<compile_context>
chip_gen: v7x
topology: tpu7x:2x2x1
jax: 0.10.0
libtpu: 0.0.40
codegen_flags: <defaults>
</compile_context>

<pallas_src>
import functools

import jax
import jax.numpy as jnp
from jax.experimental import pallas as pl
from jax.experimental.pallas import tpu as pltpu


# ----------------------------------------------------------------------------
# helpers
# ----------------------------------------------------------------------------
def _pick_rows(m: int, max_rows: int = 2048) -> int:
    """Largest row tile (full extent preferred, else a multiple of 8) dividing m."""
    if m <= max_rows:
        return m
    for t in (2048, 1024, 512, 256, 128, 64, 32, 16, 8):
        if t <= max_rows and m % t == 0:
            return t
    return m


def bn_affine_from_stats(stats, gamma, beta, count, eps=1e-5):
    """stats: (2, C) = [sum, sum-of-squares] over the batch.  Returns scale, shift.

    One-pass E[x^2]-E[x]^2 in f32 (stats are fused into the producing kernel);
    guarded against small negative variance from cancellation.  Training-mode
    (batch) statistics.
    """
    mean = stats[0] / count
    var = jnp.maximum(stats[1] / count - mean * mean, 0.0)
    scale = gamma * jax.lax.rsqrt(var + eps)
    shift = beta - mean * scale
    return scale, shift


# ----------------------------------------------------------------------------
# Pallas kernels
# ----------------------------------------------------------------------------
def _conv3x3_kernel(xw_ref, w_ref, b_ref, y_ref, st_ref, *, hw, wrow, kc):
    """3x3 conv on one image.

    xw_ref: ((H+2)*W, 3C)  -- zero-padded rows, W-direction im2col in lanes.
    w_ref : (9C, Cout), b_ref: (1, Cout)
    y_ref : (H*W, Cout)    -- conv output (+bias)
    st_ref: (1, 2, Cout)   -- per-image [sum, sum_sq] of the output (BN stats)
    """
    xw = xw_ref[...]
    acc = jnp.zeros(y_ref.shape, jnp.float32)
    for dy in range(3):  # offsets dy*W are multiples of 8 -> aligned slices
        acc = acc + jnp.dot(
            xw[dy * wrow: dy * wrow + hw, :],
            w_ref[dy * kc:(dy + 1) * kc, :],
            preferred_element_type=jnp.float32,
        )
    acc = acc + b_ref[...]
    y_ref[...] = acc.astype(y_ref.dtype)
    s1 = jnp.sum(acc, axis=0, keepdims=True)
    s2 = jnp.sum(acc * acc, axis=0, keepdims=True)
    st_ref[...] = jnp.concatenate([s1, s2], axis=0)[None]


def _matmul_stats_kernel(x_ref, w_ref, b_ref, y_ref, st_ref):
    """1x1 conv (matmul) + bias, with fused BN batch-stat accumulation."""
    acc = jnp.dot(x_ref[...], w_ref[...], preferred_element_type=jnp.float32)
    acc = acc + b_ref[...]
    y_ref[...] = acc.astype(y_ref.dtype)
    s1 = jnp.sum(acc, axis=0, keepdims=True)
    s2 = jnp.sum(acc * acc, axis=0, keepdims=True)
    st_ref[...] = jnp.concatenate([s1, s2], axis=0)[None]


def _affine_kernel(x_ref, sc_ref, sh_ref, o_ref, *, relu):
    y = x_ref[...].astype(jnp.float32) * sc_ref[...] + sh_ref[...]
    if relu:
        y = jnp.maximum(y, 0.0)
    o_ref[...] = y.astype(o_ref.dtype)


def _affine_add_kernel(x_ref, r_ref, sc_ref, sh_ref, o_ref, *, relu):
    y = (x_ref[...].astype(jnp.float32) * sc_ref[...] + sh_ref[...]
         + r_ref[...].astype(jnp.float32))
    if relu:
        y = jnp.maximum(y, 0.0)
    o_ref[...] = y.astype(o_ref.dtype)


def _maxpool_kernel(x_ref, o_ref, *, c):
    """x_ref: (rows, 4C) -- the four pixels of each 2x2 window in the lane dim."""
    x = x_ref[...]
    o_ref[...] = jnp.maximum(
        jnp.maximum(x[:, 0:c], x[:, c:2 * c]),
        jnp.maximum(x[:, 2 * c:3 * c], x[:, 3 * c:4 * c]),
    )


def _upsample_add_kernel(up_ref, low_ref, e_ref, o_ref):
    """Fused nearest-2x upsample of `low` + add to `up`.

    up_ref : (rows, 2*W*C)  -- two full-res output rows per block row
    low_ref: (rows, (W/2)*C)
    e_ref  : ((W/2)*C, W*C) -- 0/1 nearest-neighbour expansion along W
    Single full-width store (no half-lane masked partial stores).
    """
    lw = jnp.dot(low_ref[...], e_ref[...], preferred_element_type=jnp.float32)
    up = up_ref[...].astype(jnp.float32)
    o_ref[...] = (up + jnp.tile(lw, (1, 2))).astype(o_ref.dtype)


def _affine_relu_matmul2_kernel(y_ref, sc_ref, sh_ref, w_ref, b_ref,
                                o1_ref, o2_ref, *, n1):
    """Head fusion: t = relu(y*scale+shift);  [out | skip1] = t @ Wcat + bcat."""
    t = jnp.maximum(y_ref[...].astype(jnp.float32) * sc_ref[...] + sh_ref[...], 0.0)
    acc = jnp.dot(t, w_ref[...], preferred_element_type=jnp.float32) + b_ref[...]
    o1_ref[...] = acc[:, :n1].astype(o1_ref.dtype)
    o2_ref[...] = acc[:, n1:].astype(o2_ref.dtype)


def _matmul_add2_kernel(x_ref, w_ref, b_ref, a1_ref, a2_ref, o_ref):
    """res = x @ w + b + a1 + a2  (skip2 conv fused with the final 3-way add)."""
    acc = jnp.dot(x_ref[...], w_ref[...], preferred_element_type=jnp.float32)
    acc = acc + b_ref[...] + a1_ref[...].astype(jnp.float32) + a2_ref[...].astype(jnp.float32)
    o_ref[...] = acc.astype(o_ref.dtype)


# ----------------------------------------------------------------------------
# Op wrappers (XLA glue = data movement only)
# ----------------------------------------------------------------------------
def conv3x3_bias_stats(x_flat, dims, w, b):
    """3x3 conv (pad=1, stride=1) + bias, returns (y_flat, stats(2, Cout))."""
    N, H, W, C = dims
    Cout = w.shape[-1]
    x = x_flat.reshape(N, H, W, C)
    xp = jnp.pad(x, ((0, 0), (1, 1), (1, 1), (0, 0)))
    # im2col along W only (3x traffic instead of 9x); dy handled in-kernel.
    xw = jnp.concatenate([xp[:, :, dx:dx + W, :] for dx in range(3)], axis=-1)
    xw2 = xw.reshape(N * (H + 2) * W, 3 * C)
    wmat = w.reshape(9 * C, Cout)
    bmat = b.reshape(1, Cout).astype(jnp.float32)

    y, st = pl.pallas_call(
        functools.partial(_conv3x3_kernel, hw=H * W, wrow=W, kc=3 * C),
        out_shape=(
            jax.ShapeDtypeStruct((N * H * W, Cout), x_flat.dtype),
            jax.ShapeDtypeStruct((N, 2, Cout), jnp.float32),
        ),
        grid_spec=pltpu.PrefetchScalarGridSpec(
            num_scalar_prefetch=0,
            grid=(N,),
            in_specs=[
                pl.BlockSpec(((H + 2) * W, 3 * C), lambda n: (n, 0)),
                pl.BlockSpec((9 * C, Cout), lambda n: (0, 0)),
                pl.BlockSpec((1, Cout), lambda n: (0, 0)),
            ],
            out_specs=(
                pl.BlockSpec((H * W, Cout), lambda n: (n, 0)),
                pl.BlockSpec((1, 2, Cout), lambda n: (n, 0, 0)),
            ),
        ),
        compiler_params=pltpu.CompilerParams(dimension_semantics=("parallel",)),
    )(xw2, wmat, bmat)
    return y, jnp.sum(st, axis=0)


def matmul_bias_stats(x, w, b):
    """x: (M, K) @ w: (K, N) + b, with fused BN batch stats of the output."""
    M, K = x.shape
    Nc = w.shape[1]
    tm = _pick_rows(M)
    g = M // tm
    y, st = pl.pallas_call(
        _matmul_stats_kernel,
        out_shape=(
            jax.ShapeDtypeStruct((M, Nc), x.dtype),
            jax.ShapeDtypeStruct((g, 2, Nc), jnp.float32),
        ),
        grid_spec=pltpu.PrefetchScalarGridSpec(
            num_scalar_prefetch=0,
            grid=(g,),
            in_specs=[
                pl.BlockSpec((tm, K), lambda i: (i, 0)),
                pl.BlockSpec((K, Nc), lambda i: (0, 0)),
                pl.BlockSpec((1, Nc), lambda i: (0, 0)),
            ],
            out_specs=(
                pl.BlockSpec((tm, Nc), lambda i: (i, 0)),
                pl.BlockSpec((1, 2, Nc), lambda i: (i, 0, 0)),
            ),
        ),
        compiler_params=pltpu.CompilerParams(dimension_semantics=("parallel",)),
    )(x, w, b.reshape(1, Nc).astype(jnp.float32))
    return y, jnp.sum(st, axis=0)


def _dense_view(x, c):
    """(M, C) -> lane-dense (M*C//128, 128) view when possible (free reshape)."""
    m = x.shape[0]
    if 128 % c == 0 and (m * c) % 128 == 0:
        return x.reshape((m * c) // 128, 128), True
    return x, False


def _prep_chan(vec, c, dense):
    if dense:
        return jnp.tile(vec.reshape(1, c), (1, 128 // c)).astype(jnp.float32)
    return vec.reshape(1, c).astype(jnp.float32)


def affine_act(x, c, scale, shift, relu):
    """Per-channel y = x*scale + shift (optional ReLU), lane-dense layout."""
    m = x.shape[0]
    xd, dense = _dense_view(x, c)
    sc = _prep_chan(scale, c, dense)
    sh = _prep_chan(shift, c, dense)
    rows, lanes = xd.shape
    tr = _pick_rows(rows)
    out = pl.pallas_call(
        functools.partial(_affine_kernel, relu=relu),
        out_shape=jax.ShapeDtypeStruct((rows, lanes), x.dtype),
        grid_spec=pltpu.PrefetchScalarGridSpec(
            num_scalar_prefetch=0,
            grid=(rows // tr,),
            in_specs=[
                pl.BlockSpec((tr, lanes), lambda i: (i, 0)),
                pl.BlockSpec((1, lanes), lambda i: (0, 0)),
                pl.BlockSpec((1, lanes), lambda i: (0, 0)),
            ],
            out_specs=pl.BlockSpec((tr, lanes), lambda i: (i, 0)),
        ),
        compiler_params=pltpu.CompilerParams(dimension_semantics=("parallel",)),
    )(xd, sc, sh)
    return out.reshape(m, c)


def affine_add_act(x, res, c, scale, shift, relu):
    """y = relu(x*scale + shift + res) fused (BN affine + residual add + ReLU)."""
    m = x.shape[0]
    xd, dense = _dense_view(x, c)
    rd = res.reshape(xd.shape)
    sc = _prep_chan(scale, c, dense)
    sh = _prep_chan(shift, c, dense)
    rows, lanes = xd.shape
    tr = _pick_rows(rows)
    out = pl.pallas_call(
        functools.partial(_affine_add_kernel, relu=relu),
        out_shape=jax.ShapeDtypeStruct((rows, lanes), x.dtype),
        grid_spec=pltpu.PrefetchScalarGridSpec(
            num_scalar_prefetch=0,
            grid=(rows // tr,),
            in_specs=[
                pl.BlockSpec((tr, lanes), lambda i: (i, 0)),
                pl.BlockSpec((tr, lanes), lambda i: (i, 0)),
                pl.BlockSpec((1, lanes), lambda i: (0, 0)),
                pl.BlockSpec((1, lanes), lambda i: (0, 0)),
            ],
            out_specs=pl.BlockSpec((tr, lanes), lambda i: (i, 0)),
        ),
        compiler_params=pltpu.CompilerParams(dimension_semantics=("parallel",)),
    )(xd, rd, sc, sh)
    return out.reshape(m, c)


def maxpool2(x_flat, dims):
    """MaxPool2d(2, 2): one kernel; 2x2 windows regrouped into the lane dim."""
    N, H, W, C = dims
    x = x_flat.reshape(N, H // 2, 2, W // 2, 2, C)
    xt = jnp.transpose(x, (0, 1, 3, 2, 4, 5)).reshape(
        N * (H // 2) * (W // 2), 4 * C)
    rows = xt.shape[0]
    tr = _pick_rows(rows)
    return pl.pallas_call(
        functools.partial(_maxpool_kernel, c=C),
        out_shape=jax.ShapeDtypeStruct((rows, C), x_flat.dtype),
        grid_spec=pltpu.PrefetchScalarGridSpec(
            num_scalar_prefetch=0,
            grid=(rows // tr,),
            in_specs=[pl.BlockSpec((tr, 4 * C), lambda i: (i, 0))],
            out_specs=pl.BlockSpec((tr, C), lambda i: (i, 0)),
        ),
        compiler_params=pltpu.CompilerParams(dimension_semantics=("parallel",)),
    )(xt)


def upsample_add(up_flat, low_flat, dims):
    """out = up + nearest_upsample_2x(low), fused (no 4x HBM materialisation)."""
    N, H, W, C = dims
    h2, w2 = H // 2, W // 2
    up2 = up_flat.reshape(N * h2, 2 * W * C)
    low2 = low_flat.reshape(N * h2, w2 * C)
    # 0/1 expansion matrix: duplicates each W-pixel (channel-blocked) along lanes.
    # Constant under jit -> folded by XLA.
    e = jnp.kron(
        jnp.eye(w2, dtype=up_flat.dtype),
        jnp.kron(jnp.ones((1, 2), up_flat.dtype), jnp.eye(C, dtype=up_flat.dtype)),
    )
    rows = up2.shape[0]
    tr = _pick_rows(rows)
    out = pl.pallas_call(
        _upsample_add_kernel,
        out_shape=jax.ShapeDtypeStruct((rows, 2 * W * C), up_flat.dtype),
        grid_spec=pltpu.PrefetchScalarGridSpec(
            num_scalar_prefetch=0,
            grid=(rows // tr,),
            in_specs=[
                pl.BlockSpec((tr, 2 * W * C), lambda i: (i, 0)),
                pl.BlockSpec((tr, w2 * C), lambda i: (i, 0)),
                pl.BlockSpec((w2 * C, W * C), lambda i: (0, 0)),
            ],
            out_specs=pl.BlockSpec((tr, 2 * W * C), lambda i: (i, 0)),
        ),
        compiler_params=pltpu.CompilerParams(dimension_semantics=("parallel",)),
    )(up2, low2, e)
    return out.reshape(N * H * W, C)


def affine_relu_dual_matmul(y, scale, shift, wcat, bcat, n1):
    """relu(y*scale+shift) -> two 1x1 convs with concatenated weights."""
    M, K = y.shape
    Ntot = wcat.shape[1]
    n2 = Ntot - n1
    tm = _pick_rows(M)
    return pl.pallas_call(
        functools.partial(_affine_relu_matmul2_kernel, n1=n1),
        out_shape=(
            jax.ShapeDtypeStruct((M, n1), y.dtype),
            jax.ShapeDtypeStruct((M, n2), y.dtype),
        ),
        grid_spec=pltpu.PrefetchScalarGridSpec(
            num_scalar_prefetch=0,
            grid=(M // tm,),
            in_specs=[
                pl.BlockSpec((tm, K), lambda i: (i, 0)),
                pl.BlockSpec((1, K), lambda i: (0, 0)),
                pl.BlockSpec((1, K), lambda i: (0, 0)),
                pl.BlockSpec((K, Ntot), lambda i: (0, 0)),
                pl.BlockSpec((1, Ntot), lambda i: (0, 0)),
            ],
            out_specs=(
                pl.BlockSpec((tm, n1), lambda i: (i, 0)),
                pl.BlockSpec((tm, n2), lambda i: (i, 0)),
            ),
        ),
        compiler_params=pltpu.CompilerParams(dimension_semantics=("parallel",)),
    )(y, scale.reshape(1, K).astype(jnp.float32),
      shift.reshape(1, K).astype(jnp.float32),
      wcat, bcat.reshape(1, Ntot).astype(jnp.float32))


def matmul_add2(x, w, b, add1, add2):
    """x @ w + b + add1 + add2 (skip2 1x1-conv fused with the final adds)."""
    M, K = x.shape
    Nc = w.shape[1]
    tm = _pick_rows(M)
    return pl.pallas_call(
        _matmul_add2_kernel,
        out_shape=jax.ShapeDtypeStruct((M, Nc), add1.dtype),
        grid_spec=pltpu.PrefetchScalarGridSpec(
            num_scalar_prefetch=0,
            grid=(M // tm,),
            in_specs=[
                pl.BlockSpec((tm, K), lambda i: (i, 0)),
                pl.BlockSpec((K, Nc), lambda i: (0, 0)),
                pl.BlockSpec((1, Nc), lambda i: (0, 0)),
                pl.BlockSpec((tm, Nc), lambda i: (i, 0)),
                pl.BlockSpec((tm, Nc), lambda i: (i, 0)),
            ],
            out_specs=pl.BlockSpec((tm, Nc), lambda i: (i, 0)),
        ),
        compiler_params=pltpu.CompilerParams(dimension_semantics=("parallel",)),
    )(x, w, b.reshape(1, Nc).astype(jnp.float32), add1, add2)


# ----------------------------------------------------------------------------
# Module forwards (activations flow as flat (N*H*W, C) f32)
# ----------------------------------------------------------------------------
def residual_forward(p, x_flat, dims):
    # TODO(synk): ResidualBlock source not in the snippet; standard
    # conv3x3-BN-ReLU-conv3x3-BN + identity skip + ReLU is assumed (in==out).
    N, H, W, C = dims
    cnt = N * H * W
    y1, st1 = conv3x3_bias_stats(x_flat, dims, p["conv1"]["w"], p["conv1"]["b"])
    sc1, sh1 = bn_affine_from_stats(st1, p["bn1"]["g"], p["bn1"]["b"], cnt)
    h1 = affine_act(y1, C, sc1, sh1, relu=True)
    y2, st2 = conv3x3_bias_stats(h1, dims, p["conv2"]["w"], p["conv2"]["b"])
    sc2, sh2 = bn_affine_from_stats(st2, p["bn2"]["g"], p["bn2"]["b"], cnt)
    return affine_add_act(y2, x_flat, C, sc2, sh2, relu=True)


def hourglass_forward(p, x_flat, dims, levels):
    # TODO(synk): HourGlass source not in the snippet; standard recursive
    # (residual up-branch) + (pool -> residual -> recurse -> residual -> upsample).
    N, H, W, C = dims
    up = residual_forward(p["up1"], x_flat, dims)
    low = maxpool2(x_flat, dims)
    ldims = (N, H // 2, W // 2, C)
    low = residual_forward(p["low1"], low, ldims)
    if levels > 1:
        low = hourglass_forward(p["low2"], low, ldims, levels - 1)
    else:
        low = residual_forward(p["low2"], low, ldims)
    low = residual_forward(p["low3"], low, ldims)
    return upsample_add(up, low, dims)


def hgn_forward(params, x_nchw, *, levels):
    N, C, H, W = x_nchw.shape
    dims = (N, H, W, C)
    cnt = N * H * W
    x = jnp.transpose(x_nchw, (0, 2, 3, 1)).reshape(cnt, C)  # NCHW -> flat NHWC

    x1 = hourglass_forward(params["hg"], x, dims, levels)
    # self.conv = Sequential(ResidualBlock, Conv1x1, BN, ReLU)
    x1 = residual_forward(params["conv_rb"], x1, dims)
    y, st = matmul_bias_stats(x1, params["conv_1x1"]["w"], params["conv_1x1"]["b"])
    sc, sh = bn_affine_from_stats(st, params["conv_bn"]["g"], params["conv_bn"]["b"], cnt)

    # TODO(synk): SkipBlock source not in the snippet; a 1x1 conv is assumed.
    out_c = params["out"]["w"].shape[1]
    wcat = jnp.concatenate([params["out"]["w"], params["skip1"]["w"]], axis=1)
    bcat = jnp.concatenate([params["out"]["b"], params["skip1"]["b"]], axis=0)
    out_flat, s1_flat = affine_relu_dual_matmul(y, sc, sh, wcat, bcat, out_c)

    res_flat = matmul_add2(out_flat, params["skip2"]["w"], params["skip2"]["b"],
                           s1_flat, x)

    out = jnp.transpose(out_flat.reshape(N, H, W, out_c), (0, 3, 1, 2))
    res = jnp.transpose(res_flat.reshape(N, H, W, C), (0, 3, 1, 2))
    return out, res


# ----------------------------------------------------------------------------
# Deterministic parameter initialization
# ----------------------------------------------------------------------------
class ParamGen:
    def __init__(self, key):
        self.key = key

    def next(self):
        self.key, sub = jax.random.split(self.key)
        return sub


def init_conv3x3(g, cin, cout):
    w = jax.random.normal(g.next(), (3, 3, cin, cout), jnp.float32) / jnp.sqrt(9.0 * cin)
    b = 0.01 * jax.random.normal(g.next(), (cout,), jnp.float32)
    return {"w": w, "b": b}


def init_conv1x1(g, cin, cout):
    w = jax.random.normal(g.next(), (cin, cout), jnp.float32) / jnp.sqrt(1.0 * cin)
    b = 0.01 * jax.random.normal(g.next(), (cout,), jnp.float32)
    return {"w": w, "b": b}


def init_bn(c):
    return {"g": jnp.ones((c,), jnp.float32), "b": jnp.zeros((c,), jnp.float32)}


def init_residual(g, c):
    return {
        "conv1": init_conv3x3(g, c, c), "bn1": init_bn(c),
        "conv2": init_conv3x3(g, c, c), "bn2": init_bn(c),
    }


def init_hourglass(g, c, levels):
    p = {
        "up1": init_residual(g, c),
        "low1": init_residual(g, c),
        "low3": init_residual(g, c),
    }
    p["low2"] = init_hourglass(g, c, levels - 1) if levels > 1 else init_residual(g, c)
    return p


def init_hgn(key, cin, cout, levels):
    g = ParamGen(key)
    return {
        "hg": init_hourglass(g, cin, levels),
        "conv_rb": init_residual(g, cin),
        "conv_1x1": init_conv1x1(g, cin, cin),
        "conv_bn": init_bn(cin),
        "out": init_conv1x1(g, cin, cout),
        "skip1": init_conv1x1(g, cin, cin),
        "skip2": init_conv1x1(g, cout, cin),
    }


# ----------------------------------------------------------------------------
if __name__ == "__main__":
    IN_C, OUT_C, LEVELS = 8, 4, 2
    N, H, W = 2, 16, 16

    key = jax.random.PRNGKey(0)
    kp, kx = jax.random.split(key)
    params = init_hgn(kp, IN_C, OUT_C, LEVELS)
    x = jax.random.normal(kx, (N, IN_C, H, W), jnp.float32)

    fwd = jax.jit(functools.partial(hgn_forward, levels=LEVELS))
    out, res = fwd(params, x)
    jax.block_until_ready((out, res))

    assert out.shape == (N, OUT_C, H, W)
    assert res.shape == (N, IN_C, H, W)
    assert out.dtype == jnp.float32 and res.dtype == jnp.float32
    print("KERNEL_OK")
</pallas_src>

<mosaic_0001>
module attributes {stable_mosaic.version = 11 : i64} {
  func.func @_maxpool_kernel(%arg0: i32, %arg1: memref<128x32xf32, #tpu.memory_space<vmem>>, %arg2: memref<128x8xf32, #tpu.memory_space<vmem>>) attributes {dimension_semantics = [#tpu.dimension_semantics<parallel>], iteration_bounds = array<i64: 1>, scalar_prefetch = 0 : i64, scratch_operands = 0 : i64, tpu.core_type = #tpu.core_type<tc>, window_params = [{transform_indices = @transform_0, window_bounds = array<i64: 128, 32>}, {transform_indices = @transform_1, window_bounds = array<i64: 128, 8>}]} {
    %c0 = arith.constant 0 : index
    %c0_0 = arith.constant 0 : index
    %0 = vector.load %arg1[%c0, %c0_0] : memref<128x32xf32, #tpu.memory_space<vmem>>, vector<128x32xf32>
    %1 = vector.extract_strided_slice %0 {offsets = [0, 0], sizes = [128, 8], strides = [1, 1]} : vector<128x32xf32> to vector<128x8xf32>
    %2 = vector.extract_strided_slice %0 {offsets = [0, 8], sizes = [128, 8], strides = [1, 1]} : vector<128x32xf32> to vector<128x8xf32>
    %3 = arith.maximumf %1, %2 : vector<128x8xf32>
    %4 = vector.extract_strided_slice %0 {offsets = [0, 16], sizes = [128, 8], strides = [1, 1]} : vector<128x32xf32> to vector<128x8xf32>
    %5 = vector.extract_strided_slice %0 {offsets = [0, 24], sizes = [128, 8], strides = [1, 1]} : vector<128x32xf32> to vector<128x8xf32>
    %6 = arith.maximumf %4, %5 : vector<128x8xf32>
    %7 = arith.maximumf %3, %6 : vector<128x8xf32>
    %c0_1 = arith.constant 0 : index
    %c0_2 = arith.constant 0 : index
    %8 = vector.load %arg2[%c0_1, %c0_2] : memref<128x8xf32, #tpu.memory_space<vmem>>, vector<128x8xf32>
    tpu.vector_store %arg2[%c0_1, %c0_2], %7 {strides = array<i32>} : memref<128x8xf32, #tpu.memory_space<vmem>>, vector<128x8xf32>,
    return
  }
  func.func @transform_0(%arg0: i32) -> (i32, i32) {
    %c0_i32 = arith.constant 0 : i32
    %c0_i32_0 = arith.constant 0 : i32
    return %arg0, %c0_i32 : i32, i32
  }
  func.func @transform_1(%arg0: i32) -> (i32, i32) {
    %c0_i32 = arith.constant 0 : i32
    %c0_i32_0 = arith.constant 0 : i32
    return %arg0, %c0_i32 : i32, i32
  }
}

module attributes {stable_mosaic.version = 11 : i64} {
  func.func @_conv3x3_kernel(%arg0: i32, %arg1: memref<80x24xf32, #tpu.memory_space<vmem>>, %arg2: memref<72x8xf32, #tpu.memory_space<vmem>>, %arg3: memref<1x8xf32, #tpu.memory_space<vmem>>, %arg4: memref<64x8xf32, #tpu.memory_space<vmem>>, %arg5: memref<1x2x8xf32, #tpu.memory_space<vmem>>) attributes {dimension_semantics = [#tpu.dimension_semantics<parallel>], iteration_bounds = array<i64: 2>, scalar_prefetch = 0 : i64, scratch_operands = 0 : i64, tpu.core_type = #tpu.core_type<tc>, window_params = [{transform_indices = @transform_0, window_bounds = array<i64: 80, 24>}, {pipeline_mode = #tpu.pipeline_mode<synchronous>, transform_indices = @transform_1, window_bounds = array<i64: 72, 8>}, {pipeline_mode = #tpu.pipeline_mode<synchronous>, transform_indices = @transform_2, window_bounds = array<i64: 1, 8>}, {transform_indices = @transform_3, window_bounds = array<i64: 64, 8>}, {transform_indices = @transform_4, window_bounds = array<i64: 1, 2, 8>}]} {
    %c0 = arith.constant 0 : index
    %c0_0 = arith.constant 0 : index
    %0 = vector.load %arg1[%c0, %c0_0] : memref<80x24xf32, #tpu.memory_space<vmem>>, vector<80x24xf32>
    %cst = arith.constant 0.000000e+00 : f32
    %1 = vector.broadcast %cst : f32 to vector<64x8xf32>
    %2 = vector.extract_strided_slice %0 {offsets = [0, 0], sizes = [64, 24], strides = [1, 1]} : vector<80x24xf32> to vector<64x24xf32>
    %c0_1 = arith.constant 0 : index
    %c0_2 = arith.constant 0 : index
    %3 = vector.load %arg2[%c0_1, %c0_2] : memref<72x8xf32, #tpu.memory_space<vmem>>, vector<24x8xf32>
    %cst_3 = arith.constant dense<0.000000e+00> : vector<64x8xf32>
    %4 = tpu.matmul %2, %3, %cst_3 {dimension_numbers = #tpu.dot_dimension_numbers<[1], [0], [0], [1], [0, 0, 1, 1], [], []>} : vector<64x24xf32>, vector<24x8xf32>, vector<64x8xf32> -> vector<64x8xf32>
    %5 = arith.addf %1, %4 : vector<64x8xf32>
    %6 = vector.extract_strided_slice %0 {offsets = [8, 0], sizes = [64, 24], strides = [1, 1]} : vector<80x24xf32> to vector<64x24xf32>
    %c24 = arith.constant 24 : index
    %c0_4 = arith.constant 0 : index
    %7 = vector.load %arg2[%c24, %c0_4] : memref<72x8xf32, #tpu.memory_space<vmem>>, vector<24x8xf32>
    %cst_5 = arith.constant dense<0.000000e+00> : vector<64x8xf32>
    %8 = tpu.matmul %6, %7, %cst_5 {dimension_numbers = #tpu.dot_dimension_numbers<[1], [0], [0], [1], [0, 0, 1, 1], [], []>} : vector<64x24xf32>, vector<24x8xf32>, vector<64x8xf32> -> vector<64x8xf32>
    %9 = arith.addf %5, %8 : vector<64x8xf32>
    %10 = vector.extract_strided_slice %0 {offsets = [16, 0], sizes = [64, 24], strides = [1, 1]} : vector<80x24xf32> to vector<64x24xf32>
    %c48 = arith.constant 48 : index
    %c0_6 = arith.constant 0 : index
    %11 = vector.load %arg2[%c48, %c0_6] : memref<72x8xf32, #tpu.memory_space<vmem>>, vector<24x8xf32>
    %cst_7 = arith.constant dense<0.000000e+00> : vector<64x8xf32>
    %12 = tpu.matmul %10, %11, %cst_7 {dimension_numbers = #tpu.dot_dimension_numbers<[1], [0], [0], [1], [0, 0, 1, 1], [], []>} : vector<64x24xf32>, vector<24x8xf32>, vector<64x8xf32> -> vector<64x8xf32>
    %13 = arith.addf %9, %12 : vector<64x8xf32>
    %c0_8 = arith.constant 0 : index
    %c0_9 = arith.constant 0 : index
    %14 = vector.load %arg3[%c0_8, %c0_9] : memref<1x8xf32, #tpu.memory_space<vmem>>, vector<1x8xf32>
    %15 = vector.broadcast %14 : vector<1x8xf32> to vector<64x8xf32>
    %16 = arith.addf %13, %15 : vector<64x8xf32>
    %c0_10 = arith.constant 0 : index
    %c0_11 = arith.constant 0 : index
    %17 = vector.load %arg4[%c0_10, %c0_11] : memref<64x8xf32, #tpu.memory_space<vmem>>, vector<64x8xf32>
    tpu.vector_store %arg4[%c0_10, %c0_11], %16 {strides = array<i32>} : memref<64x8xf32, #tpu.memory_space<vmem>>, vector<64x8xf32>,
    %cst_12 = arith.constant dense<0.000000e+00> : vector<8xf32>
    %18 = vector.multi_reduction <add>, %16, %cst_12 [0] : vector<64x8xf32> to vector<8xf32>
    %19 = vector.shape_cast %18 : vector<8xf32> to vector<1x8xf32>
    %20 = arith.mulf %16, %16 : vector<64x8xf32>
    %cst_13 = arith.constant dense<0.000000e+00> : vector<8xf32>
    %21 = vector.multi_reduction <add>, %20, %cst_13 [0] : vector<64x8xf32> to vector<8xf32>
    %22 = vector.shape_cast %21 : vector<8xf32> to vector<1x8xf32>
    %23 = tpu.concatenate %19, %22 in 0 : vector<1x8xf32>, vector<1x8xf32> -> vector<2x8xf32>
    %24 = vector.shape_cast %23 : vector<2x8xf32> to vector<1x2x8xf32>
    %c0_14 = arith.constant 0 : index
    %c0_15 = arith.constant 0 : index
    %c0_16 = arith.constant 0 : index
    %25 = vector.load %arg5[%c0_14, %c0_15, %c0_16] : memref<1x2x8xf32, #tpu.memory_space<vmem>>, vector<1x2x8xf32>
    tpu.vector_store %arg5[%c0_14, %c0_15, %c0_16], %24 {strides = array<i32>} : memref<1x2x8xf32, #tpu.memory_space<vmem>>, vector<1x2x8xf32>,
    return
  }
  func.func @transform_0(%arg0: i32) -> (i32, i32) {
    %c0_i32 = arith.constant 0 : i32
    %c0_i32_0 = arith.constant 0 : i32
    return %arg0, %c0_i32 : i32, i32
  }
  func.func @transform_1(%arg0: i32) -> (i32, i32) {
    %c0_i32 = arith.constant 0 : i32
    %c0_i32_0 = arith.constant 0 : i32
    %c0_i32_1 = arith.constant 0 : i32
    return %c0_i32, %c0_i32_0 : i32, i32
  }
  func.func @transform_2(%arg0: i32) -> (i32, i32) {
    %c0_i32 = arith.constant 0 : i32
    %c0_i32_0 = arith.constant 0 : i32
    %c0_i32_1 = arith.constant 0 : i32
    return %c0_i32, %c0_i32_0 : i32, i32
  }
  func.func @transform_3(%arg0: i32) -> (i32, i32) {
    %c0_i32 = arith.constant 0 : i32
    %c0_i32_0 = arith.constant 0 : i32
    return %arg0, %c0_i32 : i32, i32
  }
  func.func @transform_4(%arg0: i32) -> (i32, i32, i32) {
    %c0_i32 = arith.constant 0 : i32
    %c0_i32_0 = arith.constant 0 : i32
    %c0_i32_1 = arith.constant 0 : i32
    return %arg0, %c0_i32, %c0_i32_0 : i32, i32, i32
  }
}

module attributes {stable_mosaic.version = 11 : i64} {
  func.func @_affine_kernel(%arg0: i32, %arg1: memref<8x128xf32, #tpu.memory_space<vmem>>, %arg2: memref<1x128xf32, #tpu.memory_space<vmem>>, %arg3: memref<1x128xf32, #tpu.memory_space<vmem>>, %arg4: memref<8x128xf32, #tpu.memory_space<vmem>>) attributes {dimension_semantics = [#tpu.dimension_semantics<parallel>], iteration_bounds = array<i64: 1>, scalar_prefetch = 0 : i64, scratch_operands = 0 : i64, tpu.core_type = #tpu.core_type<tc>, window_params = [{transform_indices = @transform_0, window_bounds = array<i64: 8, 128>}, {pipeline_mode = #tpu.pipeline_mode<synchronous>, transform_indices = @transform_1, window_bounds = array<i64: 1, 128>}, {pipeline_mode = #tpu.pipeline_mode<synchronous>, transform_indices = @transform_2, window_bounds = array<i64: 1, 128>}, {transform_indices = @transform_3, window_bounds = array<i64: 8, 128>}]} {
    %c0 = arith.constant 0 : index
    %c0_0 = arith.constant 0 : index
    %0 = vector.load %arg1[%c0, %c0_0] : memref<8x128xf32, #tpu.memory_space<vmem>>, vector<8x128xf32>
    %c0_1 = arith.constant 0 : index
    %c0_2 = arith.constant 0 : index
    %1 = vector.load %arg2[%c0_1, %c0_2] : memref<1x128xf32, #tpu.memory_space<vmem>>, vector<1x128xf32>
    %2 = vector.broadcast %1 : vector<1x128xf32> to vector<8x128xf32>
    %3 = arith.mulf %0, %2 : vector<8x128xf32>
    %c0_3 = arith.constant 0 : index
    %c0_4 = arith.constant 0 : index
    %4 = vector.load %arg3[%c0_3, %c0_4] : memref<1x128xf32, #tpu.memory_space<vmem>>, vector<1x128xf32>
    %5 = vector.broadcast %4 : vector<1x128xf32> to vector<8x128xf32>
    %6 = arith.addf %3, %5 : vector<8x128xf32>
    %cst = arith.constant 0.000000e+00 : f32
    %7 = vector.broadcast %cst : f32 to vector<8x128xf32>
    %8 = arith.maximumf %6, %7 : vector<8x128xf32>
    %c0_5 = arith.constant 0 : index
    %c0_6 = arith.constant 0 : index
    %9 = vector.load %arg4[%c0_5, %c0_6] : memref<8x128xf32, #tpu.memory_space<vmem>>, vector<8x128xf32>
    tpu.vector_store %arg4[%c0_5, %c0_6], %8 {strides = array<i32>} : memref<8x128xf32, #tpu.memory_space<vmem>>, vector<8x128xf32>,
    return
  }
  func.func @transform_0(%arg0: i32) -> (i32, i32) {
    %c0_i32 = arith.constant 0 : i32
    %c0_i32_0 = arith.constant 0 : i32
    return %arg0, %c0_i32 : i32, i32
  }
  func.func @transform_1(%arg0: i32) -> (i32, i32) {
    %c0_i32 = arith.constant 0 : i32
    %c0_i32_0 = arith.constant 0 : i32
    %c0_i32_1 = arith.constant 0 : i32
    return %c0_i32, %c0_i32_0 : i32, i32
  }
  func.func @transform_2(%arg0: i32) -> (i32, i32) {
    %c0_i32 = arith.constant 0 : i32
    %c0_i32_0 = arith.constant 0 : i32
    %c0_i32_1 = arith.constant 0 : i32
    return %c0_i32, %c0_i32_0 : i32, i32
  }
  func.func @transform_3(%arg0: i32) -> (i32, i32) {
    %c0_i32 = arith.constant 0 : i32
    %c0_i32_0 = arith.constant 0 : i32
    return %arg0, %c0_i32 : i32, i32
  }
}

module attributes {stable_mosaic.version = 11 : i64} {
  func.func @_affine_add_kernel(%arg0: i32, %arg1: memref<8x128xf32, #tpu.memory_space<vmem>>, %arg2: memref<8x128xf32, #tpu.memory_space<vmem>>, %arg3: memref<1x128xf32, #tpu.memory_space<vmem>>, %arg4: memref<1x128xf32, #tpu.memory_space<vmem>>, %arg5: memref<8x128xf32, #tpu.memory_space<vmem>>) attributes {dimension_semantics = [#tpu.dimension_semantics<parallel>], iteration_bounds = array<i64: 1>, scalar_prefetch = 0 : i64, scratch_operands = 0 : i64, tpu.core_type = #tpu.core_type<tc>, window_params = [{transform_indices = @transform_0, window_bounds = array<i64: 8, 128>}, {transform_indices = @transform_1, window_bounds = array<i64: 8, 128>}, {pipeline_mode = #tpu.pipeline_mode<synchronous>, transform_indices = @transform_2, window_bounds = array<i64: 1, 128>}, {pipeline_mode = #tpu.pipeline_mode<synchronous>, transform_indices = @transform_3, window_bounds = array<i64: 1, 128>}, {transform_indices = @transform_4, window_bounds = array<i64: 8, 128>}]} {
    %c0 = arith.constant 0 : index
    %c0_0 = arith.constant 0 : index
    %0 = vector.load %arg1[%c0, %c0_0] : memref<8x128xf32, #tpu.memory_space<vmem>>, vector<8x128xf32>
    %c0_1 = arith.constant 0 : index
    %c0_2 = arith.constant 0 : index
    %1 = vector.load %arg3[%c0_1, %c0_2] : memref<1x128xf32, #tpu.memory_space<vmem>>, vector<1x128xf32>
    %2 = vector.broadcast %1 : vector<1x128xf32> to vector<8x128xf32>
    %3 = arith.mulf %0, %2 : vector<8x128xf32>
    %c0_3 = arith.constant 0 : index
    %c0_4 = arith.constant 0 : index
    %4 = vector.load %arg4[%c0_3, %c0_4] : memref<1x128xf32, #tpu.memory_space<vmem>>, vector<1x128xf32>
    %5 = vector.broadcast %4 : vector<1x128xf32> to vector<8x128xf32>
    %6 = arith.addf %3, %5 : vector<8x128xf32>
    %c0_5 = arith.constant 0 : index
    %c0_6 = arith.constant 0 : index
    %7 = vector.load %arg2[%c0_5, %c0_6] : memref<8x128xf32, #tpu.memory_space<vmem>>, vector<8x128xf32>
    %8 = arith.addf %6, %7 : vector<8x128xf32>
    %cst = arith.constant 0.000000e+00 : f32
    %9 = vector.broadcast %cst : f32 to vector<8x128xf32>
    %10 = arith.maximumf %8, %9 : vector<8x128xf32>
    %c0_7 = arith.constant 0 : index
    %c0_8 = arith.constant 0 : index
    %11 = vector.load %arg5[%c0_7, %c0_8] : memref<8x128xf32, #tpu.memory_space<vmem>>, vector<8x128xf32>
    tpu.vector_store %arg5[%c0_7, %c0_8], %10 {strides = array<i32>} : memref<8x128xf32, #tpu.memory_space<vmem>>, vector<8x128xf32>,
    return
  }
  func.func @transform_0(%arg0: i32) -> (i32, i32) {
    %c0_i32 = arith.constant 0 : i32
    %c0_i32_0 = arith.constant 0 : i32
    return %arg0, %c0_i32 : i32, i32
  }
  func.func @transform_1(%arg0: i32) -> (i32, i32) {
    %c0_i32 = arith.constant 0 : i32
    %c0_i32_0 = arith.constant 0 : i32
    return %arg0, %c0_i32 : i32, i32
  }
  func.func @transform_2(%arg0: i32) -> (i32, i32) {
    %c0_i32 = arith.constant 0 : i32
    %c0_i32_0 = arith.constant 0 : i32
    %c0_i32_1 = arith.constant 0 : i32
    return %c0_i32, %c0_i32_0 : i32, i32
  }
  func.func @transform_3(%arg0: i32) -> (i32, i32) {
    %c0_i32 = arith.constant 0 : i32
    %c0_i32_0 = arith.constant 0 : i32
    %c0_i32_1 = arith.constant 0 : i32
    return %c0_i32, %c0_i32_0 : i32, i32
  }
  func.func @transform_4(%arg0: i32) -> (i32, i32) {
    %c0_i32 = arith.constant 0 : i32
    %c0_i32_0 = arith.constant 0 : i32
    return %arg0, %c0_i32 : i32, i32
  }
}

module attributes {stable_mosaic.version = 11 : i64} {
  func.func @_maxpool_kernel(%arg0: i32, %arg1: memref<32x32xf32, #tpu.memory_space<vmem>>, %arg2: memref<32x8xf32, #tpu.memory_space<vmem>>) attributes {dimension_semantics = [#tpu.dimension_semantics<parallel>], iteration_bounds = array<i64: 1>, scalar_prefetch = 0 : i64, scratch_operands = 0 : i64, tpu.core_type = #tpu.core_type<tc>, window_params = [{transform_indices = @transform_0, window_bounds = array<i64: 32, 32>}, {transform_indices = @transform_1, window_bounds = array<i64: 32, 8>}]} {
    %c0 = arith.constant 0 : index
    %c0_0 = arith.constant 0 : index
    %0 = vector.load %arg1[%c0, %c0_0] : memref<32x32xf32, #tpu.memory_space<vmem>>, vector<32x32xf32>
    %1 = vector.extract_strided_slice %0 {offsets = [0, 0], sizes = [32, 8], strides = [1, 1]} : vector<32x32xf32> to vector<32x8xf32>
    %2 = vector.extract_strided_slice %0 {offsets = [0, 8], sizes = [32, 8], strides = [1, 1]} : vector<32x32xf32> to vector<32x8xf32>
    %3 = arith.maximumf %1, %2 : vector<32x8xf32>
    %4 = vector.extract_strided_slice %0 {offsets = [0, 16], sizes = [32, 8], strides = [1, 1]} : vector<32x32xf32> to vector<32x8xf32>
    %5 = vector.extract_strided_slice %0 {offsets = [0, 24], sizes = [32, 8], strides = [1, 1]} : vector<32x32xf32> to vector<32x8xf32>
    %6 = arith.maximumf %4, %5 : vector<32x8xf32>
    %7 = arith.maximumf %3, %6 : vector<32x8xf32>
    %c0_1 = arith.constant 0 : index
    %c0_2 = arith.constant 0 : index
    %8 = vector.load %arg2[%c0_1, %c0_2] : memref<32x8xf32, #tpu.memory_space<vmem>>, vector<32x8xf32>
    tpu.vector_store %arg2[%c0_1, %c0_2], %7 {strides = array<i32>} : memref<32x8xf32, #tpu.memory_space<vmem>>, vector<32x8xf32>,
    return
  }
  func.func @transform_0(%arg0: i32) -> (i32, i32) {
    %c0_i32 = arith.constant 0 : i32
    %c0_i32_0 = arith.constant 0 : i32
    return %arg0, %c0_i32 : i32, i32
  }
  func.func @transform_1(%arg0: i32) -> (i32, i32) {
    %c0_i32 = arith.constant 0 : i32
    %c0_i32_0 = arith.constant 0 : i32
    return %arg0, %c0_i32 : i32, i32
  }
}

module attributes {stable_mosaic.version = 11 : i64} {
  func.func @_conv3x3_kernel(%arg0: i32, %arg1: memref<24x24xf32, #tpu.memory_space<vmem>>, %arg2: memref<72x8xf32, #tpu.memory_space<vmem>>, %arg3: memref<1x8xf32, #tpu.memory_space<vmem>>, %arg4: memref<16x8xf32, #tpu.memory_space<vmem>>, %arg5: memref<1x2x8xf32, #tpu.memory_space<vmem>>) attributes {dimension_semantics = [#tpu.dimension_semantics<parallel>], iteration_bounds = array<i64: 2>, scalar_prefetch = 0 : i64, scratch_operands = 0 : i64, tpu.core_type = #tpu.core_type<tc>, window_params = [{transform_indices = @transform_0, window_bounds = array<i64: 24, 24>}, {pipeline_mode = #tpu.pipeline_mode<synchronous>, transform_indices = @transform_1, window_bounds = array<i64: 72, 8>}, {pipeline_mode = #tpu.pipeline_mode<synchronous>, transform_indices = @transform_2, window_bounds = array<i64: 1, 8>}, {transform_indices = @transform_3, window_bounds = array<i64: 16, 8>}, {transform_indices = @transform_4, window_bounds = array<i64: 1, 2, 8>}]} {
    %c0 = arith.constant 0 : index
    %c0_0 = arith.constant 0 : index
    %0 = vector.load %arg1[%c0, %c0_0] : memref<24x24xf32, #tpu.memory_space<vmem>>, vector<24x24xf32>
    %cst = arith.constant 0.000000e+00 : f32
    %1 = vector.broadcast %cst : f32 to vector<16x8xf32>
    %2 = vector.extract_strided_slice %0 {offsets = [0, 0], sizes = [16, 24], strides = [1, 1]} : vector<24x24xf32> to vector<16x24xf32>
    %c0_1 = arith.constant 0 : index
    %c0_2 = arith.constant 0 : index
    %3 = vector.load %arg2[%c0_1, %c0_2] : memref<72x8xf32, #tpu.memory_space<vmem>>, vector<24x8xf32>
    %cst_3 = arith.constant dense<0.000000e+00> : vector<16x8xf32>
    %4 = tpu.matmul %2, %3, %cst_3 {dimension_numbers = #tpu.dot_dimension_numbers<[1], [0], [0], [1], [0, 0, 1, 1], [], []>} : vector<16x24xf32>, vector<24x8xf32>, vector<16x8xf32> -> vector<16x8xf32>
    %5 = arith.addf %1, %4 : vector<16x8xf32>
    %6 = vector.extract_strided_slice %0 {offsets = [4, 0], sizes = [16, 24], strides = [1, 1]} : vector<24x24xf32> to vector<16x24xf32>
    %c24 = arith.constant 24 : index
    %c0_4 = arith.constant 0 : index
    %7 = vector.load %arg2[%c24, %c0_4] : memref<72x8xf32, #tpu.memory_space<vmem>>, vector<24x8xf32>
    %cst_5 = arith.constant dense<0.000000e+00> : vector<16x8xf32>
    %8 = tpu.matmul %6, %7, %cst_5 {dimension_numbers = #tpu.dot_dimension_numbers<[1], [0], [0], [1], [0, 0, 1, 1], [], []>} : vector<16x24xf32>, vector<24x8xf32>, vector<16x8xf32> -> vector<16x8xf32>
    %9 = arith.addf %5, %8 : vector<16x8xf32>
    %10 = vector.extract_strided_slice %0 {offsets = [8, 0], sizes = [16, 24], strides = [1, 1]} : vector<24x24xf32> to vector<16x24xf32>
    %c48 = arith.constant 48 : index
    %c0_6 = arith.constant 0 : index
    %11 = vector.load %arg2[%c48, %c0_6] : memref<72x8xf32, #tpu.memory_space<vmem>>, vector<24x8xf32>
    %cst_7 = arith.constant dense<0.000000e+00> : vector<16x8xf32>
    %12 = tpu.matmul %10, %11, %cst_7 {dimension_numbers = #tpu.dot_dimension_numbers<[1], [0], [0], [1], [0, 0, 1, 1], [], []>} : vector<16x24xf32>, vector<24x8xf32>, vector<16x8xf32> -> vector<16x8xf32>
    %13 = arith.addf %9, %12 : vector<16x8xf32>
    %c0_8 = arith.constant 0 : index
    %c0_9 = arith.constant 0 : index
    %14 = vector.load %arg3[%c0_8, %c0_9] : memref<1x8xf32, #tpu.memory_space<vmem>>, vector<1x8xf32>
    %15 = vector.broadcast %14 : vector<1x8xf32> to vector<16x8xf32>
    %16 = arith.addf %13, %15 : vector<16x8xf32>
    %c0_10 = arith.constant 0 : index
    %c0_11 = arith.constant 0 : index
    %17 = vector.load %arg4[%c0_10, %c0_11] : memref<16x8xf32, #tpu.memory_space<vmem>>, vector<16x8xf32>
    tpu.vector_store %arg4[%c0_10, %c0_11], %16 {strides = array<i32>} : memref<16x8xf32, #tpu.memory_space<vmem>>, vector<16x8xf32>,
    %cst_12 = arith.constant dense<0.000000e+00> : vector<8xf32>
    %18 = vector.multi_reduction <add>, %16, %cst_12 [0] : vector<16x8xf32> to vector<8xf32>
    %19 = vector.shape_cast %18 : vector<8xf32> to vector<1x8xf32>
    %20 = arith.mulf %16, %16 : vector<16x8xf32>
    %cst_13 = arith.constant dense<0.000000e+00> : vector<8xf32>
    %21 = vector.multi_reduction <add>, %20, %cst_13 [0] : vector<16x8xf32> to vector<8xf32>
    %22 = vector.shape_cast %21 : vector<8xf32> to vector<1x8xf32>
    %23 = tpu.concatenate %19, %22 in 0 : vector<1x8xf32>, vector<1x8xf32> -> vector<2x8xf32>
    %24 = vector.shape_cast %23 : vector<2x8xf32> to vector<1x2x8xf32>
    %c0_14 = arith.constant 0 : index
    %c0_15 = arith.constant 0 : index
    %c0_16 = arith.constant 0 : index
    %25 = vector.load %arg5[%c0_14, %c0_15, %c0_16] : memref<1x2x8xf32, #tpu.memory_space<vmem>>, vector<1x2x8xf32>
    tpu.vector_store %arg5[%c0_14, %c0_15, %c0_16], %24 {strides = array<i32>} : memref<1x2x8xf32, #tpu.memory_space<vmem>>, vector<1x2x8xf32>,
    return
  }
  func.func @transform_0(%arg0: i32) -> (i32, i32) {
    %c0_i32 = arith.constant 0 : i32
    %c0_i32_0 = arith.constant 0 : i32
    return %arg0, %c0_i32 : i32, i32
  }
  func.func @transform_1(%arg0: i32) -> (i32, i32) {
    %c0_i32 = arith.constant 0 : i32
    %c0_i32_0 = arith.constant 0 : i32
    %c0_i32_1 = arith.constant 0 : i32
    return %c0_i32, %c0_i32_0 : i32, i32
  }
  func.func @transform_2(%arg0: i32) -> (i32, i32) {
    %c0_i32 = arith.constant 0 : i32
    %c0_i32_0 = arith.constant 0 : i32
    %c0_i32_1 = arith.constant 0 : i32
    return %c0_i32, %c0_i32_0 : i32, i32
  }
  func.func @transform_3(%arg0: i32) -> (i32, i32) {
    %c0_i32 = arith.constant 0 : i32
    %c0_i32_0 = arith.constant 0 : i32
    return %arg0, %c0_i32 : i32, i32
  }
  func.func @transform_4(%arg0: i32) -> (i32, i32, i32) {
    %c0_i32 = arith.constant 0 : i32
    %c0_i32_0 = arith.constant 0 : i32
    %c0_i32_1 = arith.constant 0 : i32
    return %arg0, %c0_i32, %c0_i32_0 : i32, i32, i32
  }
}

module attributes {stable_mosaic.version = 11 : i64} {
  func.func @_affine_add_kernel(%arg0: i32, %arg1: memref<2x128xf32, #tpu.memory_space<vmem>>, %arg2: memref<2x128xf32, #tpu.memory_space<vmem>>, %arg3: memref<1x128xf32, #tpu.memory_space<vmem>>, %arg4: memref<1x128xf32, #tpu.memory_space<vmem>>, %arg5: memref<2x128xf32, #tpu.memory_space<vmem>>) attributes {dimension_semantics = [#tpu.dimension_semantics<parallel>], iteration_bounds = array<i64: 1>, scalar_prefetch = 0 : i64, scratch_operands = 0 : i64, tpu.core_type = #tpu.core_type<tc>, window_params = [{transform_indices = @transform_0, window_bounds = array<i64: 2, 128>}, {transform_indices = @transform_1, window_bounds = array<i64: 2, 128>}, {pipeline_mode = #tpu.pipeline_mode<synchronous>, transform_indices = @transform_2, window_bounds = array<i64: 1, 128>}, {pipeline_mode = #tpu.pipeline_mode<synchronous>, transform_indices = @transform_3, window_bounds = array<i64: 1, 128>}, {transform_indices = @transform_4, window_bounds = array<i64: 2, 128>}]} {
    %c0 = arith.constant 0 : index
    %c0_0 = arith.constant 0 : index
    %0 = vector.load %arg1[%c0, %c0_0] : memref<2x128xf32, #tpu.memory_space<vmem>>, vector<2x128xf32>
    %c0_1 = arith.constant 0 : index
    %c0_2 = arith.constant 0 : index
    %1 = vector.load %arg3[%c0_1, %c0_2] : memref<1x128xf32, #tpu.memory_space<vmem>>, vector<1x128xf32>
    %2 = vector.broadcast %1 : vector<1x128xf32> to vector<2x128xf32>
    %3 = arith.mulf %0, %2 : vector<2x128xf32>
    %c0_3 = arith.constant 0 : index
    %c0_4 = arith.constant 0 : index
    %4 = vector.load %arg4[%c0_3, %c0_4] : memref<1x128xf32, #tpu.memory_space<vmem>>, vector<1x128xf32>
    %5 = vector.broadcast %4 : vector<1x128xf32> to vector<2x128xf32>
    %6 = arith.addf %3, %5 : vector<2x128xf32>
    %c0_5 = arith.constant 0 : index
    %c0_6 = arith.constant 0 : index
    %7 = vector.load %arg2[%c0_5, %c0_6] : memref<2x128xf32, #tpu.memory_space<vmem>>, vector<2x128xf32>
    %8 = arith.addf %6, %7 : vector<2x128xf32>
    %cst = arith.constant 0.000000e+00 : f32
    %9 = vector.broadcast %cst : f32 to vector<2x128xf32>
    %10 = arith.maximumf %8, %9 : vector<2x128xf32>
    %c0_7 = arith.constant 0 : index
    %c0_8 = arith.constant 0 : index
    %11 = vector.load %arg5[%c0_7, %c0_8] : memref<2x128xf32, #tpu.memory_space<vmem>>, vector<2x128xf32>
    tpu.vector_store %arg5[%c0_7, %c0_8], %10 {strides = array<i32>} : memref<2x128xf32, #tpu.memory_space<vmem>>, vector<2x128xf32>,
    return
  }
  func.func @transform_0(%arg0: i32) -> (i32, i32) {
    %c0_i32 = arith.constant 0 : i32
    %c0_i32_0 = arith.constant 0 : i32
    return %arg0, %c0_i32 : i32, i32
  }
  func.func @transform_1(%arg0: i32) -> (i32, i32) {
    %c0_i32 = arith.constant 0 : i32
    %c0_i32_0 = arith.constant 0 : i32
    return %arg0, %c0_i32 : i32, i32
  }
  func.func @transform_2(%arg0: i32) -> (i32, i32) {
    %c0_i32 = arith.constant 0 : i32
    %c0_i32_0 = arith.constant 0 : i32
    %c0_i32_1 = arith.constant 0 : i32
    return %c0_i32, %c0_i32_0 : i32, i32
  }
  func.func @transform_3(%arg0: i32) -> (i32, i32) {
    %c0_i32 = arith.constant 0 : i32
    %c0_i32_0 = arith.constant 0 : i32
    %c0_i32_1 = arith.constant 0 : i32
    return %c0_i32, %c0_i32_0 : i32, i32
  }
  func.func @transform_4(%arg0: i32) -> (i32, i32) {
    %c0_i32 = arith.constant 0 : i32
    %c0_i32_0 = arith.constant 0 : i32
    return %arg0, %c0_i32 : i32, i32
  }
}

module attributes {stable_mosaic.version = 11 : i64} {
  func.func @_affine_kernel(%arg0: i32, %arg1: memref<2x128xf32, #tpu.memory_space<vmem>>, %arg2: memref<1x128xf32, #tpu.memory_space<vmem>>, %arg3: memref<1x128xf32, #tpu.memory_space<vmem>>, %arg4: memref<2x128xf32, #tpu.memory_space<vmem>>) attributes {dimension_semantics = [#tpu.dimension_semantics<parallel>], iteration_bounds = array<i64: 1>, scalar_prefetch = 0 : i64, scratch_operands = 0 : i64, tpu.core_type = #tpu.core_type<tc>, window_params = [{transform_indices = @transform_0, window_bounds = array<i64: 2, 128>}, {pipeline_mode = #tpu.pipeline_mode<synchronous>, transform_indices = @transform_1, window_bounds = array<i64: 1, 128>}, {pipeline_mode = #tpu.pipeline_mode<synchronous>, transform_indices = @transform_2, window_bounds = array<i64: 1, 128>}, {transform_indices = @transform_3, window_bounds = array<i64: 2, 128>}]} {
    %c0 = arith.constant 0 : index
    %c0_0 = arith.constant 0 : index
    %0 = vector.load %arg1[%c0, %c0_0] : memref<2x128xf32, #tpu.memory_space<vmem>>, vector<2x128xf32>
    %c0_1 = arith.constant 0 : index
    %c0_2 = arith.constant 0 : index
    %1 = vector.load %arg2[%c0_1, %c0_2] : memref<1x128xf32, #tpu.memory_space<vmem>>, vector<1x128xf32>
    %2 = vector.broadcast %1 : vector<1x128xf32> to vector<2x128xf32>
    %3 = arith.mulf %0, %2 : vector<2x128xf32>
    %c0_3 = arith.constant 0 : index
    %c0_4 = arith.constant 0 : index
    %4 = vector.load %arg3[%c0_3, %c0_4] : memref<1x128xf32, #tpu.memory_space<vmem>>, vector<1x128xf32>
    %5 = vector.broadcast %4 : vector<1x128xf32> to vector<2x128xf32>
    %6 = arith.addf %3, %5 : vector<2x128xf32>
    %cst = arith.constant 0.000000e+00 : f32
    %7 = vector.broadcast %cst : f32 to vector<2x128xf32>
    %8 = arith.maximumf %6, %7 : vector<2x128xf32>
    %c0_5 = arith.constant 0 : index
    %c0_6 = arith.constant 0 : index
    %9 = vector.load %arg4[%c0_5, %c0_6] : memref<2x128xf32, #tpu.memory_space<vmem>>, vector<2x128xf32>
    tpu.vector_store %arg4[%c0_5, %c0_6], %8 {strides = array<i32>} : memref<2x128xf32, #tpu.memory_space<vmem>>, vector<2x128xf32>,
    return
  }
  func.func @transform_0(%arg0: i32) -> (i32, i32) {
    %c0_i32 = arith.constant 0 : i32
    %c0_i32_0 = arith.constant 0 : i32
    return %arg0, %c0_i32 : i32, i32
  }
  func.func @transform_1(%arg0: i32) -> (i32, i32) {
    %c0_i32 = arith.constant 0 : i32
    %c0_i32_0 = arith.constant 0 : i32
    %c0_i32_1 = arith.constant 0 : i32
    return %c0_i32, %c0_i32_0 : i32, i32
  }
  func.func @transform_2(%arg0: i32) -> (i32, i32) {
    %c0_i32 = arith.constant 0 : i32
    %c0_i32_0 = arith.constant 0 : i32
    %c0_i32_1 = arith.constant 0 : i32
    return %c0_i32, %c0_i32_0 : i32, i32
  }
  func.func @transform_3(%arg0: i32) -> (i32, i32) {
    %c0_i32 = arith.constant 0 : i32
    %c0_i32_0 = arith.constant 0 : i32
    return %arg0, %c0_i32 : i32, i32
  }
}

module attributes {stable_mosaic.version = 11 : i64} {
  func.func @_upsample_add_kernel(%arg0: i32, %arg1: memref<8x128xf32, #tpu.memory_space<vmem>>, %arg2: memref<8x32xf32, #tpu.memory_space<vmem>>, %arg3: memref<32x64xf32, #tpu.memory_space<vmem>>, %arg4: memref<8x128xf32, #tpu.memory_space<vmem>>) attributes {dimension_semantics = [#tpu.dimension_semantics<parallel>], iteration_bounds = array<i64: 1>, scalar_prefetch = 0 : i64, scratch_operands = 0 : i64, tpu.core_type = #tpu.core_type<tc>, window_params = [{transform_indices = @transform_0, window_bounds = array<i64: 8, 128>}, {transform_indices = @transform_1, window_bounds = array<i64: 8, 32>}, {pipeline_mode = #tpu.pipeline_mode<synchronous>, transform_indices = @transform_2, window_bounds = array<i64: 32, 64>}, {transform_indices = @transform_3, window_bounds = array<i64: 8, 128>}]} {
    %c0 = arith.constant 0 : index
    %c0_0 = arith.constant 0 : index
    %0 = vector.load %arg2[%c0, %c0_0] : memref<8x32xf32, #tpu.memory_space<vmem>>, vector<8x32xf32>
    %c0_1 = arith.constant 0 : index
    %c0_2 = arith.constant 0 : index
    %1 = vector.load %arg3[%c0_1, %c0_2] : memref<32x64xf32, #tpu.memory_space<vmem>>, vector<32x64xf32>
    %cst = arith.constant dense<0.000000e+00> : vector<8x64xf32>
    %2 = tpu.matmul %0, %1, %cst {dimension_numbers = #tpu.dot_dimension_numbers<[1], [0], [0], [1], [0, 0, 1, 1], [], []>} : vector<8x32xf32>, vector<32x64xf32>, vector<8x64xf32> -> vector<8x64xf32>
    %c0_3 = arith.constant 0 : index
    %c0_4 = arith.constant 0 : index
    %3 = vector.load %arg1[%c0_3, %c0_4] : memref<8x128xf32, #tpu.memory_space<vmem>>, vector<8x128xf32>
    %4 = tpu.concatenate %2, %2 in 1 : vector<8x64xf32>, vector<8x64xf32> -> vector<8x128xf32>
    %5 = arith.addf %3, %4 : vector<8x128xf32>
    %c0_5 = arith.constant 0 : index
    %c0_6 = arith.constant 0 : index
    %6 = vector.load %arg4[%c0_5, %c0_6] : memref<8x128xf32, #tpu.memory_space<vmem>>, vector<8x128xf32>
    tpu.vector_store %arg4[%c0_5, %c0_6], %5 {strides = array<i32>} : memref<8x128xf32, #tpu.memory_space<vmem>>, vector<8x128xf32>,
    return
  }
  func.func @transform_0(%arg0: i32) -> (i32, i32) {
    %c0_i32 = arith.constant 0 : i32
    %c0_i32_0 = arith.constant 0 : i32
    return %arg0, %c0_i32 : i32, i32
  }
  func.func @transform_1(%arg0: i32) -> (i32, i32) {
    %c0_i32 = arith.constant 0 : i32
    %c0_i32_0 = arith.constant 0 : i32
    return %arg0, %c0_i32 : i32, i32
  }
  func.func @transform_2(%arg0: i32) -> (i32, i32) {
    %c0_i32 = arith.constant 0 : i32
    %c0_i32_0 = arith.constant 0 : i32
    %c0_i32_1 = arith.constant 0 : i32
    return %c0_i32, %c0_i32_0 : i32, i32
  }
  func.func @transform_3(%arg0: i32) -> (i32, i32) {
    %c0_i32 = arith.constant 0 : i32
    %c0_i32_0 = arith.constant 0 : i32
    return %arg0, %c0_i32 : i32, i32
  }
}

module attributes {stable_mosaic.version = 11 : i64} {
  func.func @_conv3x3_kernel(%arg0: i32, %arg1: memref<288x24xf32, #tpu.memory_space<vmem>>, %arg2: memref<72x8xf32, #tpu.memory_space<vmem>>, %arg3: memref<1x8xf32, #tpu.memory_space<vmem>>, %arg4: memref<256x8xf32, #tpu.memory_space<vmem>>, %arg5: memref<1x2x8xf32, #tpu.memory_space<vmem>>) attributes {dimension_semantics = [#tpu.dimension_semantics<parallel>], iteration_bounds = array<i64: 2>, scalar_prefetch = 0 : i64, scratch_operands = 0 : i64, tpu.core_type = #tpu.core_type<tc>, window_params = [{transform_indices = @transform_0, window_bounds = array<i64: 288, 24>}, {pipeline_mode = #tpu.pipeline_mode<synchronous>, transform_indices = @transform_1, window_bounds = array<i64: 72, 8>}, {pipeline_mode = #tpu.pipeline_mode<synchronous>, transform_indices = @transform_2, window_bounds = array<i64: 1, 8>}, {transform_indices = @transform_3, window_bounds = array<i64: 256, 8>}, {transform_indices = @transform_4, window_bounds = array<i64: 1, 2, 8>}]} {
    %c0 = arith.constant 0 : index
    %c0_0 = arith.constant 0 : index
    %0 = vector.load %arg1[%c0, %c0_0] : memref<288x24xf32, #tpu.memory_space<vmem>>, vector<288x24xf32>
    %cst = arith.constant 0.000000e+00 : f32
    %1 = vector.broadcast %cst : f32 to vector<256x8xf32>
    %2 = vector.extract_strided_slice %0 {offsets = [0, 0], sizes = [256, 24], strides = [1, 1]} : vector<288x24xf32> to vector<256x24xf32>
    %c0_1 = arith.constant 0 : index
    %c0_2 = arith.constant 0 : index
    %3 = vector.load %arg2[%c0_1, %c0_2] : memref<72x8xf32, #tpu.memory_space<vmem>>, vector<24x8xf32>
    %cst_3 = arith.constant dense<0.000000e+00> : vector<256x8xf32>
    %4 = tpu.matmul %2, %3, %cst_3 {dimension_numbers = #tpu.dot_dimension_numbers<[1], [0], [0], [1], [0, 0, 1, 1], [], []>} : vector<256x24xf32>, vector<24x8xf32>, vector<256x8xf32> -> vector<256x8xf32>
    %5 = arith.addf %1, %4 : vector<256x8xf32>
    %6 = vector.extract_strided_slice %0 {offsets = [16, 0], sizes = [256, 24], strides = [1, 1]} : vector<288x24xf32> to vector<256x24xf32>
    %c24 = arith.constant 24 : index
    %c0_4 = arith.constant 0 : index
    %7 = vector.load %arg2[%c24, %c0_4] : memref<72x8xf32, #tpu.memory_space<vmem>>, vector<24x8xf32>
    %cst_5 = arith.constant dense<0.000000e+00> : vector<256x8xf32>
    %8 = tpu.matmul %6, %7, %cst_5 {dimension_numbers = #tpu.dot_dimension_numbers<[1], [0], [0], [1], [0, 0, 1, 1], [], []>} : vector<256x24xf32>, vector<24x8xf32>, vector<256x8xf32> -> vector<256x8xf32>
    %9 = arith.addf %5, %8 : vector<256x8xf32>
    %10 = vector.extract_strided_slice %0 {offsets = [32, 0], sizes = [256, 24], strides = [1, 1]} : vector<288x24xf32> to vector<256x24xf32>
    %c48 = arith.constant 48 : index
    %c0_6 = arith.constant 0 : index
    %11 = vector.load %arg2[%c48, %c0_6] : memref<72x8xf32, #tpu.memory_space<vmem>>, vector<24x8xf32>
    %cst_7 = arith.constant dense<0.000000e+00> : vector<256x8xf32>
    %12 = tpu.matmul %10, %11, %cst_7 {dimension_numbers = #tpu.dot_dimension_numbers<[1], [0], [0], [1], [0, 0, 1, 1], [], []>} : vector<256x24xf32>, vector<24x8xf32>, vector<256x8xf32> -> vector<256x8xf32>
    %13 = arith.addf %9, %12 : vector<256x8xf32>
    %c0_8 = arith.constant 0 : index
    %c0_9 = arith.constant 0 : index
    %14 = vector.load %arg3[%c0_8, %c0_9] : memref<1x8xf32, #tpu.memory_space<vmem>>, vector<1x8xf32>
    %15 = vector.broadcast %14 : vector<1x8xf32> to vector<256x8xf32>
    %16 = arith.addf %13, %15 : vector<256x8xf32>
    %c0_10 = arith.constant 0 : index
    %c0_11 = arith.constant 0 : index
    %17 = vector.load %arg4[%c0_10, %c0_11] : memref<256x8xf32, #tpu.memory_space<vmem>>, vector<256x8xf32>
    tpu.vector_store %arg4[%c0_10, %c0_11], %16 {strides = array<i32>} : memref<256x8xf32, #tpu.memory_space<vmem>>, vector<256x8xf32>,
    %cst_12 = arith.constant dense<0.000000e+00> : vector<8xf32>
    %18 = vector.multi_reduction <add>, %16, %cst_12 [0] : vector<256x8xf32> to vector<8xf32>
    %19 = vector.shape_cast %18 : vector<8xf32> to vector<1x8xf32>
    %20 = arith.mulf %16, %16 : vector<256x8xf32>
    %cst_13 = arith.constant dense<0.000000e+00> : vector<8xf32>
    %21 = vector.multi_reduction <add>, %20, %cst_13 [0] : vector<256x8xf32> to vector<8xf32>
    %22 = vector.shape_cast %21 : vector<8xf32> to vector<1x8xf32>
    %23 = tpu.concatenate %19, %22 in 0 : vector<1x8xf32>, vector<1x8xf32> -> vector<2x8xf32>
    %24 = vector.shape_cast %23 : vector<2x8xf32> to vector<1x2x8xf32>
    %c0_14 = arith.constant 0 : index
    %c0_15 = arith.constant 0 : index
    %c0_16 = arith.constant 0 : index
    %25 = vector.load %arg5[%c0_14, %c0_15, %c0_16] : memref<1x2x8xf32, #tpu.memory_space<vmem>>, vector<1x2x8xf32>
    tpu.vector_store %arg5[%c0_14, %c0_15, %c0_16], %24 {strides = array<i32>} : memref<1x2x8xf32, #tpu.memory_space<vmem>>, vector<1x2x8xf32>,
    return
  }
  func.func @transform_0(%arg0: i32) -> (i32, i32) {
    %c0_i32 = arith.constant 0 : i32
    %c0_i32_0 = arith.constant 0 : i32
    return %arg0, %c0_i32 : i32, i32
  }
  func.func @transform_1(%arg0: i32) -> (i32, i32) {
    %c0_i32 = arith.constant 0 : i32
    %c0_i32_0 = arith.constant 0 : i32
    %c0_i32_1 = arith.constant 0 : i32
    return %c0_i32, %c0_i32_0 : i32, i32
  }
  func.func @transform_2(%arg0: i32) -> (i32, i32) {
    %c0_i32 = arith.constant 0 : i32
    %c0_i32_0 = arith.constant 0 : i32
    %c0_i32_1 = arith.constant 0 : i32
    return %c0_i32, %c0_i32_0 : i32, i32
  }
  func.func @transform_3(%arg0: i32) -> (i32, i32) {
    %c0_i32 = arith.constant 0 : i32
    %c0_i32_0 = arith.constant 0 : i32
    return %arg0, %c0_i32 : i32, i32
  }
  func.func @transform_4(%arg0: i32) -> (i32, i32, i32) {
    %c0_i32 = arith.constant 0 : i32
    %c0_i32_0 = arith.constant 0 : i32
    %c0_i32_1 = arith.constant 0 : i32
    return %arg0, %c0_i32, %c0_i32_0 : i32, i32, i32
  }
}

module attributes {stable_mosaic.version = 11 : i64} {
  func.func @_affine_kernel(%arg0: i32, %arg1: memref<32x128xf32, #tpu.memory_space<vmem>>, %arg2: memref<1x128xf32, #tpu.memory_space<vmem>>, %arg3: memref<1x128xf32, #tpu.memory_space<vmem>>, %arg4: memref<32x128xf32, #tpu.memory_space<vmem>>) attributes {dimension_semantics = [#tpu.dimension_semantics<parallel>], iteration_bounds = array<i64: 1>, scalar_prefetch = 0 : i64, scratch_operands = 0 : i64, tpu.core_type = #tpu.core_type<tc>, window_params = [{transform_indices = @transform_0, window_bounds = array<i64: 32, 128>}, {pipeline_mode = #tpu.pipeline_mode<synchronous>, transform_indices = @transform_1, window_bounds = array<i64: 1, 128>}, {pipeline_mode = #tpu.pipeline_mode<synchronous>, transform_indices = @transform_2, window_bounds = array<i64: 1, 128>}, {transform_indices = @transform_3, window_bounds = array<i64: 32, 128>}]} {
    %c0 = arith.constant 0 : index
    %c0_0 = arith.constant 0 : index
    %0 = vector.load %arg1[%c0, %c0_0] : memref<32x128xf32, #tpu.memory_space<vmem>>, vector<32x128xf32>
    %c0_1 = arith.constant 0 : index
    %c0_2 = arith.constant 0 : index
    %1 = vector.load %arg2[%c0_1, %c0_2] : memref<1x128xf32, #tpu.memory_space<vmem>>, vector<1x128xf32>
    %2 = vector.broadcast %1 : vector<1x128xf32> to vector<32x128xf32>
    %3 = arith.mulf %0, %2 : vector<32x128xf32>
    %c0_3 = arith.constant 0 : index
    %c0_4 = arith.constant 0 : index
    %4 = vector.load %arg3[%c0_3, %c0_4] : memref<1x128xf32, #tpu.memory_space<vmem>>, vector<1x128xf32>
    %5 = vector.broadcast %4 : vector<1x128xf32> to vector<32x128xf32>
    %6 = arith.addf %3, %5 : vector<32x128xf32>
    %cst = arith.constant 0.000000e+00 : f32
    %7 = vector.broadcast %cst : f32 to vector<32x128xf32>
    %8 = arith.maximumf %6, %7 : vector<32x128xf32>
    %c0_5 = arith.constant 0 : index
    %c0_6 = arith.constant 0 : index
    %9 = vector.load %arg4[%c0_5, %c0_6] : memref<32x128xf32, #tpu.memory_space<vmem>>, vector<32x128xf32>
    tpu.vector_store %arg4[%c0_5, %c0_6], %8 {strides = array<i32>} : memref<32x128xf32, #tpu.memory_space<vmem>>, vector<32x128xf32>,
    return
  }
  func.func @transform_0(%arg0: i32) -> (i32, i32) {
    %c0_i32 = arith.constant 0 : i32
    %c0_i32_0 = arith.constant 0 : i32
    return %arg0, %c0_i32 : i32, i32
  }
  func.func @transform_1(%arg0: i32) -> (i32, i32) {
    %c0_i32 = arith.constant 0 : i32
    %c0_i32_0 = arith.constant 0 : i32
    %c0_i32_1 = arith.constant 0 : i32
    return %c0_i32, %c0_i32_0 : i32, i32
  }
  func.func @transform_2(%arg0: i32) -> (i32, i32) {
    %c0_i32 = arith.constant 0 : i32
    %c0_i32_0 = arith.constant 0 : i32
    %c0_i32_1 = arith.constant 0 : i32
    return %c0_i32, %c0_i32_0 : i32, i32
  }
  func.func @transform_3(%arg0: i32) -> (i32, i32) {
    %c0_i32 = arith.constant 0 : i32
    %c0_i32_0 = arith.constant 0 : i32
    return %arg0, %c0_i32 : i32, i32
  }
}

module attributes {stable_mosaic.version = 11 : i64} {
  func.func @_affine_add_kernel(%arg0: i32, %arg1: memref<32x128xf32, #tpu.memory_space<vmem>>, %arg2: memref<32x128xf32, #tpu.memory_space<vmem>>, %arg3: memref<1x128xf32, #tpu.memory_space<vmem>>, %arg4: memref<1x128xf32, #tpu.memory_space<vmem>>, %arg5: memref<32x128xf32, #tpu.memory_space<vmem>>) attributes {dimension_semantics = [#tpu.dimension_semantics<parallel>], iteration_bounds = array<i64: 1>, scalar_prefetch = 0 : i64, scratch_operands = 0 : i64, tpu.core_type = #tpu.core_type<tc>, window_params = [{transform_indices = @transform_0, window_bounds = array<i64: 32, 128>}, {transform_indices = @transform_1, window_bounds = array<i64: 32, 128>}, {pipeline_mode = #tpu.pipeline_mode<synchronous>, transform_indices = @transform_2, window_bounds = array<i64: 1, 128>}, {pipeline_mode = #tpu.pipeline_mode<synchronous>, transform_indices = @transform_3, window_bounds = array<i64: 1, 128>}, {transform_indices = @transform_4, window_bounds = array<i64: 32, 128>}]} {
    %c0 = arith.constant 0 : index
    %c0_0 = arith.constant 0 : index
    %0 = vector.load %arg1[%c0, %c0_0] : memref<32x128xf32, #tpu.memory_space<vmem>>, vector<32x128xf32>
    %c0_1 = arith.constant 0 : index
    %c0_2 = arith.constant 0 : index
    %1 = vector.load %arg3[%c0_1, %c0_2] : memref<1x128xf32, #tpu.memory_space<vmem>>, vector<1x128xf32>
    %2 = vector.broadcast %1 : vector<1x128xf32> to vector<32x128xf32>
    %3 = arith.mulf %0, %2 : vector<32x128xf32>
    %c0_3 = arith.constant 0 : index
    %c0_4 = arith.constant 0 : index
    %4 = vector.load %arg4[%c0_3, %c0_4] : memref<1x128xf32, #tpu.memory_space<vmem>>, vector<1x128xf32>
    %5 = vector.broadcast %4 : vector<1x128xf32> to vector<32x128xf32>
    %6 = arith.addf %3, %5 : vector<32x128xf32>
    %c0_5 = arith.constant 0 : index
    %c0_6 = arith.constant 0 : index
    %7 = vector.load %arg2[%c0_5, %c0_6] : memref<32x128xf32, #tpu.memory_space<vmem>>, vector<32x128xf32>
    %8 = arith.addf %6, %7 : vector<32x128xf32>
    %cst = arith.constant 0.000000e+00 : f32
    %9 = vector.broadcast %cst : f32 to vector<32x128xf32>
    %10 = arith.maximumf %8, %9 : vector<32x128xf32>
    %c0_7 = arith.constant 0 : index
    %c0_8 = arith.constant 0 : index
    %11 = vector.load %arg5[%c0_7, %c0_8] : memref<32x128xf32, #tpu.memory_space<vmem>>, vector<32x128xf32>
    tpu.vector_store %arg5[%c0_7, %c0_8], %10 {strides = array<i32>} : memref<32x128xf32, #tpu.memory_space<vmem>>, vector<32x128xf32>,
    return
  }
  func.func @transform_0(%arg0: i32) -> (i32, i32) {
    %c0_i32 = arith.constant 0 : i32
    %c0_i32_0 = arith.constant 0 : i32
    return %arg0, %c0_i32 : i32, i32
  }
  func.func @transform_1(%arg0: i32) -> (i32, i32) {
    %c0_i32 = arith.constant 0 : i32
    %c0_i32_0 = arith.constant 0 : i32
    return %arg0, %c0_i32 : i32, i32
  }
  func.func @transform_2(%arg0: i32) -> (i32, i32) {
    %c0_i32 = arith.constant 0 : i32
    %c0_i32_0 = arith.constant 0 : i32
    %c0_i32_1 = arith.constant 0 : i32
    return %c0_i32, %c0_i32_0 : i32, i32
  }
  func.func @transform_3(%arg0: i32) -> (i32, i32) {
    %c0_i32 = arith.constant 0 : i32
    %c0_i32_0 = arith.constant 0 : i32
    %c0_i32_1 = arith.constant 0 : i32
    return %c0_i32, %c0_i32_0 : i32, i32
  }
  func.func @transform_4(%arg0: i32) -> (i32, i32) {
    %c0_i32 = arith.constant 0 : i32
    %c0_i32_0 = arith.constant 0 : i32
    return %arg0, %c0_i32 : i32, i32
  }
}

module attributes {stable_mosaic.version = 11 : i64} {
  func.func @_upsample_add_kernel(%arg0: i32, %arg1: memref<16x256xf32, #tpu.memory_space<vmem>>, %arg2: memref<16x64xf32, #tpu.memory_space<vmem>>, %arg3: memref<64x128xf32, #tpu.memory_space<vmem>>, %arg4: memref<16x256xf32, #tpu.memory_space<vmem>>) attributes {dimension_semantics = [#tpu.dimension_semantics<parallel>], iteration_bounds = array<i64: 1>, scalar_prefetch = 0 : i64, scratch_operands = 0 : i64, tpu.core_type = #tpu.core_type<tc>, window_params = [{transform_indices = @transform_0, window_bounds = array<i64: 16, 256>}, {transform_indices = @transform_1, window_bounds = array<i64: 16, 64>}, {pipeline_mode = #tpu.pipeline_mode<synchronous>, transform_indices = @transform_2, window_bounds = array<i64: 64, 128>}, {transform_indices = @transform_3, window_bounds = array<i64: 16, 256>}]} {
    %c0 = arith.constant 0 : index
    %c0_0 = arith.constant 0 : index
    %0 = vector.load %arg2[%c0, %c0_0] : memref<16x64xf32, #tpu.memory_space<vmem>>, vector<16x64xf32>
    %c0_1 = arith.constant 0 : index
    %c0_2 = arith.constant 0 : index
    %1 = vector.load %arg3[%c0_1, %c0_2] : memref<64x128xf32, #tpu.memory_space<vmem>>, vector<64x128xf32>
    %cst = arith.constant dense<0.000000e+00> : vector<16x128xf32>
    %2 = tpu.matmul %0, %1, %cst {dimension_numbers = #tpu.dot_dimension_numbers<[1], [0], [0], [1], [0, 0, 1, 1], [], []>} : vector<16x64xf32>, vector<64x128xf32>, vector<16x128xf32> -> vector<16x128xf32>
    %c0_3 = arith.constant 0 : index
    %c0_4 = arith.constant 0 : index
    %3 = vector.load %arg1[%c0_3, %c0_4] : memref<16x256xf32, #tpu.memory_space<vmem>>, vector<16x256xf32>
    %4 = tpu.concatenate %2, %2 in 1 : vector<16x128xf32>, vector<16x128xf32> -> vector<16x256xf32>
    %5 = arith.addf %3, %4 : vector<16x256xf32>
    %c0_5 = arith.constant 0 : index
    %c0_6 = arith.constant 0 : index
    %6 = vector.load %arg4[%c0_5, %c0_6] : memref<16x256xf32, #tpu.memory_space<vmem>>, vector<16x256xf32>
    tpu.vector_store %arg4[%c0_5, %c0_6], %5 {strides = array<i32>} : memref<16x256xf32, #tpu.memory_space<vmem>>, vector<16x256xf32>,
    return
  }
  func.func @transform_0(%arg0: i32) -> (i32, i32) {
    %c0_i32 = arith.constant 0 : i32
    %c0_i32_0 = arith.constant 0 : i32
    return %arg0, %c0_i32 : i32, i32
  }
  func.func @transform_1(%arg0: i32) -> (i32, i32) {
    %c0_i32 = arith.constant 0 : i32
    %c0_i32_0 = arith.constant 0 : i32
    return %arg0, %c0_i32 : i32, i32
  }
  func.func @transform_2(%arg0: i32) -> (i32, i32) {
    %c0_i32 = arith.constant 0 : i32
    %c0_i32_0 = arith.constant 0 : i32
    %c0_i32_1 = arith.constant 0 : i32
    return %c0_i32, %c0_i32_0 : i32, i32
  }
  func.func @transform_3(%arg0: i32) -> (i32, i32) {
    %c0_i32 = arith.constant 0 : i32
    %c0_i32_0 = arith.constant 0 : i32
    return %arg0, %c0_i32 : i32, i32
  }
}

module attributes {stable_mosaic.version = 11 : i64} {
  func.func @_matmul_stats_kernel(%arg0: i32, %arg1: memref<512x8xf32, #tpu.memory_space<vmem>>, %arg2: memref<8x8xf32, #tpu.memory_space<vmem>>, %arg3: memref<1x8xf32, #tpu.memory_space<vmem>>, %arg4: memref<512x8xf32, #tpu.memory_space<vmem>>, %arg5: memref<1x2x8xf32, #tpu.memory_space<vmem>>) attributes {dimension_semantics = [#tpu.dimension_semantics<parallel>], iteration_bounds = array<i64: 1>, scalar_prefetch = 0 : i64, scratch_operands = 0 : i64, tpu.core_type = #tpu.core_type<tc>, window_params = [{transform_indices = @transform_0, window_bounds = array<i64: 512, 8>}, {pipeline_mode = #tpu.pipeline_mode<synchronous>, transform_indices = @transform_1, window_bounds = array<i64: 8, 8>}, {pipeline_mode = #tpu.pipeline_mode<synchronous>, transform_indices = @transform_2, window_bounds = array<i64: 1, 8>}, {transform_indices = @transform_3, window_bounds = array<i64: 512, 8>}, {transform_indices = @transform_4, window_bounds = array<i64: 1, 2, 8>}]} {
    %c0 = arith.constant 0 : index
    %c0_0 = arith.constant 0 : index
    %0 = vector.load %arg1[%c0, %c0_0] : memref<512x8xf32, #tpu.memory_space<vmem>>, vector<512x8xf32>
    %c0_1 = arith.constant 0 : index
    %c0_2 = arith.constant 0 : index
    %1 = vector.load %arg2[%c0_1, %c0_2] : memref<8x8xf32, #tpu.memory_space<vmem>>, vector<8x8xf32>
    %cst = arith.constant dense<0.000000e+00> : vector<512x8xf32>
    %2 = tpu.matmul %0, %1, %cst {dimension_numbers = #tpu.dot_dimension_numbers<[1], [0], [0], [1], [0, 0, 1, 1], [], []>} : vector<512x8xf32>, vector<8x8xf32>, vector<512x8xf32> -> vector<512x8xf32>
    %c0_3 = arith.constant 0 : index
    %c0_4 = arith.constant 0 : index
    %3 = vector.load %arg3[%c0_3, %c0_4] : memref<1x8xf32, #tpu.memory_space<vmem>>, vector<1x8xf32>
    %4 = vector.broadcast %3 : vector<1x8xf32> to vector<512x8xf32>
    %5 = arith.addf %2, %4 : vector<512x8xf32>
    %c0_5 = arith.constant 0 : index
    %c0_6 = arith.constant 0 : index
    %6 = vector.load %arg4[%c0_5, %c0_6] : memref<512x8xf32, #tpu.memory_space<vmem>>, vector<512x8xf32>
    tpu.vector_store %arg4[%c0_5, %c0_6], %5 {strides = array<i32>} : memref<512x8xf32, #tpu.memory_space<vmem>>, vector<512x8xf32>,
    %cst_7 = arith.constant dense<0.000000e+00> : vector<8xf32>
    %7 = vector.multi_reduction <add>, %5, %cst_7 [0] : vector<512x8xf32> to vector<8xf32>
    %8 = vector.shape_cast %7 : vector<8xf32> to vector<1x8xf32>
    %9 = arith.mulf %5, %5 : vector<512x8xf32>
    %cst_8 = arith.constant dense<0.000000e+00> : vector<8xf32>
    %10 = vector.multi_reduction <add>, %9, %cst_8 [0] : vector<512x8xf32> to vector<8xf32>
    %11 = vector.shape_cast %10 : vector<8xf32> to vector<1x8xf32>
    %12 = tpu.concatenate %8, %11 in 0 : vector<1x8xf32>, vector<1x8xf32> -> vector<2x8xf32>
    %13 = vector.shape_cast %12 : vector<2x8xf32> to vector<1x2x8xf32>
    %c0_9 = arith.constant 0 : index
    %c0_10 = arith.constant 0 : index
    %c0_11 = arith.constant 0 : index
    %14 = vector.load %arg5[%c0_9, %c0_10, %c0_11] : memref<1x2x8xf32, #tpu.memory_space<vmem>>, vector<1x2x8xf32>
    tpu.vector_store %arg5[%c0_9, %c0_10, %c0_11], %13 {strides = array<i32>} : memref<1x2x8xf32, #tpu.memory_space<vmem>>, vector<1x2x8xf32>,
    return
  }
  func.func @transform_0(%arg0: i32) -> (i32, i32) {
    %c0_i32 = arith.constant 0 : i32
    %c0_i32_0 = arith.constant 0 : i32
    return %arg0, %c0_i32 : i32, i32
  }
  func.func @transform_1(%arg0: i32) -> (i32, i32) {
    %c0_i32 = arith.constant 0 : i32
    %c0_i32_0 = arith.constant 0 : i32
    %c0_i32_1 = arith.constant 0 : i32
    return %c0_i32, %c0_i32_0 : i32, i32
  }
  func.func @transform_2(%arg0: i32) -> (i32, i32) {
    %c0_i32 = arith.constant 0 : i32
    %c0_i32_0 = arith.constant 0 : i32
    %c0_i32_1 = arith.constant 0 : i32
    return %c0_i32, %c0_i32_0 : i32, i32
  }
  func.func @transform_3(%arg0: i32) -> (i32, i32) {
    %c0_i32 = arith.constant 0 : i32
    %c0_i32_0 = arith.constant 0 : i32
    return %arg0, %c0_i32 : i32, i32
  }
  func.func @transform_4(%arg0: i32) -> (i32, i32, i32) {
    %c0_i32 = arith.constant 0 : i32
    %c0_i32_0 = arith.constant 0 : i32
    %c0_i32_1 = arith.constant 0 : i32
    return %arg0, %c0_i32, %c0_i32_0 : i32, i32, i32
  }
}

module attributes {stable_mosaic.version = 11 : i64} {
  func.func @_matmul_add2_kernel(%arg0: i32, %arg1: memref<512x4xf32, #tpu.memory_space<vmem>>, %arg2: memref<4x8xf32, #tpu.memory_space<vmem>>, %arg3: memref<1x8xf32, #tpu.memory_space<vmem>>, %arg4: memref<512x8xf32, #tpu.memory_space<vmem>>, %arg5: memref<512x8xf32, #tpu.memory_space<vmem>>, %arg6: memref<512x8xf32, #tpu.memory_space<vmem>>) attributes {dimension_semantics = [#tpu.dimension_semantics<parallel>], iteration_bounds = array<i64: 1>, scalar_prefetch = 0 : i64, scratch_operands = 0 : i64, tpu.core_type = #tpu.core_type<tc>, window_params = [{transform_indices = @transform_0, window_bounds = array<i64: 512, 4>}, {pipeline_mode = #tpu.pipeline_mode<synchronous>, transform_indices = @transform_1, window_bounds = array<i64: 4, 8>}, {pipeline_mode = #tpu.pipeline_mode<synchronous>, transform_indices = @transform_2, window_bounds = array<i64: 1, 8>}, {transform_indices = @transform_3, window_bounds = array<i64: 512, 8>}, {transform_indices = @transform_4, window_bounds = array<i64: 512, 8>}, {transform_indices = @transform_5, window_bounds = array<i64: 512, 8>}]} {
    %c0 = arith.constant 0 : index
    %c0_0 = arith.constant 0 : index
    %0 = vector.load %arg1[%c0, %c0_0] : memref<512x4xf32, #tpu.memory_space<vmem>>, vector<512x4xf32>
    %c0_1 = arith.constant 0 : index
    %c0_2 = arith.constant 0 : index
    %1 = vector.load %arg2[%c0_1, %c0_2] : memref<4x8xf32, #tpu.memory_space<vmem>>, vector<4x8xf32>
    %cst = arith.constant dense<0.000000e+00> : vector<512x8xf32>
    %2 = tpu.matmul %0, %1, %cst {dimension_numbers = #tpu.dot_dimension_numbers<[1], [0], [0], [1], [0, 0, 1, 1], [], []>} : vector<512x4xf32>, vector<4x8xf32>, vector<512x8xf32> -> vector<512x8xf32>
    %c0_3 = arith.constant 0 : index
    %c0_4 = arith.constant 0 : index
    %3 = vector.load %arg3[%c0_3, %c0_4] : memref<1x8xf32, #tpu.memory_space<vmem>>, vector<1x8xf32>
    %4 = vector.broadcast %3 : vector<1x8xf32> to vector<512x8xf32>
    %5 = arith.addf %2, %4 : vector<512x8xf32>
    %c0_5 = arith.constant 0 : index
    %c0_6 = arith.constant 0 : index
    %6 = vector.load %arg4[%c0_5, %c0_6] : memref<512x8xf32, #tpu.memory_space<vmem>>, vector<512x8xf32>
    %7 = arith.addf %5, %6 : vector<512x8xf32>
    %c0_7 = arith.constant 0 : index
    %c0_8 = arith.constant 0 : index
    %8 = vector.load %arg5[%c0_7, %c0_8] : memref<512x8xf32, #tpu.memory_space<vmem>>, vector<512x8xf32>
    %9 = arith.addf %7, %8 : vector<512x8xf32>
    %c0_9 = arith.constant 0 : index
    %c0_10 = arith.constant 0 : index
    %10 = vector.load %arg6[%c0_9, %c0_10] : memref<512x8xf32, #tpu.memory_space<vmem>>, vector<512x8xf32>
    tpu.vector_store %arg6[%c0_9, %c0_10], %9 {strides = array<i32>} : memref<512x8xf32, #tpu.memory_space<vmem>>, vector<512x8xf32>,
    return
  }
  func.func @transform_0(%arg0: i32) -> (i32, i32) {
    %c0_i32 = arith.constant 0 : i32
    %c0_i32_0 = arith.constant 0 : i32
    return %arg0, %c0_i32 : i32, i32
  }
  func.func @transform_1(%arg0: i32) -> (i32, i32) {
    %c0_i32 = arith.constant 0 : i32
    %c0_i32_0 = arith.constant 0 : i32
    %c0_i32_1 = arith.constant 0 : i32
    return %c0_i32, %c0_i32_0 : i32, i32
  }
  func.func @transform_2(%arg0: i32) -> (i32, i32) {
    %c0_i32 = arith.constant 0 : i32
    %c0_i32_0 = arith.constant 0 : i32
    %c0_i32_1 = arith.constant 0 : i32
    return %c0_i32, %c0_i32_0 : i32, i32
  }
  func.func @transform_3(%arg0: i32) -> (i32, i32) {
    %c0_i32 = arith.constant 0 : i32
    %c0_i32_0 = arith.constant 0 : i32
    return %arg0, %c0_i32 : i32, i32
  }
  func.func @transform_4(%arg0: i32) -> (i32, i32) {
    %c0_i32 = arith.constant 0 : i32
    %c0_i32_0 = arith.constant 0 : i32
    return %arg0, %c0_i32 : i32, i32
  }
  func.func @transform_5(%arg0: i32) -> (i32, i32) {
    %c0_i32 = arith.constant 0 : i32
    %c0_i32_0 = arith.constant 0 : i32
    return %arg0, %c0_i32 : i32, i32
  }
}

module attributes {stable_mosaic.version = 11 : i64} {
  func.func @_affine_relu_matmul2_kernel(%arg0: i32, %arg1: memref<512x8xf32, #tpu.memory_space<vmem>>, %arg2: memref<1x8xf32, #tpu.memory_space<vmem>>, %arg3: memref<1x8xf32, #tpu.memory_space<vmem>>, %arg4: memref<8x12xf32, #tpu.memory_space<vmem>>, %arg5: memref<1x12xf32, #tpu.memory_space<vmem>>, %arg6: memref<512x4xf32, #tpu.memory_space<vmem>>, %arg7: memref<512x8xf32, #tpu.memory_space<vmem>>) attributes {dimension_semantics = [#tpu.dimension_semantics<parallel>], iteration_bounds = array<i64: 1>, scalar_prefetch = 0 : i64, scratch_operands = 0 : i64, tpu.core_type = #tpu.core_type<tc>, window_params = [{transform_indices = @transform_0, window_bounds = array<i64: 512, 8>}, {pipeline_mode = #tpu.pipeline_mode<synchronous>, transform_indices = @transform_1, window_bounds = array<i64: 1, 8>}, {pipeline_mode = #tpu.pipeline_mode<synchronous>, transform_indices = @transform_2, window_bounds = array<i64: 1, 8>}, {pipeline_mode = #tpu.pipeline_mode<synchronous>, transform_indices = @transform_3, window_bounds = array<i64: 8, 12>}, {pipeline_mode = #tpu.pipeline_mode<synchronous>, transform_indices = @transform_4, window_bounds = array<i64: 1, 12>}, {transform_indices = @transform_5, window_bounds = array<i64: 512, 4>}, {transform_indices = @transform_6, window_bounds = array<i64: 512, 8>}]} {
    %c0 = arith.constant 0 : index
    %c0_0 = arith.constant 0 : index
    %0 = vector.load %arg1[%c0, %c0_0] : memref<512x8xf32, #tpu.memory_space<vmem>>, vector<512x8xf32>
    %c0_1 = arith.constant 0 : index
    %c0_2 = arith.constant 0 : index
    %1 = vector.load %arg2[%c0_1, %c0_2] : memref<1x8xf32, #tpu.memory_space<vmem>>, vector<1x8xf32>
    %2 = vector.broadcast %1 : vector<1x8xf32> to vector<512x8xf32>
    %3 = arith.mulf %0, %2 : vector<512x8xf32>
    %c0_3 = arith.constant 0 : index
    %c0_4 = arith.constant 0 : index
    %4 = vector.load %arg3[%c0_3, %c0_4] : memref<1x8xf32, #tpu.memory_space<vmem>>, vector<1x8xf32>
    %5 = vector.broadcast %4 : vector<1x8xf32> to vector<512x8xf32>
    %6 = arith.addf %3, %5 : vector<512x8xf32>
    %cst = arith.constant 0.000000e+00 : f32
    %7 = vector.broadcast %cst : f32 to vector<512x8xf32>
    %8 = arith.maximumf %6, %7 : vector<512x8xf32>
    %c0_5 = arith.constant 0 : index
    %c0_6 = arith.constant 0 : index
    %9 = vector.load %arg4[%c0_5, %c0_6] : memref<8x12xf32, #tpu.memory_space<vmem>>, vector<8x12xf32>
    %cst_7 = arith.constant dense<0.000000e+00> : vector<512x12xf32>
    %10 = tpu.matmul %8, %9, %cst_7 {dimension_numbers = #tpu.dot_dimension_numbers<[1], [0], [0], [1], [0, 0, 1, 1], [], []>} : vector<512x8xf32>, vector<8x12xf32>, vector<512x12xf32> -> vector<512x12xf32>
    %c0_8 = arith.constant 0 : index
    %c0_9 = arith.constant 0 : index
    %11 = vector.load %arg5[%c0_8, %c0_9] : memref<1x12xf32, #tpu.memory_space<vmem>>, vector<1x12xf32>
    %12 = vector.broadcast %11 : vector<1x12xf32> to vector<512x12xf32>
    %13 = arith.addf %10, %12 : vector<512x12xf32>
    %14 = vector.extract_strided_slice %13 {offsets = [0, 0], sizes = [512, 4], strides = [1, 1]} : vector<512x12xf32> to vector<512x4xf32>
    %c0_10 = arith.constant 0 : index
    %c0_11 = arith.constant 0 : index
    %15 = vector.load %arg6[%c0_10, %c0_11] : memref<512x4xf32, #tpu.memory_space<vmem>>, vector<512x4xf32>
    tpu.vector_store %arg6[%c0_10, %c0_11], %14 {strides = array<i32>} : memref<512x4xf32, #tpu.memory_space<vmem>>, vector<512x4xf32>,
    %16 = vector.extract_strided_slice %13 {offsets = [0, 4], sizes = [512, 8], strides = [1, 1]} : vector<512x12xf32> to vector<512x8xf32>
    %c0_12 = arith.constant 0 : index
    %c0_13 = arith.constant 0 : index
    %17 = vector.load %arg7[%c0_12, %c0_13] : memref<512x8xf32, #tpu.memory_space<vmem>>, vector<512x8xf32>
    tpu.vector_store %arg7[%c0_12, %c0_13], %16 {strides = array<i32>} : memref<512x8xf32, #tpu.memory_space<vmem>>, vector<512x8xf32>,
    return
  }
  func.func @transform_0(%arg0: i32) -> (i32, i32) {
    %c0_i32 = arith.constant 0 : i32
    %c0_i32_0 = arith.constant 0 : i32
    return %arg0, %c0_i32 : i32, i32
  }
  func.func @transform_1(%arg0: i32) -> (i32, i32) {
    %c0_i32 = arith.constant 0 : i32
    %c0_i32_0 = arith.constant 0 : i32
    %c0_i32_1 = arith.constant 0 : i32
    return %c0_i32, %c0_i32_0 : i32, i32
  }
  func.func @transform_2(%arg0: i32) -> (i32, i32) {
    %c0_i32 = arith.constant 0 : i32
    %c0_i32_0 = arith.constant 0 : i32
    %c0_i32_1 = arith.constant 0 : i32
    return %c0_i32, %c0_i32_0 : i32, i32
  }
  func.func @transform_3(%arg0: i32) -> (i32, i32) {
    %c0_i32 = arith.constant 0 : i32
    %c0_i32_0 = arith.constant 0 : i32
    %c0_i32_1 = arith.constant 0 : i32
    return %c0_i32, %c0_i32_0 : i32, i32
  }
  func.func @transform_4(%arg0: i32) -> (i32, i32) {
    %c0_i32 = arith.constant 0 : i32
    %c0_i32_0 = arith.constant 0 : i32
    %c0_i32_1 = arith.constant 0 : i32
    return %c0_i32, %c0_i32_0 : i32, i32
  }
  func.func @transform_5(%arg0: i32) -> (i32, i32) {
    %c0_i32 = arith.constant 0 : i32
    %c0_i32_0 = arith.constant 0 : i32
    return %arg0, %c0_i32 : i32, i32
  }
  func.func @transform_6(%arg0: i32) -> (i32, i32) {
    %c0_i32 = arith.constant 0 : i32
    %c0_i32_0 = arith.constant 0 : i32
    return %arg0, %c0_i32 : i32, i32
  }
}

</mosaic_0001>

<bundles_post_ra>
// kernel: hgn_forward.43
= control target key start
LH: loop header
LB: loop body
LE: loop exit
PB: predicated region body
PF: predicated region fallthrough
CT: control target
= control target key end

     0   :  { %s207_s10 = smov 120   ;;  %s208_s11 = smov 112   ;;  %vm184_vm0 = vcmask 64512   ;;  %s347_s0 = inlined_call_operand.vmem [shape: f32[128,32], index: 0, kind: input, shape index: {}]   ;;  %s348_s1 = inlined_call_operand.vmem [shape: f32[128,8], index: 1, kind: output, shape index: {}]  }
   0x1   :  { %v8_v0 = vld [vmem:[%s347_s0] sm:$0xff]  ;;  %v10_v1 = vld [vmem:[%s347_s0 + $0x10] sm:$0xff]  ;;  %v9_v2 = vld [vmem:[%s347_s0 + $0x8] sm:$0xff] }
   0x2   :  { %40 = vrot.lane.b32.xlu0 %v8_v0, %s207_s10  ;;  %44 = vrot.lane.b32.xlu1 %v10_v1, %s207_s10  ;;  %v11_v3 = vld [vmem:[%s347_s0 + $0x18] sm:$0xff]  ;;  %v12_v4 = vld [vmem:[%s347_s0 + $0x20] sm:$0xff] }
   0x3   :  { %v13_v5 = vld [vmem:[%s347_s0 + $0x28] sm:$0xff]  ;;  %v14_v6 = vld [vmem:[%s347_s0 + $0x30] sm:$0xff]  ;;  %v15_v7 = vld [vmem:[%s347_s0 + $0x38] sm:$0xff] }
   0x4   :  { %v16_v8 = vld [vmem:[%s347_s0 + $0x40] sm:$0xff]  ;;  %v17_v9 = vld [vmem:[%s347_s0 + $0x48] sm:$0xff]  ;;  %v18_v10 = vld [vmem:[%s347_s0 + $0x50] sm:$0xff] }
   0x5   :  { %v19_v11 = vld [vmem:[%s347_s0 + $0x58] sm:$0xff]  ;;  %v20_v12 = vld [vmem:[%s347_s0 + $0x60] sm:$0xff]  ;;  %v21_v13 = vld [vmem:[%s347_s0 + $0x68] sm:$0xff] }
   0x6   :  { %42 = vrot.lane.b32.xlu0 %v9_v2, %s207_s10  ;;  %46 = vrot.lane.b32.xlu1 %v11_v3, %s207_s10  ;;  %v22_v14 = vld [vmem:[%s347_s0 + $0x70] sm:$0xff]  ;;  %v23_v15 = vld [vmem:[%s347_s0 + $0x78] sm:$0xff] }
   0xa   :  { %48 = vrot.lane.b32.xlu0 %v12_v4, %s207_s10  ;;  %50 = vrot.lane.b32.xlu1 %v13_v5, %s207_s10 }
   0xe   :  { %52 = vrot.lane.b32.xlu0 %v14_v6, %s207_s10  ;;  %54 = vrot.lane.b32.xlu1 %v15_v7, %s207_s10 }
  0x12   :  { %56 = vrot.lane.b32.xlu0 %v16_v8, %s207_s10  ;;  %58 = vrot.lane.b32.xlu1 %v17_v9, %s207_s10 }
  0x16   :  { %60 = vrot.lane.b32.xlu0 %v18_v10, %s207_s10  ;;  %62 = vrot.lane.b32.xlu1 %v19_v11, %s207_s10 }
  0x1a   :  { %64 = vrot.lane.b32.xlu0 %v20_v12, %s207_s10  ;;  %66 = vrot.lane.b32.xlu1 %v21_v13, %s207_s10 }
  0x1e   :  { %68 = vrot.lane.b32.xlu0 %v22_v14, %s207_s10  ;;  %70 = vrot.lane.b32.xlu1 %v23_v15, %s207_s10 }
  0x74   :  { %v41_v16 = vpop.permute.xlu0 %40  ;;  %v45_v17 = vpop.permute.xlu1 %44 }
  0x75   :  { %v88_v18 = vmax.f32 %v8_v0, %v41_v16  ;;  %v90_v19 = vmax.f32 %v10_v1, %v45_v17 }
  0x77   :  { %120 = vrot.lane.b32.xlu0 %v88_v18, %s208_s11 }
  0x78   :  { %v43_v20 = vpop.permute.xlu0 %42  ;;  %v47_v21 = vpop.permute.xlu1 %46 }
  0x79   :  { %v89_v22 = vmax.f32 %v9_v2, %v43_v20  ;;  %v91_v23 = vmax.f32 %v11_v3, %v47_v21 }
  0x7b   :  { %124 = vrot.lane.b32.xlu0 %v90_v19, %s208_s11  ;;  %122 = vrot.lane.b32.xlu1 %v89_v22, %s208_s11 }
  0x7c   :  { %v49_v24 = vpop.permute.xlu0 %48  ;;  %v51_v25 = vpop.permute.xlu1 %50 }
  0x7d   :  { %v92_v26 = vmax.f32 %v12_v4, %v49_v24  ;;  %v93_v27 = vmax.f32 %v13_v5, %v51_v25 }
  0x7f   :  { %126 = vrot.lane.b32.xlu1 %v91_v23, %s208_s11  ;;  %128 = vrot.lane.b32.xlu0 %v92_v26, %s208_s11 }
  0x80   :  { %v53_v28 = vpop.permute.xlu0 %52  ;;  %v55_v29 = vpop.permute.xlu1 %54 }
  0x81   :  { %v94_v30 = vmax.f32 %v14_v6, %v53_v28  ;;  %v95_v31 = vmax.f32 %v15_v7, %v55_v29 }
  0x83   :  { %130 = vrot.lane.b32.xlu1 %v93_v27, %s208_s11  ;;  %132 = vrot.lane.b32.xlu0 %v94_v30, %s208_s11 }
  0x84   :  { %v57_v32 = vpop.permute.xlu0 %56  ;;  %v59_v33 = vpop.permute.xlu1 %58 }
  0x85   :  { %v96_v34 = vmax.f32 %v16_v8, %v57_v32  ;;  %v97_v35 = vmax.f32 %v17_v9, %v59_v33 }
  0x87   :  { %134 = vrot.lane.b32.xlu1 %v95_v31, %s208_s11  ;;  %136 = vrot.lane.b32.xlu0 %v96_v34, %s208_s11 }
  0x88   :  { %v61_v36 = vpop.permute.xlu0 %60  ;;  %v63_v37 = vpop.permute.xlu1 %62 }
  0x89   :  { %v98_v38 = vmax.f32 %v18_v10, %v61_v36  ;;  %v99_v39 = vmax.f32 %v19_v11, %v63_v37 }
  0x8b   :  { %138 = vrot.lane.b32.xlu1 %v97_v35, %s208_s11  ;;  %140 = vrot.lane.b32.xlu0 %v98_v38, %s208_s11 }
  0x8c   :  { %v65_v40 = vpop.permute.xlu0 %64  ;;  %v67_v41 = vpop.permute.xlu1 %66 }
  0x8d   :  { %v100_v42 = vmax.f32 %v20_v12, %v65_v40  ;;  %v101_v43 = vmax.f32 %v21_v13, %v67_v41 }
  0x8f   :  { %142 = vrot.lane.b32.xlu1 %v99_v39, %s208_s11  ;;  %144 = vrot.lane.b32.xlu0 %v100_v42, %s208_s11 }
  0x90   :  { %v69_v44 = vpop.permute.xlu0 %68  ;;  %v71_v45 = vpop.permute.xlu1 %70 }
  0x91   :  { %v102_v46 = vmax.f32 %v22_v14, %v69_v44  ;;  %v103_v47 = vmax.f32 %v23_v15, %v71_v45 }
  0x93   :  { %146 = vrot.lane.b32.xlu1 %v101_v43, %s208_s11  ;;  %148 = vrot.lane.b32.xlu0 %v102_v46, %s208_s11 }
  0x97   :  { %150 = vrot.lane.b32.xlu1 %v103_v47, %s208_s11 }
  0xe9   :  { %v121_v48 = vpop.permute.xlu0 %120 }
  0xea   :  { %v168_v49 = vmax.f32 %v88_v18, %v121_v48 }
  0xec   :  { %185 = vst.msk [vmem:[%s348_s1] sm:$0xff] %vm184_vm0, %v168_v49 }
  0xed   :  { %v123_v50 = vpop.permute.xlu1 %122  ;;  %v125_v51 = vpop.permute.xlu0 %124 }
  0xee   :  { %v169_v52 = vmax.f32 %v89_v22, %v123_v50  ;;  %v170_v53 = vmax.f32 %v90_v19, %v125_v51 }
  0xf0   :  { %186 = vst.msk [vmem:[%s348_s1 + $0x8] sm:$0xff] %vm184_vm0, %v169_v52  ;;  %187 = vst.msk [vmem:[%s348_s1 + $0x10] sm:$0xff] %vm184_vm0, %v170_v53 }
  0xf1   :  { %v127_v54 = vpop.permute.xlu1 %126  ;;  %v129_v55 = vpop.permute.xlu0 %128 }
  0xf2   :  { %v171_v56 = vmax.f32 %v91_v23, %v127_v54  ;;  %v172_v57 = vmax.f32 %v92_v26, %v129_v55 }
  0xf4   :  { %188 = vst.msk [vmem:[%s348_s1 + $0x18] sm:$0xff] %vm184_vm0, %v171_v56  ;;  %189 = vst.msk [vmem:[%s348_s1 + $0x20] sm:$0xff] %vm184_vm0, %v172_v57 }
  0xf5   :  { %v131_v58 = vpop.permute.xlu1 %130  ;;  %v133_v59 = vpop.permute.xlu0 %132 }
  0xf6   :  { %v173_v60 = vmax.f32 %v93_v27, %v131_v58  ;;  %v174_v61 = vmax.f32 %v94_v30, %v133_v59 }
  0xf8   :  { %190 = vst.msk [vmem:[%s348_s1 + $0x28] sm:$0xff] %vm184_vm0, %v173_v60  ;;  %191 = vst.msk [vmem:[%s348_s1 + $0x30] sm:$0xff] %vm184_vm0, %v174_v61 }
  0xf9   :  { %v135_v62 = vpop.permute.xlu1 %134  ;;  %v137_v63 = vpop.permute.xlu0 %136 }
  0xfa   :  { %v175_v0 = vmax.f32 %v95_v31, %v135_v62  ;;  %v176_v1 = vmax.f32 %v96_v34, %v137_v63 }
  0xfc   :  { %192 = vst.msk [vmem:[%s348_s1 + $0x38] sm:$0xff] %vm184_vm0, %v175_v0  ;;  %193 = vst.msk [vmem:[%s348_s1 + $0x40] sm:$0xff] %vm184_vm0, %v176_v1 }
  0xfd   :  { %v139_v2 = vpop.permute.xlu1 %138  ;;  %v141_v3 = vpop.permute.xlu0 %140 }
  0xfe   :  { %v177_v4 = vmax.f32 %v97_v35, %v139_v2  ;;  %v178_v5 = vmax.f32 %v98_v38, %v141_v3 }
 0x100   :  { %194 = vst.msk [vmem:[%s348_s1 + $0x48] sm:$0xff] %vm184_vm0, %v177_v4  ;;  %195 = vst.msk [vmem:[%s348_s1 + $0x50] sm:$0xff] %vm184_vm0, %v178_v5 }
 0x101   :  { %v143_v6 = vpop.permute.xlu1 %142  ;;  %v145_v7 = vpop.permute.xlu0 %144 }
 0x102   :  { %v179_v8 = vmax.f32 %v99_v39, %v143_v6  ;;  %v180_v9 = vmax.f32 %v100_v42, %v145_v7 }
 0x104   :  { %196 = vst.msk [vmem:[%s348_s1 + $0x58] sm:$0xff] %vm184_vm0, %v179_v8  ;;  %197 = vst.msk [vmem:[%s348_s1 + $0x60] sm:$0xff] %vm184_vm0, %v180_v9 }
 0x105   :  { %v147_v10 = vpop.permute.xlu1 %146  ;;  %v149_v11 = vpop.permute.xlu0 %148 }
 0x106   :  { %v181_v12 = vmax.f32 %v101_v43, %v147_v10  ;;  %v182_v13 = vmax.f32 %v102_v46, %v149_v11 }
 0x108   :  { %198 = vst.msk [vmem:[%s348_s1 + $0x68] sm:$0xff] %vm184_vm0, %v181_v12  ;;  %199 = vst.msk [vmem:[%s348_s1 + $0x70] sm:$0xff] %vm184_vm0, %v182_v13 }
 0x109   :  { %v151_v14 = vpop.permute.xlu1 %150 }
 0x10a   :  { %v183_v15 = vmax.f32 %v103_v47, %v151_v14 }
 0x10c   :  { %200 = vst.msk [vmem:[%s348_s1 + $0x78] sm:$0xff] %vm184_vm0, %v183_v15 }

// kernel: hgn_forward.44
= control target key start
LH: loop header
LB: loop body
LE: loop exit
PB: predicated region body
PF: predicated region fallthrough
CT: control target
= control target key end

     0   :  { %s946_s15 = smov 0   ;;  %s1072_s0 = inlined_call_operand.vmem [shape: f32[160,24], index: 0, kind: input, shape index: {}]   ;;  %s1073_s1 = inlined_call_operand.vmem [shape: f32[72,8], index: 1, kind: input, shape index: {}]   ;;  %s1074_s2 = inlined_call_operand.vmem [shape: f32[1,8], index: 2, kind: input, shape index: {}]   ;;  %s1075_s3 = inlined_call_operand.vmem [shape: f32[128,8], index: 3, kind: output, shape index: {0}]   ;;  %s1076_s4 = inlined_call_operand.vmem [shape: f32[2,2,8], index: 4, kind: output, shape index: {1}]  }
   0x1 LB: > { %s952_s16 = sadd.s32 4294967295, %s919_s15   ;;  %p754_p0 = scmp.ge.s32.totalorder %s919_s15, 1  ;;  %s919_s15 = sphi %s946_s15, %s15_s15  }
   0x2   : > { %p166_p1 = scmp.lt.s32.totalorder %s919_s15, 3 }
   0x4   : > { %p167_p2 = pnand %p754_p0, %p166_p1 }
   0x5   : > { %v225_v0 = vld [vmem:[%s1073_s1 + $0x18] sm:$0xff] (!%p167_p2)  ;;  %v226_v1 = vld [vmem:[%s1073_s1 + $0x20] sm:$0xff] (!%p167_p2)  ;;  %s196_s23 = smul.u32 (!%p167_p2), 10, %s952_s16  ;;  %v223_v4 = vld [vmem:[%s1073_s1 + $0x8] sm:$0xff] (!%p167_p2)  ;;  %vm228_vm0 = vcmask (!%p167_p2), 195584   ;;  %s756_s14 = sshll.u32 (!%p167_p2), %s952_s16, 3 }
   0x6   : > { %170 = sbr.rel (%p167_p2) target bundleno = 276 (0x114), region = 32  ;;  %v222_v2 = vld [vmem:[%s1073_s1] sm:$0xff] (!%p167_p2)  ;;  %v873_v3 = vpack.c.bf16 (!%p167_p2), %v226_v1, %v225_v0  ;;  %v227_v6 = vld [vmem:[%s1073_s1 + $0x28] sm:$0xff] (!%p167_p2)  ;;  %v224_v7 = vld [vmem:[%s1073_s1 + $0x10] sm:$0xff] (!%p167_p2)  ;;  %p203_p4 = scmp.lt.s32.totalorder (!%p167_p2), %s756_s14, 15  ;;  %vm600_vm1 = vcmask (!%p167_p2), 64512  }
   0x7   : > { %v877_v5 = vpack.c.bf16 (!%p167_p2), %v223_v4, %v222_v2  ;;  %p197_p3 = scmp.lt.s32.totalorder (!%p167_p2), %s196_s23, 19  ;;  %v466_v8 = vld [vmem:[%s1073_s1 + $0x30] sm:$0xff] (!%p167_p2)  ;;  %v467_v9 = vld [vmem:[%s1073_s1 + $0x38] sm:$0xff] (!%p167_p2)  ;;  %v468_v15 = vld [vmem:[%s1073_s1 + $0x40] sm:$0xff] (!%p167_p2)  ;;  %p208_p5 = scmp.lt.s32.totalorder (!%p167_p2), %s952_s16, 1  ;;  %vm659_vm2 = vcmask (!%p167_p2), 1040384  }
   0x8   : > { %874 = vmatprep.subr.bf16.mxu1 (!%p167_p2), %v873_v3  ;;  %v881_v10 = vpack.c.bf16 (!%p167_p2), %v467_v9, %v466_v8  ;;  %v783_v27 = vld [vmem:[%s1074_s2] ss:$0 sm:$0xff] (!%p167_p2)  ;;  %vm661_vm3 = vcmask (!%p167_p2), 58368  }
   0x9   : > { %878 = vmatprep.subr.bf16.mxu0 (!%p167_p2), %v877_v5  ;;  %876 = vmatpush3.bf16.msra.mxu1 (!%p167_p2), %v873_v3 }
   0xa   : > { %880 = vmatpush3.bf16.msra.mxu0 (!%p167_p2), %v877_v5  ;;  %823 = vmatprep.subr.mxu1 (!%p167_p2), %v227_v6 }
   0xb   : > { %841 = vmatprep.subr.mxu0 (!%p167_p2), %v224_v7 }
   0xd   : > { %s1078_s23 = smov (!%p197_p3, %s196_s23), 19  ;;  %824 = vmatpush3.msra.mxu1 %v227_v6  ;;  %s1080_s14 = smov (!%p203_p4, %s756_s14), 15 }
   0xe   : > { %s755_s8 = sshll.u32 %s1078_s23, 3  ;;  %842 = vmatpush3.msra.mxu0 %v224_v7  ;;  %885 = vmatprep.subr.bf16.mxu1 %v877_v5  ;;  %s757_s17 = sshll.u32 %s1080_s14, 3 }
   0xf   : > { %s984_s11 = scalar_lea.vmem %s1072_s0, %s755_s8  ;;  %882 = vmatprep.subr.bf16.mxu0 %v881_v10  ;;  %s1030_s22 = scalar_lea.vmem %s1075_s3, %s757_s17 }
  0x10   : > { %v213_v11 = vld [vmem:[%s984_s11 + $0x8] sm:$0xff]  ;;  %v212_v12 = vld [vmem:[%s984_s11] sm:$0xff]  ;;  %v214_v13 = vld [vmem:[%s984_s11 + $0x10] sm:$0xff]  ;;  %s1082_s16 = smov (!%p208_p5, %s952_s16), 1 }
  0x11   : > { %825 = vmatprep.mubr.msk.f32.mxu1 %vm228_vm0, %v213_v11  ;;  %843 = vmatprep.mubr.msk.f32.mxu0 %vm228_vm0, %v212_v12  ;;  %v215_v14 = vld [vmem:[%s984_s11 + $0x18] sm:$0xff]  ;;  %v216_v16 = vld [vmem:[%s984_s11 + $0x20] sm:$0xff]  ;;  %v217_v17 = vld [vmem:[%s984_s11 + $0x28] sm:$0xff]  ;;  %s758_s23 = sshll.u32 %s1082_s16, 1 }
  0x12   : > { %826 = vmatmul.mubr.msk.f32.vlgmr.msra.gmra.mrb[0].mxu1 %vm228_vm0, %v214_v13  ;;  %844 = vmatmul.mubr.msk.f32.vlgmr.msra.gmra.mrb[0].mxu0 %vm228_vm0, %v213_v11  ;;  %v218_v18 = vld [vmem:[%s984_s11 + $0x30] sm:$0xff]  ;;  %v219_v19 = vld [vmem:[%s984_s11 + $0x38] sm:$0xff]  ;;  %v220_v20 = vld [vmem:[%s984_s11 + $0x40] sm:$0xff]  ;;  %s211_s26 = scalar_lea.vmem %s1076_s4, %s758_s23 }
  0x13   : > { %887 = vmatpush3.bf16.msra.mxu1 %v877_v5  ;;  %884 = vmatpush3.bf16.msra.mxu0 %v881_v10  ;;  %v221_v21 = vld [vmem:[%s984_s11 + $0x48] sm:$0xff] }
  0x14   : > { %828 = vmatprep.mubr.msk.f32.mxu1 %vm228_vm0, %v215_v14  ;;  %846 = vmatprep.mubr.msk.f32.mxu0 %vm228_vm0, %v214_v13 }
  0x15   : > { %859 = vmatprep.subr.mxu0 %v468_v15  ;;  %886 = vmatprep.subr.mxu1 %v224_v7 }
  0x16   : > { %829 = vmatmul.mubr.msk.f32.gmra.mrb[2].mxu1 %vm228_vm0, %v216_v16  ;;  %847 = vmatmul.mubr.msk.f32.gmra.mrb[2].mxu0 %vm228_vm0, %v215_v14 }
  0x17   : > { %831 = vmatprep.mubr.msk.f32.mxu1 %vm228_vm0, %v217_v17  ;;  %860 = vmatpush3.msra.mxu0 %v468_v15 }
  0x18   : > { %861 = vmatprep.mubr.msk.f32.mxu0 %vm228_vm0, %v214_v13  ;;  %888 = vmatpush3.msra.mxu1 %v224_v7 }
  0x1a   : > { %832 = vmatmul.mubr.msk.f32.gmra.mrb[4].mxu1 %vm228_vm0, %v218_v18  ;;  %862 = vmatmul.mubr.msk.f32.vlgmr.msra.gmra.mrb[0].mxu0 %vm228_vm0, %v215_v14 }
  0x1b   : > { %834 = vmatprep.mubr.msk.f32.mxu1 %vm228_vm0, %v219_v19  ;;  %864 = vmatprep.mubr.msk.f32.mxu0 %vm228_vm0, %v216_v16 }
  0x1e   : > { %835 = vmatmul.mubr.msk.f32.gmra.mrb[6].mxu1 %vm228_vm0, %v220_v20  ;;  %865 = vmatmul.mubr.msk.f32.gmra.mrb[2].mxu0 %vm228_vm0, %v217_v17 }
  0x1f   : > { %849 = vmatprep.mubr.msk.f32.mxu1 %vm228_vm0, %v216_v16  ;;  %867 = vmatprep.mubr.msk.f32.mxu0 %vm228_vm0, %v218_v18 }
  0x22   : > { %850 = vmatmul.mubr.msk.f32.vlgmr.msra.gmra.mrb[4].mxu1 %vm228_vm0, %v217_v17  ;;  %868 = vmatmul.mubr.msk.f32.gmra.mrb[4].mxu0 %vm228_vm0, %v219_v19 }
  0x23   : > { %852 = vmatprep.mubr.msk.f32.mxu1 %vm228_vm0, %v218_v18  ;;  %870 = vmatprep.mubr.msk.f32.mxu0 %vm228_vm0, %v220_v20 }
  0x26   : > { %853 = vmatmul.mubr.msk.f32.gmra.mrb[6].mxu1 %vm228_vm0, %v219_v19  ;;  %871 = vmatmul.mubr.msk.f32.gmra.mrb[6].mxu0 %vm228_vm0, %v221_v21 }
  0xe5   : > { %v827_v22 = vpop.f32.mrb[0].mxu1 }
  0xe6   : > { %v319_v23 = vpop.f32.mrb[1].mxu1 }
  0xe9   : > { %v830_v24 = vpop.f32.mrb[2].mxu1 }
  0xea   : > { %v329_v25 = vpop.f32.mrb[3].mxu1 }
  0xed   : > { %v863_v26 = vpop.f32.mrb[0].mxu0 }
  0xee   : > { %v889_v28 = vadd.f32 %v863_v26, %v827_v22  ;;  %v538_v29 = vpop.f32.mrb[1].mxu0 }
  0xef   : > { %v890_v30 = vadd.f32 %v538_v29, %v319_v23 }
  0xf0   : > { %v593_v31 = vadd.f32 %v889_v28, %v783_v27 }
  0xf1   : > { %v592_v32 = vadd.f32 %v890_v30, %v783_v27  ;;  %v866_v33 = vpop.f32.mrb[2].mxu0 }
  0xf2   : > { %602 = vst.msk [vmem:[%s1030_s22 + $0x8] sm:$0xff] %vm600_vm1, %v593_v31  ;;  %v610_v34 = vsel %vm600_vm1, %v593_v31, 0.0  ;;  %v631_v35 = vmul.f32 %v593_v31, %v593_v31  ;;  %v891_v36 = vadd.f32 %v866_v33, %v830_v24  ;;  %v548_v37 = vpop.f32.mrb[3].mxu0 }
  0xf3   : > { %601 = vst.msk [vmem:[%s1030_s22] sm:$0xff] %vm600_vm1, %v592_v32  ;;  %v609_v38 = vsel %vm600_vm1, %v592_v32, 0.0  ;;  %v630_v39 = vmul.f32 %v592_v32, %v592_v32  ;;  %v892_v40 = vadd.f32 %v548_v37, %v329_v25 }
  0xf4   : > { %v639_v41 = vsel %vm600_vm1, %v631_v35, 0.0  ;;  %v611_v42 = vadd.f32 %v610_v34, %v609_v38  ;;  %v595_v43 = vadd.f32 %v891_v36, %v783_v27 }
  0xf5   : > { %v851_v44 = vpop.f32.mrb[4].mxu1  ;;  %v638_v45 = vsel %vm600_vm1, %v630_v39, 0.0  ;;  %v594_v46 = vadd.f32 %v892_v40, %v783_v27  ;;  %v869_v47 = vpop.f32.mrb[4].mxu0 }
  0xf6   : > { %v447_v48 = vpop.f32.mrb[5].mxu1  ;;  %v640_v49 = vadd.f32 %v639_v41, %v638_v45  ;;  %604 = vst.msk [vmem:[%s1030_s22 + $0x18] sm:$0xff] %vm600_vm1, %v595_v43  ;;  %v633_v50 = vmul.f32 %v595_v43, %v595_v43  ;;  %v893_v51 = vadd.f32 %v869_v47, %v851_v44  ;;  %v558_v52 = vpop.f32.mrb[5].mxu0  ;;  %v614_v59 = vsel %vm600_vm1, %v595_v43, 0.0 }
  0xf7   : > { %603 = vst.msk [vmem:[%s1030_s22 + $0x10] sm:$0xff] %vm600_vm1, %v594_v46  ;;  %v612_v53 = vsel %vm600_vm1, %v594_v46, 0.0  ;;  %v632_v54 = vmul.f32 %v594_v46, %v594_v46  ;;  %v894_v55 = vadd.f32 %v558_v52, %v447_v48 }
  0xf8   : > { %v613_v56 = vadd.f32 %v612_v53, %v611_v42  ;;  %v597_v57 = vadd.f32 %v893_v51, %v783_v27  ;;  %v643_v0 = vsel %vm600_vm1, %v633_v50, 0.0 }
  0xf9   : > { %v854_v58 = vpop.f32.mrb[6].mxu1  ;;  %v641_v60 = vsel %vm600_vm1, %v632_v54, 0.0  ;;  %v596_v61 = vadd.f32 %v894_v55, %v783_v27  ;;  %v872_v62 = vpop.f32.mrb[6].mxu0 }
  0xfa   : > { %v457_v63 = vpop.f32.mrb[7].mxu1  ;;  %v642_v1 = vadd.f32 %v641_v60, %v640_v49  ;;  %606 = vst.msk [vmem:[%s1030_s22 + $0x28] sm:$0xff] %vm600_vm1, %v597_v57  ;;  %v635_v2 = vmul.f32 %v597_v57, %v597_v57  ;;  %v615_v3 = vadd.f32 %v614_v59, %v613_v56  ;;  %v568_v4 = vpop.f32.mrb[7].mxu0  ;;  %v895_v7 = vadd.f32 %v872_v62, %v854_v58 }
  0xfb   : > { %605 = vst.msk [vmem:[%s1030_s22 + $0x20] sm:$0xff] %vm600_vm1, %v596_v61  ;;  %v616_v5 = vsel %vm600_vm1, %v596_v61, 0.0  ;;  %v634_v6 = vmul.f32 %v596_v61, %v596_v61  ;;  %v896_v8 = vadd.f32 %v568_v4, %v457_v63  ;;  %v618_v11 = vsel %vm600_vm1, %v597_v57, 0.0 }
  0xfc   : > { %v617_v9 = vadd.f32 %v616_v5, %v615_v3  ;;  %v644_v10 = vadd.f32 %v643_v0, %v642_v1  ;;  %v599_v13 = vadd.f32 %v895_v7, %v783_v27  ;;  %v647_v17 = vsel %vm600_vm1, %v635_v2, 0.0 }
  0xfd   : > { %v645_v12 = vsel %vm600_vm1, %v634_v6, 0.0  ;;  %v598_v14 = vadd.f32 %v896_v8, %v783_v27 }
  0xfe   : > { %v646_v15 = vadd.f32 %v645_v12, %v644_v10  ;;  %v619_v16 = vadd.f32 %v618_v11, %v617_v9  ;;  %608 = vst.msk [vmem:[%s1030_s22 + $0x38] sm:$0xff] %vm600_vm1, %v599_v13  ;;  %v637_v18 = vmul.f32 %v599_v13, %v599_v13  ;;  %v622_v23 = vsel %vm600_vm1, %v599_v13, 0.0 }
  0xff   : > { %607 = vst.msk [vmem:[%s1030_s22 + $0x30] sm:$0xff] %vm600_vm1, %v598_v14  ;;  %v620_v19 = vsel %vm600_vm1, %v598_v14, 0.0  ;;  %v636_v20 = vmul.f32 %v598_v14, %v598_v14 }
 0x100   : > { %v621_v21 = vadd.f32 %v620_v19, %v619_v16  ;;  %v648_v22 = vadd.f32 %v647_v17, %v646_v15  ;;  %v651_v27 = vsel %vm600_vm1, %v637_v18, 0.0 }
 0x101   : > { %v649_v24 = vsel %vm600_vm1, %v636_v20, 0.0 }
 0x102   : > { %v623_v25 = vadd.f32 %v622_v23, %v621_v21  ;;  %v650_v26 = vadd.f32 %v649_v24, %v648_v22 }
 0x104   : > { %v624_v28 = vrot.slane %v623_v25, 4  ;;  %v652_v29 = vadd.f32 %v651_v27, %v650_v26 }
 0x106   : > { %v625_v30 = vadd.f32 %v624_v28, %v623_v25  ;;  %v653_v31 = vrot.slane %v652_v29, 4 }
 0x108   : > { %v626_v32 = vrot.slane %v625_v30, 2  ;;  %v654_v33 = vadd.f32 %v653_v31, %v652_v29 }
 0x10a   : > { %v627_v34 = vadd.f32 %v626_v32, %v625_v30  ;;  %v655_v35 = vrot.slane %v654_v33, 2 }
 0x10c   : > { %v628_v36 = vrot.slane %v627_v34, 1  ;;  %v656_v37 = vadd.f32 %v655_v35, %v654_v33 }
 0x10e   : > { %v657_v38 = vrot.slane %v656_v37, 1  ;;  %v629_v39 = vadd.f32 %v628_v36, %v627_v34 }
 0x110   : > { %v658_v40 = vadd.f32 %v657_v38, %v656_v37 }
 0x112   : > { %v660_v41 = vsel %vm659_vm2, %v629_v39, %v658_v40 }
 0x113   : > { %662 = vst.msk [vmem:[%s211_s26] sm:$0x3] %vm661_vm3, %v660_v41 }
 0x114 PF: > { %s15_s15 = sadd.s32 1, %s919_s15  }
 0x115   : > { %p12_p6 = scmp.ge.s32.totalorder %s15_s15, 4  }
 0x117   :  { %14 = sbr.rel (!%p12_p6) target bundleno = 1 (0x1), region = 74 }

// kernel: hgn_forward.45
= control target key start
LH: loop header
LB: loop body
LE: loop exit
PB: predicated region body
PF: predicated region fallthrough
CT: control target
= control target key end

     0   :  { %s71_s0 = inlined_call_operand.vmem [shape: f32[8,128], index: 0, kind: input, shape index: {}]   ;;  %s72_s1 = inlined_call_operand.vmem [shape: f32[1,128], index: 1, kind: input, shape index: {}]   ;;  %s73_s2 = inlined_call_operand.vmem [shape: f32[1,128], index: 2, kind: input, shape index: {}]   ;;  %s74_s3 = inlined_call_operand.vmem [shape: f32[8,128], index: 3, kind: output, shape index: {}]  }
   0x1   :  { %v14_v0 = vld [vmem:[%s71_s0] sm:$0xff] }
   0x2   :  { %v37_v1 = vld [vmem:[%s72_s1] ss:$0 sm:$0xff] }
   0x3   :  { %v38_v2 = vld [vmem:[%s73_s2] ss:$0 sm:$0xff]  ;;  %v22_v3 = vmul.f32 %v37_v1, %v14_v0 }
   0x5   :  { %v30_v4 = vadd.f32 %v38_v2, %v22_v3 }
   0x7   :  { %v31_v5 = vmax.f32 %v30_v4, 0.0 }
   0x9   :  { %32 = vst [vmem:[%s74_s3] sm:$0xff] %v31_v5 }

// kernel: hgn_forward.47
= control target key start
LH: loop header
LB: loop body
LE: loop exit
PB: predicated region body
PF: predicated region fallthrough
CT: control target
= control target key end

     0   :  { %s84_s0 = inlined_call_operand.vmem [shape: f32[8,128], index: 0, kind: input, shape index: {}]   ;;  %s85_s1 = inlined_call_operand.vmem [shape: f32[8,128], index: 1, kind: input, shape index: {}]   ;;  %s86_s2 = inlined_call_operand.vmem [shape: f32[1,128], index: 2, kind: input, shape index: {}]   ;;  %s87_s3 = inlined_call_operand.vmem [shape: f32[1,128], index: 3, kind: input, shape index: {}]   ;;  %s88_s4 = inlined_call_operand.vmem [shape: f32[8,128], index: 4, kind: output, shape index: {}]  }
   0x1   :  { %v17_v0 = vld [vmem:[%s84_s0] sm:$0xff] }
   0x2   :  { %v42_v1 = vld [vmem:[%s86_s2] ss:$0 sm:$0xff] }
   0x3   :  { %v43_v2 = vld [vmem:[%s87_s3] ss:$0 sm:$0xff]  ;;  %v25_v3 = vmul.f32 %v42_v1, %v17_v0 }
   0x4   :  { %v34_v4 = vld [vmem:[%s85_s1] sm:$0xff] }
   0x5   :  { %v33_v5 = vadd.f32 %v43_v2, %v25_v3 }
   0x7   :  { %v35_v6 = vadd.f32 %v34_v4, %v33_v5 }
   0x9   :  { %v36_v7 = vmax.f32 %v35_v6, 0.0 }
   0xb   :  { %37 = vst [vmem:[%s88_s4] sm:$0xff] %v36_v7 }

// kernel: hgn_forward.52
= control target key start
LH: loop header
LB: loop body
LE: loop exit
PB: predicated region body
PF: predicated region fallthrough
CT: control target
= control target key end

     0   :  { %s63_s10 = smov 120   ;;  %s64_s15 = smov 112   ;;  %vm52_vm0 = vcmask 64512   ;;  %s99_s0 = inlined_call_operand.vmem [shape: f32[32,32], index: 0, kind: input, shape index: {}]   ;;  %s100_s1 = inlined_call_operand.vmem [shape: f32[32,8], index: 1, kind: output, shape index: {}]  }
   0x1   :  { %v8_v0 = vld [vmem:[%s99_s0] sm:$0xff]  ;;  %v10_v1 = vld [vmem:[%s99_s0 + $0x10] sm:$0xff]  ;;  %v9_v2 = vld [vmem:[%s99_s0 + $0x8] sm:$0xff] }
   0x2   :  { %16 = vrot.lane.b32.xlu0 %v8_v0, %s63_s10  ;;  %20 = vrot.lane.b32.xlu1 %v10_v1, %s63_s10  ;;  %v11_v3 = vld [vmem:[%s99_s0 + $0x18] sm:$0xff] }
   0x6   :  { %18 = vrot.lane.b32.xlu0 %v9_v2, %s63_s10  ;;  %22 = vrot.lane.b32.xlu1 %v11_v3, %s63_s10 }
  0x74   :  { %v17_v4 = vpop.permute.xlu0 %16  ;;  %v21_v5 = vpop.permute.xlu1 %20 }
  0x75   :  { %v28_v6 = vmax.f32 %v8_v0, %v17_v4  ;;  %v30_v7 = vmax.f32 %v10_v1, %v21_v5 }
  0x77   :  { %36 = vrot.lane.b32.xlu0 %v28_v6, %s64_s15 }
  0x78   :  { %v19_v8 = vpop.permute.xlu0 %18  ;;  %v23_v9 = vpop.permute.xlu1 %22 }
  0x79   :  { %v29_v10 = vmax.f32 %v9_v2, %v19_v8  ;;  %v31_v11 = vmax.f32 %v11_v3, %v23_v9 }
  0x7b   :  { %40 = vrot.lane.b32.xlu0 %v30_v7, %s64_s15  ;;  %38 = vrot.lane.b32.xlu1 %v29_v10, %s64_s15 }
  0x7f   :  { %42 = vrot.lane.b32.xlu1 %v31_v11, %s64_s15 }
  0xe9   :  { %v37_v12 = vpop.permute.xlu0 %36 }
  0xea   :  { %v48_v13 = vmax.f32 %v28_v6, %v37_v12 }
  0xec   :  { %53 = vst.msk [vmem:[%s100_s1] sm:$0xff] %vm52_vm0, %v48_v13 }
  0xed   :  { %v39_v14 = vpop.permute.xlu1 %38  ;;  %v41_v15 = vpop.permute.xlu0 %40 }
  0xee   :  { %v49_v16 = vmax.f32 %v29_v10, %v39_v14  ;;  %v50_v17 = vmax.f32 %v30_v7, %v41_v15 }
  0xf0   :  { %54 = vst.msk [vmem:[%s100_s1 + $0x8] sm:$0xff] %vm52_vm0, %v49_v16  ;;  %55 = vst.msk [vmem:[%s100_s1 + $0x10] sm:$0xff] %vm52_vm0, %v50_v17 }
  0xf1   :  { %v43_v18 = vpop.permute.xlu1 %42 }
  0xf2   :  { %v51_v19 = vmax.f32 %v31_v11, %v43_v18 }
  0xf4   :  { %56 = vst.msk [vmem:[%s100_s1 + $0x18] sm:$0xff] %vm52_vm0, %v51_v19 }

// kernel: mul.11
= control target key start
LH: loop header
LB: loop body
LE: loop exit
PB: predicated region body
PF: predicated region fallthrough
CT: control target
= control target key end

     0   :  { %vm42_vm0 = vcmask 1047556   ;;  %vm44_vm1 = vcmask 64512   ;;  %vm54_vm2 = vcmask 130112   ;;  %s111_s0 = inlined_call_operand.vmem [shape: f32[8,2,8], index: 0, kind: input, shape index: {}]   ;;  %s112_s1 = inlined_call_operand.vmem [shape: f32[8,16], index: 1, kind: output, shape index: {}]  }
   0x1   :  { %v62_v0 = vld [vmem:[%s111_s0 + $0xe] sm:$0x3]  ;;  %v63_v1 = vld [vmem:[%s111_s0 + $0xc] sm:$0x3]  ;;  %v64_v2 = vld [vmem:[%s111_s0 + $0xa] sm:$0x3] }
   0x2   :  { %8 = vst [vmem:[#allocation0 + $0x38] sm:$0x3] %v62_v0  ;;  %13 = vst [vmem:[#allocation0 + $0x30] sm:$0x3] %v63_v1  ;;  %v65_v3 = vld [vmem:[%s111_s0 + $0x8] sm:$0x3] }
   0x3   :  { %18 = vst [vmem:[#allocation0 + $0x28] sm:$0x3] %v64_v2  ;;  %v66_v4 = vld [vmem:[%s111_s0 + $0x6] sm:$0x3]  ;;  %v67_v5 = vld [vmem:[%s111_s0 + $0x4] sm:$0x3] }
   0x4   :  { %23 = vst [vmem:[#allocation0 + $0x20] sm:$0x3] %v65_v3  ;;  %28 = vst [vmem:[#allocation0 + $0x18] sm:$0x3] %v66_v4  ;;  %v68_v6 = vld [vmem:[%s111_s0 + $0x2] sm:$0x3] }
   0x5   :  { %33 = vst [vmem:[#allocation0 + $0x10] sm:$0x3] %v67_v5  ;;  %v38_v7 = vld [vmem:[%s111_s0] sm:$0x3]  ;;  %37 = vst [vmem:[#allocation0 + $0x8] sm:$0x3] %v68_v6 }
   0x6   :  { %39 = vst [vmem:[#allocation0] sm:$0x3] %v38_v7  ;;  %s70_s0 = smov 8  }
   0xb   :  { %v41_v8 = vld [vmem:[#allocation0] ss:$8 sm:$0xf0]   ;;  %v49_v9 = vld [vmem:[#allocation0 + $0x1] ss:$8 sm:$0xf0]  }
   0xd   :  { %v40_v10 = vld [vmem:[#allocation0] ss:$8 sm:$0xf]   ;;  %v47_v11 = vld [vmem:[#allocation0 + $0x1] ss:$8 sm:$0xf]  }
   0xe   :  { %v43_v12 = vsel %vm42_vm0, %v41_v8, %v40_v10  ;;  %v51_v13 = vsel %vm42_vm0, %v49_v9, %v47_v11 }
   0xf   :  { %52 = vrot.lane.b32.xlu0 %v51_v13, %s70_s0  ;;  %45 = vst.msk [vmem:[%s112_s1] sm:$0xff] %vm44_vm1, %v43_v12  }
  0x81   :  { %v53_v14 = vpop.permute.xlu0 %52  }
  0x82   :  { %55 = vst.msk [vmem:[%s112_s1] sm:$0xff] %vm54_vm2, %v53_v14  }

// kernel: hgn_forward.53
= control target key start
LH: loop header
LB: loop body
LE: loop exit
PB: predicated region body
PF: predicated region fallthrough
CT: control target
= control target key end

     0   :  { %s711_s15 = smov 0   ;;  %s773_s0 = inlined_call_operand.vmem [shape: f32[48,24], index: 0, kind: input, shape index: {}]   ;;  %s774_s1 = inlined_call_operand.vmem [shape: f32[72,8], index: 1, kind: input, shape index: {}]   ;;  %s775_s2 = inlined_call_operand.vmem [shape: f32[1,8], index: 2, kind: input, shape index: {}]   ;;  %s776_s3 = inlined_call_operand.vmem [shape: f32[32,8], index: 3, kind: output, shape index: {0}]   ;;  %s777_s4 = inlined_call_operand.vmem [shape: f32[2,2,8], index: 4, kind: output, shape index: {1}]  }
   0x1 LB: > { %s717_s16 = sadd.s32 4294967295, %s684_s15   ;;  %p598_p0 = scmp.ge.s32.totalorder %s684_s15, 1  ;;  %s684_s15 = sphi %s711_s15, %s15_s15  }
   0x2   : > { %p166_p1 = scmp.lt.s32.totalorder %s684_s15, 3 }
   0x4   : > { %p167_p2 = pnand %p598_p0, %p166_p1 }
   0x5   : > { %v215_v0 = vld [vmem:[%s774_s1] sm:$0xff] (!%p167_p2)  ;;  %v216_v1 = vld [vmem:[%s774_s1 + $0x8] sm:$0xff] (!%p167_p2)  ;;  %s196_s21 = smul.u32 (!%p167_p2), 3, %s717_s16  ;;  %v217_v3 = vld [vmem:[%s774_s1 + $0x10] sm:$0xff] (!%p167_p2)  ;;  %vm230_vm0 = vcmask (!%p167_p2), 195584   ;;  %vm224_vm1 = vcmask (!%p167_p2), 1043456  }
   0x6   : > { %170 = sbr.rel (%p167_p2) target bundleno = 262 (0x106), region = 32  ;;  %v658_v2 = vpack.c.bf16 (!%p167_p2), %v216_v1, %v215_v0  ;;  %v218_v4 = vld [vmem:[%s774_s1 + $0x18] sm:$0xff] (!%p167_p2)  ;;  %v389_v5 = vld [vmem:[%s774_s1 + $0x30] sm:$0xff] (!%p167_p2)  ;;  %v219_v7 = vld [vmem:[%s774_s1 + $0x20] sm:$0xff] (!%p167_p2)  ;;  %s600_s14 = sshll.u32 (!%p167_p2), %s717_s16, 1  ;;  %vm480_vm2 = vcmask (!%p167_p2), 64512  }
   0x7   : > { %p197_p3 = scmp.lt.s32.totalorder (!%p167_p2), %s196_s21, 5  ;;  %v390_v6 = vld [vmem:[%s774_s1 + $0x38] sm:$0xff] (!%p167_p2)  ;;  %v654_v8 = vpack.c.bf16 (!%p167_p2), %v219_v7, %v218_v4  ;;  %v220_v9 = vld [vmem:[%s774_s1 + $0x28] sm:$0xff] (!%p167_p2)  ;;  %v391_v16 = vld [vmem:[%s774_s1 + $0x40] sm:$0xff] (!%p167_p2)  ;;  %p203_p4 = scmp.lt.s32.totalorder (!%p167_p2), %s600_s14, 3  ;;  %vm503_vm3 = vcmask (!%p167_p2), 1040384  }
   0x8   : > { %659 = vmatprep.subr.bf16.mxu0 (!%p167_p2), %v658_v2  ;;  %v662_v10 = vpack.c.bf16 (!%p167_p2), %v390_v6, %v389_v5  ;;  %v609_v23 = vld [vmem:[%s775_s2] ss:$0 sm:$0xff] (!%p167_p2)  ;;  %p208_p5 = scmp.lt.s32.totalorder (!%p167_p2), %s717_s16, 1  ;;  %vm505_vm4 = vcmask (!%p167_p2), 58368  }
   0x9   : > { %661 = vmatpush3.bf16.msra.mxu0 (!%p167_p2), %v658_v2  ;;  %655 = vmatprep.subr.bf16.mxu1 (!%p167_p2), %v654_v8 }
   0xa   : > { %640 = vmatprep.subr.mxu0 (!%p167_p2), %v217_v3  ;;  %657 = vmatpush3.bf16.msra.mxu1 (!%p167_p2), %v654_v8 }
   0xb   : > { %631 = vmatprep.subr.mxu1 (!%p167_p2), %v220_v9 }
   0xd   : > { %s779_s21 = smov (!%p197_p3, %s196_s21), 5  ;;  %641 = vmatpush3.msra.mxu0 %v217_v3  ;;  %s781_s14 = smov (!%p203_p4, %s600_s14), 3 }
   0xe   : > { %s599_s8 = sshll.u32 %s779_s21, 3  ;;  %663 = vmatprep.subr.bf16.mxu0 %v662_v10  ;;  %632 = vmatpush3.msra.mxu1 %v220_v9  ;;  %s601_s19 = sshll.u32 %s781_s14, 3 }
   0xf   : > { %s200_s11 = scalar_lea.vmem %s773_s0, %s599_s8  ;;  %s206_s22 = scalar_lea.vmem %s776_s3, %s601_s19 }
  0x10   : > { %v212_v11 = vld [vmem:[%s200_s11] sm:$0xff]  ;;  %v214_v12 = vld [vmem:[%s200_s11 + $0x10] sm:$0xff]  ;;  %v213_v13 = vld [vmem:[%s200_s11 + $0x8] sm:$0xff]  ;;  %s783_s16 = smov (!%p208_p5, %s717_s16), 1 }
  0x11   : > { %v225_v14 = vrot.slane %v212_v11, 4  ;;  %v228_v15 = vrot.slane %v214_v12, 4  ;;  %642 = vmatprep.mubr.msk.f32.mxu0 %vm230_vm0, %v212_v11  ;;  %v226_v17 = vrot.slane %v213_v13, 4  ;;  %s602_s23 = sshll.u32 %s783_s16, 1 }
  0x12   : > { %643 = vmatmul.mubr.msk.f32.vlgmr.msra.gmra.mrb[0].mxu0 %vm230_vm0, %v213_v13  ;;  %s211_s26 = scalar_lea.vmem %s777_s4, %s602_s23 }
  0x13   : > { %665 = vmatpush3.bf16.msra.mxu0 %v662_v10  ;;  %v227_v18 = vsel %vm224_vm1, %v225_v14, %v226_v17  ;;  %v229_v19 = vsel %vm224_vm1, %v226_v17, %v228_v15  ;;  %651 = vmatprep.mubr.msk.f32.mxu0 %vm230_vm0, %v213_v13 }
  0x14   : > { %649 = vmatprep.subr.mxu0 %v391_v16  ;;  %633 = vmatprep.mubr.msk.f32.mxu1 %vm230_vm0, %v227_v18 }
  0x15   : > { %634 = vmatmul.mubr.msk.f32.vlgmr.msra.gmra.mrb[0].mxu1 %vm230_vm0, %v229_v19 }
  0x17   : > { %650 = vmatpush3.msra.mxu0 %v391_v16 }
  0x1a   : > { %652 = vmatmul.mubr.msk.f32.vlgmr.msra.gmra.mrb[0].mxu0 %vm230_vm0, %v214_v12 }
  0xe8   : > { %v635_v20 = vpop.f32.mrb[0].mxu1 }
  0xe9   : > { %v301_v21 = vpop.f32.mrb[1].mxu1 }
  0xed   : > { %v653_v22 = vpop.f32.mrb[0].mxu0 }
  0xee   : > { %v666_v24 = vadd.f32 %v653_v22, %v635_v20  ;;  %v460_v25 = vpop.f32.mrb[1].mxu0 }
  0xef   : > { %v667_v26 = vadd.f32 %v460_v25, %v301_v21 }
  0xf0   : > { %v479_v27 = vadd.f32 %v666_v24, %v609_v23 }
  0xf1   : > { %v478_v28 = vadd.f32 %v667_v26, %v609_v23 }
  0xf2   : > { %v484_v29 = vsel %vm480_vm2, %v479_v27, 0.0  ;;  %v493_v30 = vmul.f32 %v479_v27, %v479_v27  ;;  %482 = vst.msk [vmem:[%s206_s22 + $0x8] sm:$0xff] %vm480_vm2, %v479_v27 }
  0xf3   : > { %481 = vst.msk [vmem:[%s206_s22] sm:$0xff] %vm480_vm2, %v478_v28  ;;  %v483_v31 = vsel %vm480_vm2, %v478_v28, 0.0  ;;  %v492_v32 = vmul.f32 %v478_v28, %v478_v28 }
  0xf4   : > { %v495_v33 = vsel %vm480_vm2, %v493_v30, 0.0  ;;  %v485_v34 = vadd.f32 %v484_v29, %v483_v31 }
  0xf5   : > { %v494_v35 = vsel %vm480_vm2, %v492_v32, 0.0 }
  0xf6   : > { %v486_v36 = vrot.slane %v485_v34, 4  ;;  %v496_v37 = vadd.f32 %v495_v33, %v494_v35 }
  0xf8   : > { %v487_v38 = vadd.f32 %v486_v36, %v485_v34  ;;  %v497_v39 = vrot.slane %v496_v37, 4 }
  0xfa   : > { %v488_v40 = vrot.slane %v487_v38, 2  ;;  %v498_v41 = vadd.f32 %v497_v39, %v496_v37 }
  0xfc   : > { %v489_v42 = vadd.f32 %v488_v40, %v487_v38  ;;  %v499_v43 = vrot.slane %v498_v41, 2 }
  0xfe   : > { %v490_v44 = vrot.slane %v489_v42, 1  ;;  %v500_v45 = vadd.f32 %v499_v43, %v498_v41 }
 0x100   : > { %v501_v46 = vrot.slane %v500_v45, 1  ;;  %v491_v47 = vadd.f32 %v490_v44, %v489_v42 }
 0x102   : > { %v502_v48 = vadd.f32 %v501_v46, %v500_v45 }
 0x104   : > { %v504_v49 = vsel %vm503_vm3, %v491_v47, %v502_v48 }
 0x105   : > { %506 = vst.msk [vmem:[%s211_s26] sm:$0x3] %vm505_vm4, %v504_v49 }
 0x106 PF: > { %s15_s15 = sadd.s32 1, %s684_s15  }
 0x107   : > { %p12_p6 = scmp.ge.s32.totalorder %s15_s15, 4  }
 0x109   :  { %14 = sbr.rel (!%p12_p6) target bundleno = 1 (0x1), region = 74 }

// kernel: hgn_forward.56
= control target key start
LH: loop header
LB: loop body
LE: loop exit
PB: predicated region body
PF: predicated region fallthrough
CT: control target
= control target key end

     0   :  { %s84_s0 = inlined_call_operand.vmem [shape: f32[2,128], index: 0, kind: input, shape index: {}]   ;;  %s85_s1 = inlined_call_operand.vmem [shape: f32[2,128], index: 1, kind: input, shape index: {}]   ;;  %s86_s2 = inlined_call_operand.vmem [shape: f32[1,128], index: 2, kind: input, shape index: {}]   ;;  %s87_s3 = inlined_call_operand.vmem [shape: f32[1,128], index: 3, kind: input, shape index: {}]   ;;  %s88_s4 = inlined_call_operand.vmem [shape: f32[2,128], index: 4, kind: output, shape index: {}]  }
   0x1   :  { %v17_v0 = vld [vmem:[%s84_s0] sm:$0x3] }
   0x2   :  { %v42_v1 = vld [vmem:[%s86_s2] ss:$0 sm:$0xff] }
   0x3   :  { %v43_v2 = vld [vmem:[%s87_s3] ss:$0 sm:$0xff]  ;;  %v25_v3 = vmul.f32 %v42_v1, %v17_v0 }
   0x4   :  { %v34_v4 = vld [vmem:[%s85_s1] sm:$0x3] }
   0x5   :  { %v33_v5 = vadd.f32 %v43_v2, %v25_v3 }
   0x7   :  { %v35_v6 = vadd.f32 %v34_v4, %v33_v5 }
   0x9   :  { %v36_v7 = vmax.f32 %v35_v6, 0.0 }
   0xb   :  { %37 = vst [vmem:[%s88_s4] sm:$0x3] %v36_v7 }

// kernel: hgn_forward.54
= control target key start
LH: loop header
LB: loop body
LE: loop exit
PB: predicated region body
PF: predicated region fallthrough
CT: control target
= control target key end

     0   :  { %s71_s0 = inlined_call_operand.vmem [shape: f32[2,128], index: 0, kind: input, shape index: {}]   ;;  %s72_s1 = inlined_call_operand.vmem [shape: f32[1,128], index: 1, kind: input, shape index: {}]   ;;  %s73_s2 = inlined_call_operand.vmem [shape: f32[1,128], index: 2, kind: input, shape index: {}]   ;;  %s74_s3 = inlined_call_operand.vmem [shape: f32[2,128], index: 3, kind: output, shape index: {}]  }
   0x1   :  { %v14_v0 = vld [vmem:[%s71_s0] sm:$0x3] }
   0x2   :  { %v37_v1 = vld [vmem:[%s72_s1] ss:$0 sm:$0xff] }
   0x3   :  { %v38_v2 = vld [vmem:[%s73_s2] ss:$0 sm:$0xff]  ;;  %v22_v3 = vmul.f32 %v37_v1, %v14_v0 }
   0x5   :  { %v30_v4 = vadd.f32 %v38_v2, %v22_v3 }
   0x7   :  { %v31_v5 = vmax.f32 %v30_v4, 0.0 }
   0x9   :  { %32 = vst [vmem:[%s74_s3] sm:$0x3] %v31_v5 }

// kernel: hgn_forward.65
= control target key start
LH: loop header
LB: loop body
LE: loop exit
PB: predicated region body
PF: predicated region fallthrough
CT: control target
= control target key end

     0   :  { %v133_v0 = vmov 0.0|0.0   ;;  %vm134_vm0 = vmmov 0   ;;  %v135_v4 = vmov 0.0   ;;  %vm19_vm1 = vcmask 261120   ;;  %s136_s22 = smov 64   ;;  %s178_s2 = inlined_call_operand.vmem [shape: f32[32,64], index: 2, kind: input, shape index: {}]   ;;  %s179_s1 = inlined_call_operand.vmem [shape: f32[8,32], index: 1, kind: input, shape index: {}]   ;;  %s180_s0 = inlined_call_operand.vmem [shape: f32[8,128], index: 0, kind: input, shape index: {}]   ;;  %s181_s3 = inlined_call_operand.vmem [shape: f32[8,128], index: 3, kind: output, shape index: {}]  }
   0x1   :  { %123 = vmatprep.subr.bf16.mxu0 %v133_v0  ;;  %v15_v1 = vld [vmem:[%s178_s2] sm:$0xff]  ;;  %v16_v2 = vld [vmem:[%s178_s2 + $0x8] sm:$0xff]  ;;  %v17_v3 = vld [vmem:[%s178_s2 + $0x10] sm:$0xff]  ;;  %120 = vmatprep.mubr.msk.f32.mxu0 %vm134_vm0, %v135_v4  ;;  %vm98_vm2 = vcmask 523264  }
   0x2   :  { %v124_v5 = vpack.c.bf16 %v16_v2, %v15_v1  ;;  %v18_v6 = vld [vmem:[%s178_s2 + $0x18] sm:$0xff]  ;;  %v14_v8 = vld [vmem:[%s179_s1] sm:$0xff] }
   0x3   :  { %v127_v7 = vpack.c.bf16 %v18_v6, %v17_v3  ;;  %v93_v11 = vld [vmem:[%s180_s0] sm:$0xff] }
   0x4   :  { %125 = vmatpush3.bf16.msra.mxu0 %v124_v5 }
   0x5   :  { %126 = vmatprep.subr.bf16.mxu0 %v133_v0 }
   0x8   :  { %128 = vmatpush3.bf16.msra.mxu0 %v127_v7 }
   0xb   :  { %121 = vmatmul.mubr.msk.f32.vlgmr.msra.gmra.mrb[0].mxu0 %vm19_vm1, %v14_v8 }
  0xde   :  { %v89_v9 = vpop.f32.mrb[0].mxu0 }
  0xdf   :  { %v122_v10 = vpop.f32.mrb[1].mxu0  ;;  %95 = vrot.lane.b32.xlu0 %v89_v9, %s136_s22 }
 0x151   :  { %v96_v12 = vpop.permute.xlu0 %95 }
 0x152   :  { %v99_v13 = vsel %vm98_vm2, %v89_v9, %v96_v12 }
 0x153   :  { %v100_v14 = vadd.f32 %v99_v13, %v93_v11 }
 0x155   :  { %101 = vst [vmem:[%s181_s3] sm:$0xff] %v100_v14 }

// kernel: hgn_forward.40
= control target key start
LH: loop header
LB: loop body
LE: loop exit
PB: predicated region body
PF: predicated region fallthrough
CT: control target
= control target key end

     0   :  { %s104_s0 = inlined_call_operand.vmem [shape: f32[32,128], index: 0, kind: input, shape index: {}]   ;;  %s105_s1 = inlined_call_operand.vmem [shape: f32[1,128], index: 1, kind: input, shape index: {}]   ;;  %s106_s2 = inlined_call_operand.vmem [shape: f32[1,128], index: 2, kind: input, shape index: {}]   ;;  %s107_s3 = inlined_call_operand.vmem [shape: f32[32,128], index: 3, kind: output, shape index: {}]  }
   0x1   :  { %v14_v0 = vld [vmem:[%s104_s0] sm:$0xff]  ;;  %v15_v4 = vld [vmem:[%s104_s0 + $0x8] sm:$0xff]  ;;  %v16_v5 = vld [vmem:[%s104_s0 + $0x10] sm:$0xff] }
   0x2   :  { %v52_v1 = vld [vmem:[%s105_s1] ss:$0 sm:$0xff]  ;;  %v17_v6 = vld [vmem:[%s104_s0 + $0x18] sm:$0xff] }
   0x3   :  { %v53_v2 = vld [vmem:[%s106_s2] ss:$0 sm:$0xff]  ;;  %v25_v3 = vmul.f32 %v52_v1, %v14_v0  ;;  %v26_v7 = vmul.f32 %v52_v1, %v15_v4  ;;  %v27_v8 = vmul.f32 %v52_v1, %v16_v5  ;;  %v28_v9 = vmul.f32 %v52_v1, %v17_v6 }
   0x5   :  { %v36_v10 = vadd.f32 %v53_v2, %v25_v3  ;;  %v37_v11 = vadd.f32 %v53_v2, %v26_v7  ;;  %v38_v12 = vadd.f32 %v53_v2, %v27_v8  ;;  %v39_v13 = vadd.f32 %v53_v2, %v28_v9 }
   0x7   :  { %v40_v14 = vmax.f32 %v36_v10, 0.0  ;;  %v41_v15 = vmax.f32 %v37_v11, 0.0  ;;  %v42_v16 = vmax.f32 %v38_v12, 0.0  ;;  %v43_v17 = vmax.f32 %v39_v13, 0.0 }
   0x9   :  { %44 = vst [vmem:[%s107_s3] sm:$0xff] %v40_v14  ;;  %45 = vst [vmem:[%s107_s3 + $0x8] sm:$0xff] %v41_v15 }
   0xa   :  { %46 = vst [vmem:[%s107_s3 + $0x10] sm:$0xff] %v42_v16  ;;  %47 = vst [vmem:[%s107_s3 + $0x18] sm:$0xff] %v43_v17 }

// kernel: hgn_forward.39
= control target key start
LH: loop header
LB: loop body
LE: loop exit
PB: predicated region body
PF: predicated region fallthrough
CT: control target
= control target key end

     0   :  { %s1902_s15 = smov 0   ;;  %s2286_s0 = inlined_call_operand.vmem [shape: f32[576,24], index: 0, kind: input, shape index: {}]   ;;  %s2287_s1 = inlined_call_operand.vmem [shape: f32[72,8], index: 1, kind: input, shape index: {}]   ;;  %s2288_s2 = inlined_call_operand.vmem [shape: f32[1,8], index: 2, kind: input, shape index: {}]   ;;  %s2289_s3 = inlined_call_operand.vmem [shape: f32[512,8], index: 3, kind: output, shape index: {0}]   ;;  %s2290_s4 = inlined_call_operand.vmem [shape: f32[2,2,8], index: 4, kind: output, shape index: {1}]  }
   0x1 LB: > { %s1908_s16 = sadd.s32 4294967295, %s1875_s15   ;;  %p1410_p0 = scmp.ge.s32.totalorder %s1875_s15, 1  ;;  %s1875_s15 = sphi %s1902_s15, %s15_s15  }
   0x2   : > { %p166_p1 = scmp.lt.s32.totalorder %s1875_s15, 3 }
   0x4   : > { %p167_p2 = pnand %p1410_p0, %p166_p1 }
   0x5   : > { %v251_v0 = vld [vmem:[%s2287_s1 + $0x18] sm:$0xff] (!%p167_p2)  ;;  %v252_v1 = vld [vmem:[%s2287_s1 + $0x20] sm:$0xff] (!%p167_p2)  ;;  %s196_s23 = smul.u32 (!%p167_p2), 36, %s1908_s16  ;;  %v249_v4 = vld [vmem:[%s2287_s1 + $0x8] sm:$0xff] (!%p167_p2)  ;;  %vm254_vm0 = vcmask (!%p167_p2), 195584   ;;  %s1412_s14 = sshll.u32 (!%p167_p2), %s1908_s16, 5 }
   0x6   : > { %170 = sbr.rel (%p167_p2) target bundleno = 348 (0x15c), region = 32  ;;  %v248_v2 = vld [vmem:[%s2287_s1] sm:$0xff] (!%p167_p2)  ;;  %v1781_v3 = vpack.c.bf16 (!%p167_p2), %v252_v1, %v251_v0  ;;  %v253_v6 = vld [vmem:[%s2287_s1 + $0x28] sm:$0xff] (!%p167_p2)  ;;  %v250_v7 = vld [vmem:[%s2287_s1 + $0x10] sm:$0xff] (!%p167_p2)  ;;  %p203_p4 = scmp.lt.s32.totalorder (!%p167_p2), %s1412_s14, 63  ;;  %vm1112_vm1 = vcmask (!%p167_p2), 64512  }
   0x7   : > { %v1785_v5 = vpack.c.bf16 (!%p167_p2), %v249_v4, %v248_v2  ;;  %p197_p3 = scmp.lt.s32.totalorder (!%p167_p2), %s196_s23, 71  ;;  %v807_v8 = vld [vmem:[%s2287_s1 + $0x30] sm:$0xff] (!%p167_p2)  ;;  %v808_v9 = vld [vmem:[%s2287_s1 + $0x38] sm:$0xff] (!%p167_p2)  ;;  %v809_v16 = vld [vmem:[%s2287_s1 + $0x40] sm:$0xff] (!%p167_p2)  ;;  %p208_p5 = scmp.lt.s32.totalorder (!%p167_p2), %s1908_s16, 1  ;;  %vm1315_vm2 = vcmask (!%p167_p2), 1040384  }
   0x8   : > { %1782 = vmatprep.subr.bf16.mxu1 (!%p167_p2), %v1781_v3  ;;  %v1789_v10 = vpack.c.bf16 (!%p167_p2), %v808_v9, %v807_v8  ;;  %v2101_v1 = vld [vmem:[%s2288_s2] ss:$0 sm:$0xff] (!%p167_p2)  ;;  %vm1317_vm3 = vcmask (!%p167_p2), 58368  }
   0x9   : > { %1786 = vmatprep.subr.bf16.mxu0 (!%p167_p2), %v1785_v5  ;;  %1784 = vmatpush3.bf16.msra.mxu1 (!%p167_p2), %v1781_v3 }
   0xa   : > { %1788 = vmatpush3.bf16.msra.mxu0 (!%p167_p2), %v1785_v5  ;;  %1623 = vmatprep.subr.mxu1 (!%p167_p2), %v253_v6 }
   0xb   : > { %1677 = vmatprep.subr.mxu0 (!%p167_p2), %v250_v7 }
   0xd   : > { %s2292_s23 = smov (!%p197_p3, %s196_s23), 71  ;;  %1624 = vmatpush3.msra.mxu1 %v253_v6  ;;  %s2294_s14 = smov (!%p203_p4, %s1412_s14), 63 }
   0xe   : > { %s1411_s8 = sshll.u32 %s2292_s23, 3  ;;  %1678 = vmatpush3.msra.mxu0 %v250_v7  ;;  %1793 = vmatprep.subr.bf16.mxu1 %v1785_v5  ;;  %s1413_s17 = sshll.u32 %s2294_s14, 3 }
   0xf   : > { %s1940_s11 = scalar_lea.vmem %s2286_s0, %s1411_s8  ;;  %1790 = vmatprep.subr.bf16.mxu0 %v1789_v10  ;;  %s2106_s22 = scalar_lea.vmem %s2289_s3, %s1413_s17 }
  0x10   : > { %v214_v11 = vld [vmem:[%s1940_s11 + $0x10] sm:$0xff]  ;;  %v212_v12 = vld [vmem:[%s1940_s11] sm:$0xff]  ;;  %v215_v13 = vld [vmem:[%s1940_s11 + $0x18] sm:$0xff]  ;;  %s2296_s16 = smov (!%p208_p5, %s1908_s16), 1 }
  0x11   : > { %1625 = vmatprep.mubr.msk.f32.mxu1 %vm254_vm0, %v214_v11  ;;  %v213_v14 = vld [vmem:[%s1940_s11 + $0x8] sm:$0xff]  ;;  %1679 = vmatprep.mubr.msk.f32.mxu0 %vm254_vm0, %v212_v12  ;;  %v216_v15 = vld [vmem:[%s1940_s11 + $0x20] sm:$0xff]  ;;  %v218_v18 = vld [vmem:[%s1940_s11 + $0x30] sm:$0xff]  ;;  %s1414_s23 = sshll.u32 %s2296_s16, 1 }
  0x12   : > { %1626 = vmatmul.mubr.msk.f32.vlgmr.msra.gmra.mrb[0].mxu1 %vm254_vm0, %v215_v13  ;;  %1680 = vmatmul.mubr.msk.f32.vlgmr.msra.gmra.mrb[0].mxu0 %vm254_vm0, %v213_v14  ;;  %v217_v17 = vld [vmem:[%s1940_s11 + $0x28] sm:$0xff]  ;;  %v219_v19 = vld [vmem:[%s1940_s11 + $0x38] sm:$0xff]  ;;  %v220_v20 = vld [vmem:[%s1940_s11 + $0x40] sm:$0xff]  ;;  %s211_s26 = scalar_lea.vmem %s2290_s4, %s1414_s23 }
  0x13   : > { %1795 = vmatpush3.bf16.msra.mxu1 %v1785_v5  ;;  %1792 = vmatpush3.bf16.msra.mxu0 %v1789_v10  ;;  %v221_v21 = vld [vmem:[%s1940_s11 + $0x48] sm:$0xff]  ;;  %v222_v22 = vld [vmem:[%s1940_s11 + $0x50] sm:$0xff]  ;;  %v223_v23 = vld [vmem:[%s1940_s11 + $0x58] sm:$0xff] }
  0x14   : > { %1628 = vmatprep.mubr.msk.f32.mxu1 %vm254_vm0, %v216_v15  ;;  %1682 = vmatprep.mubr.msk.f32.mxu0 %vm254_vm0, %v214_v11  ;;  %v224_v24 = vld [vmem:[%s1940_s11 + $0x60] sm:$0xff]  ;;  %v225_v25 = vld [vmem:[%s1940_s11 + $0x68] sm:$0xff]  ;;  %v226_v26 = vld [vmem:[%s1940_s11 + $0x70] sm:$0xff] }
  0x15   : > { %1731 = vmatprep.subr.mxu0 %v809_v16  ;;  %1794 = vmatprep.subr.mxu1 %v250_v7  ;;  %v227_v27 = vld [vmem:[%s1940_s11 + $0x78] sm:$0xff]  ;;  %v228_v28 = vld [vmem:[%s1940_s11 + $0x80] sm:$0xff]  ;;  %v229_v29 = vld [vmem:[%s1940_s11 + $0x88] sm:$0xff] }
  0x16   : > { %1629 = vmatmul.mubr.msk.f32.gmra.mrb[2].mxu1 %vm254_vm0, %v217_v17  ;;  %1683 = vmatmul.mubr.msk.f32.gmra.mrb[2].mxu0 %vm254_vm0, %v215_v13  ;;  %v230_v30 = vld [vmem:[%s1940_s11 + $0x90] sm:$0xff]  ;;  %v231_v31 = vld [vmem:[%s1940_s11 + $0x98] sm:$0xff]  ;;  %v232_v32 = vld [vmem:[%s1940_s11 + $0xa0] sm:$0xff] }
  0x17   : > { %1631 = vmatprep.mubr.msk.f32.mxu1 %vm254_vm0, %v218_v18  ;;  %1685 = vmatprep.mubr.msk.f32.mxu0 %vm254_vm0, %v216_v15  ;;  %v233_v33 = vld [vmem:[%s1940_s11 + $0xa8] sm:$0xff]  ;;  %v234_v34 = vld [vmem:[%s1940_s11 + $0xb0] sm:$0xff]  ;;  %v235_v35 = vld [vmem:[%s1940_s11 + $0xb8] sm:$0xff] }
  0x18   : > { %1732 = vmatpush3.msra.mxu0 %v809_v16  ;;  %1796 = vmatpush3.msra.mxu1 %v250_v7  ;;  %v236_v36 = vld [vmem:[%s1940_s11 + $0xc0] sm:$0xff]  ;;  %v237_v37 = vld [vmem:[%s1940_s11 + $0xc8] sm:$0xff]  ;;  %v238_v38 = vld [vmem:[%s1940_s11 + $0xd0] sm:$0xff] }
  0x19   : > { %v239_v39 = vld [vmem:[%s1940_s11 + $0xd8] sm:$0xff]  ;;  %v240_v40 = vld [vmem:[%s1940_s11 + $0xe0] sm:$0xff]  ;;  %v241_v41 = vld [vmem:[%s1940_s11 + $0xe8] sm:$0xff] }
  0x1a   : > { %1632 = vmatmul.mubr.msk.f32.gmra.mrb[4].mxu1 %vm254_vm0, %v219_v19  ;;  %1686 = vmatmul.mubr.msk.f32.gmra.mrb[4].mxu0 %vm254_vm0, %v217_v17  ;;  %v242_v42 = vld [vmem:[%s1940_s11 + $0xf0] sm:$0xff]  ;;  %v243_v43 = vld [vmem:[%s1940_s11 + $0xf8] sm:$0xff]  ;;  %v244_v44 = vld [vmem:[%s1940_s11 + $0x100] sm:$0xff] }
  0x1b   : > { %1634 = vmatprep.mubr.msk.f32.mxu1 %vm254_vm0, %v220_v20  ;;  %1688 = vmatprep.mubr.msk.f32.mxu0 %vm254_vm0, %v218_v18  ;;  %v245_v45 = vld [vmem:[%s1940_s11 + $0x108] sm:$0xff]  ;;  %v246_v46 = vld [vmem:[%s1940_s11 + $0x110] sm:$0xff]  ;;  %v247_v47 = vld [vmem:[%s1940_s11 + $0x118] sm:$0xff] }
  0x1e   : > { %1635 = vmatmul.mubr.msk.f32.gmra.mrb[6].mxu1 %vm254_vm0, %v221_v21  ;;  %1689 = vmatmul.mubr.msk.f32.gmra.mrb[6].mxu0 %vm254_vm0, %v219_v19 }
  0x1f   : > { %1637 = vmatprep.mubr.msk.f32.mxu1 %vm254_vm0, %v222_v22  ;;  %1691 = vmatprep.mubr.msk.f32.mxu0 %vm254_vm0, %v220_v20 }
  0x22   : > { %1638 = vmatmul.mubr.msk.f32.gmra.mrb[8].mxu1 %vm254_vm0, %v223_v23  ;;  %1692 = vmatmul.mubr.msk.f32.gmra.mrb[8].mxu0 %vm254_vm0, %v221_v21 }
  0x23   : > { %1640 = vmatprep.mubr.msk.f32.mxu1 %vm254_vm0, %v224_v24  ;;  %1694 = vmatprep.mubr.msk.f32.mxu0 %vm254_vm0, %v222_v22 }
  0x26   : > { %1641 = vmatmul.mubr.msk.f32.gmra.mrb[10].mxu1 %vm254_vm0, %v225_v25  ;;  %1695 = vmatmul.mubr.msk.f32.gmra.mrb[10].mxu0 %vm254_vm0, %v223_v23 }
  0x27   : > { %1643 = vmatprep.mubr.msk.f32.mxu1 %vm254_vm0, %v226_v26  ;;  %1697 = vmatprep.mubr.msk.f32.mxu0 %vm254_vm0, %v224_v24 }
  0x2a   : > { %1644 = vmatmul.mubr.msk.f32.gmra.mrb[12].mxu1 %vm254_vm0, %v227_v27  ;;  %1698 = vmatmul.mubr.msk.f32.gmra.mrb[12].mxu0 %vm254_vm0, %v225_v25 }
  0x2b   : > { %1646 = vmatprep.mubr.msk.f32.mxu1 %vm254_vm0, %v228_v28  ;;  %1700 = vmatprep.mubr.msk.f32.mxu0 %vm254_vm0, %v226_v26 }
  0x2e   : > { %1647 = vmatmul.mubr.msk.f32.gmra.mrb[14].mxu1 %vm254_vm0, %v229_v29  ;;  %1701 = vmatmul.mubr.msk.f32.gmra.mrb[14].mxu0 %vm254_vm0, %v227_v27 }
  0x2f   : > { %1649 = vmatprep.mubr.msk.f32.mxu1 %vm254_vm0, %v230_v30  ;;  %1733 = vmatprep.mubr.msk.f32.mxu0 %vm254_vm0, %v216_v15 }
  0x32   : > { %1650 = vmatmul.mubr.msk.f32.gmra.mrb[16].mxu1 %vm254_vm0, %v231_v31  ;;  %1734 = vmatmul.mubr.msk.f32.vlgmr.msra.gmra.mrb[0].mxu0 %vm254_vm0, %v217_v17 }
  0x33   : > { %1652 = vmatprep.mubr.msk.f32.mxu1 %vm254_vm0, %v232_v32  ;;  %1736 = vmatprep.mubr.msk.f32.mxu0 %vm254_vm0, %v218_v18 }
  0x36   : > { %1653 = vmatmul.mubr.msk.f32.gmra.mrb[18].mxu1 %vm254_vm0, %v233_v33  ;;  %1737 = vmatmul.mubr.msk.f32.gmra.mrb[2].mxu0 %vm254_vm0, %v219_v19 }
  0x37   : > { %1655 = vmatprep.mubr.msk.f32.mxu1 %vm254_vm0, %v234_v34  ;;  %1739 = vmatprep.mubr.msk.f32.mxu0 %vm254_vm0, %v220_v20 }
  0x3a   : > { %1656 = vmatmul.mubr.msk.f32.gmra.mrb[20].mxu1 %vm254_vm0, %v235_v35  ;;  %1740 = vmatmul.mubr.msk.f32.gmra.mrb[4].mxu0 %vm254_vm0, %v221_v21 }
  0x3b   : > { %1658 = vmatprep.mubr.msk.f32.mxu1 %vm254_vm0, %v236_v36  ;;  %1742 = vmatprep.mubr.msk.f32.mxu0 %vm254_vm0, %v222_v22 }
  0x3e   : > { %1659 = vmatmul.mubr.msk.f32.gmra.mrb[22].mxu1 %vm254_vm0, %v237_v37  ;;  %1743 = vmatmul.mubr.msk.f32.gmra.mrb[6].mxu0 %vm254_vm0, %v223_v23 }
  0x3f   : > { %1661 = vmatprep.mubr.msk.f32.mxu1 %vm254_vm0, %v238_v38  ;;  %1745 = vmatprep.mubr.msk.f32.mxu0 %vm254_vm0, %v224_v24 }
  0x42   : > { %1662 = vmatmul.mubr.msk.f32.gmra.mrb[24].mxu1 %vm254_vm0, %v239_v39  ;;  %1746 = vmatmul.mubr.msk.f32.gmra.mrb[8].mxu0 %vm254_vm0, %v225_v25 }
  0x43   : > { %1664 = vmatprep.mubr.msk.f32.mxu1 %vm254_vm0, %v240_v40  ;;  %1748 = vmatprep.mubr.msk.f32.mxu0 %vm254_vm0, %v226_v26 }
  0x46   : > { %1665 = vmatmul.mubr.msk.f32.gmra.mrb[26].mxu1 %vm254_vm0, %v241_v41  ;;  %1749 = vmatmul.mubr.msk.f32.gmra.mrb[10].mxu0 %vm254_vm0, %v227_v27 }
  0x47   : > { %1667 = vmatprep.mubr.msk.f32.mxu1 %vm254_vm0, %v242_v42  ;;  %1751 = vmatprep.mubr.msk.f32.mxu0 %vm254_vm0, %v228_v28 }
  0x4a   : > { %1668 = vmatmul.mubr.msk.f32.gmra.mrb[28].mxu1 %vm254_vm0, %v243_v43  ;;  %1752 = vmatmul.mubr.msk.f32.gmra.mrb[12].mxu0 %vm254_vm0, %v229_v29 }
  0x4b   : > { %1670 = vmatprep.mubr.msk.f32.mxu1 %vm254_vm0, %v244_v44  ;;  %1754 = vmatprep.mubr.msk.f32.mxu0 %vm254_vm0, %v230_v30 }
  0x4e   : > { %1671 = vmatmul.mubr.msk.f32.gmra.mrb[30].mxu1 %vm254_vm0, %v245_v45  ;;  %1755 = vmatmul.mubr.msk.f32.gmra.mrb[14].mxu0 %vm254_vm0, %v231_v31 }
  0x4f   : > { %1703 = vmatprep.mubr.msk.f32.mxu1 %vm254_vm0, %v228_v28  ;;  %1757 = vmatprep.mubr.msk.f32.mxu0 %vm254_vm0, %v232_v32 }
  0x52   : > { %1704 = vmatmul.mubr.msk.f32.vlgmr.msra.gmra.mrb[16].mxu1 %vm254_vm0, %v229_v29  ;;  %1758 = vmatmul.mubr.msk.f32.gmra.mrb[16].mxu0 %vm254_vm0, %v233_v33 }
  0x53   : > { %1706 = vmatprep.mubr.msk.f32.mxu1 %vm254_vm0, %v230_v30  ;;  %1760 = vmatprep.mubr.msk.f32.mxu0 %vm254_vm0, %v234_v34 }
  0x56   : > { %1707 = vmatmul.mubr.msk.f32.gmra.mrb[18].mxu1 %vm254_vm0, %v231_v31  ;;  %1761 = vmatmul.mubr.msk.f32.gmra.mrb[18].mxu0 %vm254_vm0, %v235_v35 }
  0x57   : > { %1709 = vmatprep.mubr.msk.f32.mxu1 %vm254_vm0, %v232_v32  ;;  %1763 = vmatprep.mubr.msk.f32.mxu0 %vm254_vm0, %v236_v36 }
  0x5a   : > { %1710 = vmatmul.mubr.msk.f32.gmra.mrb[20].mxu1 %vm254_vm0, %v233_v33  ;;  %1764 = vmatmul.mubr.msk.f32.gmra.mrb[20].mxu0 %vm254_vm0, %v237_v37 }
  0x5b   : > { %1712 = vmatprep.mubr.msk.f32.mxu1 %vm254_vm0, %v234_v34  ;;  %1766 = vmatprep.mubr.msk.f32.mxu0 %vm254_vm0, %v238_v38 }
  0x5e   : > { %1713 = vmatmul.mubr.msk.f32.gmra.mrb[22].mxu1 %vm254_vm0, %v235_v35  ;;  %1767 = vmatmul.mubr.msk.f32.gmra.mrb[22].mxu0 %vm254_vm0, %v239_v39 }
  0x5f   : > { %1715 = vmatprep.mubr.msk.f32.mxu1 %vm254_vm0, %v236_v36  ;;  %1769 = vmatprep.mubr.msk.f32.mxu0 %vm254_vm0, %v240_v40 }
  0x62   : > { %1716 = vmatmul.mubr.msk.f32.gmra.mrb[24].mxu1 %vm254_vm0, %v237_v37  ;;  %1770 = vmatmul.mubr.msk.f32.gmra.mrb[24].mxu0 %vm254_vm0, %v241_v41 }
  0x63   : > { %1718 = vmatprep.mubr.msk.f32.mxu1 %vm254_vm0, %v238_v38  ;;  %1772 = vmatprep.mubr.msk.f32.mxu0 %vm254_vm0, %v242_v42 }
  0x66   : > { %1719 = vmatmul.mubr.msk.f32.gmra.mrb[26].mxu1 %vm254_vm0, %v239_v39  ;;  %1773 = vmatmul.mubr.msk.f32.gmra.mrb[26].mxu0 %vm254_vm0, %v243_v43 }
  0x67   : > { %1721 = vmatprep.mubr.msk.f32.mxu1 %vm254_vm0, %v240_v40  ;;  %1775 = vmatprep.mubr.msk.f32.mxu0 %vm254_vm0, %v244_v44 }
  0x6a   : > { %1722 = vmatmul.mubr.msk.f32.gmra.mrb[28].mxu1 %vm254_vm0, %v241_v41  ;;  %1776 = vmatmul.mubr.msk.f32.gmra.mrb[28].mxu0 %vm254_vm0, %v245_v45 }
  0x6b   : > { %1724 = vmatprep.mubr.msk.f32.mxu1 %vm254_vm0, %v242_v42  ;;  %1778 = vmatprep.mubr.msk.f32.mxu0 %vm254_vm0, %v246_v46 }
  0x6e   : > { %1725 = vmatmul.mubr.msk.f32.gmra.mrb[30].mxu1 %vm254_vm0, %v243_v43  ;;  %1779 = vmatmul.mubr.msk.f32.gmra.mrb[30].mxu0 %vm254_vm0, %v247_v47 }
  0xe5   : > { %v1627_v48 = vpop.f32.mrb[0].mxu1 }
  0xe6   : > { %v417_v49 = vpop.f32.mrb[1].mxu1 }
  0xe9   : > { %v1630_v50 = vpop.f32.mrb[2].mxu1 }
  0xea   : > { %v427_v51 = vpop.f32.mrb[3].mxu1 }
  0xed   : > { %v1633_v52 = vpop.f32.mrb[4].mxu1 }
  0xee   : > { %v437_v53 = vpop.f32.mrb[5].mxu1 }
  0xf1   : > { %v2077_v54 = vpop.f32.mrb[6].mxu1 }
  0xf2   : > { %v2079_v55 = vpop.f32.mrb[7].mxu1 }
  0xf5   : > { %v2081_v56 = vpop.f32.mrb[8].mxu1 }
  0xf6   : > { %v2083_v57 = vpop.f32.mrb[9].mxu1 }
  0xf9   : > { %v2085_v58 = vpop.f32.mrb[10].mxu1 }
  0xfa   : > { %v2087_v59 = vpop.f32.mrb[11].mxu1 }
  0xfd   : > { %v2090_v60 = vpop.f32.mrb[12].mxu1 }
  0xfe   : > { %v2092_v61 = vpop.f32.mrb[13].mxu1 }
 0x101   : > { %v2094_v62 = vpop.f32.mrb[14].mxu1 }
 0x102   : > { %v2096_v63 = vpop.f32.mrb[15].mxu1 }
 0x105   : > { %v1735_v0 = vpop.f32.mrb[0].mxu0 }
 0x106   : > { %v1797_v2 = vadd.f32 %v1735_v0, %v1627_v48  ;;  %v882_v3 = vpop.f32.mrb[1].mxu0 }
 0x107   : > { %v1798_v4 = vadd.f32 %v882_v3, %v417_v49 }
 0x108   : > { %v1081_v5 = vadd.f32 %v1797_v2, %v2101_v1 }
 0x109   : > { %v1080_v6 = vadd.f32 %v1798_v4, %v2101_v1  ;;  %v1738_v7 = vpop.f32.mrb[2].mxu0 }
 0x10a   : > { %1114 = vst.msk [vmem:[%s2106_s22 + $0x8] sm:$0xff] %vm1112_vm1, %v1081_v5  ;;  %v1146_v8 = vsel %vm1112_vm1, %v1081_v5, 0.0  ;;  %v1215_v9 = vmul.f32 %v1081_v5, %v1081_v5  ;;  %v1799_v10 = vadd.f32 %v1738_v7, %v1630_v50  ;;  %v892_v11 = vpop.f32.mrb[3].mxu0 }
 0x10b   : > { %1113 = vst.msk [vmem:[%s2106_s22] sm:$0xff] %vm1112_vm1, %v1080_v6  ;;  %v1145_v12 = vsel %vm1112_vm1, %v1080_v6, 0.0  ;;  %v1214_v13 = vmul.f32 %v1080_v6, %v1080_v6  ;;  %v1800_v14 = vadd.f32 %v892_v11, %v427_v51 }
 0x10c   : > { %v1247_v15 = vsel %vm1112_vm1, %v1215_v9, 0.0  ;;  %v1147_v16 = vadd.f32 %v1146_v8, %v1145_v12  ;;  %v1083_v17 = vadd.f32 %v1799_v10, %v2101_v1 }
 0x10d   : > { %v1246_v18 = vsel %vm1112_vm1, %v1214_v13, 0.0  ;;  %v1082_v19 = vadd.f32 %v1800_v14, %v2101_v1  ;;  %v1741_v20 = vpop.f32.mrb[4].mxu0 }
 0x10e   : > { %v1248_v21 = vadd.f32 %v1247_v15, %v1246_v18  ;;  %1116 = vst.msk [vmem:[%s2106_s22 + $0x18] sm:$0xff] %vm1112_vm1, %v1083_v17  ;;  %v1217_v22 = vmul.f32 %v1083_v17, %v1083_v17  ;;  %v1801_v23 = vadd.f32 %v1741_v20, %v1633_v52  ;;  %v902_v24 = vpop.f32.mrb[5].mxu0  ;;  %v1150_v30 = vsel %vm1112_vm1, %v1083_v17, 0.0 }
 0x10f   : > { %1115 = vst.msk [vmem:[%s2106_s22 + $0x10] sm:$0xff] %vm1112_vm1, %v1082_v19  ;;  %v1148_v25 = vsel %vm1112_vm1, %v1082_v19, 0.0  ;;  %v1216_v26 = vmul.f32 %v1082_v19, %v1082_v19  ;;  %v1802_v27 = vadd.f32 %v902_v24, %v437_v53 }
 0x110   : > { %v1149_v28 = vadd.f32 %v1148_v25, %v1147_v16  ;;  %v1085_v29 = vadd.f32 %v1801_v23, %v2101_v1  ;;  %v1251_v34 = vsel %vm1112_vm1, %v1217_v22, 0.0 }
 0x111   : > { %v1249_v31 = vsel %vm1112_vm1, %v1216_v26, 0.0  ;;  %v1084_v32 = vadd.f32 %v1802_v27, %v2101_v1  ;;  %v1744_v33 = vpop.f32.mrb[6].mxu0 }
 0x112   : > { %v1250_v35 = vadd.f32 %v1249_v31, %v1248_v21  ;;  %1118 = vst.msk [vmem:[%s2106_s22 + $0x28] sm:$0xff] %vm1112_vm1, %v1085_v29  ;;  %v1219_v36 = vmul.f32 %v1085_v29, %v1085_v29  ;;  %v1151_v37 = vadd.f32 %v1150_v30, %v1149_v28  ;;  %v912_v38 = vpop.f32.mrb[7].mxu0  ;;  %v1803_v41 = vadd.f32 %v1744_v33, %v2077_v54 }
 0x113   : > { %1117 = vst.msk [vmem:[%s2106_s22 + $0x20] sm:$0xff] %vm1112_vm1, %v1084_v32  ;;  %v1152_v39 = vsel %vm1112_vm1, %v1084_v32, 0.0  ;;  %v1218_v40 = vmul.f32 %v1084_v32, %v1084_v32  ;;  %v1804_v42 = vadd.f32 %v912_v38, %v2079_v55  ;;  %v1154_v45 = vsel %vm1112_vm1, %v1085_v29, 0.0 }
 0x114   : > { %v1153_v43 = vadd.f32 %v1152_v39, %v1151_v37  ;;  %v1252_v44 = vadd.f32 %v1251_v34, %v1250_v35  ;;  %v1087_v47 = vadd.f32 %v1803_v41, %v2101_v1  ;;  %v1255_v54 = vsel %vm1112_vm1, %v1219_v36, 0.0 }
 0x115   : > { %v1253_v46 = vsel %vm1112_vm1, %v1218_v40, 0.0  ;;  %v1086_v48 = vadd.f32 %v1804_v42, %v2101_v1  ;;  %v1747_v49 = vpop.f32.mrb[8].mxu0 }
 0x116   : > { %v1254_v50 = vadd.f32 %v1253_v46, %v1252_v44  ;;  %v1155_v51 = vadd.f32 %v1154_v45, %v1153_v43  ;;  %v1805_v52 = vadd.f32 %v1747_v49, %v2081_v56  ;;  %v922_v53 = vpop.f32.mrb[9].mxu0  ;;  %1120 = vst.msk [vmem:[%s2106_s22 + $0x38] sm:$0xff] %vm1112_vm1, %v1087_v47  ;;  %v1221_v55 = vmul.f32 %v1087_v47, %v1087_v47 }
 0x117   : > { %1119 = vst.msk [vmem:[%s2106_s22 + $0x30] sm:$0xff] %vm1112_vm1, %v1086_v48  ;;  %v1156_v0 = vsel %vm1112_vm1, %v1086_v48, 0.0  ;;  %v1220_v2 = vmul.f32 %v1086_v48, %v1086_v48  ;;  %v1806_v6 = vadd.f32 %v922_v53, %v2083_v57  ;;  %v1158_v8 = vsel %vm1112_vm1, %v1087_v47, 0.0 }
 0x118   : > { %v1157_v3 = vadd.f32 %v1156_v0, %v1155_v51  ;;  %v1256_v4 = vadd.f32 %v1255_v54, %v1254_v50  ;;  %v1089_v5 = vadd.f32 %v1805_v52, %v2101_v1  ;;  %v1259_v9 = vsel %vm1112_vm1, %v1221_v55, 0.0 }
 0x119   : > { %v1257_v56 = vsel %vm1112_vm1, %v1220_v2, 0.0  ;;  %v1750_v7 = vpop.f32.mrb[10].mxu0  ;;  %v1088_v11 = vadd.f32 %v1806_v6, %v2101_v1 }
 0x11a   : > { %v1258_v10 = vadd.f32 %v1257_v56, %v1256_v4  ;;  %1122 = vst.msk [vmem:[%s2106_s22 + $0x48] sm:$0xff] %vm1112_vm1, %v1089_v5  ;;  %v932_v12 = vpop.f32.mrb[11].mxu0  ;;  %v1223_v13 = vmul.f32 %v1089_v5, %v1089_v5  ;;  %v1159_v14 = vadd.f32 %v1158_v8, %v1157_v3  ;;  %v1807_v15 = vadd.f32 %v1750_v7, %v2085_v58 }
 0x11b   : > { %v1808_v57 = vadd.f32 %v932_v12, %v2087_v59  ;;  %1121 = vst.msk [vmem:[%s2106_s22 + $0x40] sm:$0xff] %vm1112_vm1, %v1088_v11  ;;  %v1160_v16 = vsel %vm1112_vm1, %v1088_v11, 0.0  ;;  %v1222_v17 = vmul.f32 %v1088_v11, %v1088_v11  ;;  %v1162_v23 = vsel %vm1112_vm1, %v1089_v5, 0.0 }
 0x11c   : > { %v1260_v18 = vadd.f32 %v1259_v9, %v1258_v10  ;;  %v1161_v19 = vadd.f32 %v1160_v16, %v1159_v14  ;;  %v1091_v20 = vadd.f32 %v1807_v15, %v2101_v1  ;;  %v1263_v25 = vsel %vm1112_vm1, %v1223_v13, 0.0 }
 0x11d   : > { %v1090_v21 = vadd.f32 %v1808_v57, %v2101_v1  ;;  %v1753_v22 = vpop.f32.mrb[12].mxu0  ;;  %v1261_v58 = vsel %vm1112_vm1, %v1222_v17, 0.0 }
 0x11e   : > { %v1809_v24 = vadd.f32 %v1753_v22, %v2090_v60  ;;  %v942_v59 = vpop.f32.mrb[13].mxu0  ;;  %v1262_v26 = vadd.f32 %v1261_v58, %v1260_v18  ;;  %1124 = vst.msk [vmem:[%s2106_s22 + $0x58] sm:$0xff] %vm1112_vm1, %v1091_v20  ;;  %v1225_v27 = vmul.f32 %v1091_v20, %v1091_v20  ;;  %v1163_v28 = vadd.f32 %v1162_v23, %v1161_v19 }
 0x11f   : > { %1123 = vst.msk [vmem:[%s2106_s22 + $0x50] sm:$0xff] %vm1112_vm1, %v1090_v21  ;;  %v1164_v29 = vsel %vm1112_vm1, %v1090_v21, 0.0  ;;  %v1224_v30 = vmul.f32 %v1090_v21, %v1090_v21  ;;  %v1810_v32 = vadd.f32 %v942_v59, %v2092_v61  ;;  %v1166_v35 = vsel %vm1112_vm1, %v1091_v20, 0.0 }
 0x120   : > { %v1093_v31 = vadd.f32 %v1809_v24, %v2101_v1  ;;  %v1165_v60 = vadd.f32 %v1164_v29, %v1163_v28  ;;  %v1264_v33 = vadd.f32 %v1263_v25, %v1262_v26  ;;  %v1267_v61 = vsel %vm1112_vm1, %v1225_v27, 0.0 }
 0x121   : > { %v1756_v34 = vpop.f32.mrb[14].mxu0  ;;  %v1265_v36 = vsel %vm1112_vm1, %v1224_v30, 0.0  ;;  %v1092_v38 = vadd.f32 %v1810_v32, %v2101_v1 }
 0x122   : > { %1126 = vst.msk [vmem:[%s2106_s22 + $0x68] sm:$0xff] %vm1112_vm1, %v1093_v31  ;;  %v1227_v37 = vmul.f32 %v1093_v31, %v1093_v31  ;;  %v952_v39 = vpop.f32.mrb[15].mxu0  ;;  %v1266_v40 = vadd.f32 %v1265_v36, %v1264_v33  ;;  %v1167_v41 = vadd.f32 %v1166_v35, %v1165_v60  ;;  %v1811_v42 = vadd.f32 %v1756_v34, %v2094_v62 }
 0x123   : > { %v1812_v43 = vadd.f32 %v952_v39, %v2096_v63  ;;  %1125 = vst.msk [vmem:[%s2106_s22 + $0x60] sm:$0xff] %vm1112_vm1, %v1092_v38  ;;  %v1168_v44 = vsel %vm1112_vm1, %v1092_v38, 0.0  ;;  %v1226_v45 = vmul.f32 %v1092_v38, %v1092_v38  ;;  %v1170_v63 = vsel %vm1112_vm1, %v1093_v31, 0.0 }
 0x124   : > { %v1169_v47 = vadd.f32 %v1168_v44, %v1167_v41  ;;  %v1268_v48 = vadd.f32 %v1267_v61, %v1266_v40  ;;  %v1095_v49 = vadd.f32 %v1811_v42, %v2101_v1  ;;  %v1271_v55 = vsel %vm1112_vm1, %v1227_v37, 0.0 }
 0x125   : > { %v1705_v46 = vpop.f32.mrb[16].mxu1  ;;  %v1094_v50 = vadd.f32 %v1812_v43, %v2101_v1  ;;  %v1759_v51 = vpop.f32.mrb[16].mxu0  ;;  %v1269_v52 = vsel %vm1112_vm1, %v1226_v45, 0.0 }
 0x126   : > { %v728_v62 = vpop.f32.mrb[17].mxu1  ;;  %v1813_v53 = vadd.f32 %v1759_v51, %v1705_v46  ;;  %v962_v54 = vpop.f32.mrb[17].mxu0  ;;  %v1270_v0 = vadd.f32 %v1269_v52, %v1268_v48  ;;  %1128 = vst.msk [vmem:[%s2106_s22 + $0x78] sm:$0xff] %vm1112_vm1, %v1095_v49  ;;  %v1229_v2 = vmul.f32 %v1095_v49, %v1095_v49  ;;  %v1171_v3 = vadd.f32 %v1170_v63, %v1169_v47 }
 0x127   : > { %1127 = vst.msk [vmem:[%s2106_s22 + $0x70] sm:$0xff] %vm1112_vm1, %v1094_v50  ;;  %v1172_v4 = vsel %vm1112_vm1, %v1094_v50, 0.0  ;;  %v1228_v5 = vmul.f32 %v1094_v50, %v1094_v50  ;;  %v1814_v56 = vadd.f32 %v962_v54, %v728_v62  ;;  %v1174_v12 = vsel %vm1112_vm1, %v1095_v49, 0.0 }
 0x128   : > { %v1097_v6 = vadd.f32 %v1813_v53, %v2101_v1  ;;  %v1173_v8 = vadd.f32 %v1172_v4, %v1171_v3  ;;  %v1272_v9 = vadd.f32 %v1271_v55, %v1270_v0  ;;  %v1275_v20 = vsel %vm1112_vm1, %v1229_v2, 0.0 }
 0x129   : > { %v1708_v7 = vpop.f32.mrb[18].mxu1  ;;  %v1762_v10 = vpop.f32.mrb[18].mxu0  ;;  %v1273_v13 = vsel %vm1112_vm1, %v1228_v5, 0.0  ;;  %v1096_v15 = vadd.f32 %v1814_v56, %v2101_v1 }
 0x12a   : > { %v738_v11 = vpop.f32.mrb[19].mxu1  ;;  %1130 = vst.msk [vmem:[%s2106_s22 + $0x88] sm:$0xff] %vm1112_vm1, %v1097_v6  ;;  %v1231_v14 = vmul.f32 %v1097_v6, %v1097_v6  ;;  %v972_v57 = vpop.f32.mrb[19].mxu0  ;;  %v1274_v16 = vadd.f32 %v1273_v13, %v1272_v9  ;;  %v1175_v17 = vadd.f32 %v1174_v12, %v1173_v8  ;;  %v1815_v18 = vadd.f32 %v1762_v10, %v1708_v7 }
 0x12b   : > { %v1816_v19 = vadd.f32 %v972_v57, %v738_v11  ;;  %1129 = vst.msk [vmem:[%s2106_s22 + $0x80] sm:$0xff] %vm1112_vm1, %v1096_v15  ;;  %v1176_v21 = vsel %vm1112_vm1, %v1096_v15, 0.0  ;;  %v1230_v22 = vmul.f32 %v1096_v15, %v1096_v15  ;;  %v1178_v28 = vsel %vm1112_vm1, %v1097_v6, 0.0 }
 0x12c   : > { %v1177_v58 = vadd.f32 %v1176_v21, %v1175_v17  ;;  %v1276_v24 = vadd.f32 %v1275_v20, %v1274_v16  ;;  %v1099_v59 = vadd.f32 %v1815_v18, %v2101_v1  ;;  %v1279_v32 = vsel %vm1112_vm1, %v1231_v14, 0.0 }
 0x12d   : > { %v1711_v23 = vpop.f32.mrb[20].mxu1  ;;  %v1098_v25 = vadd.f32 %v1816_v19, %v2101_v1  ;;  %v1765_v26 = vpop.f32.mrb[20].mxu0  ;;  %v1277_v29 = vsel %vm1112_vm1, %v1230_v22, 0.0 }
 0x12e   : > { %v748_v27 = vpop.f32.mrb[21].mxu1  ;;  %v1817_v30 = vadd.f32 %v1765_v26, %v1711_v23  ;;  %v982_v31 = vpop.f32.mrb[21].mxu0  ;;  %v1278_v60 = vadd.f32 %v1277_v29, %v1276_v24  ;;  %1132 = vst.msk [vmem:[%s2106_s22 + $0x98] sm:$0xff] %vm1112_vm1, %v1099_v59  ;;  %v1233_v33 = vmul.f32 %v1099_v59, %v1099_v59  ;;  %v1179_v34 = vadd.f32 %v1178_v28, %v1177_v58 }
 0x12f   : > { %1131 = vst.msk [vmem:[%s2106_s22 + $0x90] sm:$0xff] %vm1112_vm1, %v1098_v25  ;;  %v1180_v35 = vsel %vm1112_vm1, %v1098_v25, 0.0  ;;  %v1232_v36 = vmul.f32 %v1098_v25, %v1098_v25  ;;  %v1818_v38 = vadd.f32 %v982_v31, %v748_v27  ;;  %v1182_v61 = vsel %vm1112_vm1, %v1099_v59, 0.0 }
 0x130   : > { %v1101_v37 = vadd.f32 %v1817_v30, %v2101_v1  ;;  %v1181_v40 = vadd.f32 %v1180_v35, %v1179_v34  ;;  %v1280_v41 = vadd.f32 %v1279_v32, %v1278_v60  ;;  %v1283_v62 = vsel %vm1112_vm1, %v1233_v33, 0.0 }
 0x131   : > { %v1714_v39 = vpop.f32.mrb[22].mxu1  ;;  %v1768_v42 = vpop.f32.mrb[22].mxu0  ;;  %v1281_v44 = vsel %vm1112_vm1, %v1232_v36, 0.0  ;;  %v1100_v46 = vadd.f32 %v1818_v38, %v2101_v1 }
 0x132   : > { %v758_v43 = vpop.f32.mrb[23].mxu1  ;;  %1134 = vst.msk [vmem:[%s2106_s22 + $0xa8] sm:$0xff] %vm1112_vm1, %v1101_v37  ;;  %v1235_v45 = vmul.f32 %v1101_v37, %v1101_v37  ;;  %v992_v47 = vpop.f32.mrb[23].mxu0  ;;  %v1282_v48 = vadd.f32 %v1281_v44, %v1280_v41  ;;  %v1183_v49 = vadd.f32 %v1182_v61, %v1181_v40  ;;  %v1819_v50 = vadd.f32 %v1768_v42, %v1714_v39 }
 0x133   : > { %v1820_v51 = vadd.f32 %v992_v47, %v758_v43  ;;  %1133 = vst.msk [vmem:[%s2106_s22 + $0xa0] sm:$0xff] %vm1112_vm1, %v1100_v46  ;;  %v1184_v63 = vsel %vm1112_vm1, %v1100_v46, 0.0  ;;  %v1234_v52 = vmul.f32 %v1100_v46, %v1100_v46  ;;  %v1186_v5 = vsel %vm1112_vm1, %v1101_v37, 0.0 }
 0x134   : > { %v1185_v54 = vadd.f32 %v1184_v63, %v1183_v49  ;;  %v1284_v55 = vadd.f32 %v1283_v62, %v1282_v48  ;;  %v1103_v0 = vadd.f32 %v1819_v50, %v2101_v1  ;;  %v1287_v8 = vsel %vm1112_vm1, %v1235_v45, 0.0 }
 0x135   : > { %v1717_v53 = vpop.f32.mrb[24].mxu1  ;;  %v1102_v2 = vadd.f32 %v1820_v51, %v2101_v1  ;;  %v1771_v3 = vpop.f32.mrb[24].mxu0  ;;  %v1285_v6 = vsel %vm1112_vm1, %v1234_v52, 0.0 }
 0x136   : > { %v768_v4 = vpop.f32.mrb[25].mxu1  ;;  %v1821_v56 = vadd.f32 %v1771_v3, %v1717_v53  ;;  %v1002_v7 = vpop.f32.mrb[25].mxu0  ;;  %v1286_v9 = vadd.f32 %v1285_v6, %v1284_v55  ;;  %1136 = vst.msk [vmem:[%s2106_s22 + $0xb8] sm:$0xff] %vm1112_vm1, %v1103_v0  ;;  %v1237_v10 = vmul.f32 %v1103_v0, %v1103_v0  ;;  %v1187_v11 = vadd.f32 %v1186_v5, %v1185_v54 }
 0x137   : > { %1135 = vst.msk [vmem:[%s2106_s22 + $0xb0] sm:$0xff] %vm1112_vm1, %v1102_v2  ;;  %v1188_v12 = vsel %vm1112_vm1, %v1102_v2, 0.0  ;;  %v1236_v13 = vmul.f32 %v1102_v2, %v1102_v2  ;;  %v1822_v15 = vadd.f32 %v1002_v7, %v768_v4  ;;  %v1190_v20 = vsel %vm1112_vm1, %v1103_v0, 0.0 }
 0x138   : > { %v1105_v14 = vadd.f32 %v1821_v56, %v2101_v1  ;;  %v1189_v16 = vadd.f32 %v1188_v12, %v1187_v11  ;;  %v1288_v17 = vadd.f32 %v1287_v8, %v1286_v9  ;;  %v1291_v27 = vsel %vm1112_vm1, %v1237_v10, 0.0 }
 0x139   : > { %v1720_v57 = vpop.f32.mrb[26].mxu1  ;;  %v1774_v18 = vpop.f32.mrb[26].mxu0  ;;  %v1289_v21 = vsel %vm1112_vm1, %v1236_v13, 0.0  ;;  %v1104_v23 = vadd.f32 %v1822_v15, %v2101_v1 }
 0x13a   : > { %v778_v19 = vpop.f32.mrb[27].mxu1  ;;  %1138 = vst.msk [vmem:[%s2106_s22 + $0xc8] sm:$0xff] %vm1112_vm1, %v1105_v14  ;;  %v1239_v22 = vmul.f32 %v1105_v14, %v1105_v14  ;;  %v1012_v58 = vpop.f32.mrb[27].mxu0  ;;  %v1290_v24 = vadd.f32 %v1289_v21, %v1288_v17  ;;  %v1191_v59 = vadd.f32 %v1190_v20, %v1189_v16  ;;  %v1823_v25 = vadd.f32 %v1774_v18, %v1720_v57 }
 0x13b   : > { %v1824_v26 = vadd.f32 %v1012_v58, %v778_v19  ;;  %1137 = vst.msk [vmem:[%s2106_s22 + $0xc0] sm:$0xff] %vm1112_vm1, %v1104_v23  ;;  %v1192_v28 = vsel %vm1112_vm1, %v1104_v23, 0.0  ;;  %v1238_v29 = vmul.f32 %v1104_v23, %v1104_v23  ;;  %v1194_v36 = vsel %vm1112_vm1, %v1105_v14, 0.0 }
 0x13c   : > { %v1193_v31 = vadd.f32 %v1192_v28, %v1191_v59  ;;  %v1292_v32 = vadd.f32 %v1291_v27, %v1290_v24  ;;  %v1107_v60 = vadd.f32 %v1823_v25, %v2101_v1  ;;  %v1295_v40 = vsel %vm1112_vm1, %v1239_v22, 0.0 }
 0x13d   : > { %v1723_v30 = vpop.f32.mrb[28].mxu1  ;;  %v1106_v33 = vadd.f32 %v1824_v26, %v2101_v1  ;;  %v1777_v34 = vpop.f32.mrb[28].mxu0  ;;  %v1293_v37 = vsel %vm1112_vm1, %v1238_v29, 0.0 }
 0x13e   : > { %v788_v35 = vpop.f32.mrb[29].mxu1  ;;  %v1825_v38 = vadd.f32 %v1777_v34, %v1723_v30  ;;  %v1022_v39 = vpop.f32.mrb[29].mxu0  ;;  %v1294_v41 = vadd.f32 %v1293_v37, %v1292_v32  ;;  %1140 = vst.msk [vmem:[%s2106_s22 + $0xd8] sm:$0xff] %vm1112_vm1, %v1107_v60  ;;  %v1241_v42 = vmul.f32 %v1107_v60, %v1107_v60  ;;  %v1195_v43 = vadd.f32 %v1194_v36, %v1193_v31 }
 0x13f   : > { %1139 = vst.msk [vmem:[%s2106_s22 + $0xd0] sm:$0xff] %vm1112_vm1, %v1106_v33  ;;  %v1196_v61 = vsel %vm1112_vm1, %v1106_v33, 0.0  ;;  %v1240_v44 = vmul.f32 %v1106_v33, %v1106_v33  ;;  %v1826_v46 = vadd.f32 %v1022_v39, %v788_v35  ;;  %v1198_v62 = vsel %vm1112_vm1, %v1107_v60, 0.0 }
 0x140   : > { %v1109_v45 = vadd.f32 %v1825_v38, %v2101_v1  ;;  %v1197_v48 = vadd.f32 %v1196_v61, %v1195_v43  ;;  %v1296_v49 = vadd.f32 %v1295_v40, %v1294_v41  ;;  %v1299_v3 = vsel %vm1112_vm1, %v1241_v42, 0.0 }
 0x141   : > { %v1726_v47 = vpop.f32.mrb[30].mxu1  ;;  %v1780_v50 = vpop.f32.mrb[30].mxu0  ;;  %v1297_v63 = vsel %vm1112_vm1, %v1240_v44, 0.0  ;;  %v1108_v52 = vadd.f32 %v1826_v46, %v2101_v1 }
 0x142   : > { %v798_v51 = vpop.f32.mrb[31].mxu1  ;;  %1142 = vst.msk [vmem:[%s2106_s22 + $0xe8] sm:$0xff] %vm1112_vm1, %v1109_v45  ;;  %v1032_v53 = vpop.f32.mrb[31].mxu0  ;;  %v1298_v54 = vadd.f32 %v1297_v63, %v1296_v49  ;;  %v1199_v55 = vadd.f32 %v1198_v62, %v1197_v48  ;;  %v1827_v0 = vadd.f32 %v1780_v50, %v1726_v47  ;;  %v1243_v4 = vmul.f32 %v1109_v45, %v1109_v45 }
 0x143   : > { %v1828_v2 = vadd.f32 %v1032_v53, %v798_v51  ;;  %1141 = vst.msk [vmem:[%s2106_s22 + $0xe0] sm:$0xff] %vm1112_vm1, %v1108_v52  ;;  %v1200_v5 = vsel %vm1112_vm1, %v1108_v52, 0.0  ;;  %v1242_v6 = vmul.f32 %v1108_v52, %v1108_v52  ;;  %v1202_v10 = vsel %vm1112_vm1, %v1109_v45, 0.0 }
 0x144   : > { %v1201_v56 = vadd.f32 %v1200_v5, %v1199_v55  ;;  %v1300_v7 = vadd.f32 %v1299_v3, %v1298_v54  ;;  %v1111_v8 = vadd.f32 %v1827_v0, %v2101_v1  ;;  %v1303_v57 = vsel %vm1112_vm1, %v1243_v4, 0.0 }
 0x145   : > { %v1110_v9 = vadd.f32 %v1828_v2, %v2101_v1  ;;  %v1301_v11 = vsel %vm1112_vm1, %v1242_v6, 0.0 }
 0x146   : > { %v1302_v12 = vadd.f32 %v1301_v11, %v1300_v7  ;;  %1144 = vst.msk [vmem:[%s2106_s22 + $0xf8] sm:$0xff] %vm1112_vm1, %v1111_v8  ;;  %v1206_v13 = vsel %vm1112_vm1, %v1111_v8, 0.0  ;;  %v1245_v14 = vmul.f32 %v1111_v8, %v1111_v8  ;;  %v1203_v15 = vadd.f32 %v1202_v10, %v1201_v56 }
 0x147   : > { %1143 = vst.msk [vmem:[%s2106_s22 + $0xf0] sm:$0xff] %vm1112_vm1, %v1110_v9  ;;  %v1204_v16 = vsel %vm1112_vm1, %v1110_v9, 0.0  ;;  %v1244_v1 = vmul.f32 %v1110_v9, %v1110_v9 }
 0x148   : > { %v1307_v17 = vsel %vm1112_vm1, %v1245_v14, 0.0  ;;  %v1205_v18 = vadd.f32 %v1204_v16, %v1203_v15  ;;  %v1304_v19 = vadd.f32 %v1303_v57, %v1302_v12 }
 0x149   : > { %v1305_v20 = vsel %vm1112_vm1, %v1244_v1, 0.0 }
 0x14a   : > { %v1207_v21 = vadd.f32 %v1206_v13, %v1205_v18  ;;  %v1306_v22 = vadd.f32 %v1305_v20, %v1304_v19 }
 0x14c   : > { %v1208_v23 = vrot.slane %v1207_v21, 4  ;;  %v1308_v58 = vadd.f32 %v1307_v17, %v1306_v22 }
 0x14e   : > { %v1209_v24 = vadd.f32 %v1208_v23, %v1207_v21  ;;  %v1309_v59 = vrot.slane %v1308_v58, 4 }
 0x150   : > { %v1210_v25 = vrot.slane %v1209_v24, 2  ;;  %v1310_v26 = vadd.f32 %v1309_v59, %v1308_v58 }
 0x152   : > { %v1211_v27 = vadd.f32 %v1210_v25, %v1209_v24  ;;  %v1311_v28 = vrot.slane %v1310_v26, 2 }
 0x154   : > { %v1212_v29 = vrot.slane %v1211_v27, 1  ;;  %v1312_v30 = vadd.f32 %v1311_v28, %v1310_v26 }
 0x156   : > { %v1313_v31 = vrot.slane %v1312_v30, 1  ;;  %v1213_v32 = vadd.f32 %v1212_v29, %v1211_v27 }
 0x158   : > { %v1314_v60 = vadd.f32 %v1313_v31, %v1312_v30 }
 0x15a   : > { %v1316_v33 = vsel %vm1315_vm2, %v1213_v32, %v1314_v60 }
 0x15b   : > { %1318 = vst.msk [vmem:[%s211_s26] sm:$0x3] %vm1317_vm3, %v1316_v33 }
 0x15c PF: > { %s15_s15 = sadd.s32 1, %s1875_s15  }
 0x15d   : > { %p12_p6 = scmp.ge.s32.totalorder %s15_s15, 4  }
 0x15f   :  { %14 = sbr.rel (!%p12_p6) target bundleno = 1 (0x1), region = 74 }

// kernel: hgn_forward.42
= control target key start
LH: loop header
LB: loop body
LE: loop exit
PB: predicated region body
PF: predicated region fallthrough
CT: control target
= control target key end

     0   :  { %s132_s0 = inlined_call_operand.vmem [shape: f32[32,128], index: 0, kind: input, shape index: {}]   ;;  %s133_s1 = inlined_call_operand.vmem [shape: f32[32,128], index: 1, kind: input, shape index: {}]   ;;  %s134_s2 = inlined_call_operand.vmem [shape: f32[1,128], index: 2, kind: input, shape index: {}]   ;;  %s135_s3 = inlined_call_operand.vmem [shape: f32[1,128], index: 3, kind: input, shape index: {}]   ;;  %s136_s4 = inlined_call_operand.vmem [shape: f32[32,128], index: 4, kind: output, shape index: {}]  }
   0x1   :  { %v17_v0 = vld [vmem:[%s132_s0] sm:$0xff]  ;;  %v18_v4 = vld [vmem:[%s132_s0 + $0x8] sm:$0xff]  ;;  %v19_v7 = vld [vmem:[%s132_s0 + $0x10] sm:$0xff] }
   0x2   :  { %v63_v1 = vld [vmem:[%s134_s2] ss:$0 sm:$0xff]  ;;  %v20_v8 = vld [vmem:[%s132_s0 + $0x18] sm:$0xff]  ;;  %v44_v10 = vld [vmem:[%s133_s1 + $0x8] sm:$0xff] }
   0x3   :  { %v64_v2 = vld [vmem:[%s135_s3] ss:$0 sm:$0xff]  ;;  %v28_v3 = vmul.f32 %v63_v1, %v17_v0  ;;  %v29_v6 = vmul.f32 %v63_v1, %v18_v4  ;;  %v30_v11 = vmul.f32 %v63_v1, %v19_v7  ;;  %v31_v12 = vmul.f32 %v63_v1, %v20_v8  ;;  %v45_v14 = vld [vmem:[%s133_s1 + $0x10] sm:$0xff]  ;;  %v46_v15 = vld [vmem:[%s133_s1 + $0x18] sm:$0xff] }
   0x4   :  { %v43_v5 = vld [vmem:[%s133_s1] sm:$0xff] }
   0x5   :  { %v39_v9 = vadd.f32 %v64_v2, %v28_v3  ;;  %v40_v13 = vadd.f32 %v64_v2, %v29_v6  ;;  %v41_v17 = vadd.f32 %v64_v2, %v30_v11  ;;  %v42_v18 = vadd.f32 %v64_v2, %v31_v12 }
   0x7   :  { %v47_v16 = vadd.f32 %v43_v5, %v39_v9  ;;  %v48_v19 = vadd.f32 %v44_v10, %v40_v13  ;;  %v49_v21 = vadd.f32 %v45_v14, %v41_v17  ;;  %v50_v22 = vadd.f32 %v46_v15, %v42_v18 }
   0x9   :  { %v51_v20 = vmax.f32 %v47_v16, 0.0  ;;  %v52_v23 = vmax.f32 %v48_v19, 0.0  ;;  %v53_v24 = vmax.f32 %v49_v21, 0.0  ;;  %v54_v25 = vmax.f32 %v50_v22, 0.0 }
   0xb   :  { %55 = vst [vmem:[%s136_s4] sm:$0xff] %v51_v20  ;;  %56 = vst [vmem:[%s136_s4 + $0x8] sm:$0xff] %v52_v23 }
   0xc   :  { %57 = vst [vmem:[%s136_s4 + $0x10] sm:$0xff] %v53_v24  ;;  %58 = vst [vmem:[%s136_s4 + $0x18] sm:$0xff] %v54_v25 }

// kernel: hgn_forward.70
= control target key start
LH: loop header
LB: loop body
LE: loop exit
PB: predicated region body
PF: predicated region fallthrough
CT: control target
= control target key end

     0   :  { %vm24_vm0 = vcmask 523264   ;;  %s245_s2 = inlined_call_operand.vmem [shape: f32[64,128], index: 2, kind: input, shape index: {}]   ;;  %s246_s1 = inlined_call_operand.vmem [shape: f32[16,64], index: 1, kind: input, shape index: {}]   ;;  %s247_s0 = inlined_call_operand.vmem [shape: f32[16,256], index: 0, kind: input, shape index: {}]   ;;  %s248_s3 = inlined_call_operand.vmem [shape: f32[16,256], index: 3, kind: output, shape index: {}]  }
   0x1   :  { %v16_v0 = vld [vmem:[%s245_s2] sm:$0xff]  ;;  %v17_v1 = vld [vmem:[%s245_s2 + $0x8] sm:$0xff]  ;;  %v18_v2 = vld [vmem:[%s245_s2 + $0x10] sm:$0xff] }
   0x2   :  { %v153_v3 = vpack.c.bf16 %v17_v1, %v16_v0  ;;  %v19_v4 = vld [vmem:[%s245_s2 + $0x18] sm:$0xff]  ;;  %v20_v6 = vld [vmem:[%s245_s2 + $0x20] sm:$0xff]  ;;  %v21_v7 = vld [vmem:[%s245_s2 + $0x28] sm:$0xff] }
   0x3   :  { %v157_v5 = vpack.c.bf16 %v19_v4, %v18_v2  ;;  %v14_v8 = vld [vmem:[%s246_s1] sm:$0xff]  ;;  %v161_v9 = vpack.c.bf16 %v21_v7, %v20_v6  ;;  %v22_v10 = vld [vmem:[%s245_s2 + $0x30] sm:$0xff]  ;;  %v23_v11 = vld [vmem:[%s245_s2 + $0x38] sm:$0xff] }
   0x4   :  { %154 = vmatprep.subr.bf16.mxu0 %v153_v3  ;;  %150 = vmatprep.mubr.msk.f32.mxu0 %vm24_vm0, %v14_v8  ;;  %v165_v12 = vpack.c.bf16 %v23_v11, %v22_v10  ;;  %v15_v13 = vld [vmem:[%s246_s1 + $0x8] sm:$0xff]  ;;  %v108_v14 = vld [vmem:[%s247_s0 + $0x10] sm:$0xff]  ;;  %v109_v15 = vld [vmem:[%s247_s0 + $0x18] sm:$0xff] }
   0x5   :  { %156 = vmatpush3.bf16.msra.mxu0 %v153_v3  ;;  %v106_v16 = vld [vmem:[%s247_s0] sm:$0xff]  ;;  %v107_v17 = vld [vmem:[%s247_s0 + $0x8] sm:$0xff] }
   0x6   :  { %158 = vmatprep.subr.bf16.mxu0 %v157_v5 }
   0x9   :  { %160 = vmatpush3.bf16.msra.mxu0 %v157_v5 }
   0xa   :  { %162 = vmatprep.subr.bf16.mxu0 %v161_v9 }
   0xd   :  { %164 = vmatpush3.bf16.msra.mxu0 %v161_v9 }
   0xe   :  { %166 = vmatprep.subr.bf16.mxu0 %v165_v12 }
  0x11   :  { %168 = vmatpush3.bf16.msra.mxu0 %v165_v12 }
  0x14   :  { %151 = vmatmul.mubr.msk.f32.vlgmr.msra.gmra.mrb[0].mxu0 %vm24_vm0, %v15_v13 }
  0xe7   :  { %v152_v18 = vpop.f32.mrb[0].mxu0 }
  0xe8   :  { %v112_v19 = vadd.f32 %v152_v18, %v108_v14  ;;  %v113_v20 = vadd.f32 %v152_v18, %v109_v15  ;;  %v97_v21 = vpop.f32.mrb[1].mxu0 }
  0xe9   :  { %v110_v22 = vadd.f32 %v106_v16, %v97_v21  ;;  %v111_v23 = vadd.f32 %v107_v17, %v97_v21 }
  0xea   :  { %116 = vst [vmem:[%s248_s3 + $0x10] sm:$0xff] %v112_v19  ;;  %117 = vst [vmem:[%s248_s3 + $0x18] sm:$0xff] %v113_v20 }
  0xeb   :  { %114 = vst [vmem:[%s248_s3] sm:$0xff] %v110_v22  ;;  %115 = vst [vmem:[%s248_s3 + $0x8] sm:$0xff] %v111_v23 }

// kernel: hgn_forward.75
= control target key start
LH: loop header
LB: loop body
LE: loop exit
PB: predicated region body
PF: predicated region fallthrough
CT: control target
= control target key end

     0   :  { %vm88_vm0 = vcmask 64512   ;;  %vm1060_vm1 = vcmask 1040384   ;;  %vm1062_vm2 = vcmask 58368   ;;  %s2309_s1 = inlined_call_operand.vmem [shape: f32[8,8], index: 1, kind: input, shape index: {}]   ;;  %s2310_s0 = inlined_call_operand.vmem [shape: f32[512,8], index: 0, kind: input, shape index: {}]   ;;  %s2311_s2 = inlined_call_operand.vmem [shape: f32[1,8], index: 2, kind: input, shape index: {}]   ;;  %s2312_s3 = inlined_call_operand.vmem [shape: f32[512,8], index: 3, kind: output, shape index: {0}]   ;;  %s2313_s4 = inlined_call_operand.vmem [shape: f32[1,2,8], index: 4, kind: output, shape index: {1}]  }
   0x1   :  { %v80_v0 = vld [vmem:[%s2309_s1] sm:$0xff]  ;;  %v17_v2 = vld [vmem:[%s2310_s0 + $0x8] sm:$0xff]  ;;  %v18_v3 = vld [vmem:[%s2310_s0 + $0x10] sm:$0xff] }
   0x2   :  { %v16_v1 = vld [vmem:[%s2310_s0] sm:$0xff]  ;;  %1202 = vmatprep.subr.mxu0 %v80_v0  ;;  %1300 = vmatprep.subr.mxu1 %v80_v0  ;;  %v19_v4 = vld [vmem:[%s2310_s0 + $0x18] sm:$0xff]  ;;  %v21_v6 = vld [vmem:[%s2310_s0 + $0x28] sm:$0xff] }
   0x3   :  { %1204 = vmatprep.mubr.msk.f32.mxu0 %vm88_vm0, %v16_v1  ;;  %1203 = vmatpush3.msra.mxu0 %v80_v0  ;;  %v20_v5 = vld [vmem:[%s2310_s0 + $0x20] sm:$0xff]  ;;  %v22_v7 = vld [vmem:[%s2310_s0 + $0x30] sm:$0xff]  ;;  %v49_v9 = vld [vmem:[%s2310_s0 + $0x108] sm:$0xff] }
   0x4   :  { %1205 = vmatmul.mubr.msk.f32.vlgmr.msra.gmra.mrb[0].mxu0 %vm88_vm0, %v17_v2  ;;  %1301 = vmatpush3.msra.mxu1 %v80_v0  ;;  %v48_v8 = vld [vmem:[%s2310_s0 + $0x100] sm:$0xff]  ;;  %v50_v10 = vld [vmem:[%s2310_s0 + $0x110] sm:$0xff]  ;;  %v23_v11 = vld [vmem:[%s2310_s0 + $0x38] sm:$0xff] }
   0x5   :  { %1207 = vmatprep.mubr.msk.f32.mxu0 %vm88_vm0, %v18_v3  ;;  %1252 = vmatprep.mubr.msk.f32.mxu1 %vm88_vm0, %v48_v8  ;;  %v24_v12 = vld [vmem:[%s2310_s0 + $0x40] sm:$0xff]  ;;  %v51_v13 = vld [vmem:[%s2310_s0 + $0x118] sm:$0xff]  ;;  %v25_v15 = vld [vmem:[%s2310_s0 + $0x48] sm:$0xff] }
   0x6   :  { %1253 = vmatmul.mubr.msk.f32.vlgmr.msra.gmra.mrb[0].mxu1 %vm88_vm0, %v49_v9  ;;  %v52_v14 = vld [vmem:[%s2310_s0 + $0x120] sm:$0xff]  ;;  %v26_v16 = vld [vmem:[%s2310_s0 + $0x50] sm:$0xff]  ;;  %v53_v17 = vld [vmem:[%s2310_s0 + $0x128] sm:$0xff] }
   0x7   :  { %1255 = vmatprep.mubr.msk.f32.mxu1 %vm88_vm0, %v50_v10  ;;  %v54_v18 = vld [vmem:[%s2310_s0 + $0x130] sm:$0xff]  ;;  %v27_v19 = vld [vmem:[%s2310_s0 + $0x58] sm:$0xff]  ;;  %v28_v20 = vld [vmem:[%s2310_s0 + $0x60] sm:$0xff] }
   0x8   :  { %1208 = vmatmul.mubr.msk.f32.gmra.mrb[2].mxu0 %vm88_vm0, %v19_v4  ;;  %v55_v21 = vld [vmem:[%s2310_s0 + $0x138] sm:$0xff]  ;;  %v56_v22 = vld [vmem:[%s2310_s0 + $0x140] sm:$0xff]  ;;  %v29_v23 = vld [vmem:[%s2310_s0 + $0x68] sm:$0xff] }
   0x9   :  { %1210 = vmatprep.mubr.msk.f32.mxu0 %vm88_vm0, %v20_v5  ;;  %v30_v24 = vld [vmem:[%s2310_s0 + $0x70] sm:$0xff]  ;;  %v57_v25 = vld [vmem:[%s2310_s0 + $0x148] sm:$0xff]  ;;  %v31_v27 = vld [vmem:[%s2310_s0 + $0x78] sm:$0xff] }
   0xa   :  { %1256 = vmatmul.mubr.msk.f32.gmra.mrb[2].mxu1 %vm88_vm0, %v51_v13  ;;  %v58_v26 = vld [vmem:[%s2310_s0 + $0x150] sm:$0xff]  ;;  %v32_v28 = vld [vmem:[%s2310_s0 + $0x80] sm:$0xff]  ;;  %v59_v29 = vld [vmem:[%s2310_s0 + $0x158] sm:$0xff] }
   0xb   :  { %1258 = vmatprep.mubr.msk.f32.mxu1 %vm88_vm0, %v52_v14  ;;  %v60_v30 = vld [vmem:[%s2310_s0 + $0x160] sm:$0xff]  ;;  %v33_v31 = vld [vmem:[%s2310_s0 + $0x88] sm:$0xff]  ;;  %v34_v32 = vld [vmem:[%s2310_s0 + $0x90] sm:$0xff] }
   0xc   :  { %1211 = vmatmul.mubr.msk.f32.gmra.mrb[4].mxu0 %vm88_vm0, %v21_v6  ;;  %v61_v33 = vld [vmem:[%s2310_s0 + $0x168] sm:$0xff]  ;;  %v62_v34 = vld [vmem:[%s2310_s0 + $0x170] sm:$0xff]  ;;  %v35_v35 = vld [vmem:[%s2310_s0 + $0x98] sm:$0xff] }
   0xd   :  { %1213 = vmatprep.mubr.msk.f32.mxu0 %vm88_vm0, %v22_v7  ;;  %v36_v36 = vld [vmem:[%s2310_s0 + $0xa0] sm:$0xff]  ;;  %v63_v37 = vld [vmem:[%s2310_s0 + $0x178] sm:$0xff]  ;;  %v37_v39 = vld [vmem:[%s2310_s0 + $0xa8] sm:$0xff] }
   0xe   :  { %1259 = vmatmul.mubr.msk.f32.gmra.mrb[4].mxu1 %vm88_vm0, %v53_v17  ;;  %v64_v38 = vld [vmem:[%s2310_s0 + $0x180] sm:$0xff]  ;;  %v38_v40 = vld [vmem:[%s2310_s0 + $0xb0] sm:$0xff]  ;;  %v65_v41 = vld [vmem:[%s2310_s0 + $0x188] sm:$0xff] }
   0xf   :  { %1261 = vmatprep.mubr.msk.f32.mxu1 %vm88_vm0, %v54_v18  ;;  %v66_v42 = vld [vmem:[%s2310_s0 + $0x190] sm:$0xff]  ;;  %v39_v43 = vld [vmem:[%s2310_s0 + $0xb8] sm:$0xff]  ;;  %v40_v44 = vld [vmem:[%s2310_s0 + $0xc0] sm:$0xff] }
  0x10   :  { %1214 = vmatmul.mubr.msk.f32.gmra.mrb[6].mxu0 %vm88_vm0, %v23_v11  ;;  %v67_v45 = vld [vmem:[%s2310_s0 + $0x198] sm:$0xff]  ;;  %v68_v46 = vld [vmem:[%s2310_s0 + $0x1a0] sm:$0xff]  ;;  %v41_v47 = vld [vmem:[%s2310_s0 + $0xc8] sm:$0xff] }
  0x11   :  { %1216 = vmatprep.mubr.msk.f32.mxu0 %vm88_vm0, %v24_v12  ;;  %v42_v48 = vld [vmem:[%s2310_s0 + $0xd0] sm:$0xff]  ;;  %v69_v49 = vld [vmem:[%s2310_s0 + $0x1a8] sm:$0xff]  ;;  %v43_v51 = vld [vmem:[%s2310_s0 + $0xd8] sm:$0xff] }
  0x12   :  { %1262 = vmatmul.mubr.msk.f32.gmra.mrb[6].mxu1 %vm88_vm0, %v55_v21  ;;  %v70_v50 = vld [vmem:[%s2310_s0 + $0x1b0] sm:$0xff]  ;;  %v44_v52 = vld [vmem:[%s2310_s0 + $0xe0] sm:$0xff]  ;;  %v71_v53 = vld [vmem:[%s2310_s0 + $0x1b8] sm:$0xff] }
  0x13   :  { %1264 = vmatprep.mubr.msk.f32.mxu1 %vm88_vm0, %v56_v22  ;;  %v72_v54 = vld [vmem:[%s2310_s0 + $0x1c0] sm:$0xff]  ;;  %v45_v55 = vld [vmem:[%s2310_s0 + $0xe8] sm:$0xff]  ;;  %v46_v56 = vld [vmem:[%s2310_s0 + $0xf0] sm:$0xff] }
  0x14   :  { %1217 = vmatmul.mubr.msk.f32.gmra.mrb[8].mxu0 %vm88_vm0, %v25_v15  ;;  %v73_v57 = vld [vmem:[%s2310_s0 + $0x1c8] sm:$0xff]  ;;  %v74_v58 = vld [vmem:[%s2310_s0 + $0x1d0] sm:$0xff]  ;;  %v47_v59 = vld [vmem:[%s2310_s0 + $0xf8] sm:$0xff] }
  0x15   :  { %1219 = vmatprep.mubr.msk.f32.mxu0 %vm88_vm0, %v26_v16  ;;  %v75_v60 = vld [vmem:[%s2310_s0 + $0x1d8] sm:$0xff]  ;;  %v76_v61 = vld [vmem:[%s2310_s0 + $0x1e0] sm:$0xff]  ;;  %v77_v62 = vld [vmem:[%s2310_s0 + $0x1e8] sm:$0xff] }
  0x16   :  { %1265 = vmatmul.mubr.msk.f32.gmra.mrb[8].mxu1 %vm88_vm0, %v57_v25  ;;  %v78_v63 = vld [vmem:[%s2310_s0 + $0x1f0] sm:$0xff]  ;;  %v79_v0 = vld [vmem:[%s2310_s0 + $0x1f8] sm:$0xff]  ;;  %v1589_v1 = vld [vmem:[%s2311_s2] ss:$0 sm:$0xff] }
  0x17   :  { %1267 = vmatprep.mubr.msk.f32.mxu1 %vm88_vm0, %v58_v26 }
  0x18   :  { %1220 = vmatmul.mubr.msk.f32.gmra.mrb[10].mxu0 %vm88_vm0, %v27_v19 }
  0x19   :  { %1222 = vmatprep.mubr.msk.f32.mxu0 %vm88_vm0, %v28_v20 }
  0x1a   :  { %1268 = vmatmul.mubr.msk.f32.gmra.mrb[10].mxu1 %vm88_vm0, %v59_v29 }
  0x1b   :  { %1270 = vmatprep.mubr.msk.f32.mxu1 %vm88_vm0, %v60_v30 }
  0x1c   :  { %1223 = vmatmul.mubr.msk.f32.gmra.mrb[12].mxu0 %vm88_vm0, %v29_v23 }
  0x1d   :  { %1225 = vmatprep.mubr.msk.f32.mxu0 %vm88_vm0, %v30_v24 }
  0x1e   :  { %1271 = vmatmul.mubr.msk.f32.gmra.mrb[12].mxu1 %vm88_vm0, %v61_v33 }
  0x1f   :  { %1273 = vmatprep.mubr.msk.f32.mxu1 %vm88_vm0, %v62_v34 }
  0x20   :  { %1226 = vmatmul.mubr.msk.f32.gmra.mrb[14].mxu0 %vm88_vm0, %v31_v27 }
  0x21   :  { %1228 = vmatprep.mubr.msk.f32.mxu0 %vm88_vm0, %v32_v28 }
  0x22   :  { %1274 = vmatmul.mubr.msk.f32.gmra.mrb[14].mxu1 %vm88_vm0, %v63_v37 }
  0x23   :  { %1276 = vmatprep.mubr.msk.f32.mxu1 %vm88_vm0, %v64_v38 }
  0x24   :  { %1229 = vmatmul.mubr.msk.f32.gmra.mrb[16].mxu0 %vm88_vm0, %v33_v31 }
  0x25   :  { %1231 = vmatprep.mubr.msk.f32.mxu0 %vm88_vm0, %v34_v32 }
  0x26   :  { %1277 = vmatmul.mubr.msk.f32.gmra.mrb[16].mxu1 %vm88_vm0, %v65_v41 }
  0x27   :  { %1279 = vmatprep.mubr.msk.f32.mxu1 %vm88_vm0, %v66_v42 }
  0x28   :  { %1232 = vmatmul.mubr.msk.f32.gmra.mrb[18].mxu0 %vm88_vm0, %v35_v35 }
  0x29   :  { %1234 = vmatprep.mubr.msk.f32.mxu0 %vm88_vm0, %v36_v36 }
  0x2a   :  { %1280 = vmatmul.mubr.msk.f32.gmra.mrb[18].mxu1 %vm88_vm0, %v67_v45 }
  0x2b   :  { %1282 = vmatprep.mubr.msk.f32.mxu1 %vm88_vm0, %v68_v46 }
  0x2c   :  { %1235 = vmatmul.mubr.msk.f32.gmra.mrb[20].mxu0 %vm88_vm0, %v37_v39 }
  0x2d   :  { %1237 = vmatprep.mubr.msk.f32.mxu0 %vm88_vm0, %v38_v40 }
  0x2e   :  { %1283 = vmatmul.mubr.msk.f32.gmra.mrb[20].mxu1 %vm88_vm0, %v69_v49 }
  0x2f   :  { %1285 = vmatprep.mubr.msk.f32.mxu1 %vm88_vm0, %v70_v50 }
  0x30   :  { %1238 = vmatmul.mubr.msk.f32.gmra.mrb[22].mxu0 %vm88_vm0, %v39_v43 }
  0x31   :  { %1240 = vmatprep.mubr.msk.f32.mxu0 %vm88_vm0, %v40_v44 }
  0x32   :  { %1286 = vmatmul.mubr.msk.f32.gmra.mrb[22].mxu1 %vm88_vm0, %v71_v53 }
  0x33   :  { %1288 = vmatprep.mubr.msk.f32.mxu1 %vm88_vm0, %v72_v54 }
  0x34   :  { %1241 = vmatmul.mubr.msk.f32.gmra.mrb[24].mxu0 %vm88_vm0, %v41_v47 }
  0x35   :  { %1243 = vmatprep.mubr.msk.f32.mxu0 %vm88_vm0, %v42_v48 }
  0x36   :  { %1289 = vmatmul.mubr.msk.f32.gmra.mrb[24].mxu1 %vm88_vm0, %v73_v57 }
  0x37   :  { %1291 = vmatprep.mubr.msk.f32.mxu1 %vm88_vm0, %v74_v58 }
  0x38   :  { %1244 = vmatmul.mubr.msk.f32.gmra.mrb[26].mxu0 %vm88_vm0, %v43_v51 }
  0x39   :  { %1246 = vmatprep.mubr.msk.f32.mxu0 %vm88_vm0, %v44_v52 }
  0x3a   :  { %1292 = vmatmul.mubr.msk.f32.gmra.mrb[26].mxu1 %vm88_vm0, %v75_v60 }
  0x3b   :  { %1294 = vmatprep.mubr.msk.f32.mxu1 %vm88_vm0, %v76_v61 }
  0x3c   :  { %1247 = vmatmul.mubr.msk.f32.gmra.mrb[28].mxu0 %vm88_vm0, %v45_v55 }
  0x3d   :  { %1249 = vmatprep.mubr.msk.f32.mxu0 %vm88_vm0, %v46_v56 }
  0x3e   :  { %1295 = vmatmul.mubr.msk.f32.gmra.mrb[28].mxu1 %vm88_vm0, %v77_v62 }
  0x3f   :  { %1297 = vmatprep.mubr.msk.f32.mxu1 %vm88_vm0, %v78_v63 }
  0x40   :  { %1250 = vmatmul.mubr.msk.f32.gmra.mrb[30].mxu0 %vm88_vm0, %v47_v59 }
  0x42   :  { %1298 = vmatmul.mubr.msk.f32.gmra.mrb[30].mxu1 %vm88_vm0, %v79_v0 }
  0xd7   :  { %v1206_v2 = vpop.f32.mrb[0].mxu0 }
  0xd8   :  { %v353_v3 = vadd.f32 %v1206_v2, %v1589_v1  ;;  %v347_v4 = vpop.f32.mrb[1].mxu0 }
  0xd9   :  { %v348_v5 = vadd.f32 %v1589_v1, %v347_v4  ;;  %v1254_v28 = vpop.f32.mrb[0].mxu1 }
  0xda   :  { %667 = vst.msk [vmem:[%s2312_s3 + $0x8] sm:$0xff] %vm88_vm0, %v353_v3  ;;  %v731_v6 = vsel %vm88_vm0, %v353_v3, 0.0  ;;  %v864_v7 = vmul.f32 %v353_v3, %v353_v3  ;;  %v507_v33 = vpop.f32.mrb[1].mxu1  ;;  %v1631_v37 = vadd.f32 %v1254_v28, %v1589_v1 }
  0xdb   :  { %666 = vst.msk [vmem:[%s2312_s3] sm:$0xff] %vm88_vm0, %v348_v5  ;;  %v730_v8 = vsel %vm88_vm0, %v348_v5, 0.0  ;;  %v863_v9 = vmul.f32 %v348_v5, %v348_v5  ;;  %v1209_v10 = vpop.f32.mrb[2].mxu0  ;;  %v1634_v38 = vadd.f32 %v1589_v1, %v507_v33 }
  0xdc   :  { %v928_v11 = vsel %vm88_vm0, %v864_v7, 0.0  ;;  %v732_v12 = vadd.f32 %v731_v6, %v730_v8  ;;  %v363_v13 = vadd.f32 %v1209_v10, %v1589_v1  ;;  %v357_v14 = vpop.f32.mrb[3].mxu0  ;;  %699 = vst.msk [vmem:[%s2312_s3 + $0x108] sm:$0xff] %vm88_vm0, %v1631_v37 }
  0xdd   :  { %v927_v15 = vsel %vm88_vm0, %v863_v9, 0.0  ;;  %v358_v16 = vadd.f32 %v1589_v1, %v357_v14  ;;  %698 = vst.msk [vmem:[%s2312_s3 + $0x100] sm:$0xff] %vm88_vm0, %v1634_v38  ;;  %v1257_v46 = vpop.f32.mrb[2].mxu1 }
  0xde   :  { %v929_v17 = vadd.f32 %v928_v11, %v927_v15  ;;  %669 = vst.msk [vmem:[%s2312_s3 + $0x18] sm:$0xff] %vm88_vm0, %v363_v13  ;;  %v866_v18 = vmul.f32 %v363_v13, %v363_v13  ;;  %v735_v25 = vsel %vm88_vm0, %v363_v13, 0.0  ;;  %v517_v49 = vpop.f32.mrb[3].mxu1  ;;  %v1665_v62 = vadd.f32 %v1257_v46, %v1589_v1 }
  0xdf   :  { %668 = vst.msk [vmem:[%s2312_s3 + $0x10] sm:$0xff] %vm88_vm0, %v358_v16  ;;  %v733_v19 = vsel %vm88_vm0, %v358_v16, 0.0  ;;  %v865_v20 = vmul.f32 %v358_v16, %v358_v16  ;;  %v1212_v21 = vpop.f32.mrb[4].mxu0  ;;  %v1687_v16 = vadd.f32 %v1589_v1, %v517_v49 }
  0xe0   :  { %v734_v22 = vadd.f32 %v733_v19, %v732_v12  ;;  %v373_v23 = vadd.f32 %v1212_v21, %v1589_v1  ;;  %v367_v24 = vpop.f32.mrb[5].mxu0  ;;  %v932_v29 = vsel %vm88_vm0, %v866_v18, 0.0  ;;  %701 = vst.msk [vmem:[%s2312_s3 + $0x118] sm:$0xff] %vm88_vm0, %v1665_v62 }
  0xe1   :  { %v930_v26 = vsel %vm88_vm0, %v865_v20, 0.0  ;;  %v368_v27 = vadd.f32 %v1589_v1, %v367_v24  ;;  %v1260_v63 = vpop.f32.mrb[4].mxu1  ;;  %700 = vst.msk [vmem:[%s2312_s3 + $0x110] sm:$0xff] %vm88_vm0, %v1687_v16 }
  0xe2   :  { %v931_v30 = vadd.f32 %v930_v26, %v929_v17  ;;  %671 = vst.msk [vmem:[%s2312_s3 + $0x28] sm:$0xff] %vm88_vm0, %v373_v23  ;;  %v868_v31 = vmul.f32 %v373_v23, %v373_v23  ;;  %v736_v32 = vadd.f32 %v735_v25, %v734_v22  ;;  %v739_v43 = vsel %vm88_vm0, %v373_v23, 0.0  ;;  %v527_v3 = vpop.f32.mrb[5].mxu1 }
  0xe3   :  { %670 = vst.msk [vmem:[%s2312_s3 + $0x20] sm:$0xff] %vm88_vm0, %v368_v27  ;;  %v737_v34 = vsel %vm88_vm0, %v368_v27, 0.0  ;;  %v867_v35 = vmul.f32 %v368_v27, %v368_v27  ;;  %v1215_v36 = vpop.f32.mrb[6].mxu0  ;;  %v1711_v33 = vadd.f32 %v1260_v63, %v1589_v1 }
  0xe4   :  { %v738_v39 = vadd.f32 %v737_v34, %v736_v32  ;;  %v933_v40 = vadd.f32 %v932_v29, %v931_v30  ;;  %v383_v41 = vadd.f32 %v1215_v36, %v1589_v1  ;;  %v377_v42 = vpop.f32.mrb[7].mxu0  ;;  %v936_v50 = vsel %vm88_vm0, %v868_v31, 0.0 }
  0xe5   :  { %v934_v44 = vsel %vm88_vm0, %v867_v35, 0.0  ;;  %v378_v45 = vadd.f32 %v1589_v1, %v377_v42  ;;  %v1263_v17 = vpop.f32.mrb[6].mxu1  ;;  %703 = vst.msk [vmem:[%s2312_s3 + $0x128] sm:$0xff] %vm88_vm0, %v1711_v33 }
  0xe6   :  { %v935_v47 = vadd.f32 %v934_v44, %v933_v40  ;;  %673 = vst.msk [vmem:[%s2312_s3 + $0x38] sm:$0xff] %vm88_vm0, %v383_v41  ;;  %v740_v48 = vadd.f32 %v739_v43, %v738_v39  ;;  %v870_v51 = vmul.f32 %v383_v41, %v383_v41  ;;  %v743_v59 = vsel %vm88_vm0, %v383_v41, 0.0  ;;  %v1693_v20 = vpop.f32.mrb[7].mxu1 }
  0xe7   :  { %672 = vst.msk [vmem:[%s2312_s3 + $0x30] sm:$0xff] %vm88_vm0, %v378_v45  ;;  %v741_v52 = vsel %vm88_vm0, %v378_v45, 0.0  ;;  %v869_v53 = vmul.f32 %v378_v45, %v378_v45  ;;  %v1218_v54 = vpop.f32.mrb[8].mxu0 }
  0xe8   :  { %v742_v55 = vadd.f32 %v741_v52, %v740_v48  ;;  %v937_v56 = vadd.f32 %v936_v50, %v935_v47  ;;  %v393_v57 = vadd.f32 %v1218_v54, %v1589_v1  ;;  %v387_v58 = vpop.f32.mrb[9].mxu0  ;;  %v940_v4 = vsel %vm88_vm0, %v870_v51, 0.0 }
  0xe9   :  { %v938_v60 = vsel %vm88_vm0, %v869_v53, 0.0  ;;  %v388_v61 = vadd.f32 %v1589_v1, %v387_v58  ;;  %v1713_v34 = vpop.f32.mrb[8].mxu1  ;;  %v1737_v52 = vadd.f32 %v1589_v1, %v527_v3 }
  0xea   :  { %v939_v0 = vadd.f32 %v938_v60, %v937_v56  ;;  %675 = vst.msk [vmem:[%s2312_s3 + $0x48] sm:$0xff] %vm88_vm0, %v393_v57  ;;  %v744_v2 = vadd.f32 %v743_v59, %v742_v55  ;;  %v872_v5 = vmul.f32 %v393_v57, %v393_v57  ;;  %v747_v13 = vsel %vm88_vm0, %v393_v57, 0.0  ;;  %v1719_v39 = vpop.f32.mrb[9].mxu1 }
  0xeb   :  { %674 = vst.msk [vmem:[%s2312_s3 + $0x40] sm:$0xff] %vm88_vm0, %v388_v61  ;;  %v745_v6 = vsel %vm88_vm0, %v388_v61, 0.0  ;;  %v871_v7 = vmul.f32 %v388_v61, %v388_v61  ;;  %v1221_v8 = vpop.f32.mrb[10].mxu0  ;;  %702 = vst.msk [vmem:[%s2312_s3 + $0x120] sm:$0xff] %vm88_vm0, %v1737_v52 }
  0xec   :  { %v746_v9 = vadd.f32 %v745_v6, %v744_v2  ;;  %v941_v10 = vadd.f32 %v940_v4, %v939_v0  ;;  %v403_v11 = vadd.f32 %v1221_v8, %v1589_v1  ;;  %v397_v12 = vpop.f32.mrb[11].mxu0  ;;  %v944_v21 = vsel %vm88_vm0, %v872_v5, 0.0 }
  0xed   :  { %v942_v14 = vsel %vm88_vm0, %v871_v7, 0.0  ;;  %v398_v15 = vadd.f32 %v1589_v1, %v397_v12  ;;  %v1739_v53 = vpop.f32.mrb[10].mxu1  ;;  %v1763_v7 = vadd.f32 %v1263_v17, %v1589_v1 }
  0xee   :  { %v943_v18 = vadd.f32 %v942_v14, %v941_v10  ;;  %677 = vst.msk [vmem:[%s2312_s3 + $0x58] sm:$0xff] %vm88_vm0, %v403_v11  ;;  %v748_v19 = vadd.f32 %v747_v13, %v746_v9  ;;  %v874_v22 = vmul.f32 %v403_v11, %v403_v11  ;;  %v751_v30 = vsel %vm88_vm0, %v403_v11, 0.0  ;;  %v1745_v56 = vpop.f32.mrb[11].mxu1 }
  0xef   :  { %676 = vst.msk [vmem:[%s2312_s3 + $0x50] sm:$0xff] %vm88_vm0, %v398_v15  ;;  %v749_v23 = vsel %vm88_vm0, %v398_v15, 0.0  ;;  %v873_v24 = vmul.f32 %v398_v15, %v398_v15  ;;  %v1224_v25 = vpop.f32.mrb[12].mxu0  ;;  %705 = vst.msk [vmem:[%s2312_s3 + $0x138] sm:$0xff] %vm88_vm0, %v1763_v7 }
  0xf0   :  { %v750_v26 = vadd.f32 %v749_v23, %v748_v19  ;;  %v945_v27 = vadd.f32 %v944_v21, %v943_v18  ;;  %v413_v28 = vadd.f32 %v1224_v25, %v1589_v1  ;;  %v407_v29 = vpop.f32.mrb[13].mxu0  ;;  %v948_v40 = vsel %vm88_vm0, %v874_v22, 0.0 }
  0xf1   :  { %v946_v31 = vsel %vm88_vm0, %v873_v24, 0.0  ;;  %v408_v32 = vadd.f32 %v1589_v1, %v407_v29  ;;  %v1765_v8 = vpop.f32.mrb[12].mxu1 }
  0xf2   :  { %v947_v35 = vadd.f32 %v946_v31, %v945_v27  ;;  %679 = vst.msk [vmem:[%s2312_s3 + $0x68] sm:$0xff] %vm88_vm0, %v413_v28  ;;  %v752_v36 = vadd.f32 %v751_v30, %v750_v26  ;;  %v876_v41 = vmul.f32 %v413_v28, %v413_v28  ;;  %v755_v49 = vsel %vm88_vm0, %v413_v28, 0.0  ;;  %v1771_v11 = vpop.f32.mrb[13].mxu1 }
  0xf3   :  { %678 = vst.msk [vmem:[%s2312_s3 + $0x60] sm:$0xff] %vm88_vm0, %v408_v32  ;;  %v753_v42 = vsel %vm88_vm0, %v408_v32, 0.0  ;;  %v875_v43 = vmul.f32 %v408_v32, %v408_v32  ;;  %v1227_v44 = vpop.f32.mrb[14].mxu0  ;;  %v1790_v26 = vadd.f32 %v1589_v1, %v1693_v20 }
  0xf4   :  { %v754_v45 = vadd.f32 %v753_v42, %v752_v36  ;;  %v949_v46 = vadd.f32 %v948_v40, %v947_v35  ;;  %v423_v47 = vadd.f32 %v1227_v44, %v1589_v1  ;;  %v417_v48 = vpop.f32.mrb[15].mxu0  ;;  %v952_v57 = vsel %vm88_vm0, %v876_v41, 0.0 }
  0xf5   :  { %v950_v50 = vsel %vm88_vm0, %v875_v43, 0.0  ;;  %v418_v51 = vadd.f32 %v1589_v1, %v417_v48  ;;  %v1792_v27 = vpop.f32.mrb[14].mxu1  ;;  %704 = vst.msk [vmem:[%s2312_s3 + $0x130] sm:$0xff] %vm88_vm0, %v1790_v26 }
  0xf6   :  { %v951_v54 = vadd.f32 %v950_v50, %v949_v46  ;;  %681 = vst.msk [vmem:[%s2312_s3 + $0x78] sm:$0xff] %vm88_vm0, %v423_v47  ;;  %v756_v55 = vadd.f32 %v755_v49, %v754_v45  ;;  %v878_v58 = vmul.f32 %v423_v47, %v423_v47  ;;  %v759_v4 = vsel %vm88_vm0, %v423_v47, 0.0  ;;  %v1798_v30 = vpop.f32.mrb[15].mxu1 }
  0xf7   :  { %680 = vst.msk [vmem:[%s2312_s3 + $0x70] sm:$0xff] %vm88_vm0, %v418_v51  ;;  %v757_v59 = vsel %vm88_vm0, %v418_v51, 0.0  ;;  %v877_v60 = vmul.f32 %v418_v51, %v418_v51  ;;  %v1230_v61 = vpop.f32.mrb[16].mxu0  ;;  %v1817_v47 = vadd.f32 %v1713_v34, %v1589_v1 }
  0xf8   :  { %v758_v63 = vadd.f32 %v757_v59, %v756_v55  ;;  %v953_v0 = vadd.f32 %v952_v57, %v951_v54  ;;  %v433_v2 = vadd.f32 %v1230_v61, %v1589_v1  ;;  %v427_v3 = vpop.f32.mrb[17].mxu0  ;;  %v956_v12 = vsel %vm88_vm0, %v878_v58, 0.0 }
  0xf9   :  { %v954_v5 = vsel %vm88_vm0, %v877_v60, 0.0  ;;  %v428_v6 = vadd.f32 %v1589_v1, %v427_v3  ;;  %v1819_v48 = vpop.f32.mrb[16].mxu1  ;;  %707 = vst.msk [vmem:[%s2312_s3 + $0x148] sm:$0xff] %vm88_vm0, %v1817_v47 }
  0xfa   :  { %v955_v9 = vadd.f32 %v954_v5, %v953_v0  ;;  %683 = vst.msk [vmem:[%s2312_s3 + $0x88] sm:$0xff] %vm88_vm0, %v433_v2  ;;  %v760_v10 = vadd.f32 %v759_v4, %v758_v63  ;;  %v880_v13 = vmul.f32 %v433_v2, %v433_v2  ;;  %v763_v23 = vsel %vm88_vm0, %v433_v2, 0.0  ;;  %v1825_v51 = vpop.f32.mrb[17].mxu1 }
  0xfb   :  { %682 = vst.msk [vmem:[%s2312_s3 + $0x80] sm:$0xff] %vm88_vm0, %v428_v6  ;;  %v761_v14 = vsel %vm88_vm0, %v428_v6, 0.0  ;;  %v879_v15 = vmul.f32 %v428_v6, %v428_v6  ;;  %v1233_v17 = vpop.f32.mrb[18].mxu0  ;;  %v1844_v4 = vadd.f32 %v1589_v1, %v1719_v39 }
  0xfc   :  { %v762_v18 = vadd.f32 %v761_v14, %v760_v10  ;;  %v957_v19 = vadd.f32 %v956_v12, %v955_v9  ;;  %v443_v21 = vadd.f32 %v1233_v17, %v1589_v1  ;;  %v437_v22 = vpop.f32.mrb[19].mxu0  ;;  %v960_v31 = vsel %vm88_vm0, %v880_v13, 0.0 }
  0xfd   :  { %v958_v24 = vsel %vm88_vm0, %v879_v15, 0.0  ;;  %v438_v25 = vadd.f32 %v1589_v1, %v437_v22  ;;  %v1846_v5 = vpop.f32.mrb[18].mxu1  ;;  %706 = vst.msk [vmem:[%s2312_s3 + $0x140] sm:$0xff] %vm88_vm0, %v1844_v4 }
  0xfe   :  { %v959_v28 = vadd.f32 %v958_v24, %v957_v19  ;;  %685 = vst.msk [vmem:[%s2312_s3 + $0x98] sm:$0xff] %vm88_vm0, %v443_v21  ;;  %v764_v29 = vadd.f32 %v763_v23, %v762_v18  ;;  %v882_v32 = vmul.f32 %v443_v21, %v443_v21  ;;  %v767_v44 = vsel %vm88_vm0, %v443_v21, 0.0  ;;  %v1852_v10 = vpop.f32.mrb[19].mxu1 }
  0xff   :  { %684 = vst.msk [vmem:[%s2312_s3 + $0x90] sm:$0xff] %vm88_vm0, %v438_v25  ;;  %v765_v20 = vsel %vm88_vm0, %v438_v25, 0.0  ;;  %v881_v35 = vmul.f32 %v438_v25, %v438_v25  ;;  %v1236_v36 = vpop.f32.mrb[20].mxu0  ;;  %v1871_v25 = vadd.f32 %v1739_v53, %v1589_v1 }
 0x100   :  { %v766_v40 = vadd.f32 %v765_v20, %v764_v29  ;;  %v961_v41 = vadd.f32 %v960_v31, %v959_v28  ;;  %v453_v42 = vadd.f32 %v1236_v36, %v1589_v1  ;;  %v447_v43 = vpop.f32.mrb[21].mxu0  ;;  %v964_v54 = vsel %vm88_vm0, %v882_v32, 0.0 }
 0x101   :  { %v962_v45 = vsel %vm88_vm0, %v881_v35, 0.0  ;;  %v448_v46 = vadd.f32 %v1589_v1, %v447_v43  ;;  %v1873_v28 = vpop.f32.mrb[20].mxu1  ;;  %709 = vst.msk [vmem:[%s2312_s3 + $0x158] sm:$0xff] %vm88_vm0, %v1871_v25 }
 0x102   :  { %v963_v49 = vadd.f32 %v962_v45, %v961_v41  ;;  %687 = vst.msk [vmem:[%s2312_s3 + $0xa8] sm:$0xff] %vm88_vm0, %v453_v42  ;;  %v768_v50 = vadd.f32 %v767_v44, %v766_v40  ;;  %v884_v55 = vmul.f32 %v453_v42, %v453_v42  ;;  %v771_v0 = vsel %vm88_vm0, %v453_v42, 0.0  ;;  %v1879_v32 = vpop.f32.mrb[21].mxu1 }
 0x103   :  { %686 = vst.msk [vmem:[%s2312_s3 + $0xa0] sm:$0xff] %vm88_vm0, %v448_v46  ;;  %v769_v34 = vsel %vm88_vm0, %v448_v46, 0.0  ;;  %v883_v57 = vmul.f32 %v448_v46, %v448_v46  ;;  %v1239_v58 = vpop.f32.mrb[22].mxu0 }
 0x104   :  { %v770_v59 = vadd.f32 %v769_v34, %v768_v50  ;;  %v965_v60 = vadd.f32 %v964_v54, %v963_v49  ;;  %v463_v61 = vadd.f32 %v1239_v58, %v1589_v1  ;;  %v457_v63 = vpop.f32.mrb[23].mxu0  ;;  %v968_v12 = vsel %vm88_vm0, %v884_v55, 0.0 }
 0x105   :  { %v966_v2 = vsel %vm88_vm0, %v883_v57, 0.0  ;;  %v458_v3 = vadd.f32 %v1589_v1, %v457_v63  ;;  %v1898_v50 = vadd.f32 %v1589_v1, %v1745_v56  ;;  %v1900_v54 = vpop.f32.mrb[22].mxu1 }
 0x106   :  { %v967_v6 = vadd.f32 %v966_v2, %v965_v60  ;;  %689 = vst.msk [vmem:[%s2312_s3 + $0xb8] sm:$0xff] %vm88_vm0, %v463_v61  ;;  %v772_v9 = vadd.f32 %v771_v0, %v770_v59  ;;  %v886_v13 = vmul.f32 %v463_v61, %v463_v61  ;;  %v775_v22 = vsel %vm88_vm0, %v463_v61, 0.0  ;;  %v1906_v57 = vpop.f32.mrb[23].mxu1 }
 0x107   :  { %688 = vst.msk [vmem:[%s2312_s3 + $0xb0] sm:$0xff] %vm88_vm0, %v458_v3  ;;  %v773_v39 = vsel %vm88_vm0, %v458_v3, 0.0  ;;  %v885_v14 = vmul.f32 %v458_v3, %v458_v3  ;;  %v1242_v15 = vpop.f32.mrb[24].mxu0  ;;  %708 = vst.msk [vmem:[%s2312_s3 + $0x150] sm:$0xff] %vm88_vm0, %v1898_v50 }
 0x108   :  { %v774_v17 = vadd.f32 %v773_v39, %v772_v9  ;;  %v969_v18 = vadd.f32 %v968_v12, %v967_v6  ;;  %v473_v19 = vadd.f32 %v1242_v15, %v1589_v1  ;;  %v467_v21 = vpop.f32.mrb[25].mxu0  ;;  %v972_v20 = vsel %vm88_vm0, %v886_v13, 0.0 }
 0x109   :  { %v970_v23 = vsel %vm88_vm0, %v885_v14, 0.0  ;;  %v468_v24 = vadd.f32 %v1589_v1, %v467_v21  ;;  %v1925_v13 = vadd.f32 %v1765_v8, %v1589_v1  ;;  %v1927_v39 = vpop.f32.mrb[24].mxu1 }
 0x10a   :  { %v971_v29 = vadd.f32 %v970_v23, %v969_v18  ;;  %691 = vst.msk [vmem:[%s2312_s3 + $0xc8] sm:$0xff] %vm88_vm0, %v473_v19  ;;  %v776_v31 = vadd.f32 %v775_v22, %v774_v17  ;;  %v888_v35 = vmul.f32 %v473_v19, %v473_v19  ;;  %v779_v45 = vsel %vm88_vm0, %v473_v19, 0.0  ;;  %v1933_v17 = vpop.f32.mrb[25].mxu1 }
 0x10b   :  { %690 = vst.msk [vmem:[%s2312_s3 + $0xc0] sm:$0xff] %vm88_vm0, %v468_v24  ;;  %v777_v53 = vsel %vm88_vm0, %v468_v24, 0.0  ;;  %v887_v36 = vmul.f32 %v468_v24, %v468_v24  ;;  %v1245_v40 = vpop.f32.mrb[26].mxu0  ;;  %711 = vst.msk [vmem:[%s2312_s3 + $0x168] sm:$0xff] %vm88_vm0, %v1925_v13 }
 0x10c   :  { %v778_v41 = vadd.f32 %v777_v53, %v776_v31  ;;  %v973_v42 = vadd.f32 %v972_v20, %v971_v29  ;;  %v483_v43 = vadd.f32 %v1245_v40, %v1589_v1  ;;  %v477_v44 = vpop.f32.mrb[27].mxu0  ;;  %v976_v58 = vsel %vm88_vm0, %v888_v35, 0.0 }
 0x10d   :  { %v974_v46 = vsel %vm88_vm0, %v887_v36, 0.0  ;;  %v478_v49 = vadd.f32 %v1589_v1, %v477_v44  ;;  %v1952_v36 = vadd.f32 %v1589_v1, %v1771_v11  ;;  %v1954_v40 = vpop.f32.mrb[26].mxu1  ;;  %v895_v44 = vmul.f32 %v1634_v38, %v1634_v38 }
 0x10e   :  { %v975_v55 = vadd.f32 %v974_v46, %v973_v42  ;;  %693 = vst.msk [vmem:[%s2312_s3 + $0xd8] sm:$0xff] %vm88_vm0, %v483_v43  ;;  %v780_v34 = vadd.f32 %v779_v45, %v778_v41  ;;  %v890_v59 = vmul.f32 %v483_v43, %v483_v43  ;;  %v783_v6 = vsel %vm88_vm0, %v483_v43, 0.0  ;;  %v1964_v45 = vpop.f32.mrb[27].mxu1 }
 0x10f   :  { %692 = vst.msk [vmem:[%s2312_s3 + $0xd0] sm:$0xff] %vm88_vm0, %v478_v49  ;;  %v781_v56 = vsel %vm88_vm0, %v478_v49, 0.0  ;;  %v889_v60 = vmul.f32 %v478_v49, %v478_v49  ;;  %v1248_v61 = vpop.f32.mrb[28].mxu0  ;;  %v896_v43 = vmul.f32 %v1631_v37, %v1631_v37  ;;  %710 = vst.msk [vmem:[%s2312_s3 + $0x160] sm:$0xff] %vm88_vm0, %v1952_v36 }
 0x110   :  { %v782_v63 = vadd.f32 %v781_v56, %v780_v34  ;;  %v977_v0 = vadd.f32 %v976_v58, %v975_v55  ;;  %v493_v2 = vadd.f32 %v1248_v61, %v1589_v1  ;;  %v487_v3 = vpop.f32.mrb[29].mxu0  ;;  %v980_v18 = vsel %vm88_vm0, %v890_v59, 0.0 }
 0x111   :  { %v978_v9 = vsel %vm88_vm0, %v889_v60, 0.0  ;;  %v488_v12 = vadd.f32 %v1589_v1, %v487_v3  ;;  %v793_v56 = vsel %vm88_vm0, %v1634_v38, 0.0  ;;  %v1983_v61 = vadd.f32 %v1792_v27, %v1589_v1 }
 0x112   :  { %v979_v14 = vadd.f32 %v978_v9, %v977_v0  ;;  %695 = vst.msk [vmem:[%s2312_s3 + $0xe8] sm:$0xff] %vm88_vm0, %v493_v2  ;;  %v784_v15 = vadd.f32 %v783_v6, %v782_v63  ;;  %v892_v19 = vmul.f32 %v493_v2, %v493_v2  ;;  %v787_v20 = vsel %vm88_vm0, %v493_v2, 0.0  ;;  %v1993_v2 = vpop.f32.mrb[28].mxu1 }
 0x113   :  { %694 = vst.msk [vmem:[%s2312_s3 + $0xe0] sm:$0xff] %vm88_vm0, %v488_v12  ;;  %v785_v8 = vsel %vm88_vm0, %v488_v12, 0.0  ;;  %v891_v21 = vmul.f32 %v488_v12, %v488_v12  ;;  %v1251_v22 = vpop.f32.mrb[30].mxu0  ;;  %v1987_v63 = vadd.f32 %v1589_v1, %v1798_v30  ;;  %v1991_v0 = vadd.f32 %v1819_v48, %v1589_v1  ;;  %v2001_v27 = vpop.f32.mrb[29].mxu1  ;;  %713 = vst.msk [vmem:[%s2312_s3 + $0x178] sm:$0xff] %vm88_vm0, %v1983_v61 }
 0x114   :  { %v786_v23 = vadd.f32 %v785_v8, %v784_v15  ;;  %v981_v24 = vadd.f32 %v980_v18, %v979_v14  ;;  %v503_v29 = vadd.f32 %v1251_v22, %v1589_v1  ;;  %v497_v31 = vpop.f32.mrb[31].mxu0  ;;  %v984_v11 = vsel %vm88_vm0, %v892_v19, 0.0 }
 0x115   :  { %v982_v35 = vsel %vm88_vm0, %v891_v21, 0.0  ;;  %v498_v53 = vadd.f32 %v1589_v1, %v497_v31  ;;  %v897_v38 = vmul.f32 %v1687_v16, %v1687_v16  ;;  %v1999_v9 = vadd.f32 %v1589_v1, %v1825_v51  ;;  %712 = vst.msk [vmem:[%s2312_s3 + $0x170] sm:$0xff] %vm88_vm0, %v1987_v63  ;;  %715 = vst.msk [vmem:[%s2312_s3 + $0x188] sm:$0xff] %vm88_vm0, %v1991_v0  ;;  %v2032_v8 = vpop.f32.mrb[30].mxu1 }
 0x116   :  { %v983_v41 = vadd.f32 %v982_v35, %v981_v24  ;;  %697 = vst.msk [vmem:[%s2312_s3 + $0xf8] sm:$0xff] %vm88_vm0, %v503_v29  ;;  %v788_v42 = vadd.f32 %v787_v20, %v786_v23  ;;  %v894_v46 = vmul.f32 %v503_v29, %v503_v29  ;;  %v791_v34 = vsel %vm88_vm0, %v503_v29, 0.0  ;;  %v2039_v29 = vpop.f32.mrb[31].mxu1 }
 0x117   :  { %696 = vst.msk [vmem:[%s2312_s3 + $0xf0] sm:$0xff] %vm88_vm0, %v498_v53  ;;  %v789_v49 = vsel %vm88_vm0, %v498_v53, 0.0  ;;  %v893_v55 = vmul.f32 %v498_v53, %v498_v53  ;;  %v990_v12 = vsel %vm88_vm0, %v895_v44, 0.0  ;;  %714 = vst.msk [vmem:[%s2312_s3 + $0x180] sm:$0xff] %vm88_vm0, %v1999_v9  ;;  %v795_v14 = vsel %vm88_vm0, %v1631_v37, 0.0 }
 0x118   :  { %v790_v58 = vadd.f32 %v789_v49, %v788_v42  ;;  %v985_v59 = vadd.f32 %v984_v11, %v983_v41  ;;  %v988_v30 = vsel %vm88_vm0, %v894_v46, 0.0  ;;  %v992_v15 = vsel %vm88_vm0, %v896_v43, 0.0 }
 0x119   :  { %v986_v60 = vsel %vm88_vm0, %v893_v55, 0.0  ;;  %v898_v18 = vmul.f32 %v1665_v62, %v1665_v62  ;;  %v797_v19 = vsel %vm88_vm0, %v1687_v16, 0.0  ;;  %v994_v23 = vsel %vm88_vm0, %v897_v38, 0.0 }
 0x11a   :  { %v987_v3 = vadd.f32 %v986_v60, %v985_v59  ;;  %v792_v6 = vadd.f32 %v791_v34, %v790_v58  ;;  %v2037_v24 = vadd.f32 %v1846_v5, %v1589_v1  ;;  %v899_v37 = vmul.f32 %v1737_v52, %v1737_v52 }
 0x11b   :  { %v2045_v31 = vadd.f32 %v1589_v1, %v1852_v10  ;;  %v2049_v16 = vadd.f32 %v1873_v28, %v1589_v1  ;;  %v2053_v20 = vadd.f32 %v1589_v1, %v1879_v32  ;;  %v799_v10 = vsel %vm88_vm0, %v1665_v62, 0.0 }
 0x11c   :  { %v794_v48 = vadd.f32 %v793_v56, %v792_v6  ;;  %v989_v51 = vadd.f32 %v988_v30, %v987_v3  ;;  %717 = vst.msk [vmem:[%s2312_s3 + $0x198] sm:$0xff] %vm88_vm0, %v2037_v24  ;;  %v801_v53 = vsel %vm88_vm0, %v1737_v52, 0.0  ;;  %v996_v62 = vsel %vm88_vm0, %v898_v18, 0.0 }
 0x11d   :  { %716 = vst.msk [vmem:[%s2312_s3 + $0x190] sm:$0xff] %vm88_vm0, %v2045_v31  ;;  %719 = vst.msk [vmem:[%s2312_s3 + $0x1a8] sm:$0xff] %vm88_vm0, %v2049_v16  ;;  %v900_v32 = vmul.f32 %v1711_v33, %v1711_v33  ;;  %v998_v41 = vsel %vm88_vm0, %v899_v37, 0.0  ;;  %v901_v42 = vmul.f32 %v1790_v26, %v1790_v26  ;;  %v2087_v43 = vadd.f32 %v1900_v54, %v1589_v1 }
 0x11e   :  { %v991_v21 = vadd.f32 %v990_v12, %v989_v51  ;;  %v796_v22 = vadd.f32 %v795_v14, %v794_v48  ;;  %718 = vst.msk [vmem:[%s2312_s3 + $0x1a0] sm:$0xff] %vm88_vm0, %v2053_v20  ;;  %v2091_v46 = vadd.f32 %v1589_v1, %v1906_v57  ;;  %v2095_v49 = vadd.f32 %v1927_v39, %v1589_v1 }
 0x11f   :  { %v803_v55 = vsel %vm88_vm0, %v1711_v33, 0.0  ;;  %v805_v34 = vsel %vm88_vm0, %v1790_v26, 0.0  ;;  %721 = vst.msk [vmem:[%s2312_s3 + $0x1b8] sm:$0xff] %vm88_vm0, %v2087_v43  ;;  %v2108_v54 = vadd.f32 %v1589_v1, %v1933_v17  ;;  %v1000_v33 = vsel %vm88_vm0, %v900_v32, 0.0 }
 0x120   :  { %v798_v35 = vadd.f32 %v797_v19, %v796_v22  ;;  %v993_v5 = vadd.f32 %v992_v15, %v991_v21  ;;  %720 = vst.msk [vmem:[%s2312_s3 + $0x1b0] sm:$0xff] %vm88_vm0, %v2091_v46  ;;  %723 = vst.msk [vmem:[%s2312_s3 + $0x1c8] sm:$0xff] %vm88_vm0, %v2095_v49  ;;  %v902_v26 = vmul.f32 %v1763_v7, %v1763_v7  ;;  %v1002_v39 = vsel %vm88_vm0, %v901_v42, 0.0 }
 0x121   :  { %v903_v17 = vmul.f32 %v1844_v4, %v1844_v4  ;;  %722 = vst.msk [vmem:[%s2312_s3 + $0x1c0] sm:$0xff] %vm88_vm0, %v2108_v54  ;;  %v807_v59 = vsel %vm88_vm0, %v1763_v7, 0.0  ;;  %v809_v3 = vsel %vm88_vm0, %v1844_v4, 0.0  ;;  %v2137_v6 = vadd.f32 %v1954_v40, %v1589_v1 }
 0x122   :  { %v995_v52 = vadd.f32 %v994_v23, %v993_v5  ;;  %v800_v28 = vadd.f32 %v799_v10, %v798_v35  ;;  %v2141_v38 = vadd.f32 %v1589_v1, %v1964_v45  ;;  %v2145_v30 = vadd.f32 %v1993_v2, %v1589_v1 }
 0x123   :  { %v904_v7 = vmul.f32 %v1817_v47, %v1817_v47  ;;  %v2151_v4 = vadd.f32 %v1589_v1, %v2001_v27  ;;  %v1004_v40 = vsel %vm88_vm0, %v902_v26, 0.0  ;;  %v1006_v51 = vsel %vm88_vm0, %v903_v17, 0.0  ;;  %725 = vst.msk [vmem:[%s2312_s3 + $0x1d8] sm:$0xff] %vm88_vm0, %v2137_v6 }
 0x124   :  { %v802_v44 = vadd.f32 %v801_v53, %v800_v28  ;;  %v997_v11 = vadd.f32 %v996_v62, %v995_v52  ;;  %v905_v45 = vmul.f32 %v1898_v50, %v1898_v50  ;;  %724 = vst.msk [vmem:[%s2312_s3 + $0x1d0] sm:$0xff] %vm88_vm0, %v2141_v38  ;;  %727 = vst.msk [vmem:[%s2312_s3 + $0x1e8] sm:$0xff] %vm88_vm0, %v2145_v30  ;;  %v811_v14 = vsel %vm88_vm0, %v1817_v47, 0.0 }
 0x125   :  { %726 = vst.msk [vmem:[%s2312_s3 + $0x1e0] sm:$0xff] %vm88_vm0, %v2151_v4  ;;  %v813_v15 = vsel %vm88_vm0, %v1898_v50, 0.0  ;;  %v1008_v18 = vsel %vm88_vm0, %v904_v7, 0.0  ;;  %v2184_v22 = vadd.f32 %v2032_v8, %v1589_v1  ;;  %v906_v23 = vmul.f32 %v1871_v25, %v1871_v25 }
 0x126   :  { %v999_v57 = vadd.f32 %v998_v41, %v997_v11  ;;  %v804_v58 = vadd.f32 %v803_v55, %v802_v44  ;;  %v1010_v37 = vsel %vm88_vm0, %v905_v45, 0.0  ;;  %v907_v35 = vmul.f32 %v1952_v36, %v1952_v36 }
 0x127   :  { %v2193_v47 = vadd.f32 %v1589_v1, %v2039_v29  ;;  %729 = vst.msk [vmem:[%s2312_s3 + $0x1f8] sm:$0xff] %vm88_vm0, %v2184_v22  ;;  %v815_v8 = vsel %vm88_vm0, %v1871_v25, 0.0  ;;  %v817_v10 = vsel %vm88_vm0, %v1952_v36, 0.0  ;;  %v1012_v53 = vsel %vm88_vm0, %v906_v23, 0.0 }
 0x128   :  { %v806_v56 = vadd.f32 %v805_v34, %v804_v58  ;;  %v1001_v60 = vadd.f32 %v1000_v33, %v999_v57  ;;  %v908_v62 = vmul.f32 %v1925_v13, %v1925_v13  ;;  %v1014_v52 = vsel %vm88_vm0, %v907_v35, 0.0 }
 0x129   :  { %728 = vst.msk [vmem:[%s2312_s3 + $0x1f0] sm:$0xff] %vm88_vm0, %v2193_v47  ;;  %v909_v25 = vmul.f32 %v1987_v63, %v1987_v63  ;;  %v819_v32 = vsel %vm88_vm0, %v1925_v13, 0.0  ;;  %v821_v41 = vsel %vm88_vm0, %v1987_v63, 0.0  ;;  %v910_v55 = vmul.f32 %v1983_v61, %v1983_v61 }
 0x12a   :  { %v1003_v12 = vadd.f32 %v1002_v39, %v1001_v60  ;;  %v808_v48 = vadd.f32 %v807_v59, %v806_v56  ;;  %v1016_v11 = vsel %vm88_vm0, %v908_v62, 0.0  ;;  %v911_v57 = vmul.f32 %v1999_v9, %v1999_v9 }
 0x12b   :  { %v1018_v34 = vsel %vm88_vm0, %v909_v25, 0.0  ;;  %v823_v13 = vsel %vm88_vm0, %v1983_v61, 0.0  ;;  %v825_v63 = vsel %vm88_vm0, %v1999_v9, 0.0  ;;  %v1020_v17 = vsel %vm88_vm0, %v910_v55, 0.0 }
 0x12c   :  { %v810_v2 = vadd.f32 %v809_v3, %v808_v48  ;;  %v1005_v27 = vadd.f32 %v1004_v40, %v1003_v12  ;;  %v912_v59 = vmul.f32 %v1991_v0, %v1991_v0  ;;  %v1022_v56 = vsel %vm88_vm0, %v911_v57, 0.0 }
 0x12d   :  { %v913_v60 = vmul.f32 %v2045_v31, %v2045_v31  ;;  %v827_v61 = vsel %vm88_vm0, %v1991_v0, 0.0  ;;  %v829_v9 = vsel %vm88_vm0, %v2045_v31, 0.0  ;;  %v831_v0 = vsel %vm88_vm0, %v2037_v24, 0.0 }
 0x12e   :  { %v1007_v19 = vadd.f32 %v1006_v51, %v1005_v27  ;;  %v812_v21 = vadd.f32 %v811_v14, %v810_v2  ;;  %v1024_v40 = vsel %vm88_vm0, %v912_v59, 0.0  ;;  %v914_v51 = vmul.f32 %v2037_v24, %v2037_v24 }
 0x12f   :  { %v1026_v45 = vsel %vm88_vm0, %v913_v60, 0.0  ;;  %v915_v2 = vmul.f32 %v2053_v20, %v2053_v20  ;;  %v833_v31 = vsel %vm88_vm0, %v2053_v20, 0.0  ;;  %v835_v24 = vsel %vm88_vm0, %v2049_v16, 0.0 }
 0x130   :  { %v814_v50 = vadd.f32 %v813_v15, %v812_v21  ;;  %v1009_v5 = vadd.f32 %v1008_v18, %v1007_v19  ;;  %v1028_v19 = vsel %vm88_vm0, %v914_v51, 0.0  ;;  %v916_v21 = vmul.f32 %v2049_v16, %v2049_v16 }
 0x131   :  { %v1030_v23 = vsel %vm88_vm0, %v915_v2, 0.0  ;;  %v837_v20 = vsel %vm88_vm0, %v2091_v46, 0.0  ;;  %v839_v16 = vsel %vm88_vm0, %v2087_v43, 0.0 }
 0x132   :  { %v1011_v1 = vadd.f32 %v1010_v37, %v1009_v5  ;;  %v816_v29 = vadd.f32 %v815_v8, %v814_v50  ;;  %v917_v37 = vmul.f32 %v2091_v46, %v2091_v46  ;;  %v841_v46 = vsel %vm88_vm0, %v2108_v54, 0.0 }
 0x134   :  { %v818_v28 = vadd.f32 %v817_v10, %v816_v29  ;;  %v1013_v36 = vadd.f32 %v1012_v53, %v1011_v1  ;;  %v1032_v10 = vsel %vm88_vm0, %v916_v21, 0.0  ;;  %v918_v1 = vmul.f32 %v2087_v43, %v2087_v43 }
 0x135   :  { %v1034_v29 = vsel %vm88_vm0, %v917_v37, 0.0  ;;  %v919_v53 = vmul.f32 %v2108_v54, %v2108_v54  ;;  %v843_v43 = vsel %vm88_vm0, %v2095_v49, 0.0  ;;  %v845_v54 = vsel %vm88_vm0, %v2141_v38, 0.0 }
 0x136   :  { %v1015_v42 = vadd.f32 %v1014_v52, %v1013_v36  ;;  %v820_v44 = vadd.f32 %v819_v32, %v818_v28  ;;  %v1036_v36 = vsel %vm88_vm0, %v918_v1, 0.0  ;;  %v920_v32 = vmul.f32 %v2095_v49, %v2095_v49 }
 0x137   :  { %v847_v49 = vsel %vm88_vm0, %v2137_v6, 0.0 }
 0x138   :  { %v822_v58 = vadd.f32 %v821_v41, %v820_v44  ;;  %v1017_v33 = vadd.f32 %v1016_v11, %v1015_v42  ;;  %v1038_v41 = vsel %vm88_vm0, %v919_v53, 0.0  ;;  %v921_v42 = vmul.f32 %v2141_v38, %v2141_v38 }
 0x139   :  { %v1040_v57 = vsel %vm88_vm0, %v920_v32, 0.0  ;;  %v849_v38 = vsel %vm88_vm0, %v2151_v4, 0.0 }
 0x13a   :  { %v1019_v26 = vadd.f32 %v1018_v34, %v1017_v33  ;;  %v824_v39 = vadd.f32 %v823_v13, %v822_v58  ;;  %v922_v58 = vmul.f32 %v2137_v6, %v2137_v6  ;;  %v1042_v33 = vsel %vm88_vm0, %v921_v42, 0.0 }
 0x13b   :  { %v923_v13 = vmul.f32 %v2151_v4, %v2151_v4  ;;  %v851_v6 = vsel %vm88_vm0, %v2145_v30, 0.0  ;;  %v853_v4 = vsel %vm88_vm0, %v2193_v47, 0.0 }
 0x13c   :  { %v826_v3 = vadd.f32 %v825_v63, %v824_v39  ;;  %v1021_v12 = vadd.f32 %v1020_v17, %v1019_v26  ;;  %v1044_v59 = vsel %vm88_vm0, %v922_v58, 0.0 }
 0x13d   :  { %v1046_v60 = vsel %vm88_vm0, %v923_v13, 0.0 }
 0x13e   :  { %v1023_v7 = vadd.f32 %v1022_v56, %v1021_v12  ;;  %v828_v48 = vadd.f32 %v827_v61, %v826_v3  ;;  %v924_v56 = vmul.f32 %v2145_v30, %v2145_v30  ;;  %v925_v3 = vmul.f32 %v2193_v47, %v2193_v47 }
 0x140   :  { %v830_v27 = vadd.f32 %v829_v9, %v828_v48  ;;  %v1025_v14 = vadd.f32 %v1024_v40, %v1023_v7  ;;  %v1048_v48 = vsel %vm88_vm0, %v924_v56, 0.0  ;;  %v926_v40 = vmul.f32 %v2184_v22, %v2184_v22 }
 0x141   :  { %v1050_v51 = vsel %vm88_vm0, %v925_v3, 0.0 }
 0x142   :  { %v1027_v15 = vadd.f32 %v1026_v45, %v1025_v14  ;;  %v832_v18 = vadd.f32 %v831_v0, %v830_v27  ;;  %v855_v27 = vsel %vm88_vm0, %v2184_v22, 0.0  ;;  %v1052_v30 = vsel %vm88_vm0, %v926_v40, 0.0 }
 0x144   :  { %v834_v35 = vadd.f32 %v833_v31, %v832_v18  ;;  %v1029_v50 = vadd.f32 %v1028_v19, %v1027_v15 }
 0x146   :  { %v1031_v5 = vadd.f32 %v1030_v23, %v1029_v50  ;;  %v836_v8 = vadd.f32 %v835_v24, %v834_v35 }
 0x148   :  { %v838_v62 = vadd.f32 %v837_v20, %v836_v8  ;;  %v1033_v52 = vadd.f32 %v1032_v10, %v1031_v5 }
 0x14a   :  { %v1035_v25 = vadd.f32 %v1034_v29, %v1033_v52  ;;  %v840_v28 = vadd.f32 %v839_v16, %v838_v62 }
 0x14c   :  { %v842_v44 = vadd.f32 %v841_v46, %v840_v28  ;;  %v1037_v11 = vadd.f32 %v1036_v36, %v1035_v25 }
 0x14e   :  { %v1039_v55 = vadd.f32 %v1038_v41, %v1037_v11  ;;  %v844_v34 = vadd.f32 %v843_v43, %v842_v44 }
 0x150   :  { %v846_v63 = vadd.f32 %v845_v54, %v844_v34  ;;  %v1041_v26 = vadd.f32 %v1040_v57, %v1039_v55 }
 0x152   :  { %v1043_v39 = vadd.f32 %v1042_v33, %v1041_v26  ;;  %v848_v17 = vadd.f32 %v847_v49, %v846_v63 }
 0x154   :  { %v850_v12 = vadd.f32 %v849_v38, %v848_v17  ;;  %v1045_v61 = vadd.f32 %v1044_v59, %v1043_v39 }
 0x156   :  { %v1047_v9 = vadd.f32 %v1046_v60, %v1045_v61  ;;  %v852_v7 = vadd.f32 %v851_v6, %v850_v12 }
 0x158   :  { %v854_v45 = vadd.f32 %v853_v4, %v852_v7  ;;  %v1049_v2 = vadd.f32 %v1048_v48, %v1047_v9 }
 0x15a   :  { %v856_v14 = vadd.f32 %v855_v27, %v854_v45  ;;  %v1051_v0 = vadd.f32 %v1050_v51, %v1049_v2 }
 0x15c   :  { %v857_v31 = vrot.slane %v856_v14, 4  ;;  %v1053_v47 = vadd.f32 %v1052_v30, %v1051_v0 }
 0x15e   :  { %v858_v15 = vadd.f32 %v857_v31, %v856_v14  ;;  %v1054_v18 = vrot.slane %v1053_v47, 4 }
 0x160   :  { %v859_v19 = vrot.slane %v858_v15, 2  ;;  %v1055_v21 = vadd.f32 %v1054_v18, %v1053_v47 }
 0x162   :  { %v860_v23 = vadd.f32 %v859_v19, %v858_v15  ;;  %v1056_v37 = vrot.slane %v1055_v21, 2 }
 0x164   :  { %v861_v35 = vrot.slane %v860_v23, 1  ;;  %v1057_v50 = vadd.f32 %v1056_v37, %v1055_v21 }
 0x166   :  { %v1058_v24 = vrot.slane %v1057_v50, 1  ;;  %v862_v20 = vadd.f32 %v861_v35, %v860_v23 }
 0x168   :  { %v1059_v5 = vadd.f32 %v1058_v24, %v1057_v50 }
 0x16a   :  { %v1061_v22 = vsel %vm1060_vm1, %v862_v20, %v1059_v5 }
 0x16b   :  { %1063 = vst.msk [vmem:[%s2313_s4] sm:$0x3] %vm1062_vm2, %v1061_v22 }

// kernel: hgn_forward.77
= control target key start
LH: loop header
LB: loop body
LE: loop exit
PB: predicated region body
PF: predicated region fallthrough
CT: control target
= control target key end

     0   :  { %vm285_vm0 = vcmask 1043456   ;;  %vm92_vm1 = vcmask 31744   ;;  %vm930_vm2 = vcmask 64512   ;;  %s2228_s1 = inlined_call_operand.vmem [shape: f32[4,8], index: 1, kind: input, shape index: {}]   ;;  %s2229_s0 = inlined_call_operand.vmem [shape: f32[512,4], index: 0, kind: input, shape index: {}]   ;;  %s2230_s2 = inlined_call_operand.vmem [shape: f32[1,8], index: 2, kind: input, shape index: {}]   ;;  %s2231_s3 = inlined_call_operand.vmem [shape: f32[512,8], index: 3, kind: input, shape index: {}]   ;;  %s2232_s4 = inlined_call_operand.vmem [shape: f32[512,8], index: 4, kind: input, shape index: {}]   ;;  %s2233_s5 = inlined_call_operand.vmem [shape: f32[512,8], index: 5, kind: output, shape index: {}]  }
   0x1   :  { %v84_v0 = vld [vmem:[%s2228_s1] sm:$0xf]  ;;  %v21_v3 = vld [vmem:[%s2229_s0 + $0x8] sm:$0xff]  ;;  %v22_v5 = vld [vmem:[%s2229_s0 + $0x10] sm:$0xff] }
   0x2   :  { %v20_v1 = vld [vmem:[%s2229_s0] sm:$0xff]  ;;  %1130 = vmatprep.subr.msk.mxu0 %vm285_vm0, %v84_v0  ;;  %1228 = vmatprep.subr.msk.mxu1 %vm285_vm0, %v84_v0  ;;  %v53_v4 = vld [vmem:[%s2229_s0 + $0x108] sm:$0xff]  ;;  %v54_v6 = vld [vmem:[%s2229_s0 + $0x110] sm:$0xff] }
   0x3   :  { %v52_v2 = vld [vmem:[%s2229_s0 + $0x100] sm:$0xff]  ;;  %1131 = vmatpush3.msk.msra.mxu0 %vm285_vm0, %v84_v0  ;;  %1229 = vmatpush3.msk.msra.mxu1 %vm285_vm0, %v84_v0  ;;  %v23_v7 = vld [vmem:[%s2229_s0 + $0x18] sm:$0xff]  ;;  %v25_v11 = vld [vmem:[%s2229_s0 + $0x28] sm:$0xff] }
   0x4   :  { %1132 = vmatprep.mubr.msk.f32.mxu0 %vm92_vm1, %v20_v1  ;;  %1180 = vmatprep.mubr.msk.f32.mxu1 %vm92_vm1, %v52_v2  ;;  %v55_v8 = vld [vmem:[%s2229_s0 + $0x118] sm:$0xff]  ;;  %v24_v9 = vld [vmem:[%s2229_s0 + $0x20] sm:$0xff]  ;;  %v57_v12 = vld [vmem:[%s2229_s0 + $0x128] sm:$0xff] }
   0x5   :  { %1133 = vmatmul.mubr.msk.f32.vlgmr.msra.gmra.mrb[0].mxu0 %vm92_vm1, %v21_v3  ;;  %1181 = vmatmul.mubr.msk.f32.vlgmr.msra.gmra.mrb[0].mxu1 %vm92_vm1, %v53_v4  ;;  %v56_v10 = vld [vmem:[%s2229_s0 + $0x120] sm:$0xff]  ;;  %v26_v13 = vld [vmem:[%s2229_s0 + $0x30] sm:$0xff]  ;;  %v27_v15 = vld [vmem:[%s2229_s0 + $0x38] sm:$0xff] }
   0x6   :  { %1135 = vmatprep.mubr.msk.f32.mxu0 %vm92_vm1, %v22_v5  ;;  %1183 = vmatprep.mubr.msk.f32.mxu1 %vm92_vm1, %v54_v6  ;;  %v58_v14 = vld [vmem:[%s2229_s0 + $0x130] sm:$0xff]  ;;  %v59_v16 = vld [vmem:[%s2229_s0 + $0x138] sm:$0xff]  ;;  %v28_v17 = vld [vmem:[%s2229_s0 + $0x40] sm:$0xff] }
   0x7   :  { %v60_v18 = vld [vmem:[%s2229_s0 + $0x140] sm:$0xff]  ;;  %v29_v19 = vld [vmem:[%s2229_s0 + $0x48] sm:$0xff]  ;;  %v30_v21 = vld [vmem:[%s2229_s0 + $0x50] sm:$0xff] }
   0x8   :  { %v61_v20 = vld [vmem:[%s2229_s0 + $0x148] sm:$0xff]  ;;  %v62_v22 = vld [vmem:[%s2229_s0 + $0x150] sm:$0xff]  ;;  %v31_v23 = vld [vmem:[%s2229_s0 + $0x58] sm:$0xff] }
   0x9   :  { %1136 = vmatmul.mubr.msk.f32.gmra.mrb[2].mxu0 %vm92_vm1, %v23_v7  ;;  %1184 = vmatmul.mubr.msk.f32.gmra.mrb[2].mxu1 %vm92_vm1, %v55_v8  ;;  %v63_v24 = vld [vmem:[%s2229_s0 + $0x158] sm:$0xff]  ;;  %v32_v25 = vld [vmem:[%s2229_s0 + $0x60] sm:$0xff]  ;;  %v33_v27 = vld [vmem:[%s2229_s0 + $0x68] sm:$0xff] }
   0xa   :  { %1138 = vmatprep.mubr.msk.f32.mxu0 %vm92_vm1, %v24_v9  ;;  %1186 = vmatprep.mubr.msk.f32.mxu1 %vm92_vm1, %v56_v10  ;;  %v64_v26 = vld [vmem:[%s2229_s0 + $0x160] sm:$0xff]  ;;  %v65_v28 = vld [vmem:[%s2229_s0 + $0x168] sm:$0xff]  ;;  %v34_v29 = vld [vmem:[%s2229_s0 + $0x70] sm:$0xff] }
   0xb   :  { %v66_v30 = vld [vmem:[%s2229_s0 + $0x170] sm:$0xff]  ;;  %v35_v31 = vld [vmem:[%s2229_s0 + $0x78] sm:$0xff]  ;;  %v36_v33 = vld [vmem:[%s2229_s0 + $0x80] sm:$0xff] }
   0xc   :  { %v67_v32 = vld [vmem:[%s2229_s0 + $0x178] sm:$0xff]  ;;  %v68_v34 = vld [vmem:[%s2229_s0 + $0x180] sm:$0xff]  ;;  %v37_v35 = vld [vmem:[%s2229_s0 + $0x88] sm:$0xff] }
   0xd   :  { %1139 = vmatmul.mubr.msk.f32.gmra.mrb[4].mxu0 %vm92_vm1, %v25_v11  ;;  %1187 = vmatmul.mubr.msk.f32.gmra.mrb[4].mxu1 %vm92_vm1, %v57_v12  ;;  %v69_v36 = vld [vmem:[%s2229_s0 + $0x188] sm:$0xff]  ;;  %v38_v37 = vld [vmem:[%s2229_s0 + $0x90] sm:$0xff]  ;;  %v39_v39 = vld [vmem:[%s2229_s0 + $0x98] sm:$0xff] }
   0xe   :  { %1141 = vmatprep.mubr.msk.f32.mxu0 %vm92_vm1, %v26_v13  ;;  %1189 = vmatprep.mubr.msk.f32.mxu1 %vm92_vm1, %v58_v14  ;;  %v70_v38 = vld [vmem:[%s2229_s0 + $0x190] sm:$0xff]  ;;  %v71_v40 = vld [vmem:[%s2229_s0 + $0x198] sm:$0xff]  ;;  %v40_v41 = vld [vmem:[%s2229_s0 + $0xa0] sm:$0xff] }
   0xf   :  { %v72_v42 = vld [vmem:[%s2229_s0 + $0x1a0] sm:$0xff]  ;;  %v41_v43 = vld [vmem:[%s2229_s0 + $0xa8] sm:$0xff]  ;;  %v42_v45 = vld [vmem:[%s2229_s0 + $0xb0] sm:$0xff] }
  0x10   :  { %v73_v44 = vld [vmem:[%s2229_s0 + $0x1a8] sm:$0xff]  ;;  %v74_v46 = vld [vmem:[%s2229_s0 + $0x1b0] sm:$0xff]  ;;  %v43_v47 = vld [vmem:[%s2229_s0 + $0xb8] sm:$0xff] }
  0x11   :  { %1142 = vmatmul.mubr.msk.f32.gmra.mrb[6].mxu0 %vm92_vm1, %v27_v15  ;;  %1190 = vmatmul.mubr.msk.f32.gmra.mrb[6].mxu1 %vm92_vm1, %v59_v16  ;;  %v75_v48 = vld [vmem:[%s2229_s0 + $0x1b8] sm:$0xff]  ;;  %v44_v49 = vld [vmem:[%s2229_s0 + $0xc0] sm:$0xff]  ;;  %v45_v51 = vld [vmem:[%s2229_s0 + $0xc8] sm:$0xff] }
  0x12   :  { %1144 = vmatprep.mubr.msk.f32.mxu0 %vm92_vm1, %v28_v17  ;;  %1192 = vmatprep.mubr.msk.f32.mxu1 %vm92_vm1, %v60_v18  ;;  %v76_v50 = vld [vmem:[%s2229_s0 + $0x1c0] sm:$0xff]  ;;  %v77_v52 = vld [vmem:[%s2229_s0 + $0x1c8] sm:$0xff]  ;;  %v46_v53 = vld [vmem:[%s2229_s0 + $0xd0] sm:$0xff] }
  0x13   :  { %v78_v54 = vld [vmem:[%s2229_s0 + $0x1d0] sm:$0xff]  ;;  %v47_v55 = vld [vmem:[%s2229_s0 + $0xd8] sm:$0xff]  ;;  %v48_v57 = vld [vmem:[%s2229_s0 + $0xe0] sm:$0xff] }
  0x14   :  { %v79_v56 = vld [vmem:[%s2229_s0 + $0x1d8] sm:$0xff]  ;;  %v80_v58 = vld [vmem:[%s2229_s0 + $0x1e0] sm:$0xff]  ;;  %v49_v59 = vld [vmem:[%s2229_s0 + $0xe8] sm:$0xff] }
  0x15   :  { %1145 = vmatmul.mubr.msk.f32.gmra.mrb[8].mxu0 %vm92_vm1, %v29_v19  ;;  %1193 = vmatmul.mubr.msk.f32.gmra.mrb[8].mxu1 %vm92_vm1, %v61_v20  ;;  %v81_v60 = vld [vmem:[%s2229_s0 + $0x1e8] sm:$0xff]  ;;  %v50_v61 = vld [vmem:[%s2229_s0 + $0xf0] sm:$0xff]  ;;  %v51_v63 = vld [vmem:[%s2229_s0 + $0xf8] sm:$0xff] }
  0x16   :  { %1147 = vmatprep.mubr.msk.f32.mxu0 %vm92_vm1, %v30_v21  ;;  %1195 = vmatprep.mubr.msk.f32.mxu1 %vm92_vm1, %v62_v22  ;;  %v82_v62 = vld [vmem:[%s2229_s0 + $0x1f0] sm:$0xff]  ;;  %v83_v0 = vld [vmem:[%s2229_s0 + $0x1f8] sm:$0xff]  ;;  %v1522_v1 = vld [vmem:[%s2230_s2] ss:$0 sm:$0xff] }
  0x17   :  { %v675_v3 = vld [vmem:[%s2231_s3 + $0x8] sm:$0xff]  ;;  %v674_v9 = vld [vmem:[%s2231_s3] sm:$0xff] }
  0x18   :  { %v707_v5 = vld [vmem:[%s2231_s3 + $0x108] sm:$0xff]  ;;  %v706_v11 = vld [vmem:[%s2231_s3 + $0x100] sm:$0xff] }
  0x19   :  { %1148 = vmatmul.mubr.msk.f32.gmra.mrb[10].mxu0 %vm92_vm1, %v31_v23  ;;  %1196 = vmatmul.mubr.msk.f32.gmra.mrb[10].mxu1 %vm92_vm1, %v63_v24  ;;  %v803_v12 = vld [vmem:[%s2232_s4 + $0x8] sm:$0xff]  ;;  %v802_v18 = vld [vmem:[%s2232_s4] sm:$0xff]  ;;  %v677_v23 = vld [vmem:[%s2231_s3 + $0x18] sm:$0xff] }
  0x1a   :  { %1150 = vmatprep.mubr.msk.f32.mxu0 %vm92_vm1, %v32_v25  ;;  %1198 = vmatprep.mubr.msk.f32.mxu1 %vm92_vm1, %v64_v26  ;;  %v835_v13 = vld [vmem:[%s2232_s4 + $0x108] sm:$0xff]  ;;  %v834_v19 = vld [vmem:[%s2232_s4 + $0x100] sm:$0xff]  ;;  %v709_v25 = vld [vmem:[%s2231_s3 + $0x118] sm:$0xff] }
  0x1d   :  { %1151 = vmatmul.mubr.msk.f32.gmra.mrb[12].mxu0 %vm92_vm1, %v33_v27  ;;  %1199 = vmatmul.mubr.msk.f32.gmra.mrb[12].mxu1 %vm92_vm1, %v65_v28 }
  0x1e   :  { %1153 = vmatprep.mubr.msk.f32.mxu0 %vm92_vm1, %v34_v29  ;;  %1201 = vmatprep.mubr.msk.f32.mxu1 %vm92_vm1, %v66_v30 }
  0x21   :  { %1154 = vmatmul.mubr.msk.f32.gmra.mrb[14].mxu0 %vm92_vm1, %v35_v31  ;;  %1202 = vmatmul.mubr.msk.f32.gmra.mrb[14].mxu1 %vm92_vm1, %v67_v32  ;;  %v676_v31 = vld [vmem:[%s2231_s3 + $0x10] sm:$0xff] }
  0x22   :  { %1156 = vmatprep.mubr.msk.f32.mxu0 %vm92_vm1, %v36_v33  ;;  %1204 = vmatprep.mubr.msk.f32.mxu1 %vm92_vm1, %v68_v34  ;;  %v708_v33 = vld [vmem:[%s2231_s3 + $0x110] sm:$0xff] }
  0x25   :  { %1157 = vmatmul.mubr.msk.f32.gmra.mrb[16].mxu0 %vm92_vm1, %v37_v35  ;;  %1205 = vmatmul.mubr.msk.f32.gmra.mrb[16].mxu1 %vm92_vm1, %v69_v36  ;;  %v805_v36 = vld [vmem:[%s2232_s4 + $0x18] sm:$0xff] }
  0x26   :  { %1159 = vmatprep.mubr.msk.f32.mxu0 %vm92_vm1, %v38_v37  ;;  %1207 = vmatprep.mubr.msk.f32.mxu1 %vm92_vm1, %v70_v38  ;;  %v837_v37 = vld [vmem:[%s2232_s4 + $0x118] sm:$0xff] }
  0x29   :  { %1160 = vmatmul.mubr.msk.f32.gmra.mrb[18].mxu0 %vm92_vm1, %v39_v39  ;;  %1208 = vmatmul.mubr.msk.f32.gmra.mrb[18].mxu1 %vm92_vm1, %v71_v40 }
  0x2a   :  { %1162 = vmatprep.mubr.msk.f32.mxu0 %vm92_vm1, %v40_v41  ;;  %1210 = vmatprep.mubr.msk.f32.mxu1 %vm92_vm1, %v72_v42  ;;  %v804_v42 = vld [vmem:[%s2232_s4 + $0x10] sm:$0xff] }
  0x2d   :  { %1163 = vmatmul.mubr.msk.f32.gmra.mrb[20].mxu0 %vm92_vm1, %v41_v43  ;;  %1211 = vmatmul.mubr.msk.f32.gmra.mrb[20].mxu1 %vm92_vm1, %v73_v44  ;;  %v836_v43 = vld [vmem:[%s2232_s4 + $0x110] sm:$0xff] }
  0x2e   :  { %1165 = vmatprep.mubr.msk.f32.mxu0 %vm92_vm1, %v42_v45  ;;  %1213 = vmatprep.mubr.msk.f32.mxu1 %vm92_vm1, %v74_v46 }
  0x31   :  { %1166 = vmatmul.mubr.msk.f32.gmra.mrb[22].mxu0 %vm92_vm1, %v43_v47  ;;  %1214 = vmatmul.mubr.msk.f32.gmra.mrb[22].mxu1 %vm92_vm1, %v75_v48  ;;  %v679_v47 = vld [vmem:[%s2231_s3 + $0x28] sm:$0xff] }
  0x32   :  { %1168 = vmatprep.mubr.msk.f32.mxu0 %vm92_vm1, %v44_v49  ;;  %1216 = vmatprep.mubr.msk.f32.mxu1 %vm92_vm1, %v76_v50  ;;  %v711_v49 = vld [vmem:[%s2231_s3 + $0x128] sm:$0xff] }
  0x35   :  { %1169 = vmatmul.mubr.msk.f32.gmra.mrb[24].mxu0 %vm92_vm1, %v45_v51  ;;  %1217 = vmatmul.mubr.msk.f32.gmra.mrb[24].mxu1 %vm92_vm1, %v77_v52 }
  0x36   :  { %1171 = vmatprep.mubr.msk.f32.mxu0 %vm92_vm1, %v46_v53  ;;  %1219 = vmatprep.mubr.msk.f32.mxu1 %vm92_vm1, %v78_v54 }
  0x39   :  { %1172 = vmatmul.mubr.msk.f32.gmra.mrb[26].mxu0 %vm92_vm1, %v47_v55  ;;  %1220 = vmatmul.mubr.msk.f32.gmra.mrb[26].mxu1 %vm92_vm1, %v79_v56  ;;  %v678_v55 = vld [vmem:[%s2231_s3 + $0x20] sm:$0xff] }
  0x3a   :  { %1174 = vmatprep.mubr.msk.f32.mxu0 %vm92_vm1, %v48_v57  ;;  %1222 = vmatprep.mubr.msk.f32.mxu1 %vm92_vm1, %v80_v58  ;;  %v710_v57 = vld [vmem:[%s2231_s3 + $0x120] sm:$0xff] }
  0x3d   :  { %1175 = vmatmul.mubr.msk.f32.gmra.mrb[28].mxu0 %vm92_vm1, %v49_v59  ;;  %1223 = vmatmul.mubr.msk.f32.gmra.mrb[28].mxu1 %vm92_vm1, %v81_v60  ;;  %v807_v60 = vld [vmem:[%s2232_s4 + $0x28] sm:$0xff] }
  0x3e   :  { %1177 = vmatprep.mubr.msk.f32.mxu0 %vm92_vm1, %v50_v61  ;;  %1225 = vmatprep.mubr.msk.f32.mxu1 %vm92_vm1, %v82_v62  ;;  %v839_v61 = vld [vmem:[%s2232_s4 + $0x128] sm:$0xff] }
  0x41   :  { %1178 = vmatmul.mubr.msk.f32.gmra.mrb[30].mxu0 %vm92_vm1, %v51_v63  ;;  %1226 = vmatmul.mubr.msk.f32.gmra.mrb[30].mxu1 %vm92_vm1, %v83_v0 }
  0xd8   :  { %v1134_v2 = vpop.f32.mrb[0].mxu0  ;;  %v1182_v4 = vpop.f32.mrb[0].mxu1 }
  0xd9   :  { %v361_v6 = vadd.f32 %v1134_v2, %v1522_v1  ;;  %v521_v7 = vadd.f32 %v1182_v4, %v1522_v1  ;;  %v355_v8 = vpop.f32.mrb[1].mxu0  ;;  %v515_v10 = vpop.f32.mrb[1].mxu1  ;;  %v838_v4 = vld [vmem:[%s2232_s4 + $0x120] sm:$0xff] }
  0xda   :  { %v356_v14 = vadd.f32 %v1522_v1, %v355_v8  ;;  %v516_v15 = vadd.f32 %v1522_v1, %v515_v10  ;;  %v681_v8 = vld [vmem:[%s2231_s3 + $0x38] sm:$0xff] }
  0xdb   :  { %v739_v16 = vadd.f32 %v675_v3, %v361_v6  ;;  %v771_v17 = vadd.f32 %v707_v5, %v521_v7  ;;  %v806_v3 = vld [vmem:[%s2232_s4 + $0x20] sm:$0xff]  ;;  %v713_v10 = vld [vmem:[%s2231_s3 + $0x138] sm:$0xff] }
  0xdc   :  { %v738_v20 = vadd.f32 %v674_v9, %v356_v14  ;;  %v770_v21 = vadd.f32 %v706_v11, %v516_v15  ;;  %v1137_v22 = vpop.f32.mrb[2].mxu0  ;;  %v1185_v24 = vpop.f32.mrb[2].mxu1 }
  0xdd   :  { %v867_v26 = vadd.f32 %v803_v12, %v739_v16  ;;  %v899_v27 = vadd.f32 %v835_v13, %v771_v17  ;;  %v371_v28 = vadd.f32 %v1137_v22, %v1522_v1  ;;  %v531_v29 = vadd.f32 %v1185_v24, %v1522_v1  ;;  %v365_v30 = vpop.f32.mrb[3].mxu0  ;;  %v525_v32 = vpop.f32.mrb[3].mxu1  ;;  %v680_v16 = vld [vmem:[%s2231_s3 + $0x30] sm:$0xff]  ;;  %v841_v22 = vld [vmem:[%s2232_s4 + $0x138] sm:$0xff] }
  0xde   :  { %v866_v34 = vadd.f32 %v802_v18, %v738_v20  ;;  %v898_v35 = vadd.f32 %v834_v19, %v770_v21  ;;  %v366_v38 = vadd.f32 %v1522_v1, %v365_v30  ;;  %v526_v39 = vadd.f32 %v1522_v1, %v525_v32  ;;  %v712_v18 = vld [vmem:[%s2231_s3 + $0x130] sm:$0xff]  ;;  %v809_v21 = vld [vmem:[%s2232_s4 + $0x38] sm:$0xff]  ;;  %v683_v32 = vld [vmem:[%s2231_s3 + $0x48] sm:$0xff] }
  0xdf   :  { %932 = vst.msk [vmem:[%s2233_s5 + $0x8] sm:$0xff] %vm930_vm2, %v867_v26  ;;  %964 = vst.msk [vmem:[%s2233_s5 + $0x108] sm:$0xff] %vm930_vm2, %v899_v27  ;;  %v741_v40 = vadd.f32 %v677_v23, %v371_v28  ;;  %v773_v41 = vadd.f32 %v709_v25, %v531_v29  ;;  %v808_v27 = vld [vmem:[%s2232_s4 + $0x30] sm:$0xff] }
  0xe0   :  { %931 = vst.msk [vmem:[%s2233_s5] sm:$0xff] %vm930_vm2, %v866_v34  ;;  %963 = vst.msk [vmem:[%s2233_s5 + $0x100] sm:$0xff] %vm930_vm2, %v898_v35  ;;  %v740_v44 = vadd.f32 %v676_v31, %v366_v38  ;;  %v772_v45 = vadd.f32 %v708_v33, %v526_v39  ;;  %v1140_v46 = vpop.f32.mrb[4].mxu0  ;;  %v1188_v48 = vpop.f32.mrb[4].mxu1  ;;  %v840_v28 = vld [vmem:[%s2232_s4 + $0x130] sm:$0xff]  ;;  %v715_v34 = vld [vmem:[%s2231_s3 + $0x148] sm:$0xff] }
  0xe1   :  { %v869_v50 = vadd.f32 %v805_v36, %v741_v40  ;;  %v901_v51 = vadd.f32 %v837_v37, %v773_v41  ;;  %v381_v52 = vadd.f32 %v1140_v46, %v1522_v1  ;;  %v541_v53 = vadd.f32 %v1188_v48, %v1522_v1  ;;  %v375_v54 = vpop.f32.mrb[5].mxu0  ;;  %v535_v56 = vpop.f32.mrb[5].mxu1  ;;  %v682_v40 = vld [vmem:[%s2231_s3 + $0x40] sm:$0xff]  ;;  %v843_v46 = vld [vmem:[%s2232_s4 + $0x148] sm:$0xff] }
  0xe2   :  { %v868_v58 = vadd.f32 %v804_v42, %v740_v44  ;;  %v900_v59 = vadd.f32 %v836_v43, %v772_v45  ;;  %v376_v62 = vadd.f32 %v1522_v1, %v375_v54  ;;  %v536_v63 = vadd.f32 %v1522_v1, %v535_v56  ;;  %v714_v42 = vld [vmem:[%s2231_s3 + $0x140] sm:$0xff]  ;;  %v811_v45 = vld [vmem:[%s2232_s4 + $0x48] sm:$0xff]  ;;  %v685_v56 = vld [vmem:[%s2231_s3 + $0x58] sm:$0xff] }
  0xe3   :  { %934 = vst.msk [vmem:[%s2233_s5 + $0x18] sm:$0xff] %vm930_vm2, %v869_v50  ;;  %966 = vst.msk [vmem:[%s2233_s5 + $0x118] sm:$0xff] %vm930_vm2, %v901_v51  ;;  %v743_v0 = vadd.f32 %v679_v47, %v381_v52  ;;  %v775_v2 = vadd.f32 %v711_v49, %v541_v53  ;;  %v810_v51 = vld [vmem:[%s2232_s4 + $0x40] sm:$0xff] }
  0xe4   :  { %933 = vst.msk [vmem:[%s2233_s5 + $0x10] sm:$0xff] %vm930_vm2, %v868_v58  ;;  %965 = vst.msk [vmem:[%s2233_s5 + $0x110] sm:$0xff] %vm930_vm2, %v900_v59  ;;  %v742_v5 = vadd.f32 %v678_v55, %v376_v62  ;;  %v774_v6 = vadd.f32 %v710_v57, %v536_v63  ;;  %v1143_v7 = vpop.f32.mrb[6].mxu0  ;;  %v1191_v9 = vpop.f32.mrb[6].mxu1  ;;  %v842_v52 = vld [vmem:[%s2232_s4 + $0x140] sm:$0xff]  ;;  %v717_v58 = vld [vmem:[%s2231_s3 + $0x158] sm:$0xff] }
  0xe5   :  { %v871_v11 = vadd.f32 %v807_v60, %v743_v0  ;;  %v903_v12 = vadd.f32 %v839_v61, %v775_v2  ;;  %v391_v13 = vadd.f32 %v1143_v7, %v1522_v1  ;;  %v551_v14 = vadd.f32 %v1191_v9, %v1522_v1  ;;  %v385_v15 = vpop.f32.mrb[7].mxu0  ;;  %v545_v17 = vpop.f32.mrb[7].mxu1  ;;  %v684_v0 = vld [vmem:[%s2231_s3 + $0x50] sm:$0xff]  ;;  %v845_v7 = vld [vmem:[%s2232_s4 + $0x158] sm:$0xff] }
  0xe6   :  { %v870_v19 = vadd.f32 %v806_v3, %v742_v5  ;;  %v902_v20 = vadd.f32 %v838_v4, %v774_v6  ;;  %v386_v23 = vadd.f32 %v1522_v1, %v385_v15  ;;  %v546_v24 = vadd.f32 %v1522_v1, %v545_v17  ;;  %v716_v3 = vld [vmem:[%s2231_s3 + $0x150] sm:$0xff]  ;;  %v813_v6 = vld [vmem:[%s2232_s4 + $0x58] sm:$0xff]  ;;  %v687_v17 = vld [vmem:[%s2231_s3 + $0x68] sm:$0xff] }
  0xe7   :  { %936 = vst.msk [vmem:[%s2233_s5 + $0x28] sm:$0xff] %vm930_vm2, %v871_v11  ;;  %968 = vst.msk [vmem:[%s2233_s5 + $0x128] sm:$0xff] %vm930_vm2, %v903_v12  ;;  %v745_v25 = vadd.f32 %v681_v8, %v391_v13  ;;  %v777_v26 = vadd.f32 %v713_v10, %v551_v14  ;;  %v812_v12 = vld [vmem:[%s2232_s4 + $0x50] sm:$0xff] }
  0xe8   :  { %935 = vst.msk [vmem:[%s2233_s5 + $0x20] sm:$0xff] %vm930_vm2, %v870_v19  ;;  %967 = vst.msk [vmem:[%s2233_s5 + $0x120] sm:$0xff] %vm930_vm2, %v902_v20  ;;  %v744_v29 = vadd.f32 %v680_v16, %v386_v23  ;;  %v776_v30 = vadd.f32 %v712_v18, %v546_v24  ;;  %v1146_v31 = vpop.f32.mrb[8].mxu0  ;;  %v1194_v33 = vpop.f32.mrb[8].mxu1  ;;  %v844_v13 = vld [vmem:[%s2232_s4 + $0x150] sm:$0xff]  ;;  %v719_v19 = vld [vmem:[%s2231_s3 + $0x168] sm:$0xff] }
  0xe9   :  { %v873_v35 = vadd.f32 %v809_v21, %v745_v25  ;;  %v905_v36 = vadd.f32 %v841_v22, %v777_v26  ;;  %v401_v37 = vadd.f32 %v1146_v31, %v1522_v1  ;;  %v561_v38 = vadd.f32 %v1194_v33, %v1522_v1  ;;  %v395_v39 = vpop.f32.mrb[9].mxu0  ;;  %v555_v41 = vpop.f32.mrb[9].mxu1  ;;  %v686_v25 = vld [vmem:[%s2231_s3 + $0x60] sm:$0xff]  ;;  %v847_v31 = vld [vmem:[%s2232_s4 + $0x168] sm:$0xff] }
  0xea   :  { %v872_v43 = vadd.f32 %v808_v27, %v744_v29  ;;  %v904_v44 = vadd.f32 %v840_v28, %v776_v30  ;;  %v396_v47 = vadd.f32 %v1522_v1, %v395_v39  ;;  %v556_v48 = vadd.f32 %v1522_v1, %v555_v41  ;;  %v718_v27 = vld [vmem:[%s2231_s3 + $0x160] sm:$0xff]  ;;  %v815_v30 = vld [vmem:[%s2232_s4 + $0x68] sm:$0xff]  ;;  %v689_v41 = vld [vmem:[%s2231_s3 + $0x78] sm:$0xff] }
  0xeb   :  { %938 = vst.msk [vmem:[%s2233_s5 + $0x38] sm:$0xff] %vm930_vm2, %v873_v35  ;;  %970 = vst.msk [vmem:[%s2233_s5 + $0x138] sm:$0xff] %vm930_vm2, %v905_v36  ;;  %v747_v49 = vadd.f32 %v683_v32, %v401_v37  ;;  %v779_v50 = vadd.f32 %v715_v34, %v561_v38  ;;  %v814_v36 = vld [vmem:[%s2232_s4 + $0x60] sm:$0xff] }
  0xec   :  { %937 = vst.msk [vmem:[%s2233_s5 + $0x30] sm:$0xff] %vm930_vm2, %v872_v43  ;;  %969 = vst.msk [vmem:[%s2233_s5 + $0x130] sm:$0xff] %vm930_vm2, %v904_v44  ;;  %v746_v53 = vadd.f32 %v682_v40, %v396_v47  ;;  %v778_v54 = vadd.f32 %v714_v42, %v556_v48  ;;  %v1149_v55 = vpop.f32.mrb[10].mxu0  ;;  %v1197_v57 = vpop.f32.mrb[10].mxu1  ;;  %v846_v37 = vld [vmem:[%s2232_s4 + $0x160] sm:$0xff]  ;;  %v721_v43 = vld [vmem:[%s2231_s3 + $0x178] sm:$0xff] }
  0xed   :  { %v875_v59 = vadd.f32 %v811_v45, %v747_v49  ;;  %v907_v60 = vadd.f32 %v843_v46, %v779_v50  ;;  %v411_v61 = vadd.f32 %v1149_v55, %v1522_v1  ;;  %v571_v62 = vadd.f32 %v1197_v57, %v1522_v1  ;;  %v405_v63 = vpop.f32.mrb[11].mxu0  ;;  %v565_v2 = vpop.f32.mrb[11].mxu1  ;;  %v688_v49 = vld [vmem:[%s2231_s3 + $0x70] sm:$0xff]  ;;  %v849_v55 = vld [vmem:[%s2232_s4 + $0x178] sm:$0xff] }
  0xee   :  { %v874_v4 = vadd.f32 %v810_v51, %v746_v53  ;;  %v906_v5 = vadd.f32 %v842_v52, %v778_v54  ;;  %v406_v8 = vadd.f32 %v1522_v1, %v405_v63  ;;  %v566_v9 = vadd.f32 %v1522_v1, %v565_v2  ;;  %v720_v51 = vld [vmem:[%s2231_s3 + $0x170] sm:$0xff]  ;;  %v817_v54 = vld [vmem:[%s2232_s4 + $0x78] sm:$0xff]  ;;  %v691_v2 = vld [vmem:[%s2231_s3 + $0x88] sm:$0xff] }
  0xef   :  { %940 = vst.msk [vmem:[%s2233_s5 + $0x48] sm:$0xff] %vm930_vm2, %v875_v59  ;;  %972 = vst.msk [vmem:[%s2233_s5 + $0x148] sm:$0xff] %vm930_vm2, %v907_v60  ;;  %v749_v10 = vadd.f32 %v685_v56, %v411_v61  ;;  %v781_v11 = vadd.f32 %v717_v58, %v571_v62  ;;  %v816_v60 = vld [vmem:[%s2232_s4 + $0x70] sm:$0xff] }
  0xf0   :  { %939 = vst.msk [vmem:[%s2233_s5 + $0x40] sm:$0xff] %vm930_vm2, %v874_v4  ;;  %971 = vst.msk [vmem:[%s2233_s5 + $0x140] sm:$0xff] %vm930_vm2, %v906_v5  ;;  %v748_v14 = vadd.f32 %v684_v0, %v406_v8  ;;  %v780_v15 = vadd.f32 %v716_v3, %v566_v9  ;;  %v1152_v16 = vpop.f32.mrb[12].mxu0  ;;  %v1200_v18 = vpop.f32.mrb[12].mxu1  ;;  %v848_v61 = vld [vmem:[%s2232_s4 + $0x170] sm:$0xff]  ;;  %v723_v4 = vld [vmem:[%s2231_s3 + $0x188] sm:$0xff] }
  0xf1   :  { %v877_v20 = vadd.f32 %v813_v6, %v749_v10  ;;  %v909_v21 = vadd.f32 %v845_v7, %v781_v11  ;;  %v421_v22 = vadd.f32 %v1152_v16, %v1522_v1  ;;  %v581_v23 = vadd.f32 %v1200_v18, %v1522_v1  ;;  %v415_v24 = vpop.f32.mrb[13].mxu0  ;;  %v575_v26 = vpop.f32.mrb[13].mxu1  ;;  %v690_v10 = vld [vmem:[%s2231_s3 + $0x80] sm:$0xff]  ;;  %v851_v16 = vld [vmem:[%s2232_s4 + $0x188] sm:$0xff] }
  0xf2   :  { %v876_v28 = vadd.f32 %v812_v12, %v748_v14  ;;  %v908_v29 = vadd.f32 %v844_v13, %v780_v15  ;;  %v416_v32 = vadd.f32 %v1522_v1, %v415_v24  ;;  %v576_v33 = vadd.f32 %v1522_v1, %v575_v26  ;;  %v722_v12 = vld [vmem:[%s2231_s3 + $0x180] sm:$0xff]  ;;  %v819_v15 = vld [vmem:[%s2232_s4 + $0x88] sm:$0xff]  ;;  %v693_v26 = vld [vmem:[%s2231_s3 + $0x98] sm:$0xff] }
  0xf3   :  { %942 = vst.msk [vmem:[%s2233_s5 + $0x58] sm:$0xff] %vm930_vm2, %v877_v20  ;;  %974 = vst.msk [vmem:[%s2233_s5 + $0x158] sm:$0xff] %vm930_vm2, %v909_v21  ;;  %v751_v34 = vadd.f32 %v687_v17, %v421_v22  ;;  %v783_v35 = vadd.f32 %v719_v19, %v581_v23  ;;  %v818_v21 = vld [vmem:[%s2232_s4 + $0x80] sm:$0xff] }
  0xf4   :  { %941 = vst.msk [vmem:[%s2233_s5 + $0x50] sm:$0xff] %vm930_vm2, %v876_v28  ;;  %973 = vst.msk [vmem:[%s2233_s5 + $0x150] sm:$0xff] %vm930_vm2, %v908_v29  ;;  %v750_v38 = vadd.f32 %v686_v25, %v416_v32  ;;  %v782_v39 = vadd.f32 %v718_v27, %v576_v33  ;;  %v1155_v40 = vpop.f32.mrb[14].mxu0  ;;  %v1203_v42 = vpop.f32.mrb[14].mxu1  ;;  %v850_v22 = vld [vmem:[%s2232_s4 + $0x180] sm:$0xff]  ;;  %v725_v28 = vld [vmem:[%s2231_s3 + $0x198] sm:$0xff] }
  0xf5   :  { %v879_v44 = vadd.f32 %v815_v30, %v751_v34  ;;  %v911_v45 = vadd.f32 %v847_v31, %v783_v35  ;;  %v431_v46 = vadd.f32 %v1155_v40, %v1522_v1  ;;  %v591_v47 = vadd.f32 %v1203_v42, %v1522_v1  ;;  %v425_v48 = vpop.f32.mrb[15].mxu0  ;;  %v585_v50 = vpop.f32.mrb[15].mxu1  ;;  %v692_v34 = vld [vmem:[%s2231_s3 + $0x90] sm:$0xff]  ;;  %v853_v40 = vld [vmem:[%s2232_s4 + $0x198] sm:$0xff] }
  0xf6   :  { %v878_v52 = vadd.f32 %v814_v36, %v750_v38  ;;  %v910_v53 = vadd.f32 %v846_v37, %v782_v39  ;;  %v426_v56 = vadd.f32 %v1522_v1, %v425_v48  ;;  %v586_v57 = vadd.f32 %v1522_v1, %v585_v50  ;;  %v724_v36 = vld [vmem:[%s2231_s3 + $0x190] sm:$0xff]  ;;  %v821_v39 = vld [vmem:[%s2232_s4 + $0x98] sm:$0xff]  ;;  %v695_v50 = vld [vmem:[%s2231_s3 + $0xa8] sm:$0xff] }
  0xf7   :  { %944 = vst.msk [vmem:[%s2233_s5 + $0x68] sm:$0xff] %vm930_vm2, %v879_v44  ;;  %976 = vst.msk [vmem:[%s2233_s5 + $0x168] sm:$0xff] %vm930_vm2, %v911_v45  ;;  %v753_v58 = vadd.f32 %v689_v41, %v431_v46  ;;  %v785_v59 = vadd.f32 %v721_v43, %v591_v47  ;;  %v820_v45 = vld [vmem:[%s2232_s4 + $0x90] sm:$0xff] }
  0xf8   :  { %943 = vst.msk [vmem:[%s2233_s5 + $0x60] sm:$0xff] %vm930_vm2, %v878_v52  ;;  %975 = vst.msk [vmem:[%s2233_s5 + $0x160] sm:$0xff] %vm930_vm2, %v910_v53  ;;  %v752_v62 = vadd.f32 %v688_v49, %v426_v56  ;;  %v784_v63 = vadd.f32 %v720_v51, %v586_v57  ;;  %v1158_v0 = vpop.f32.mrb[16].mxu0  ;;  %v1206_v3 = vpop.f32.mrb[16].mxu1  ;;  %v852_v46 = vld [vmem:[%s2232_s4 + $0x190] sm:$0xff]  ;;  %v727_v52 = vld [vmem:[%s2231_s3 + $0x1a8] sm:$0xff] }
  0xf9   :  { %v881_v5 = vadd.f32 %v817_v54, %v753_v58  ;;  %v913_v6 = vadd.f32 %v849_v55, %v785_v59  ;;  %v441_v7 = vadd.f32 %v1158_v0, %v1522_v1  ;;  %v601_v8 = vadd.f32 %v1206_v3, %v1522_v1  ;;  %v435_v9 = vpop.f32.mrb[17].mxu0  ;;  %v595_v11 = vpop.f32.mrb[17].mxu1  ;;  %v694_v58 = vld [vmem:[%s2231_s3 + $0xa0] sm:$0xff]  ;;  %v855_v0 = vld [vmem:[%s2232_s4 + $0x1a8] sm:$0xff] }
  0xfa   :  { %v880_v13 = vadd.f32 %v816_v60, %v752_v62  ;;  %v912_v14 = vadd.f32 %v848_v61, %v784_v63  ;;  %v436_v17 = vadd.f32 %v1522_v1, %v435_v9  ;;  %v596_v18 = vadd.f32 %v1522_v1, %v595_v11  ;;  %v726_v60 = vld [vmem:[%s2231_s3 + $0x1a0] sm:$0xff]  ;;  %v823_v63 = vld [vmem:[%s2232_s4 + $0xa8] sm:$0xff]  ;;  %v697_v11 = vld [vmem:[%s2231_s3 + $0xb8] sm:$0xff] }
  0xfb   :  { %946 = vst.msk [vmem:[%s2233_s5 + $0x78] sm:$0xff] %vm930_vm2, %v881_v5  ;;  %978 = vst.msk [vmem:[%s2233_s5 + $0x178] sm:$0xff] %vm930_vm2, %v913_v6  ;;  %v755_v19 = vadd.f32 %v691_v2, %v441_v7  ;;  %v787_v20 = vadd.f32 %v723_v4, %v601_v8  ;;  %v822_v6 = vld [vmem:[%s2232_s4 + $0xa0] sm:$0xff] }
  0xfc   :  { %945 = vst.msk [vmem:[%s2233_s5 + $0x70] sm:$0xff] %vm930_vm2, %v880_v13  ;;  %977 = vst.msk [vmem:[%s2233_s5 + $0x170] sm:$0xff] %vm930_vm2, %v912_v14  ;;  %v754_v23 = vadd.f32 %v690_v10, %v436_v17  ;;  %v786_v24 = vadd.f32 %v722_v12, %v596_v18  ;;  %v1161_v25 = vpop.f32.mrb[18].mxu0  ;;  %v1209_v27 = vpop.f32.mrb[18].mxu1  ;;  %v854_v7 = vld [vmem:[%s2232_s4 + $0x1a0] sm:$0xff]  ;;  %v729_v13 = vld [vmem:[%s2231_s3 + $0x1b8] sm:$0xff] }
  0xfd   :  { %v883_v29 = vadd.f32 %v819_v15, %v755_v19  ;;  %v915_v30 = vadd.f32 %v851_v16, %v787_v20  ;;  %v451_v31 = vadd.f32 %v1161_v25, %v1522_v1  ;;  %v611_v32 = vadd.f32 %v1209_v27, %v1522_v1  ;;  %v445_v33 = vpop.f32.mrb[19].mxu0  ;;  %v605_v35 = vpop.f32.mrb[19].mxu1  ;;  %v696_v19 = vld [vmem:[%s2231_s3 + $0xb0] sm:$0xff]  ;;  %v857_v25 = vld [vmem:[%s2232_s4 + $0x1b8] sm:$0xff] }
  0xfe   :  { %v882_v37 = vadd.f32 %v818_v21, %v754_v23  ;;  %v914_v38 = vadd.f32 %v850_v22, %v786_v24  ;;  %v446_v41 = vadd.f32 %v1522_v1, %v445_v33  ;;  %v606_v42 = vadd.f32 %v1522_v1, %v605_v35  ;;  %v728_v21 = vld [vmem:[%s2231_s3 + $0x1b0] sm:$0xff]  ;;  %v825_v24 = vld [vmem:[%s2232_s4 + $0xb8] sm:$0xff]  ;;  %v699_v35 = vld [vmem:[%s2231_s3 + $0xc8] sm:$0xff] }
  0xff   :  { %948 = vst.msk [vmem:[%s2233_s5 + $0x88] sm:$0xff] %vm930_vm2, %v883_v29  ;;  %980 = vst.msk [vmem:[%s2233_s5 + $0x188] sm:$0xff] %vm930_vm2, %v915_v30  ;;  %v757_v43 = vadd.f32 %v693_v26, %v451_v31  ;;  %v789_v44 = vadd.f32 %v725_v28, %v611_v32  ;;  %v824_v30 = vld [vmem:[%s2232_s4 + $0xb0] sm:$0xff] }
 0x100   :  { %947 = vst.msk [vmem:[%s2233_s5 + $0x80] sm:$0xff] %vm930_vm2, %v882_v37  ;;  %979 = vst.msk [vmem:[%s2233_s5 + $0x180] sm:$0xff] %vm930_vm2, %v914_v38  ;;  %v756_v47 = vadd.f32 %v692_v34, %v446_v41  ;;  %v788_v48 = vadd.f32 %v724_v36, %v606_v42  ;;  %v1164_v49 = vpop.f32.mrb[20].mxu0  ;;  %v1212_v51 = vpop.f32.mrb[20].mxu1  ;;  %v856_v31 = vld [vmem:[%s2232_s4 + $0x1b0] sm:$0xff]  ;;  %v731_v37 = vld [vmem:[%s2231_s3 + $0x1c8] sm:$0xff] }
 0x101   :  { %v885_v53 = vadd.f32 %v821_v39, %v757_v43  ;;  %v917_v54 = vadd.f32 %v853_v40, %v789_v44  ;;  %v461_v55 = vadd.f32 %v1164_v49, %v1522_v1  ;;  %v621_v56 = vadd.f32 %v1212_v51, %v1522_v1  ;;  %v455_v57 = vpop.f32.mrb[21].mxu0  ;;  %v615_v59 = vpop.f32.mrb[21].mxu1  ;;  %v698_v43 = vld [vmem:[%s2231_s3 + $0xc0] sm:$0xff]  ;;  %v859_v49 = vld [vmem:[%s2232_s4 + $0x1c8] sm:$0xff] }
 0x102   :  { %v884_v61 = vadd.f32 %v820_v45, %v756_v47  ;;  %v916_v62 = vadd.f32 %v852_v46, %v788_v48  ;;  %v456_v2 = vadd.f32 %v1522_v1, %v455_v57  ;;  %v616_v3 = vadd.f32 %v1522_v1, %v615_v59  ;;  %v730_v45 = vld [vmem:[%s2231_s3 + $0x1c0] sm:$0xff]  ;;  %v827_v48 = vld [vmem:[%s2232_s4 + $0xc8] sm:$0xff]  ;;  %v701_v59 = vld [vmem:[%s2231_s3 + $0xd8] sm:$0xff] }
 0x103   :  { %950 = vst.msk [vmem:[%s2233_s5 + $0x98] sm:$0xff] %vm930_vm2, %v885_v53  ;;  %982 = vst.msk [vmem:[%s2233_s5 + $0x198] sm:$0xff] %vm930_vm2, %v917_v54  ;;  %v759_v4 = vadd.f32 %v695_v50, %v461_v55  ;;  %v791_v5 = vadd.f32 %v727_v52, %v621_v56  ;;  %v826_v54 = vld [vmem:[%s2232_s4 + $0xc0] sm:$0xff] }
 0x104   :  { %949 = vst.msk [vmem:[%s2233_s5 + $0x90] sm:$0xff] %vm930_vm2, %v884_v61  ;;  %981 = vst.msk [vmem:[%s2233_s5 + $0x190] sm:$0xff] %vm930_vm2, %v916_v62  ;;  %v758_v8 = vadd.f32 %v694_v58, %v456_v2  ;;  %v790_v9 = vadd.f32 %v726_v60, %v616_v3  ;;  %v1167_v10 = vpop.f32.mrb[22].mxu0  ;;  %v1215_v12 = vpop.f32.mrb[22].mxu1  ;;  %v858_v55 = vld [vmem:[%s2232_s4 + $0x1c0] sm:$0xff]  ;;  %v733_v61 = vld [vmem:[%s2231_s3 + $0x1d8] sm:$0xff] }
 0x105   :  { %v887_v14 = vadd.f32 %v823_v63, %v759_v4  ;;  %v919_v15 = vadd.f32 %v855_v0, %v791_v5  ;;  %v471_v16 = vadd.f32 %v1167_v10, %v1522_v1  ;;  %v631_v17 = vadd.f32 %v1215_v12, %v1522_v1  ;;  %v465_v18 = vpop.f32.mrb[23].mxu0  ;;  %v625_v20 = vpop.f32.mrb[23].mxu1  ;;  %v700_v4 = vld [vmem:[%s2231_s3 + $0xd0] sm:$0xff]  ;;  %v861_v10 = vld [vmem:[%s2232_s4 + $0x1d8] sm:$0xff] }
 0x106   :  { %v886_v22 = vadd.f32 %v822_v6, %v758_v8  ;;  %v918_v23 = vadd.f32 %v854_v7, %v790_v9  ;;  %v466_v26 = vadd.f32 %v1522_v1, %v465_v18  ;;  %v626_v27 = vadd.f32 %v1522_v1, %v625_v20  ;;  %v732_v6 = vld [vmem:[%s2231_s3 + $0x1d0] sm:$0xff]  ;;  %v829_v9 = vld [vmem:[%s2232_s4 + $0xd8] sm:$0xff]  ;;  %v703_v20 = vld [vmem:[%s2231_s3 + $0xe8] sm:$0xff] }
 0x107   :  { %952 = vst.msk [vmem:[%s2233_s5 + $0xa8] sm:$0xff] %vm930_vm2, %v887_v14  ;;  %984 = vst.msk [vmem:[%s2233_s5 + $0x1a8] sm:$0xff] %vm930_vm2, %v919_v15  ;;  %v761_v28 = vadd.f32 %v697_v11, %v471_v16  ;;  %v793_v29 = vadd.f32 %v729_v13, %v631_v17  ;;  %v828_v15 = vld [vmem:[%s2232_s4 + $0xd0] sm:$0xff] }
 0x108   :  { %951 = vst.msk [vmem:[%s2233_s5 + $0xa0] sm:$0xff] %vm930_vm2, %v886_v22  ;;  %983 = vst.msk [vmem:[%s2233_s5 + $0x1a0] sm:$0xff] %vm930_vm2, %v918_v23  ;;  %v760_v32 = vadd.f32 %v696_v19, %v466_v26  ;;  %v792_v33 = vadd.f32 %v728_v21, %v626_v27  ;;  %v1170_v34 = vpop.f32.mrb[24].mxu0  ;;  %v1218_v36 = vpop.f32.mrb[24].mxu1  ;;  %v860_v16 = vld [vmem:[%s2232_s4 + $0x1d0] sm:$0xff]  ;;  %v735_v22 = vld [vmem:[%s2231_s3 + $0x1e8] sm:$0xff] }
 0x109   :  { %v889_v38 = vadd.f32 %v825_v24, %v761_v28  ;;  %v921_v39 = vadd.f32 %v857_v25, %v793_v29  ;;  %v481_v40 = vadd.f32 %v1170_v34, %v1522_v1  ;;  %v641_v41 = vadd.f32 %v1218_v36, %v1522_v1  ;;  %v475_v42 = vpop.f32.mrb[25].mxu0  ;;  %v635_v44 = vpop.f32.mrb[25].mxu1  ;;  %v702_v28 = vld [vmem:[%s2231_s3 + $0xe0] sm:$0xff]  ;;  %v863_v34 = vld [vmem:[%s2232_s4 + $0x1e8] sm:$0xff] }
 0x10a   :  { %v888_v46 = vadd.f32 %v824_v30, %v760_v32  ;;  %v920_v47 = vadd.f32 %v856_v31, %v792_v33  ;;  %v476_v50 = vadd.f32 %v1522_v1, %v475_v42  ;;  %v636_v51 = vadd.f32 %v1522_v1, %v635_v44  ;;  %v734_v30 = vld [vmem:[%s2231_s3 + $0x1e0] sm:$0xff]  ;;  %v831_v33 = vld [vmem:[%s2232_s4 + $0xe8] sm:$0xff]  ;;  %v705_v44 = vld [vmem:[%s2231_s3 + $0xf8] sm:$0xff] }
 0x10b   :  { %954 = vst.msk [vmem:[%s2233_s5 + $0xb8] sm:$0xff] %vm930_vm2, %v889_v38  ;;  %986 = vst.msk [vmem:[%s2233_s5 + $0x1b8] sm:$0xff] %vm930_vm2, %v921_v39  ;;  %v763_v52 = vadd.f32 %v699_v35, %v481_v40  ;;  %v795_v53 = vadd.f32 %v731_v37, %v641_v41  ;;  %v830_v39 = vld [vmem:[%s2232_s4 + $0xe0] sm:$0xff] }
 0x10c   :  { %953 = vst.msk [vmem:[%s2233_s5 + $0xb0] sm:$0xff] %vm930_vm2, %v888_v46  ;;  %985 = vst.msk [vmem:[%s2233_s5 + $0x1b0] sm:$0xff] %vm930_vm2, %v920_v47  ;;  %v762_v56 = vadd.f32 %v698_v43, %v476_v50  ;;  %v794_v57 = vadd.f32 %v730_v45, %v636_v51  ;;  %v1173_v58 = vpop.f32.mrb[26].mxu0  ;;  %v1221_v60 = vpop.f32.mrb[26].mxu1  ;;  %v862_v40 = vld [vmem:[%s2232_s4 + $0x1e0] sm:$0xff]  ;;  %v737_v46 = vld [vmem:[%s2231_s3 + $0x1f8] sm:$0xff] }
 0x10d   :  { %v891_v62 = vadd.f32 %v827_v48, %v763_v52  ;;  %v923_v63 = vadd.f32 %v859_v49, %v795_v53  ;;  %v491_v0 = vadd.f32 %v1173_v58, %v1522_v1  ;;  %v651_v2 = vadd.f32 %v1221_v60, %v1522_v1  ;;  %v485_v3 = vpop.f32.mrb[27].mxu0  ;;  %v645_v5 = vpop.f32.mrb[27].mxu1  ;;  %v704_v52 = vld [vmem:[%s2231_s3 + $0xf0] sm:$0xff]  ;;  %v865_v58 = vld [vmem:[%s2232_s4 + $0x1f8] sm:$0xff] }
 0x10e   :  { %v890_v7 = vadd.f32 %v826_v54, %v762_v56  ;;  %v922_v8 = vadd.f32 %v858_v55, %v794_v57  ;;  %v486_v11 = vadd.f32 %v1522_v1, %v485_v3  ;;  %v646_v12 = vadd.f32 %v1522_v1, %v645_v5  ;;  %v736_v54 = vld [vmem:[%s2231_s3 + $0x1f0] sm:$0xff]  ;;  %v833_v57 = vld [vmem:[%s2232_s4 + $0xf8] sm:$0xff] }
 0x10f   :  { %956 = vst.msk [vmem:[%s2233_s5 + $0xc8] sm:$0xff] %vm930_vm2, %v891_v62  ;;  %988 = vst.msk [vmem:[%s2233_s5 + $0x1c8] sm:$0xff] %vm930_vm2, %v923_v63  ;;  %v765_v13 = vadd.f32 %v701_v59, %v491_v0  ;;  %v797_v14 = vadd.f32 %v733_v61, %v651_v2  ;;  %v832_v63 = vld [vmem:[%s2232_s4 + $0xf0] sm:$0xff] }
 0x110   :  { %955 = vst.msk [vmem:[%s2233_s5 + $0xc0] sm:$0xff] %vm930_vm2, %v890_v7  ;;  %987 = vst.msk [vmem:[%s2233_s5 + $0x1c0] sm:$0xff] %vm930_vm2, %v922_v8  ;;  %v764_v17 = vadd.f32 %v700_v4, %v486_v11  ;;  %v796_v18 = vadd.f32 %v732_v6, %v646_v12  ;;  %v1176_v19 = vpop.f32.mrb[28].mxu0  ;;  %v1224_v21 = vpop.f32.mrb[28].mxu1 }
 0x111   :  { %v893_v23 = vadd.f32 %v829_v9, %v765_v13  ;;  %v925_v24 = vadd.f32 %v861_v10, %v797_v14  ;;  %v501_v25 = vadd.f32 %v1176_v19, %v1522_v1  ;;  %v661_v26 = vadd.f32 %v1224_v21, %v1522_v1  ;;  %v495_v27 = vpop.f32.mrb[29].mxu0  ;;  %v655_v29 = vpop.f32.mrb[29].mxu1 }
 0x112   :  { %v892_v31 = vadd.f32 %v828_v15, %v764_v17  ;;  %v924_v32 = vadd.f32 %v860_v16, %v796_v18  ;;  %v496_v35 = vadd.f32 %v1522_v1, %v495_v27  ;;  %v656_v36 = vadd.f32 %v1522_v1, %v655_v29 }
 0x113   :  { %958 = vst.msk [vmem:[%s2233_s5 + $0xd8] sm:$0xff] %vm930_vm2, %v893_v23  ;;  %990 = vst.msk [vmem:[%s2233_s5 + $0x1d8] sm:$0xff] %vm930_vm2, %v925_v24  ;;  %v767_v37 = vadd.f32 %v703_v20, %v501_v25  ;;  %v799_v38 = vadd.f32 %v735_v22, %v661_v26 }
 0x114   :  { %957 = vst.msk [vmem:[%s2233_s5 + $0xd0] sm:$0xff] %vm930_vm2, %v892_v31  ;;  %989 = vst.msk [vmem:[%s2233_s5 + $0x1d0] sm:$0xff] %vm930_vm2, %v924_v32  ;;  %v766_v41 = vadd.f32 %v702_v28, %v496_v35  ;;  %v798_v42 = vadd.f32 %v734_v30, %v656_v36  ;;  %v1179_v43 = vpop.f32.mrb[30].mxu0  ;;  %v1227_v45 = vpop.f32.mrb[30].mxu1 }
 0x115   :  { %v895_v47 = vadd.f32 %v831_v33, %v767_v37  ;;  %v927_v48 = vadd.f32 %v863_v34, %v799_v38  ;;  %v511_v49 = vadd.f32 %v1179_v43, %v1522_v1  ;;  %v671_v50 = vadd.f32 %v1227_v45, %v1522_v1  ;;  %v505_v51 = vpop.f32.mrb[31].mxu0  ;;  %v665_v53 = vpop.f32.mrb[31].mxu1 }
 0x116   :  { %v894_v55 = vadd.f32 %v830_v39, %v766_v41  ;;  %v926_v56 = vadd.f32 %v862_v40, %v798_v42  ;;  %v506_v59 = vadd.f32 %v1522_v1, %v505_v51  ;;  %v666_v60 = vadd.f32 %v1522_v1, %v665_v53  ;;  %v864_v1 = vld [vmem:[%s2232_s4 + $0x1f0] sm:$0xff] }
 0x117   :  { %960 = vst.msk [vmem:[%s2233_s5 + $0xe8] sm:$0xff] %vm930_vm2, %v895_v47  ;;  %992 = vst.msk [vmem:[%s2233_s5 + $0x1e8] sm:$0xff] %vm930_vm2, %v927_v48  ;;  %v769_v61 = vadd.f32 %v705_v44, %v511_v49  ;;  %v801_v62 = vadd.f32 %v737_v46, %v671_v50 }
 0x118   :  { %959 = vst.msk [vmem:[%s2233_s5 + $0xe0] sm:$0xff] %vm930_vm2, %v894_v55  ;;  %991 = vst.msk [vmem:[%s2233_s5 + $0x1e0] sm:$0xff] %vm930_vm2, %v926_v56  ;;  %v768_v0 = vadd.f32 %v704_v52, %v506_v59  ;;  %v800_v2 = vadd.f32 %v736_v54, %v666_v60 }
 0x119   :  { %v897_v3 = vadd.f32 %v833_v57, %v769_v61  ;;  %v929_v4 = vadd.f32 %v865_v58, %v801_v62 }
 0x11a   :  { %v896_v5 = vadd.f32 %v832_v63, %v768_v0  ;;  %v928_v6 = vadd.f32 %v864_v1, %v800_v2 }
 0x11b   :  { %962 = vst.msk [vmem:[%s2233_s5 + $0xf8] sm:$0xff] %vm930_vm2, %v897_v3  ;;  %994 = vst.msk [vmem:[%s2233_s5 + $0x1f8] sm:$0xff] %vm930_vm2, %v929_v4 }
 0x11c   :  { %961 = vst.msk [vmem:[%s2233_s5 + $0xf0] sm:$0xff] %vm930_vm2, %v896_v5  ;;  %993 = vst.msk [vmem:[%s2233_s5 + $0x1f0] sm:$0xff] %vm930_vm2, %v928_v6 }

// kernel: hgn_forward.76
= control target key start
LH: loop header
LB: loop body
LE: loop exit
PB: predicated region body
PF: predicated region fallthrough
CT: control target
= control target key end

     0   :  { %vm300_vm0 = vcmask 64512   ;;  %vm878_vm1 = vcmask 31744   ;;  %s2722_s3 = inlined_call_operand.vmem [shape: f32[8,12], index: 3, kind: input, shape index: {}]   ;;  %s2723_s0 = inlined_call_operand.vmem [shape: f32[512,8], index: 0, kind: input, shape index: {}]   ;;  %s2724_s1 = inlined_call_operand.vmem [shape: f32[1,8], index: 1, kind: input, shape index: {}]   ;;  %s2725_s2 = inlined_call_operand.vmem [shape: f32[1,8], index: 2, kind: input, shape index: {}]   ;;  %s2726_s4 = inlined_call_operand.vmem [shape: f32[1,12], index: 4, kind: input, shape index: {}]   ;;  %s2727_s5 = inlined_call_operand.vmem [shape: f32[512,4], index: 5, kind: output, shape index: {0}]   ;;  %s2728_s6 = inlined_call_operand.vmem [shape: f32[512,8], index: 6, kind: output, shape index: {1}]  }
   0x1   :  { %v292_v0 = vld [vmem:[%s2722_s3] sm:$0xff]  ;;  %v23_v6 = vld [vmem:[%s2723_s0 + $0x8] sm:$0xff]  ;;  %v24_v10 = vld [vmem:[%s2723_s0 + $0x10] sm:$0xff] }
   0x2   :  { %v22_v1 = vld [vmem:[%s2723_s0] sm:$0xff]  ;;  %1403 = vmatprep.subr.mxu0 %v292_v0  ;;  %1501 = vmatprep.subr.mxu1 %v292_v0  ;;  %v55_v9 = vld [vmem:[%s2723_s0 + $0x108] sm:$0xff]  ;;  %v25_v11 = vld [vmem:[%s2723_s0 + $0x18] sm:$0xff] }
   0x3   :  { %v1549_v2 = vld [vmem:[%s2724_s1] ss:$0 sm:$0xff]  ;;  %1404 = vmatpush3.msra.mxu0 %v292_v0  ;;  %1502 = vmatpush3.msra.mxu1 %v292_v0  ;;  %v56_v16 = vld [vmem:[%s2723_s0 + $0x110] sm:$0xff]  ;;  %v57_v17 = vld [vmem:[%s2723_s0 + $0x118] sm:$0xff] }
   0x4   :  { %v93_v3 = vmul.f32 %v1549_v2, %v22_v1  ;;  %v1555_v4 = vld [vmem:[%s2725_s2] ss:$0 sm:$0xff]  ;;  %v94_v8 = vmul.f32 %v1549_v2, %v23_v6  ;;  %v126_v13 = vmul.f32 %v1549_v2, %v55_v9  ;;  %v95_v14 = vmul.f32 %v1549_v2, %v24_v10  ;;  %v27_v27 = vld [vmem:[%s2723_s0 + $0x28] sm:$0xff]  ;;  %v28_v34 = vld [vmem:[%s2723_s0 + $0x30] sm:$0xff] }
   0x5   :  { %v54_v5 = vld [vmem:[%s2723_s0 + $0x100] sm:$0xff]  ;;  %v96_v15 = vmul.f32 %v1549_v2, %v25_v11  ;;  %v127_v20 = vmul.f32 %v1549_v2, %v56_v16  ;;  %v128_v21 = vmul.f32 %v1549_v2, %v57_v17  ;;  %v59_v33 = vld [vmem:[%s2723_s0 + $0x128] sm:$0xff]  ;;  %v29_v38 = vld [vmem:[%s2723_s0 + $0x38] sm:$0xff]  ;;  %v98_v42 = vmul.f32 %v1549_v2, %v27_v27 }
   0x6   :  { %v125_v7 = vmul.f32 %v1549_v2, %v54_v5  ;;  %v164_v12 = vadd.f32 %v1555_v4, %v93_v3  ;;  %v165_v19 = vadd.f32 %v1555_v4, %v94_v8  ;;  %v26_v22 = vld [vmem:[%s2723_s0 + $0x20] sm:$0xff]  ;;  %v197_v24 = vadd.f32 %v1555_v4, %v126_v13  ;;  %v60_v39 = vld [vmem:[%s2723_s0 + $0x130] sm:$0xff]  ;;  %v61_v44 = vld [vmem:[%s2723_s0 + $0x138] sm:$0xff] }
   0x7   :  { %v166_v25 = vadd.f32 %v1555_v4, %v95_v14  ;;  %v167_v26 = vadd.f32 %v1555_v4, %v96_v15  ;;  %v58_v28 = vld [vmem:[%s2723_s0 + $0x120] sm:$0xff]  ;;  %v198_v31 = vadd.f32 %v1555_v4, %v127_v20  ;;  %v199_v32 = vadd.f32 %v1555_v4, %v128_v21  ;;  %v31_v58 = vld [vmem:[%s2723_s0 + $0x48] sm:$0xff]  ;;  %v32_v1 = vld [vmem:[%s2723_s0 + $0x50] sm:$0xff] }
   0x8   :  { %v196_v18 = vadd.f32 %v1555_v4, %v125_v7  ;;  %v228_v23 = vmax.f32 %v164_v12, 0.0  ;;  %v229_v30 = vmax.f32 %v165_v19, 0.0  ;;  %v261_v35 = vmax.f32 %v197_v24, 0.0  ;;  %v30_v53 = vld [vmem:[%s2723_s0 + $0x40] sm:$0xff]  ;;  %v63_v0 = vld [vmem:[%s2723_s0 + $0x148] sm:$0xff]  ;;  %v33_v8 = vld [vmem:[%s2723_s0 + $0x58] sm:$0xff] }
   0x9   :  { %v230_v36 = vmax.f32 %v166_v25, 0.0  ;;  %v97_v37 = vmul.f32 %v1549_v2, %v26_v22  ;;  %v231_v40 = vmax.f32 %v167_v26, 0.0  ;;  %v262_v41 = vmax.f32 %v198_v31, 0.0  ;;  %v62_v59 = vld [vmem:[%s2723_s0 + $0x140] sm:$0xff]  ;;  %v64_v9 = vld [vmem:[%s2723_s0 + $0x150] sm:$0xff]  ;;  %v65_v14 = vld [vmem:[%s2723_s0 + $0x158] sm:$0xff] }
   0xa   :  { %v260_v29 = vmax.f32 %v196_v18, 0.0  ;;  %1405 = vmatprep.mubr.msk.f32.mxu0 %vm300_vm0, %v228_v23  ;;  %v129_v43 = vmul.f32 %v1549_v2, %v58_v28  ;;  %v263_v45 = vmax.f32 %v199_v32, 0.0  ;;  %v130_v47 = vmul.f32 %v1549_v2, %v59_v33  ;;  %v34_v23 = vld [vmem:[%s2723_s0 + $0x60] sm:$0xff]  ;;  %v35_v28 = vld [vmem:[%s2723_s0 + $0x68] sm:$0xff]  ;;  %v36_v33 = vld [vmem:[%s2723_s0 + $0x70] sm:$0xff] }
   0xb   :  { %1406 = vmatmul.mubr.msk.f32.vlgmr.msra.gmra.mrb[0].mxu0 %vm300_vm0, %v229_v30  ;;  %v168_v46 = vadd.f32 %v1555_v4, %v97_v37  ;;  %v99_v48 = vmul.f32 %v1549_v2, %v28_v34  ;;  %v169_v49 = vadd.f32 %v1555_v4, %v98_v42  ;;  %v100_v51 = vmul.f32 %v1549_v2, %v29_v38  ;;  %v67_v32 = vld [vmem:[%s2723_s0 + $0x168] sm:$0xff]  ;;  %v68_v37 = vld [vmem:[%s2723_s0 + $0x170] sm:$0xff] }
   0xc   :  { %1453 = vmatprep.mubr.msk.f32.mxu1 %vm300_vm0, %v260_v29  ;;  %1408 = vmatprep.mubr.msk.f32.mxu0 %vm300_vm0, %v230_v36  ;;  %v200_v50 = vadd.f32 %v1555_v4, %v129_v43  ;;  %v131_v52 = vmul.f32 %v1549_v2, %v60_v39  ;;  %v201_v55 = vadd.f32 %v1555_v4, %v130_v47  ;;  %v66_v29 = vld [vmem:[%s2723_s0 + $0x160] sm:$0xff]  ;;  %v69_v47 = vld [vmem:[%s2723_s0 + $0x178] sm:$0xff] }
   0xd   :  { %1454 = vmatmul.mubr.msk.f32.vlgmr.msra.gmra.mrb[0].mxu1 %vm300_vm0, %v261_v35  ;;  %v232_v54 = vmax.f32 %v168_v46, 0.0  ;;  %v170_v56 = vadd.f32 %v1555_v4, %v99_v48  ;;  %v132_v57 = vmul.f32 %v1549_v2, %v61_v44  ;;  %v233_v60 = vmax.f32 %v169_v49, 0.0  ;;  %v37_v46 = vld [vmem:[%s2723_s0 + $0x78] sm:$0xff] }
   0xe   :  { %1456 = vmatprep.mubr.msk.f32.mxu1 %vm300_vm0, %v262_v41  ;;  %v264_v61 = vmax.f32 %v200_v50, 0.0  ;;  %v171_v62 = vadd.f32 %v1555_v4, %v100_v51  ;;  %v202_v63 = vadd.f32 %v1555_v4, %v131_v52  ;;  %v265_v3 = vmax.f32 %v201_v55, 0.0  ;;  %v38_v51 = vld [vmem:[%s2723_s0 + $0x80] sm:$0xff] }
   0xf   :  { %1409 = vmatmul.mubr.msk.f32.gmra.mrb[2].mxu0 %vm300_vm0, %v231_v40  ;;  %v234_v5 = vmax.f32 %v170_v56, 0.0  ;;  %v203_v6 = vadd.f32 %v1555_v4, %v132_v57  ;;  %v101_v7 = vmul.f32 %v1549_v2, %v30_v53  ;;  %v102_v12 = vmul.f32 %v1549_v2, %v31_v58  ;;  %v70_v53 = vld [vmem:[%s2723_s0 + $0x180] sm:$0xff] }
  0x10   :  { %1411 = vmatprep.mubr.msk.f32.mxu0 %vm300_vm0, %v232_v54  ;;  %v235_v10 = vmax.f32 %v171_v62, 0.0  ;;  %v266_v11 = vmax.f32 %v202_v63, 0.0  ;;  %v133_v13 = vmul.f32 %v1549_v2, %v62_v59  ;;  %v134_v17 = vmul.f32 %v1549_v2, %v63_v0  ;;  %v39_v62 = vld [vmem:[%s2723_s0 + $0x88] sm:$0xff] }
  0x11   :  { %1457 = vmatmul.mubr.msk.f32.gmra.mrb[2].mxu1 %vm300_vm0, %v263_v45  ;;  %v267_v15 = vmax.f32 %v203_v6, 0.0  ;;  %v172_v16 = vadd.f32 %v1555_v4, %v101_v7  ;;  %v103_v18 = vmul.f32 %v1549_v2, %v32_v1  ;;  %v173_v19 = vadd.f32 %v1555_v4, %v102_v12  ;;  %v72_v7 = vld [vmem:[%s2723_s0 + $0x190] sm:$0xff]  ;;  %v41_v12 = vld [vmem:[%s2723_s0 + $0x98] sm:$0xff] }
  0x12   :  { %1459 = vmatprep.mubr.msk.f32.mxu1 %vm300_vm0, %v264_v61  ;;  %v204_v20 = vadd.f32 %v1555_v4, %v133_v13  ;;  %v104_v21 = vmul.f32 %v1549_v2, %v33_v8  ;;  %v135_v22 = vmul.f32 %v1549_v2, %v64_v9  ;;  %v205_v25 = vadd.f32 %v1555_v4, %v134_v17  ;;  %v73_v17 = vld [vmem:[%s2723_s0 + $0x198] sm:$0xff] }
  0x13   :  { %1412 = vmatmul.mubr.msk.f32.gmra.mrb[4].mxu0 %vm300_vm0, %v233_v60  ;;  %v236_v24 = vmax.f32 %v172_v16, 0.0  ;;  %v174_v26 = vadd.f32 %v1555_v4, %v103_v18  ;;  %v136_v27 = vmul.f32 %v1549_v2, %v65_v14  ;;  %v237_v34 = vmax.f32 %v173_v19, 0.0 }
  0x14   :  { %1414 = vmatprep.mubr.msk.f32.mxu0 %vm300_vm0, %v234_v5  ;;  %v268_v30 = vmax.f32 %v204_v20, 0.0  ;;  %v206_v31 = vadd.f32 %v1555_v4, %v135_v22  ;;  %v175_v35 = vadd.f32 %v1555_v4, %v104_v21  ;;  %v105_v36 = vmul.f32 %v1549_v2, %v34_v23  ;;  %v40_v5 = vld [vmem:[%s2723_s0 + $0x90] sm:$0xff]  ;;  %v42_v21 = vld [vmem:[%s2723_s0 + $0xa0] sm:$0xff] }
  0x15   :  { %1460 = vmatmul.mubr.msk.f32.gmra.mrb[4].mxu1 %vm300_vm0, %v265_v3  ;;  %v269_v38 = vmax.f32 %v205_v25, 0.0  ;;  %v207_v39 = vadd.f32 %v1555_v4, %v136_v27  ;;  %v106_v40 = vmul.f32 %v1549_v2, %v35_v28  ;;  %v137_v41 = vmul.f32 %v1549_v2, %v66_v29  ;;  %v71_v3 = vld [vmem:[%s2723_s0 + $0x188] sm:$0xff]  ;;  %v74_v23 = vld [vmem:[%s2723_s0 + $0x1a0] sm:$0xff] }
  0x16   :  { %1462 = vmatprep.mubr.msk.f32.mxu1 %vm300_vm0, %v266_v11  ;;  %v238_v42 = vmax.f32 %v174_v26, 0.0  ;;  %v176_v43 = vadd.f32 %v1555_v4, %v105_v36  ;;  %v138_v44 = vmul.f32 %v1549_v2, %v67_v32  ;;  %v107_v45 = vmul.f32 %v1549_v2, %v36_v33  ;;  %v43_v32 = vld [vmem:[%s2723_s0 + $0xa8] sm:$0xff] }
  0x17   :  { %1415 = vmatmul.mubr.msk.f32.gmra.mrb[6].mxu0 %vm300_vm0, %v235_v10  ;;  %v270_v48 = vmax.f32 %v206_v31, 0.0  ;;  %v208_v49 = vadd.f32 %v1555_v4, %v137_v41  ;;  %v139_v50 = vmul.f32 %v1549_v2, %v68_v37  ;;  %v177_v52 = vadd.f32 %v1555_v4, %v106_v40  ;;  %v75_v33 = vld [vmem:[%s2723_s0 + $0x1a8] sm:$0xff]  ;;  %v44_v37 = vld [vmem:[%s2723_s0 + $0xb0] sm:$0xff] }
  0x18   :  { %1417 = vmatprep.mubr.msk.f32.mxu0 %vm300_vm0, %v236_v24  ;;  %v239_v54 = vmax.f32 %v175_v35, 0.0  ;;  %v209_v55 = vadd.f32 %v1555_v4, %v138_v44  ;;  %v108_v56 = vmul.f32 %v1549_v2, %v37_v46  ;;  %v140_v57 = vmul.f32 %v1549_v2, %v69_v47 }
  0x19   :  { %1463 = vmatmul.mubr.msk.f32.gmra.mrb[6].mxu1 %vm300_vm0, %v267_v15  ;;  %v271_v58 = vmax.f32 %v207_v39, 0.0  ;;  %v240_v59 = vmax.f32 %v176_v43, 0.0  ;;  %v178_v60 = vadd.f32 %v1555_v4, %v107_v45  ;;  %v109_v61 = vmul.f32 %v1549_v2, %v38_v51  ;;  %v76_v39 = vld [vmem:[%s2723_s0 + $0x1b0] sm:$0xff] }
  0x1a   :  { %1465 = vmatprep.mubr.msk.f32.mxu1 %vm300_vm0, %v268_v30  ;;  %v272_v63 = vmax.f32 %v208_v49, 0.0  ;;  %v210_v0 = vadd.f32 %v1555_v4, %v139_v50  ;;  %v141_v1 = vmul.f32 %v1549_v2, %v70_v53  ;;  %v241_v6 = vmax.f32 %v177_v52, 0.0  ;;  %v77_v52 = vld [vmem:[%s2723_s0 + $0x1b8] sm:$0xff]  ;;  %v46_v53 = vld [vmem:[%s2723_s0 + $0xc0] sm:$0xff] }
  0x1b   :  { %1418 = vmatmul.mubr.msk.f32.gmra.mrb[8].mxu0 %vm300_vm0, %v237_v34  ;;  %v273_v8 = vmax.f32 %v209_v55, 0.0  ;;  %v179_v9 = vadd.f32 %v1555_v4, %v108_v56  ;;  %v211_v10 = vadd.f32 %v1555_v4, %v140_v57  ;;  %v110_v11 = vmul.f32 %v1549_v2, %v39_v62  ;;  %v78_v55 = vld [vmem:[%s2723_s0 + $0x1c0] sm:$0xff] }
  0x1c   :  { %1420 = vmatprep.mubr.msk.f32.mxu0 %vm300_vm0, %v238_v42  ;;  %v242_v13 = vmax.f32 %v178_v60, 0.0  ;;  %v180_v14 = vadd.f32 %v1555_v4, %v109_v61  ;;  %v142_v15 = vmul.f32 %v1549_v2, %v71_v3  ;;  %v111_v16 = vmul.f32 %v1549_v2, %v40_v5  ;;  %v47_v60 = vld [vmem:[%s2723_s0 + $0xc8] sm:$0xff] }
  0x1d   :  { %1466 = vmatmul.mubr.msk.f32.gmra.mrb[8].mxu1 %vm300_vm0, %v269_v38  ;;  %v274_v18 = vmax.f32 %v210_v0, 0.0  ;;  %v212_v19 = vadd.f32 %v1555_v4, %v141_v1  ;;  %v143_v20 = vmul.f32 %v1549_v2, %v72_v7  ;;  %v112_v22 = vmul.f32 %v1549_v2, %v41_v12  ;;  %v79_v1 = vld [vmem:[%s2723_s0 + $0x1c8] sm:$0xff]  ;;  %v48_v7 = vld [vmem:[%s2723_s0 + $0xd0] sm:$0xff] }
  0x1e   :  { %1468 = vmatprep.mubr.msk.f32.mxu1 %vm300_vm0, %v270_v48  ;;  %v243_v24 = vmax.f32 %v179_v9, 0.0  ;;  %v275_v25 = vmax.f32 %v211_v10, 0.0  ;;  %v181_v26 = vadd.f32 %v1555_v4, %v110_v11  ;;  %v144_v27 = vmul.f32 %v1549_v2, %v73_v17  ;;  %v45_v48 = vld [vmem:[%s2723_s0 + $0xb8] sm:$0xff]  ;;  %v80_v9 = vld [vmem:[%s2723_s0 + $0x1d0] sm:$0xff] }
  0x1f   :  { %1421 = vmatmul.mubr.msk.f32.gmra.mrb[10].mxu0 %vm300_vm0, %v239_v54  ;;  %v244_v28 = vmax.f32 %v180_v14, 0.0  ;;  %v213_v29 = vadd.f32 %v1555_v4, %v142_v15  ;;  %v182_v30 = vadd.f32 %v1555_v4, %v111_v16  ;;  %v113_v31 = vmul.f32 %v1549_v2, %v42_v21 }
  0x20   :  { %1423 = vmatprep.mubr.msk.f32.mxu0 %vm300_vm0, %v240_v59  ;;  %v276_v34 = vmax.f32 %v212_v19, 0.0  ;;  %v214_v35 = vadd.f32 %v1555_v4, %v143_v20  ;;  %v145_v36 = vmul.f32 %v1549_v2, %v74_v23  ;;  %v183_v38 = vadd.f32 %v1555_v4, %v112_v22  ;;  %v81_v19 = vld [vmem:[%s2723_s0 + $0x1d8] sm:$0xff]  ;;  %v50_v23 = vld [vmem:[%s2723_s0 + $0xe0] sm:$0xff] }
  0x21   :  { %1469 = vmatmul.mubr.msk.f32.gmra.mrb[10].mxu1 %vm300_vm0, %v271_v58  ;;  %v245_v40 = vmax.f32 %v181_v26, 0.0  ;;  %v215_v41 = vadd.f32 %v1555_v4, %v144_v27  ;;  %v114_v42 = vmul.f32 %v1549_v2, %v43_v32  ;;  %v146_v43 = vmul.f32 %v1549_v2, %v75_v33 }
  0x22   :  { %1471 = vmatprep.mubr.msk.f32.mxu1 %vm300_vm0, %v272_v63  ;;  %v277_v44 = vmax.f32 %v213_v29, 0.0  ;;  %v246_v45 = vmax.f32 %v182_v30, 0.0  ;;  %v184_v46 = vadd.f32 %v1555_v4, %v113_v31  ;;  %v115_v47 = vmul.f32 %v1549_v2, %v44_v37 }
  0x23   :  { %1424 = vmatmul.mubr.msk.f32.gmra.mrb[12].mxu0 %vm300_vm0, %v241_v6  ;;  %v278_v49 = vmax.f32 %v214_v35, 0.0  ;;  %v216_v50 = vadd.f32 %v1555_v4, %v145_v36  ;;  %v147_v51 = vmul.f32 %v1549_v2, %v76_v39  ;;  %v247_v54 = vmax.f32 %v183_v38, 0.0  ;;  %v83_v38 = vld [vmem:[%s2723_s0 + $0x1e8] sm:$0xff]  ;;  %v52_v39 = vld [vmem:[%s2723_s0 + $0xf0] sm:$0xff] }
  0x24   :  { %1426 = vmatprep.mubr.msk.f32.mxu0 %vm300_vm0, %v242_v13  ;;  %v279_v56 = vmax.f32 %v215_v41, 0.0  ;;  %v185_v57 = vadd.f32 %v1555_v4, %v114_v42  ;;  %v217_v58 = vadd.f32 %v1555_v4, %v146_v43  ;;  %v116_v59 = vmul.f32 %v1549_v2, %v45_v48  ;;  %v84_v41 = vld [vmem:[%s2723_s0 + $0x1f0] sm:$0xff] }
  0x25   :  { %1472 = vmatmul.mubr.msk.f32.gmra.mrb[12].mxu1 %vm300_vm0, %v273_v8  ;;  %v248_v61 = vmax.f32 %v184_v46, 0.0  ;;  %v186_v62 = vadd.f32 %v1555_v4, %v115_v47  ;;  %v148_v63 = vmul.f32 %v1549_v2, %v77_v52  ;;  %v117_v0 = vmul.f32 %v1549_v2, %v46_v53 }
  0x26   :  { %1474 = vmatprep.mubr.msk.f32.mxu1 %vm300_vm0, %v274_v18  ;;  %v280_v3 = vmax.f32 %v216_v50, 0.0  ;;  %v218_v5 = vadd.f32 %v1555_v4, %v147_v51  ;;  %v149_v6 = vmul.f32 %v1549_v2, %v78_v55  ;;  %v118_v8 = vmul.f32 %v1549_v2, %v47_v60  ;;  %v49_v18 = vld [vmem:[%s2723_s0 + $0xd8] sm:$0xff] }
  0x27   :  { %1427 = vmatmul.mubr.msk.f32.gmra.mrb[14].mxu0 %vm300_vm0, %v243_v24  ;;  %v249_v10 = vmax.f32 %v185_v57, 0.0  ;;  %v281_v11 = vmax.f32 %v217_v58, 0.0  ;;  %v187_v12 = vadd.f32 %v1555_v4, %v116_v59  ;;  %v150_v13 = vmul.f32 %v1549_v2, %v79_v1  ;;  %v53_v50 = vld [vmem:[%s2723_s0 + $0xf8] sm:$0xff] }
  0x28   :  { %1429 = vmatprep.mubr.msk.f32.mxu0 %vm300_vm0, %v244_v28  ;;  %v250_v14 = vmax.f32 %v186_v62, 0.0  ;;  %v219_v15 = vadd.f32 %v1555_v4, %v148_v63  ;;  %v188_v16 = vadd.f32 %v1555_v4, %v117_v0  ;;  %v119_v17 = vmul.f32 %v1549_v2, %v48_v7 }
  0x29   :  { %1475 = vmatmul.mubr.msk.f32.gmra.mrb[14].mxu1 %vm300_vm0, %v275_v25  ;;  %v282_v20 = vmax.f32 %v218_v5, 0.0  ;;  %v220_v21 = vadd.f32 %v1555_v4, %v149_v6  ;;  %v151_v22 = vmul.f32 %v1549_v2, %v80_v9  ;;  %v189_v24 = vadd.f32 %v1555_v4, %v118_v8  ;;  %v82_v25 = vld [vmem:[%s2723_s0 + $0x1e0] sm:$0xff] }
  0x2a   :  { %1477 = vmatprep.mubr.msk.f32.mxu1 %vm300_vm0, %v276_v34  ;;  %v251_v26 = vmax.f32 %v187_v12, 0.0  ;;  %v221_v27 = vadd.f32 %v1555_v4, %v150_v13  ;;  %v120_v28 = vmul.f32 %v1549_v2, %v49_v18  ;;  %v152_v29 = vmul.f32 %v1549_v2, %v81_v19  ;;  %v51_v34 = vld [vmem:[%s2723_s0 + $0xe8] sm:$0xff] }
  0x2b   :  { %1430 = vmatmul.mubr.msk.f32.gmra.mrb[16].mxu0 %vm300_vm0, %v245_v40  ;;  %v283_v30 = vmax.f32 %v219_v15, 0.0  ;;  %v252_v31 = vmax.f32 %v188_v16, 0.0  ;;  %v190_v32 = vadd.f32 %v1555_v4, %v119_v17  ;;  %v121_v33 = vmul.f32 %v1549_v2, %v50_v23 }
  0x2c   :  { %1432 = vmatprep.mubr.msk.f32.mxu0 %vm300_vm0, %v246_v45  ;;  %v284_v35 = vmax.f32 %v220_v21, 0.0  ;;  %v222_v36 = vadd.f32 %v1555_v4, %v151_v22  ;;  %v153_v37 = vmul.f32 %v1549_v2, %v82_v25  ;;  %v253_v40 = vmax.f32 %v189_v24, 0.0 }
  0x2d   :  { %1478 = vmatmul.mubr.msk.f32.gmra.mrb[16].mxu1 %vm300_vm0, %v277_v44  ;;  %v285_v42 = vmax.f32 %v221_v27, 0.0  ;;  %v191_v43 = vadd.f32 %v1555_v4, %v120_v28  ;;  %v223_v44 = vadd.f32 %v1555_v4, %v152_v29  ;;  %v122_v45 = vmul.f32 %v1549_v2, %v51_v34 }
  0x2e   :  { %1480 = vmatprep.mubr.msk.f32.mxu1 %vm300_vm0, %v278_v49  ;;  %v254_v46 = vmax.f32 %v190_v32, 0.0  ;;  %v192_v47 = vadd.f32 %v1555_v4, %v121_v33  ;;  %v154_v48 = vmul.f32 %v1549_v2, %v83_v38  ;;  %v123_v49 = vmul.f32 %v1549_v2, %v52_v39 }
  0x2f   :  { %1433 = vmatmul.mubr.msk.f32.gmra.mrb[18].mxu0 %vm300_vm0, %v247_v54  ;;  %v286_v51 = vmax.f32 %v222_v36, 0.0  ;;  %v224_v52 = vadd.f32 %v1555_v4, %v153_v37  ;;  %v155_v53 = vmul.f32 %v1549_v2, %v84_v41  ;;  %v85_v54 = vld [vmem:[%s2723_s0 + $0x1f8] sm:$0xff]  ;;  %v255_v55 = vmax.f32 %v191_v43, 0.0 }
  0x30   :  { %1435 = vmatprep.mubr.msk.f32.mxu0 %vm300_vm0, %v248_v61  ;;  %v193_v57 = vadd.f32 %v1555_v4, %v122_v45  ;;  %v124_v58 = vmul.f32 %v1549_v2, %v53_v50  ;;  %v256_v59 = vmax.f32 %v192_v47, 0.0  ;;  %v225_v60 = vadd.f32 %v1555_v4, %v154_v48 }
  0x31   :  { %1481 = vmatmul.mubr.msk.f32.gmra.mrb[18].mxu1 %vm300_vm0, %v279_v56  ;;  %v287_v56 = vmax.f32 %v223_v44, 0.0  ;;  %v194_v61 = vadd.f32 %v1555_v4, %v123_v49  ;;  %v156_v62 = vmul.f32 %v1549_v2, %v85_v54  ;;  %v288_v63 = vmax.f32 %v224_v52, 0.0 }
  0x32   :  { %1483 = vmatprep.mubr.msk.f32.mxu1 %vm300_vm0, %v280_v3  ;;  %v226_v0 = vadd.f32 %v1555_v4, %v155_v53  ;;  %v257_v1 = vmax.f32 %v193_v57, 0.0  ;;  %v195_v3 = vadd.f32 %v1555_v4, %v124_v58  ;;  %v289_v5 = vmax.f32 %v225_v60, 0.0 }
  0x33   :  { %1436 = vmatmul.mubr.msk.f32.gmra.mrb[20].mxu0 %vm300_vm0, %v249_v10  ;;  %v258_v6 = vmax.f32 %v194_v61, 0.0  ;;  %v227_v7 = vadd.f32 %v1555_v4, %v156_v62  ;;  %v1940_v4 = vld [vmem:[%s2726_s4] ss:$0 sm:$0xff]  ;;  %s1504_s4 = smov 124  }
  0x34   :  { %1438 = vmatprep.mubr.msk.f32.mxu0 %vm300_vm0, %v250_v14  ;;  %v290_v2 = vmax.f32 %v226_v0, 0.0  ;;  %v259_v8 = vmax.f32 %v195_v3, 0.0 }
  0x35   :  { %1484 = vmatmul.mubr.msk.f32.gmra.mrb[20].mxu1 %vm300_vm0, %v281_v11  ;;  %v291_v9 = vmax.f32 %v227_v7, 0.0 }
  0x36   :  { %1486 = vmatprep.mubr.msk.f32.mxu1 %vm300_vm0, %v282_v20 }
  0x37   :  { %1439 = vmatmul.mubr.msk.f32.gmra.mrb[22].mxu0 %vm300_vm0, %v251_v26 }
  0x38   :  { %1441 = vmatprep.mubr.msk.f32.mxu0 %vm300_vm0, %v252_v31 }
  0x39   :  { %1487 = vmatmul.mubr.msk.f32.gmra.mrb[22].mxu1 %vm300_vm0, %v283_v30 }
  0x3a   :  { %1489 = vmatprep.mubr.msk.f32.mxu1 %vm300_vm0, %v284_v35 }
  0x3b   :  { %1442 = vmatmul.mubr.msk.f32.gmra.mrb[24].mxu0 %vm300_vm0, %v253_v40 }
  0x3c   :  { %1444 = vmatprep.mubr.msk.f32.mxu0 %vm300_vm0, %v254_v46 }
  0x3d   :  { %1490 = vmatmul.mubr.msk.f32.gmra.mrb[24].mxu1 %vm300_vm0, %v285_v42 }
  0x3e   :  { %1492 = vmatprep.mubr.msk.f32.mxu1 %vm300_vm0, %v286_v51 }
  0x3f   :  { %1445 = vmatmul.mubr.msk.f32.gmra.mrb[26].mxu0 %vm300_vm0, %v255_v55 }
  0x40   :  { %1447 = vmatprep.mubr.msk.f32.mxu0 %vm300_vm0, %v256_v59 }
  0x41   :  { %1493 = vmatmul.mubr.msk.f32.gmra.mrb[26].mxu1 %vm300_vm0, %v287_v56 }
  0x42   :  { %1495 = vmatprep.mubr.msk.f32.mxu1 %vm300_vm0, %v288_v63 }
  0x43   :  { %1448 = vmatmul.mubr.msk.f32.gmra.mrb[28].mxu0 %vm300_vm0, %v257_v1 }
  0x44   :  { %1450 = vmatprep.mubr.msk.f32.mxu0 %vm300_vm0, %v258_v6 }
  0x45   :  { %1496 = vmatmul.mubr.msk.f32.gmra.mrb[28].mxu1 %vm300_vm0, %v289_v5 }
  0x46   :  { %1498 = vmatprep.mubr.msk.f32.mxu1 %vm300_vm0, %v290_v2 }
  0x47   :  { %1451 = vmatmul.mubr.msk.f32.gmra.mrb[30].mxu0 %vm300_vm0, %v259_v8 }
  0x49   :  { %1499 = vmatmul.mubr.msk.f32.gmra.mrb[30].mxu1 %vm300_vm0, %v291_v9 }
  0xde   :  { %v1407_v10 = vpop.f32.mrb[0].mxu0 }
  0xdf   :  { %v565_v11 = vadd.f32 %v1407_v10, %v1940_v4  ;;  %v559_v13 = vpop.f32.mrb[1].mxu0 }
  0xe0   :  { %v1455_v12 = vpop.f32.mrb[0].mxu1  ;;  %v560_v15 = vadd.f32 %v1940_v4, %v559_v13 }
  0xe1   :  { %v725_v14 = vadd.f32 %v1455_v12, %v1940_v4  ;;  %v719_v16 = vpop.f32.mrb[1].mxu1  ;;  %880 = vst.msk [vmem:[%s2727_s5 + $0x8] sm:$0xff] %vm878_vm1, %v565_v11  ;;  %1009 = vrot.lane.b32.xlu0 %v565_v11, %s1504_s4 }
  0xe2   :  { %v720_v17 = vadd.f32 %v1940_v4, %v719_v16  ;;  %879 = vst.msk [vmem:[%s2727_s5] sm:$0xff] %vm878_vm1, %v560_v15  ;;  %v1410_v18 = vpop.f32.mrb[2].mxu0 }
  0xe3   :  { %912 = vst.msk [vmem:[%s2727_s5 + $0x108] sm:$0xff] %vm878_vm1, %v725_v14  ;;  %1073 = vrot.lane.b32.xlu1 %v725_v14, %s1504_s4  ;;  %v575_v19 = vadd.f32 %v1410_v18, %v1940_v4  ;;  %v569_v20 = vpop.f32.mrb[3].mxu0 }
  0xe4   :  { %911 = vst.msk [vmem:[%s2727_s5 + $0x100] sm:$0xff] %vm878_vm1, %v720_v17  ;;  %v1458_v21 = vpop.f32.mrb[2].mxu1  ;;  %v570_v22 = vadd.f32 %v1940_v4, %v569_v20 }
  0xe5   :  { %v735_v23 = vadd.f32 %v1458_v21, %v1940_v4  ;;  %v729_v24 = vpop.f32.mrb[3].mxu1  ;;  %882 = vst.msk [vmem:[%s2727_s5 + $0x18] sm:$0xff] %vm878_vm1, %v575_v19  ;;  %1007 = vrot.lane.b32.xlu0 %v560_v15, %s1504_s4 }
  0xe6   :  { %v730_v25 = vadd.f32 %v1940_v4, %v729_v24  ;;  %881 = vst.msk [vmem:[%s2727_s5 + $0x10] sm:$0xff] %vm878_vm1, %v570_v22  ;;  %v1413_v26 = vpop.f32.mrb[4].mxu0 }
  0xe7   :  { %914 = vst.msk [vmem:[%s2727_s5 + $0x118] sm:$0xff] %vm878_vm1, %v735_v23  ;;  %1013 = vrot.lane.b32.xlu1 %v575_v19, %s1504_s4  ;;  %v585_v27 = vadd.f32 %v1413_v26, %v1940_v4  ;;  %v579_v28 = vpop.f32.mrb[5].mxu0 }
  0xe8   :  { %913 = vst.msk [vmem:[%s2727_s5 + $0x110] sm:$0xff] %vm878_vm1, %v730_v25  ;;  %v1461_v29 = vpop.f32.mrb[4].mxu1  ;;  %v580_v30 = vadd.f32 %v1940_v4, %v579_v28 }
  0xe9   :  { %v745_v31 = vadd.f32 %v1461_v29, %v1940_v4  ;;  %v739_v32 = vpop.f32.mrb[5].mxu1  ;;  %1071 = vrot.lane.b32.xlu0 %v720_v17, %s1504_s4  ;;  %884 = vst.msk [vmem:[%s2727_s5 + $0x28] sm:$0xff] %vm878_vm1, %v585_v27 }
  0xea   :  { %v740_v33 = vadd.f32 %v1940_v4, %v739_v32  ;;  %883 = vst.msk [vmem:[%s2727_s5 + $0x20] sm:$0xff] %vm878_vm1, %v580_v30  ;;  %v1416_v34 = vpop.f32.mrb[6].mxu0 }
  0xeb   :  { %1077 = vrot.lane.b32.xlu1 %v735_v23, %s1504_s4  ;;  %916 = vst.msk [vmem:[%s2727_s5 + $0x128] sm:$0xff] %vm878_vm1, %v745_v31  ;;  %v595_v35 = vadd.f32 %v1416_v34, %v1940_v4  ;;  %v589_v36 = vpop.f32.mrb[7].mxu0 }
  0xec   :  { %915 = vst.msk [vmem:[%s2727_s5 + $0x120] sm:$0xff] %vm878_vm1, %v740_v33  ;;  %v1464_v37 = vpop.f32.mrb[6].mxu1  ;;  %v590_v38 = vadd.f32 %v1940_v4, %v589_v36 }
  0xed   :  { %v755_v39 = vadd.f32 %v1464_v37, %v1940_v4  ;;  %v749_v40 = vpop.f32.mrb[7].mxu1  ;;  %1075 = vrot.lane.b32.xlu0 %v730_v25, %s1504_s4  ;;  %886 = vst.msk [vmem:[%s2727_s5 + $0x38] sm:$0xff] %vm878_vm1, %v595_v35 }
  0xee   :  { %v750_v41 = vadd.f32 %v1940_v4, %v749_v40  ;;  %885 = vst.msk [vmem:[%s2727_s5 + $0x30] sm:$0xff] %vm878_vm1, %v590_v38  ;;  %v1419_v42 = vpop.f32.mrb[8].mxu0 }
  0xef   :  { %1011 = vrot.lane.b32.xlu1 %v570_v22, %s1504_s4  ;;  %918 = vst.msk [vmem:[%s2727_s5 + $0x138] sm:$0xff] %vm878_vm1, %v755_v39  ;;  %v2031_v43 = vadd.f32 %v1419_v42, %v1940_v4  ;;  %v599_v44 = vpop.f32.mrb[9].mxu0 }
  0xf0   :  { %917 = vst.msk [vmem:[%s2727_s5 + $0x130] sm:$0xff] %vm878_vm1, %v750_v41  ;;  %v1467_v45 = vpop.f32.mrb[8].mxu1  ;;  %v600_v46 = vadd.f32 %v1940_v4, %v599_v44 }
  0xf1   :  { %v2035_v47 = vadd.f32 %v1467_v45, %v1940_v4  ;;  %v759_v48 = vpop.f32.mrb[9].mxu1  ;;  %1015 = vrot.lane.b32.xlu0 %v580_v30, %s1504_s4  ;;  %888 = vst.msk [vmem:[%s2727_s5 + $0x48] sm:$0xff] %vm878_vm1, %v2031_v43 }
  0xf2   :  { %v2044_v49 = vadd.f32 %v1940_v4, %v759_v48  ;;  %887 = vst.msk [vmem:[%s2727_s5 + $0x40] sm:$0xff] %vm878_vm1, %v600_v46  ;;  %v1422_v50 = vpop.f32.mrb[10].mxu0 }
  0xf3   :  { %1017 = vrot.lane.b32.xlu1 %v585_v27, %s1504_s4  ;;  %920 = vst.msk [vmem:[%s2727_s5 + $0x148] sm:$0xff] %vm878_vm1, %v2035_v47  ;;  %v2062_v51 = vadd.f32 %v1422_v50, %v1940_v4  ;;  %v609_v52 = vpop.f32.mrb[11].mxu0 }
  0xf4   :  { %919 = vst.msk [vmem:[%s2727_s5 + $0x140] sm:$0xff] %vm878_vm1, %v2044_v49  ;;  %v1470_v53 = vpop.f32.mrb[10].mxu1  ;;  %v2065_v54 = vadd.f32 %v1940_v4, %v609_v52 }
  0xf5   :  { %v2068_v55 = vadd.f32 %v1470_v53, %v1940_v4  ;;  %v769_v56 = vpop.f32.mrb[11].mxu1  ;;  %1079 = vrot.lane.b32.xlu0 %v740_v33, %s1504_s4  ;;  %890 = vst.msk [vmem:[%s2727_s5 + $0x58] sm:$0xff] %vm878_vm1, %v2062_v51 }
  0xf6   :  { %v2077_v57 = vadd.f32 %v1940_v4, %v769_v56  ;;  %889 = vst.msk [vmem:[%s2727_s5 + $0x50] sm:$0xff] %vm878_vm1, %v2065_v54  ;;  %v1425_v58 = vpop.f32.mrb[12].mxu0 }
  0xf7   :  { %1081 = vrot.lane.b32.xlu1 %v745_v31, %s1504_s4  ;;  %922 = vst.msk [vmem:[%s2727_s5 + $0x158] sm:$0xff] %vm878_vm1, %v2068_v55  ;;  %v2096_v59 = vadd.f32 %v1425_v58, %v1940_v4  ;;  %v619_v60 = vpop.f32.mrb[13].mxu0 }
  0xf8   :  { %921 = vst.msk [vmem:[%s2727_s5 + $0x150] sm:$0xff] %vm878_vm1, %v2077_v57  ;;  %v1473_v61 = vpop.f32.mrb[12].mxu1  ;;  %v2099_v62 = vadd.f32 %v1940_v4, %v619_v60 }
  0xf9   :  { %v2102_v63 = vadd.f32 %v1473_v61, %v1940_v4  ;;  %v779_v0 = vpop.f32.mrb[13].mxu1  ;;  %1019 = vrot.lane.b32.xlu0 %v590_v38, %s1504_s4  ;;  %892 = vst.msk [vmem:[%s2727_s5 + $0x68] sm:$0xff] %vm878_vm1, %v2096_v59 }
  0xfa   :  { %v2111_v1 = vadd.f32 %v1940_v4, %v779_v0  ;;  %891 = vst.msk [vmem:[%s2727_s5 + $0x60] sm:$0xff] %vm878_vm1, %v2099_v62  ;;  %v1428_v3 = vpop.f32.mrb[14].mxu0 }
  0xfb   :  { %1021 = vrot.lane.b32.xlu1 %v595_v35, %s1504_s4  ;;  %924 = vst.msk [vmem:[%s2727_s5 + $0x168] sm:$0xff] %vm878_vm1, %v2102_v63  ;;  %v2130_v5 = vadd.f32 %v1428_v3, %v1940_v4  ;;  %v629_v6 = vpop.f32.mrb[15].mxu0 }
  0xfc   :  { %923 = vst.msk [vmem:[%s2727_s5 + $0x160] sm:$0xff] %vm878_vm1, %v2111_v1  ;;  %v1476_v7 = vpop.f32.mrb[14].mxu1  ;;  %v2133_v2 = vadd.f32 %v1940_v4, %v629_v6 }
  0xfd   :  { %v2136_v8 = vadd.f32 %v1476_v7, %v1940_v4  ;;  %v789_v9 = vpop.f32.mrb[15].mxu1  ;;  %1083 = vrot.lane.b32.xlu0 %v750_v41, %s1504_s4  ;;  %894 = vst.msk [vmem:[%s2727_s5 + $0x78] sm:$0xff] %vm878_vm1, %v2130_v5 }
  0xfe   :  { %v2145_v10 = vadd.f32 %v1940_v4, %v789_v9  ;;  %893 = vst.msk [vmem:[%s2727_s5 + $0x70] sm:$0xff] %vm878_vm1, %v2133_v2  ;;  %v1431_v11 = vpop.f32.mrb[16].mxu0 }
  0xff   :  { %1085 = vrot.lane.b32.xlu1 %v755_v39, %s1504_s4  ;;  %926 = vst.msk [vmem:[%s2727_s5 + $0x178] sm:$0xff] %vm878_vm1, %v2136_v8  ;;  %v2164_v12 = vadd.f32 %v1431_v11, %v1940_v4  ;;  %v639_v13 = vpop.f32.mrb[17].mxu0 }
 0x100   :  { %925 = vst.msk [vmem:[%s2727_s5 + $0x170] sm:$0xff] %vm878_vm1, %v2145_v10  ;;  %v1479_v14 = vpop.f32.mrb[16].mxu1  ;;  %v2167_v15 = vadd.f32 %v1940_v4, %v639_v13 }
 0x101   :  { %v2170_v16 = vadd.f32 %v1479_v14, %v1940_v4  ;;  %v799_v17 = vpop.f32.mrb[17].mxu1  ;;  %1023 = vrot.lane.b32.xlu0 %v600_v46, %s1504_s4  ;;  %896 = vst.msk [vmem:[%s2727_s5 + $0x88] sm:$0xff] %vm878_vm1, %v2164_v12 }
 0x102   :  { %v2179_v18 = vadd.f32 %v1940_v4, %v799_v17  ;;  %895 = vst.msk [vmem:[%s2727_s5 + $0x80] sm:$0xff] %vm878_vm1, %v2167_v15  ;;  %v1434_v19 = vpop.f32.mrb[18].mxu0 }
 0x103   :  { %1025 = vrot.lane.b32.xlu1 %v2031_v43, %s1504_s4  ;;  %928 = vst.msk [vmem:[%s2727_s5 + $0x188] sm:$0xff] %vm878_vm1, %v2170_v16  ;;  %v2199_v20 = vadd.f32 %v1434_v19, %v1940_v4  ;;  %v649_v21 = vpop.f32.mrb[19].mxu0 }
 0x104   :  { %927 = vst.msk [vmem:[%s2727_s5 + $0x180] sm:$0xff] %vm878_vm1, %v2179_v18  ;;  %v1482_v22 = vpop.f32.mrb[18].mxu1  ;;  %v2202_v23 = vadd.f32 %v1940_v4, %v649_v21 }
 0x105   :  { %v2205_v24 = vadd.f32 %v1482_v22, %v1940_v4  ;;  %v809_v25 = vpop.f32.mrb[19].mxu1  ;;  %1087 = vrot.lane.b32.xlu0 %v2044_v49, %s1504_s4  ;;  %898 = vst.msk [vmem:[%s2727_s5 + $0x98] sm:$0xff] %vm878_vm1, %v2199_v20 }
 0x106   :  { %v2215_v26 = vadd.f32 %v1940_v4, %v809_v25  ;;  %897 = vst.msk [vmem:[%s2727_s5 + $0x90] sm:$0xff] %vm878_vm1, %v2202_v23  ;;  %v1437_v27 = vpop.f32.mrb[20].mxu0 }
 0x107   :  { %1089 = vrot.lane.b32.xlu1 %v2035_v47, %s1504_s4  ;;  %930 = vst.msk [vmem:[%s2727_s5 + $0x198] sm:$0xff] %vm878_vm1, %v2205_v24  ;;  %v2235_v28 = vadd.f32 %v1437_v27, %v1940_v4  ;;  %v659_v29 = vpop.f32.mrb[21].mxu0 }
 0x108   :  { %929 = vst.msk [vmem:[%s2727_s5 + $0x190] sm:$0xff] %vm878_vm1, %v2215_v26  ;;  %v1485_v30 = vpop.f32.mrb[20].mxu1  ;;  %v2238_v31 = vadd.f32 %v1940_v4, %v659_v29 }
 0x109   :  { %v2241_v32 = vadd.f32 %v1485_v30, %v1940_v4  ;;  %v819_v33 = vpop.f32.mrb[21].mxu1  ;;  %1027 = vrot.lane.b32.xlu0 %v2065_v54, %s1504_s4  ;;  %900 = vst.msk [vmem:[%s2727_s5 + $0xa8] sm:$0xff] %vm878_vm1, %v2235_v28 }
 0x10a   :  { %v2251_v34 = vadd.f32 %v1940_v4, %v819_v33  ;;  %899 = vst.msk [vmem:[%s2727_s5 + $0xa0] sm:$0xff] %vm878_vm1, %v2238_v31  ;;  %v1440_v35 = vpop.f32.mrb[22].mxu0 }
 0x10b   :  { %1029 = vrot.lane.b32.xlu1 %v2062_v51, %s1504_s4  ;;  %932 = vst.msk [vmem:[%s2727_s5 + $0x1a8] sm:$0xff] %vm878_vm1, %v2241_v32  ;;  %v2271_v36 = vadd.f32 %v1440_v35, %v1940_v4  ;;  %v669_v37 = vpop.f32.mrb[23].mxu0 }
 0x10c   :  { %931 = vst.msk [vmem:[%s2727_s5 + $0x1a0] sm:$0xff] %vm878_vm1, %v2251_v34  ;;  %v1488_v38 = vpop.f32.mrb[22].mxu1  ;;  %v2274_v39 = vadd.f32 %v1940_v4, %v669_v37 }
 0x10d   :  { %v2277_v40 = vadd.f32 %v1488_v38, %v1940_v4  ;;  %v829_v41 = vpop.f32.mrb[23].mxu1  ;;  %1091 = vrot.lane.b32.xlu0 %v2077_v57, %s1504_s4  ;;  %902 = vst.msk [vmem:[%s2727_s5 + $0xb8] sm:$0xff] %vm878_vm1, %v2271_v36 }
 0x10e   :  { %v2287_v42 = vadd.f32 %v1940_v4, %v829_v41  ;;  %901 = vst.msk [vmem:[%s2727_s5 + $0xb0] sm:$0xff] %vm878_vm1, %v2274_v39  ;;  %v1443_v43 = vpop.f32.mrb[24].mxu0 }
 0x10f   :  { %1093 = vrot.lane.b32.xlu1 %v2068_v55, %s1504_s4  ;;  %934 = vst.msk [vmem:[%s2727_s5 + $0x1b8] sm:$0xff] %vm878_vm1, %v2277_v40  ;;  %v2307_v44 = vadd.f32 %v1443_v43, %v1940_v4  ;;  %v679_v45 = vpop.f32.mrb[25].mxu0 }
 0x110   :  { %933 = vst.msk [vmem:[%s2727_s5 + $0x1b0] sm:$0xff] %vm878_vm1, %v2287_v42  ;;  %v1491_v46 = vpop.f32.mrb[24].mxu1  ;;  %v2310_v47 = vadd.f32 %v1940_v4, %v679_v45 }
 0x111   :  { %v2313_v48 = vadd.f32 %v1491_v46, %v1940_v4  ;;  %v839_v49 = vpop.f32.mrb[25].mxu1  ;;  %1031 = vrot.lane.b32.xlu0 %v2099_v62, %s1504_s4  ;;  %904 = vst.msk [vmem:[%s2727_s5 + $0xc8] sm:$0xff] %vm878_vm1, %v2307_v44 }
 0x112   :  { %v2323_v50 = vadd.f32 %v1940_v4, %v839_v49  ;;  %903 = vst.msk [vmem:[%s2727_s5 + $0xc0] sm:$0xff] %vm878_vm1, %v2310_v47  ;;  %v1446_v51 = vpop.f32.mrb[26].mxu0 }
 0x113   :  { %1033 = vrot.lane.b32.xlu1 %v2096_v59, %s1504_s4  ;;  %936 = vst.msk [vmem:[%s2727_s5 + $0x1c8] sm:$0xff] %vm878_vm1, %v2313_v48  ;;  %v695_v52 = vadd.f32 %v1446_v51, %v1940_v4  ;;  %v689_v53 = vpop.f32.mrb[27].mxu0 }
 0x114   :  { %935 = vst.msk [vmem:[%s2727_s5 + $0x1c0] sm:$0xff] %vm878_vm1, %v2323_v50  ;;  %v1494_v54 = vpop.f32.mrb[26].mxu1  ;;  %v690_v55 = vadd.f32 %v1940_v4, %v689_v53 }
 0x115   :  { %v855_v56 = vadd.f32 %v1494_v54, %v1940_v4  ;;  %v849_v57 = vpop.f32.mrb[27].mxu1  ;;  %1095 = vrot.lane.b32.xlu0 %v2111_v1, %s1504_s4  ;;  %906 = vst.msk [vmem:[%s2727_s5 + $0xd8] sm:$0xff] %vm878_vm1, %v695_v52 }
 0x116   :  { %v850_v58 = vadd.f32 %v1940_v4, %v849_v57  ;;  %905 = vst.msk [vmem:[%s2727_s5 + $0xd0] sm:$0xff] %vm878_vm1, %v690_v55  ;;  %v1449_v59 = vpop.f32.mrb[28].mxu0 }
 0x117   :  { %1097 = vrot.lane.b32.xlu1 %v2102_v63, %s1504_s4  ;;  %938 = vst.msk [vmem:[%s2727_s5 + $0x1d8] sm:$0xff] %vm878_vm1, %v855_v56  ;;  %v705_v60 = vadd.f32 %v1449_v59, %v1940_v4  ;;  %v699_v61 = vpop.f32.mrb[29].mxu0 }
 0x118   :  { %937 = vst.msk [vmem:[%s2727_s5 + $0x1d0] sm:$0xff] %vm878_vm1, %v850_v58  ;;  %v1497_v62 = vpop.f32.mrb[28].mxu1  ;;  %v700_v63 = vadd.f32 %v1940_v4, %v699_v61 }
 0x119   :  { %v865_v0 = vadd.f32 %v1497_v62, %v1940_v4  ;;  %v859_v1 = vpop.f32.mrb[29].mxu1  ;;  %1035 = vrot.lane.b32.xlu0 %v2133_v2, %s1504_s4  ;;  %908 = vst.msk [vmem:[%s2727_s5 + $0xe8] sm:$0xff] %vm878_vm1, %v705_v60 }
 0x11a   :  { %v860_v3 = vadd.f32 %v1940_v4, %v859_v1  ;;  %907 = vst.msk [vmem:[%s2727_s5 + $0xe0] sm:$0xff] %vm878_vm1, %v700_v63  ;;  %v1452_v6 = vpop.f32.mrb[30].mxu0 }
 0x11b   :  { %1037 = vrot.lane.b32.xlu1 %v2130_v5, %s1504_s4  ;;  %940 = vst.msk [vmem:[%s2727_s5 + $0x1e8] sm:$0xff] %vm878_vm1, %v865_v0  ;;  %v715_v7 = vadd.f32 %v1452_v6, %v1940_v4  ;;  %v709_v2 = vpop.f32.mrb[31].mxu0 }
 0x11c   :  { %939 = vst.msk [vmem:[%s2727_s5 + $0x1e0] sm:$0xff] %vm878_vm1, %v860_v3  ;;  %v1500_v5 = vpop.f32.mrb[30].mxu1  ;;  %v710_v9 = vadd.f32 %v1940_v4, %v709_v2 }
 0x11d   :  { %v875_v11 = vadd.f32 %v1500_v5, %v1940_v4  ;;  %v869_v13 = vpop.f32.mrb[31].mxu1  ;;  %1099 = vrot.lane.b32.xlu0 %v2145_v10, %s1504_s4  ;;  %910 = vst.msk [vmem:[%s2727_s5 + $0xf8] sm:$0xff] %vm878_vm1, %v715_v7 }
 0x11e   :  { %v870_v14 = vadd.f32 %v1940_v4, %v869_v13  ;;  %909 = vst.msk [vmem:[%s2727_s5 + $0xf0] sm:$0xff] %vm878_vm1, %v710_v9 }
 0x11f   :  { %1101 = vrot.lane.b32.xlu1 %v2136_v8, %s1504_s4  ;;  %942 = vst.msk [vmem:[%s2727_s5 + $0x1f8] sm:$0xff] %vm878_vm1, %v875_v11 }
 0x120   :  { %941 = vst.msk [vmem:[%s2727_s5 + $0x1f0] sm:$0xff] %vm878_vm1, %v870_v14 }
 0x121   :  { %1039 = vrot.lane.b32.xlu0 %v2167_v15, %s1504_s4 }
 0x123   :  { %1041 = vrot.lane.b32.xlu1 %v2164_v12, %s1504_s4 }
 0x125   :  { %1103 = vrot.lane.b32.xlu0 %v2179_v18, %s1504_s4 }
 0x127   :  { %1105 = vrot.lane.b32.xlu1 %v2170_v16, %s1504_s4 }
 0x129   :  { %1043 = vrot.lane.b32.xlu0 %v2202_v23, %s1504_s4 }
 0x12b   :  { %1045 = vrot.lane.b32.xlu1 %v2199_v20, %s1504_s4 }
 0x12d   :  { %1107 = vrot.lane.b32.xlu0 %v2215_v26, %s1504_s4 }
 0x12f   :  { %1109 = vrot.lane.b32.xlu1 %v2205_v24, %s1504_s4 }
 0x131   :  { %1047 = vrot.lane.b32.xlu0 %v2238_v31, %s1504_s4 }
 0x133   :  { %1049 = vrot.lane.b32.xlu1 %v2235_v28, %s1504_s4 }
 0x135   :  { %1111 = vrot.lane.b32.xlu0 %v2251_v34, %s1504_s4 }
 0x137   :  { %1113 = vrot.lane.b32.xlu1 %v2241_v32, %s1504_s4 }
 0x139   :  { %1051 = vrot.lane.b32.xlu0 %v2274_v39, %s1504_s4 }
 0x13b   :  { %1053 = vrot.lane.b32.xlu1 %v2271_v36, %s1504_s4 }
 0x13d   :  { %1115 = vrot.lane.b32.xlu0 %v2287_v42, %s1504_s4 }
 0x13f   :  { %1117 = vrot.lane.b32.xlu1 %v2277_v40, %s1504_s4 }
 0x141   :  { %1055 = vrot.lane.b32.xlu0 %v2310_v47, %s1504_s4 }
 0x143   :  { %1057 = vrot.lane.b32.xlu1 %v2307_v44, %s1504_s4 }
 0x145   :  { %1119 = vrot.lane.b32.xlu0 %v2323_v50, %s1504_s4 }
 0x147   :  { %1121 = vrot.lane.b32.xlu1 %v2313_v48, %s1504_s4 }
 0x149   :  { %1059 = vrot.lane.b32.xlu0 %v690_v55, %s1504_s4 }
 0x14b   :  { %1061 = vrot.lane.b32.xlu1 %v695_v52, %s1504_s4 }
 0x14d   :  { %1123 = vrot.lane.b32.xlu0 %v850_v58, %s1504_s4 }
 0x14f   :  { %1125 = vrot.lane.b32.xlu1 %v855_v56, %s1504_s4 }
 0x151   :  { %1063 = vrot.lane.b32.xlu0 %v700_v63, %s1504_s4 }
 0x153   :  { %1065 = vrot.lane.b32.xlu1 %v705_v60, %s1504_s4  ;;  %v1010_v4 = vpop.permute.xlu0 %1009 }
 0x154   :  { %1200 = vst.msk [vmem:[%s2728_s6 + $0x8] sm:$0xff] %vm300_vm0, %v1010_v4 }
 0x155   :  { %v1074_v8 = vpop.permute.xlu1 %1073  ;;  %1127 = vrot.lane.b32.xlu0 %v860_v3, %s1504_s4 }
 0x156   :  { %1232 = vst.msk [vmem:[%s2728_s6 + $0x108] sm:$0xff] %vm300_vm0, %v1074_v8 }
 0x157   :  { %1129 = vrot.lane.b32.xlu1 %v865_v0, %s1504_s4  ;;  %v1008_v10 = vpop.permute.xlu0 %1007 }
 0x158   :  { %1199 = vst.msk [vmem:[%s2728_s6] sm:$0xff] %vm300_vm0, %v1008_v10 }
 0x159   :  { %v1014_v12 = vpop.permute.xlu1 %1013  ;;  %1067 = vrot.lane.b32.xlu0 %v710_v9, %s1504_s4 }
 0x15a   :  { %1202 = vst.msk [vmem:[%s2728_s6 + $0x18] sm:$0xff] %vm300_vm0, %v1014_v12 }
 0x15b   :  { %1069 = vrot.lane.b32.xlu1 %v715_v7, %s1504_s4  ;;  %v1072_v15 = vpop.permute.xlu0 %1071 }
 0x15c   :  { %1231 = vst.msk [vmem:[%s2728_s6 + $0x100] sm:$0xff] %vm300_vm0, %v1072_v15 }
 0x15d   :  { %v1078_v16 = vpop.permute.xlu1 %1077  ;;  %1131 = vrot.lane.b32.xlu0 %v870_v14, %s1504_s4 }
 0x15e   :  { %1234 = vst.msk [vmem:[%s2728_s6 + $0x118] sm:$0xff] %vm300_vm0, %v1078_v16 }
 0x15f   :  { %1133 = vrot.lane.b32.xlu1 %v875_v11, %s1504_s4  ;;  %v1076_v17 = vpop.permute.xlu0 %1075 }
 0x160   :  { %1233 = vst.msk [vmem:[%s2728_s6 + $0x110] sm:$0xff] %vm300_vm0, %v1076_v17 }
 0x161   :  { %v1012_v18 = vpop.permute.xlu1 %1011 }
 0x162   :  { %1201 = vst.msk [vmem:[%s2728_s6 + $0x10] sm:$0xff] %vm300_vm0, %v1012_v18 }
 0x163   :  { %v1016_v19 = vpop.permute.xlu0 %1015 }
 0x164   :  { %1203 = vst.msk [vmem:[%s2728_s6 + $0x20] sm:$0xff] %vm300_vm0, %v1016_v19 }
 0x165   :  { %v1018_v20 = vpop.permute.xlu1 %1017 }
 0x166   :  { %1204 = vst.msk [vmem:[%s2728_s6 + $0x28] sm:$0xff] %vm300_vm0, %v1018_v20 }
 0x167   :  { %v1080_v21 = vpop.permute.xlu0 %1079 }
 0x168   :  { %1235 = vst.msk [vmem:[%s2728_s6 + $0x120] sm:$0xff] %vm300_vm0, %v1080_v21 }
 0x169   :  { %v1082_v22 = vpop.permute.xlu1 %1081 }
 0x16a   :  { %1236 = vst.msk [vmem:[%s2728_s6 + $0x128] sm:$0xff] %vm300_vm0, %v1082_v22 }
 0x16b   :  { %v1020_v23 = vpop.permute.xlu0 %1019 }
 0x16c   :  { %1205 = vst.msk [vmem:[%s2728_s6 + $0x30] sm:$0xff] %vm300_vm0, %v1020_v23 }
 0x16d   :  { %v1022_v24 = vpop.permute.xlu1 %1021 }
 0x16e   :  { %1206 = vst.msk [vmem:[%s2728_s6 + $0x38] sm:$0xff] %vm300_vm0, %v1022_v24 }
 0x16f   :  { %v1084_v25 = vpop.permute.xlu0 %1083 }
 0x170   :  { %1237 = vst.msk [vmem:[%s2728_s6 + $0x130] sm:$0xff] %vm300_vm0, %v1084_v25 }
 0x171   :  { %v1086_v26 = vpop.permute.xlu1 %1085 }
 0x172   :  { %1238 = vst.msk [vmem:[%s2728_s6 + $0x138] sm:$0xff] %vm300_vm0, %v1086_v26 }
 0x173   :  { %v1024_v27 = vpop.permute.xlu0 %1023 }
 0x174   :  { %1207 = vst.msk [vmem:[%s2728_s6 + $0x40] sm:$0xff] %vm300_vm0, %v1024_v27 }
 0x175   :  { %v1026_v28 = vpop.permute.xlu1 %1025 }
 0x176   :  { %1208 = vst.msk [vmem:[%s2728_s6 + $0x48] sm:$0xff] %vm300_vm0, %v1026_v28 }
 0x177   :  { %v1088_v29 = vpop.permute.xlu0 %1087 }
 0x178   :  { %1239 = vst.msk [vmem:[%s2728_s6 + $0x140] sm:$0xff] %vm300_vm0, %v1088_v29 }
 0x179   :  { %v1090_v30 = vpop.permute.xlu1 %1089 }
 0x17a   :  { %1240 = vst.msk [vmem:[%s2728_s6 + $0x148] sm:$0xff] %vm300_vm0, %v1090_v30 }
 0x17b   :  { %v1028_v31 = vpop.permute.xlu0 %1027 }
 0x17c   :  { %1209 = vst.msk [vmem:[%s2728_s6 + $0x50] sm:$0xff] %vm300_vm0, %v1028_v31 }
 0x17d   :  { %v1030_v32 = vpop.permute.xlu1 %1029 }
 0x17e   :  { %1210 = vst.msk [vmem:[%s2728_s6 + $0x58] sm:$0xff] %vm300_vm0, %v1030_v32 }
 0x17f   :  { %v1092_v33 = vpop.permute.xlu0 %1091 }
 0x180   :  { %1241 = vst.msk [vmem:[%s2728_s6 + $0x150] sm:$0xff] %vm300_vm0, %v1092_v33 }
 0x181   :  { %v1094_v34 = vpop.permute.xlu1 %1093 }
 0x182   :  { %1242 = vst.msk [vmem:[%s2728_s6 + $0x158] sm:$0xff] %vm300_vm0, %v1094_v34 }
 0x183   :  { %v1032_v35 = vpop.permute.xlu0 %1031 }
 0x184   :  { %1211 = vst.msk [vmem:[%s2728_s6 + $0x60] sm:$0xff] %vm300_vm0, %v1032_v35 }
 0x185   :  { %v1034_v36 = vpop.permute.xlu1 %1033 }
 0x186   :  { %1212 = vst.msk [vmem:[%s2728_s6 + $0x68] sm:$0xff] %vm300_vm0, %v1034_v36 }
 0x187   :  { %v1096_v37 = vpop.permute.xlu0 %1095 }
 0x188   :  { %1243 = vst.msk [vmem:[%s2728_s6 + $0x160] sm:$0xff] %vm300_vm0, %v1096_v37 }
 0x189   :  { %v1098_v38 = vpop.permute.xlu1 %1097 }
 0x18a   :  { %1244 = vst.msk [vmem:[%s2728_s6 + $0x168] sm:$0xff] %vm300_vm0, %v1098_v38 }
 0x18b   :  { %v1036_v39 = vpop.permute.xlu0 %1035 }
 0x18c   :  { %1213 = vst.msk [vmem:[%s2728_s6 + $0x70] sm:$0xff] %vm300_vm0, %v1036_v39 }
 0x18d   :  { %v1038_v40 = vpop.permute.xlu1 %1037 }
 0x18e   :  { %1214 = vst.msk [vmem:[%s2728_s6 + $0x78] sm:$0xff] %vm300_vm0, %v1038_v40 }
 0x18f   :  { %v1100_v41 = vpop.permute.xlu0 %1099 }
 0x190   :  { %1245 = vst.msk [vmem:[%s2728_s6 + $0x170] sm:$0xff] %vm300_vm0, %v1100_v41 }
 0x191   :  { %v1102_v42 = vpop.permute.xlu1 %1101 }
 0x192   :  { %1246 = vst.msk [vmem:[%s2728_s6 + $0x178] sm:$0xff] %vm300_vm0, %v1102_v42 }
 0x193   :  { %v1040_v43 = vpop.permute.xlu0 %1039 }
 0x194   :  { %1215 = vst.msk [vmem:[%s2728_s6 + $0x80] sm:$0xff] %vm300_vm0, %v1040_v43 }
 0x195   :  { %v1042_v44 = vpop.permute.xlu1 %1041 }
 0x196   :  { %1216 = vst.msk [vmem:[%s2728_s6 + $0x88] sm:$0xff] %vm300_vm0, %v1042_v44 }
 0x197   :  { %v1104_v45 = vpop.permute.xlu0 %1103 }
 0x198   :  { %1247 = vst.msk [vmem:[%s2728_s6 + $0x180] sm:$0xff] %vm300_vm0, %v1104_v45 }
 0x199   :  { %v1106_v46 = vpop.permute.xlu1 %1105 }
 0x19a   :  { %1248 = vst.msk [vmem:[%s2728_s6 + $0x188] sm:$0xff] %vm300_vm0, %v1106_v46 }
 0x19b   :  { %v1044_v47 = vpop.permute.xlu0 %1043 }
 0x19c   :  { %1217 = vst.msk [vmem:[%s2728_s6 + $0x90] sm:$0xff] %vm300_vm0, %v1044_v47 }
 0x19d   :  { %v1046_v48 = vpop.permute.xlu1 %1045 }
 0x19e   :  { %1218 = vst.msk [vmem:[%s2728_s6 + $0x98] sm:$0xff] %vm300_vm0, %v1046_v48 }
 0x19f   :  { %v1108_v49 = vpop.permute.xlu0 %1107 }
 0x1a0   :  { %1249 = vst.msk [vmem:[%s2728_s6 + $0x190] sm:$0xff] %vm300_vm0, %v1108_v49 }
 0x1a1   :  { %v1110_v50 = vpop.permute.xlu1 %1109 }
 0x1a2   :  { %1250 = vst.msk [vmem:[%s2728_s6 + $0x198] sm:$0xff] %vm300_vm0, %v1110_v50 }
 0x1a3   :  { %v1048_v51 = vpop.permute.xlu0 %1047 }
 0x1a4   :  { %1219 = vst.msk [vmem:[%s2728_s6 + $0xa0] sm:$0xff] %vm300_vm0, %v1048_v51 }
 0x1a5   :  { %v1050_v52 = vpop.permute.xlu1 %1049 }
 0x1a6   :  { %1220 = vst.msk [vmem:[%s2728_s6 + $0xa8] sm:$0xff] %vm300_vm0, %v1050_v52 }
 0x1a7   :  { %v1112_v53 = vpop.permute.xlu0 %1111 }
 0x1a8   :  { %1251 = vst.msk [vmem:[%s2728_s6 + $0x1a0] sm:$0xff] %vm300_vm0, %v1112_v53 }
 0x1a9   :  { %v1114_v54 = vpop.permute.xlu1 %1113 }
 0x1aa   :  { %1252 = vst.msk [vmem:[%s2728_s6 + $0x1a8] sm:$0xff] %vm300_vm0, %v1114_v54 }
 0x1ab   :  { %v1052_v55 = vpop.permute.xlu0 %1051 }
 0x1ac   :  { %1221 = vst.msk [vmem:[%s2728_s6 + $0xb0] sm:$0xff] %vm300_vm0, %v1052_v55 }
 0x1ad   :  { %v1054_v56 = vpop.permute.xlu1 %1053 }
 0x1ae   :  { %1222 = vst.msk [vmem:[%s2728_s6 + $0xb8] sm:$0xff] %vm300_vm0, %v1054_v56 }
 0x1af   :  { %v1116_v57 = vpop.permute.xlu0 %1115 }
 0x1b0   :  { %1253 = vst.msk [vmem:[%s2728_s6 + $0x1b0] sm:$0xff] %vm300_vm0, %v1116_v57 }
 0x1b1   :  { %v1118_v58 = vpop.permute.xlu1 %1117 }
 0x1b2   :  { %1254 = vst.msk [vmem:[%s2728_s6 + $0x1b8] sm:$0xff] %vm300_vm0, %v1118_v58 }
 0x1b3   :  { %v1056_v59 = vpop.permute.xlu0 %1055 }
 0x1b4   :  { %1223 = vst.msk [vmem:[%s2728_s6 + $0xc0] sm:$0xff] %vm300_vm0, %v1056_v59 }
 0x1b5   :  { %v1058_v60 = vpop.permute.xlu1 %1057 }
 0x1b6   :  { %1224 = vst.msk [vmem:[%s2728_s6 + $0xc8] sm:$0xff] %vm300_vm0, %v1058_v60 }
 0x1b7   :  { %v1120_v61 = vpop.permute.xlu0 %1119 }
 0x1b8   :  { %1255 = vst.msk [vmem:[%s2728_s6 + $0x1c0] sm:$0xff] %vm300_vm0, %v1120_v61 }
 0x1b9   :  { %v1122_v62 = vpop.permute.xlu1 %1121 }
 0x1ba   :  { %1256 = vst.msk [vmem:[%s2728_s6 + $0x1c8] sm:$0xff] %vm300_vm0, %v1122_v62 }
 0x1bb   :  { %v1060_v63 = vpop.permute.xlu0 %1059 }
 0x1bc   :  { %1225 = vst.msk [vmem:[%s2728_s6 + $0xd0] sm:$0xff] %vm300_vm0, %v1060_v63 }
 0x1bd   :  { %v1062_v0 = vpop.permute.xlu1 %1061 }
 0x1be   :  { %1226 = vst.msk [vmem:[%s2728_s6 + $0xd8] sm:$0xff] %vm300_vm0, %v1062_v0 }
 0x1bf   :  { %v1124_v1 = vpop.permute.xlu0 %1123 }
 0x1c0   :  { %1257 = vst.msk [vmem:[%s2728_s6 + $0x1d0] sm:$0xff] %vm300_vm0, %v1124_v1 }
 0x1c1   :  { %v1126_v3 = vpop.permute.xlu1 %1125 }
 0x1c2   :  { %1258 = vst.msk [vmem:[%s2728_s6 + $0x1d8] sm:$0xff] %vm300_vm0, %v1126_v3 }
 0x1c3   :  { %v1064_v6 = vpop.permute.xlu0 %1063 }
 0x1c4   :  { %1227 = vst.msk [vmem:[%s2728_s6 + $0xe0] sm:$0xff] %vm300_vm0, %v1064_v6 }
 0x1c5   :  { %v1066_v7 = vpop.permute.xlu1 %1065 }
 0x1c6   :  { %1228 = vst.msk [vmem:[%s2728_s6 + $0xe8] sm:$0xff] %vm300_vm0, %v1066_v7 }
 0x1c7   :  { %v1128_v2 = vpop.permute.xlu0 %1127 }
 0x1c8   :  { %1259 = vst.msk [vmem:[%s2728_s6 + $0x1e0] sm:$0xff] %vm300_vm0, %v1128_v2 }
 0x1c9   :  { %v1130_v5 = vpop.permute.xlu1 %1129 }
 0x1ca   :  { %1260 = vst.msk [vmem:[%s2728_s6 + $0x1e8] sm:$0xff] %vm300_vm0, %v1130_v5 }
 0x1cb   :  { %v1068_v9 = vpop.permute.xlu0 %1067 }
 0x1cc   :  { %1229 = vst.msk [vmem:[%s2728_s6 + $0xf0] sm:$0xff] %vm300_vm0, %v1068_v9 }
 0x1cd   :  { %v1070_v11 = vpop.permute.xlu1 %1069 }
 0x1ce   :  { %1230 = vst.msk [vmem:[%s2728_s6 + $0xf8] sm:$0xff] %vm300_vm0, %v1070_v11 }
 0x1cf   :  { %v1132_v13 = vpop.permute.xlu0 %1131 }
 0x1d0   :  { %1261 = vst.msk [vmem:[%s2728_s6 + $0x1f0] sm:$0xff] %vm300_vm0, %v1132_v13 }
 0x1d1   :  { %v1134_v14 = vpop.permute.xlu1 %1133 }
 0x1d2   :  { %1262 = vst.msk [vmem:[%s2728_s6 + $0x1f8] sm:$0xff] %vm300_vm0, %v1134_v14 }

</bundles_post_ra>
